<compile_context>
chip_gen: v5e
topology: v5e:2x2
jax: 0.10.0
libtpu: 0.0.40
codegen_flags: <defaults>
</compile_context>

<pallas_src>
import numpy as np
import jax
import jax.numpy as jnp
from jax.experimental import pallas as pl
from jax.experimental.pallas import tpu as pltpu


# ----------------------------------------------------------------------------
# Hardware queries (best effort, safe fallbacks)
# ----------------------------------------------------------------------------
def _vmem_limit_bytes():
    """Scoped-VMEM limit: ~75% of physical per generation, conservative fallback."""
    cap = 64 * 1024 * 1024  # conservative: v7x physical is 64 MiB
    try:
        cap = int(pltpu.get_tpu_info().vmem_capacity_bytes)
    except Exception:
        pass
    return min(int(cap * 0.75), 96 * 1024 * 1024)


def _is_multi_tensorcore_chip():
    """True on chips with 2 TensorCores sharing HBM (v4/v5p megacore, v7x)."""
    try:
        kind = jax.devices()[0].device_kind.lower()
    except Exception:
        return False
    return ("v7" in kind) or ("v4" in kind) or ("v5p" in kind)


def _buffered_spec(block_shape, index_map, n_buffers):
    """BlockSpec with deeper multi-buffering when supported (else default 2)."""
    if n_buffers > 2:
        try:
            return pl.BlockSpec(block_shape, index_map,
                                pipeline_mode=pl.Buffered(n_buffers))
        except TypeError:
            pass
    return pl.BlockSpec(block_shape, index_map)


# ----------------------------------------------------------------------------
# Tiling helpers
# ----------------------------------------------------------------------------
def _largest_tile(dim, cap, align):
    """Largest divisor of `dim` <= cap that is a multiple of `align`.
    Falls back to the full dim (always a legal block size) if none exists."""
    if dim <= cap:
        return dim
    t = (cap // align) * align
    while t >= align:
        if dim % t == 0:
            return t
        t -= align
    return dim


def _aligned_divisors(dim, align):
    divs = [d for d in range(align, dim + 1, align) if dim % d == 0]
    return sorted(divs or [dim], reverse=True)


def _pick_tm(M, tk, tn, *, x_item, w_item, out_item, w_buf, use_acc,
             tm_cap, vmem_budget):
    """Largest aligned divisor of M that keeps the tile set within the VMEM budget."""
    candidates = [d for d in _aligned_divisors(M, 8) if d <= tm_cap]
    if not candidates:
        candidates = [min(_aligned_divisors(M, 8))]
    for tm in candidates:
        used = (2 * tm * tk * x_item          # x double-buffered
                + w_buf * tk * tn * w_item    # streamed weight buffers
                + 2 * tn * 4                  # bias
                + 2 * tm * tn * out_item      # output double-buffered
                + (tm * tn * 4 if use_acc else 0))
        if used <= vmem_budget:
            return tm
    return candidates[-1]


# ----------------------------------------------------------------------------
# 2x2 average pooling over (H, W)
# ----------------------------------------------------------------------------
def _pool_kernel(x_ref, o_ref):
    # x_ref block: (F, 2, Wp, 2*C)
    #   axis 1 holds the H pair (h = 2*hp, 2*hp+1)
    #   last axis packs the W pair with channels: index = w_offset*C + c
    c = x_ref.shape[-1] // 2
    x = x_ref[...].astype(jnp.float32)                        # accumulate in f32
    hsum = x[:, 0] + x[:, 1]                                  # sum over H pair -> (F, Wp, 2C)
    o_ref[...] = ((hsum[..., :c] + hsum[..., c:]) * 0.25).astype(o_ref.dtype)


def avg_pool_2x2(x, *, out_dtype=None, block_bytes=8 * 1024 * 1024):
    """2x2 stride-2 average pool over (H, W) of a (B, T, H, W, C) array."""
    B, T, H, W, C = x.shape
    assert H % 2 == 0 and W % 2 == 0
    Hp, Wp = H // 2, W // 2
    P = B * T * Hp
    out_dtype = out_dtype if out_dtype is not None else x.dtype
    # pure reshape (no data movement): (B,T,H,W,C) -> (B*T*Hp, 2, Wp, 2*C)
    xr = x.reshape(P, 2, Wp, 2 * C)
    # Coarsen the grid: as many H-row-pairs per step as fit the byte budget.
    rowpair_bytes = 2 * Wp * 2 * C * x.dtype.itemsize
    F = int(max(1, min(P, block_bytes // rowpair_bytes)))
    while P % F:
        F -= 1
    out = pl.pallas_call(
        _pool_kernel,
        out_shape=jax.ShapeDtypeStruct((P, Wp, C), out_dtype),
        grid=(P // F,),
        in_specs=[pl.BlockSpec((F, 2, Wp, 2 * C), lambda i: (i, 0, 0, 0))],
        out_specs=pl.BlockSpec((F, Wp, C), lambda i: (i, 0, 0)),
        compiler_params=pltpu.CompilerParams(
            dimension_semantics=("parallel",),
            vmem_limit_bytes=_vmem_limit_bytes()),
    )(xr)
    return out.reshape(B, T, Hp, Wp, C)


# ----------------------------------------------------------------------------
# Tiled Linear (y = x @ W_t + b) on the MXU
# ----------------------------------------------------------------------------
def _matmul_bias_kernel(x_ref, w_ref, b_ref, o_ref, acc_ref):
    k = pl.program_id(2)

    @pl.when(k == 0)
    def _():
        acc_ref[...] = jnp.zeros_like(acc_ref)

    acc_ref[...] += jnp.dot(x_ref[...], w_ref[...],
                            preferred_element_type=jnp.float32)

    @pl.when(k == pl.num_programs(2) - 1)
    def _():
        o_ref[...] = (acc_ref[...] + b_ref[...]).astype(o_ref.dtype)


def _matmul_bias_single_k_kernel(x_ref, w_ref, b_ref, o_ref):
    # Full K in one shot: no accumulator scratch / pl.when phases needed.
    o_ref[...] = (jnp.dot(x_ref[...], w_ref[...],
                          preferred_element_type=jnp.float32)
                  + b_ref[...]).astype(o_ref.dtype)


def linear_pallas(x, w_t, b, *, out_dtype=None,
                  tm_cap=1024, tk_cap=2048, tn_cap=2048,
                  split_n_for_cores=None, w_buffers=3):
    """x: (M, K), w_t: (K, N), b: (N,) -> (M, N) with f32 MXU accumulation."""
    M, K = x.shape
    K2, N = w_t.shape
    assert K == K2 and b.shape == (N,)
    out_dtype = out_dtype if out_dtype is not None else x.dtype
    if split_n_for_cores is None:
        split_n_for_cores = _is_multi_tensorcore_chip()

    vmem_limit = _vmem_limit_bytes()
    vmem_budget = int(vmem_limit * 0.85)

    tk = _largest_tile(K, tk_cap, 128)    # K=49*2048 -> tk=2048 (49 k-steps)
    tn = _largest_tile(N, tn_cap, 128)    # N=2048 -> tn=N on single-TC chips

    # On 2-TensorCore chips, make sure there is a parallel axis with >= 2 tiles so
    # both cores pull disjoint halves of the (dominant) weight stream.
    if split_n_for_cores and (N // tn) < 2 and M <= tm_cap:
        half = tn // 2
        if half >= 128 and half % 128 == 0 and N % half == 0:
            tn = half

    multi_k = tk < K
    x_item = x.dtype.itemsize
    w_item = w_t.dtype.itemsize
    out_item = jnp.dtype(out_dtype).itemsize
    w_buf = w_buffers if multi_k else 2

    tm = _pick_tm(M, tk, tn, x_item=x_item, w_item=w_item, out_item=out_item,
                  w_buf=w_buf, use_acc=multi_k, tm_cap=tm_cap,
                  vmem_budget=vmem_budget)

    b2 = b.reshape(1, N)
    n_j = N // tn
    cost = pl.CostEstimate(
        flops=2 * M * K * N,
        transcendentals=0,
        bytes_accessed=(K * N * w_item            # weights streamed once
                        + n_j * M * K * x_item    # activations per N tile
                        + M * N * out_item))

    if not multi_k:
        # Single K step (e.g. the 2048 -> 4096 mapping): bias-fused one-shot matmul.
        return pl.pallas_call(
            _matmul_bias_single_k_kernel,
            out_shape=jax.ShapeDtypeStruct((M, N), out_dtype),
            grid_spec=pltpu.PrefetchScalarGridSpec(
                num_scalar_prefetch=0,
                grid=(M // tm, N // tn),
                in_specs=[pl.BlockSpec((tm, K), lambda i, j: (i, 0)),
                          pl.BlockSpec((K, tn), lambda i, j: (0, j)),
                          pl.BlockSpec((1, tn), lambda i, j: (0, j))],
                out_specs=pl.BlockSpec((tm, tn), lambda i, j: (i, j))),
            compiler_params=pltpu.CompilerParams(
                dimension_semantics=("parallel", "parallel"),
                vmem_limit_bytes=vmem_limit),
            cost_estimate=cost,
        )(x, w_t, b2)

    # K streamed on the innermost ("arbitrary") axis with an f32 VMEM accumulator.
    # The streamed weight operand gets 3-deep buffering to hide per-step bubbles.
    return pl.pallas_call(
        _matmul_bias_kernel,
        out_shape=jax.ShapeDtypeStruct((M, N), out_dtype),
        grid_spec=pltpu.PrefetchScalarGridSpec(
            num_scalar_prefetch=0,
            grid=(M // tm, N // tn, K // tk),
            in_specs=[pl.BlockSpec((tm, tk), lambda i, j, k: (i, k)),
                      _buffered_spec((tk, tn), lambda i, j, k: (k, j), w_buf),
                      pl.BlockSpec((1, tn), lambda i, j, k: (0, j))],
            out_specs=pl.BlockSpec((tm, tn), lambda i, j, k: (i, j)),
            scratch_shapes=[pltpu.VMEM((tm, tn), jnp.float32)]),
        compiler_params=pltpu.CompilerParams(
            dimension_semantics=("parallel", "parallel", "arbitrary"),
            vmem_limit_bytes=vmem_limit),
        cost_estimate=cost,
    )(x, w_t, b2)


# ----------------------------------------------------------------------------
# Module: parameters + forward
# ----------------------------------------------------------------------------
def init_params(key, *, pooled_hw, c, d1, d2,
                weight_dtype=jnp.bfloat16, bias_dtype=jnp.float32):
    """nn.Linear-style init: U(-1/sqrt(fan_in), 1/sqrt(fan_in)); weights stored (K, N)."""
    k_in1 = pooled_hw * c
    k1, k2, k3, k4 = jax.random.split(key, 4)
    lim1 = 1.0 / np.sqrt(k_in1)
    lim2 = 1.0 / np.sqrt(d1)
    return {
        "w1_t": jax.random.uniform(k1, (k_in1, d1), jnp.float32, -lim1, lim1).astype(weight_dtype),
        "b1":   jax.random.uniform(k2, (d1,), bias_dtype, -lim1, lim1),
        "w2_t": jax.random.uniform(k3, (d1, d2), jnp.float32, -lim2, lim2).astype(weight_dtype),
        "b2":   jax.random.uniform(k4, (d2,), bias_dtype, -lim2, lim2),
    }


def multi_modal_projector(visual_inputs, params, *, t, h, w, c,
                          compute_dtype=jnp.bfloat16):
    B = visual_inputs.shape[0]
    att = visual_inputs.reshape(B, t, h, w, c)                 # == .view(B,24,14,14,2048)
    pooled = avg_pool_2x2(att, out_dtype=compute_dtype)        # 2x2 avg-pool, bf16 out
    feats = pooled.reshape(B * t, (h // 2) * (w // 2) * c)     # pure reshape
    w1 = params["w1_t"].astype(compute_dtype)
    w2 = params["w2_t"].astype(compute_dtype)
    # TODO(synk): optional int8 (v5e/v6e) / fp8 (v7x) weight path with per-output-channel
    #             scales applied in the matmul epilogue would ~halve the dominant w1 HBM bytes.
    y = linear_pallas(feats, w1, params["b1"], out_dtype=compute_dtype)  # global_feature_extraction
    z = linear_pallas(y, w2, params["b2"], out_dtype=compute_dtype)      # global_feature_mapping
    d2 = params["b2"].shape[0]
    return z.reshape(B, t, d2)


def reference(visual_inputs, params, *, t, h, w, c, compute_dtype=jnp.bfloat16):
    B = visual_inputs.shape[0]
    att = visual_inputs.reshape(B, t, h, w, c).astype(jnp.float32)
    pooled = att.reshape(B, t, h // 2, 2, w // 2, 2, c).mean(axis=(3, 5)).astype(compute_dtype)
    feats = pooled.reshape(B, t, -1)
    w1 = params["w1_t"].astype(compute_dtype)
    w2 = params["w2_t"].astype(compute_dtype)
    y = (jnp.einsum("btk,kn->btn", feats, w1,
                    preferred_element_type=jnp.float32) + params["b1"]).astype(compute_dtype)
    z = (jnp.einsum("btk,kn->btn", y, w2,
                    preferred_element_type=jnp.float32) + params["b2"]).astype(compute_dtype)
    return z


if __name__ == "__main__":
    # Real module dims: T=24, H=W=14, C=2048, D1=2048, D2=4096.
    # Demo keeps the exact structure (24 frames, 14x14 -> 7x7=49 tokens) at reduced
    # channel widths; both the multi-K-step and single-K-step matmul paths run.
    B, T, H, W, C = 2, 24, 14, 14, 128
    D1, D2 = 256, 512

    key = jax.random.PRNGKey(0)
    kx, kp = jax.random.split(key)
    visual_inputs = jax.random.normal(kx, (B, T, H, W, C), dtype=jnp.float32)
    params = init_params(kp, pooled_hw=(H // 2) * (W // 2), c=C, d1=D1, d2=D2)

    out = multi_modal_projector(visual_inputs, params, t=T, h=H, w=W, c=C)
    out = jax.block_until_ready(out)
    assert out.shape == (B, T, D2), out.shape

    ref = reference(visual_inputs, params, t=T, h=H, w=W, c=C)
    np.testing.assert_allclose(np.asarray(out, dtype=np.float32),
                               np.asarray(ref, dtype=np.float32),
                               rtol=1e-2, atol=1e-2)
    print("KERNEL_OK")
</pallas_src>

<mosaic_0001>
module attributes {stable_mosaic.version = 11 : i64} {
  func.func @_pool_kernel(%arg0: i32, %arg1: memref<336x2x7x256xf32, #tpu.memory_space<vmem>>, %arg2: memref<336x7x128xbf16, #tpu.memory_space<vmem>>) attributes {dimension_semantics = [#tpu.dimension_semantics<parallel>], iteration_bounds = array<i64: 1>, scalar_prefetch = 0 : i64, scratch_operands = 0 : i64, tpu.core_type = #tpu.core_type<tc>, window_params = [{transform_indices = @transform_0, window_bounds = array<i64: 336, 2, 7, 256>}, {transform_indices = @transform_1, window_bounds = array<i64: 336, 7, 128>}]} {
    %c0 = arith.constant 0 : index
    %c0_0 = arith.constant 0 : index
    %c0_1 = arith.constant 0 : index
    %c0_2 = arith.constant 0 : index
    %0 = vector.load %arg1[%c0, %c0_0, %c0_1, %c0_2] : memref<336x2x7x256xf32, #tpu.memory_space<vmem>>, vector<336x2x7x256xf32>
    %1 = vector.extract_strided_slice %0 {offsets = [0, 0, 0, 0], sizes = [336, 1, 7, 256], strides = [1, 1, 1, 1]} : vector<336x2x7x256xf32> to vector<336x1x7x256xf32>
    %2 = vector.shape_cast %1 : vector<336x1x7x256xf32> to vector<336x7x256xf32>
    %3 = vector.extract_strided_slice %0 {offsets = [0, 1, 0, 0], sizes = [336, 1, 7, 256], strides = [1, 1, 1, 1]} : vector<336x2x7x256xf32> to vector<336x1x7x256xf32>
    %4 = vector.shape_cast %3 : vector<336x1x7x256xf32> to vector<336x7x256xf32>
    %5 = arith.addf %2, %4 : vector<336x7x256xf32>
    %6 = vector.extract_strided_slice %5 {offsets = [0, 0, 0], sizes = [336, 7, 128], strides = [1, 1, 1]} : vector<336x7x256xf32> to vector<336x7x128xf32>
    %7 = vector.extract_strided_slice %5 {offsets = [0, 0, 128], sizes = [336, 7, 128], strides = [1, 1, 1]} : vector<336x7x256xf32> to vector<336x7x128xf32>
    %8 = arith.addf %6, %7 : vector<336x7x128xf32>
    %cst = arith.constant 2.500000e-01 : f32
    %9 = vector.broadcast %cst : f32 to vector<336x7x128xf32>
    %10 = arith.mulf %8, %9 : vector<336x7x128xf32>
    %11 = arith.truncf %10 : vector<336x7x128xf32> to vector<336x7x128xbf16>
    %c0_3 = arith.constant 0 : index
    %c0_4 = arith.constant 0 : index
    %c0_5 = arith.constant 0 : index
    %12 = vector.load %arg2[%c0_3, %c0_4, %c0_5] : memref<336x7x128xbf16, #tpu.memory_space<vmem>>, vector<336x7x128xbf16>
    tpu.vector_store %arg2[%c0_3, %c0_4, %c0_5], %11 {strides = array<i32>} : memref<336x7x128xbf16, #tpu.memory_space<vmem>>, vector<336x7x128xbf16>,
    return
  }
  func.func @transform_0(%arg0: i32) -> (i32, i32, i32, i32) {
    %c0_i32 = arith.constant 0 : i32
    %c0_i32_0 = arith.constant 0 : i32
    %c0_i32_1 = arith.constant 0 : i32
    %c0_i32_2 = arith.constant 0 : i32
    return %arg0, %c0_i32, %c0_i32_0, %c0_i32_1 : i32, i32, i32, i32
  }
  func.func @transform_1(%arg0: i32) -> (i32, i32, i32) {
    %c0_i32 = arith.constant 0 : i32
    %c0_i32_0 = arith.constant 0 : i32
    %c0_i32_1 = arith.constant 0 : i32
    return %arg0, %c0_i32, %c0_i32_0 : i32, i32, i32
  }
}

</mosaic_0001>

<bundles_post_ra>
// kernel: tpu_custom_call.1
= control target key start
LH: loop header
LB: loop body
LE: loop exit
PB: predicated region body
PF: predicated region fallthrough
CT: control target
= control target key end

     0   :  { %vm3032_vm0 = vcmask 1043456   ;;  %vm3033_vm1 = vsmask.f32 3328  ;;  %s10783_s0 = inlined_call_operand.vmem [shape: f32[336,2,7,256], index: 0, kind: input, shape index: {}]   ;;  %s10784_s1 = inlined_call_operand.vmem [shape: bf16[336,7,128], index: 1, kind: output, shape index: {}]  }
   0x1   :  { %v8_v0 = vld [vmem:[%s10783_s0] sm:$0x7f]  ;;  %v9_v1 = vld [vmem:[%s10783_s0 + $0x8] sm:$0x7f]  ;;  %v10_v2 = vld [vmem:[%s10783_s0 + $0x10] sm:$0x7f] }
   0x2   :  { %v11_v3 = vld [vmem:[%s10783_s0 + $0x18] sm:$0x7f]  ;;  %v1352_v4 = vadd.f32 %v10_v2, %v8_v0  ;;  %v12_v6 = vld [vmem:[%s10783_s0 + $0x20] sm:$0x7f]  ;;  %v13_v7 = vld [vmem:[%s10783_s0 + $0x28] sm:$0x7f] }
   0x3   :  { %v1353_v5 = vadd.f32 %v11_v3, %v9_v1  ;;  %v14_v8 = vld [vmem:[%s10783_s0 + $0x30] sm:$0x7f]  ;;  %v15_v9 = vld [vmem:[%s10783_s0 + $0x38] sm:$0x7f]  ;;  %v16_v11 = vld [vmem:[%s10783_s0 + $0x40] sm:$0x7f] }
   0x4   :  { %v1354_v10 = vadd.f32 %v14_v8, %v12_v6  ;;  %v1355_v13 = vadd.f32 %v15_v9, %v13_v7  ;;  %v17_v14 = vld [vmem:[%s10783_s0 + $0x48] sm:$0x7f]  ;;  %v18_v15 = vld [vmem:[%s10783_s0 + $0x50] sm:$0x7f]  ;;  %v19_v16 = vld [vmem:[%s10783_s0 + $0x58] sm:$0x7f] }
   0x5   :  { %v2024_v12 = vadd.f32 %v1353_v5, %v1352_v4  ;;  %v3035_v17 = vld [vmem:[%s10784_s1] sm:$0xf]  ;;  %v1356_v18 = vadd.f32 %v18_v15, %v16_v11  ;;  %v1357_v19 = vadd.f32 %v19_v16, %v17_v14  ;;  %v21_v21 = vld [vmem:[%s10783_s0 + $0x68] sm:$0x7f]  ;;  %vm4104_vm2 = vmand %vm3032_vm0, %vm3033_vm1 }
   0x6   :  { %v20_v20 = vld [vmem:[%s10783_s0 + $0x60] sm:$0x7f]  ;;  %v2025_v24 = vadd.f32 %v1355_v13, %v1354_v10  ;;  %v22_v25 = vld [vmem:[%s10783_s0 + $0x70] sm:$0x7f]  ;;  %v23_v26 = vld [vmem:[%s10783_s0 + $0x78] sm:$0x7f] }
   0x7   :  { %v2360_v22 = vmul.f32 0.25, %v2024_v12  ;;  %v3038_v27 = vld [vmem:[%s10784_s1 + $0x4] sm:$0xf]  ;;  %v2026_v28 = vadd.f32 %v1357_v19, %v1356_v18  ;;  %v1358_v29 = vadd.f32 %v22_v25, %v20_v20  ;;  %v1359_v30 = vadd.f32 %v23_v26, %v21_v21  ;;  %v25_v32 = vld [vmem:[%s10783_s0 + $0x88] sm:$0x7f] }
   0x8   :  { %v24_v31 = vld [vmem:[%s10783_s0 + $0x80] sm:$0x7f]  ;;  %v2361_v34 = vmul.f32 0.25, %v2025_v24  ;;  %v26_v35 = vld [vmem:[%s10783_s0 + $0x90] sm:$0x7f] }
   0x9   :  { %v2696_v33 = vpack.c.bf16 %v2360_v22, %v2360_v22  ;;  %v27_v36 = vld [vmem:[%s10783_s0 + $0x98] sm:$0x7f]  ;;  %v2362_v37 = vmul.f32 0.25, %v2026_v28  ;;  %v3041_v38 = vld [vmem:[%s10784_s1 + $0x8] sm:$0xf]  ;;  %v2027_v39 = vadd.f32 %v1359_v30, %v1358_v29  ;;  %v1360_v40 = vadd.f32 %v26_v35, %v24_v31 }
   0xa   :  { %v1361_v41 = vadd.f32 %v27_v36, %v25_v32  ;;  %v28_v42 = vld [vmem:[%s10783_s0 + $0xa0] sm:$0x7f]  ;;  %v2697_v44 = vpack.c.bf16 %v2361_v34, %v2361_v34  ;;  %v29_v45 = vld [vmem:[%s10783_s0 + $0xa8] sm:$0x7f]  ;;  %v30_v46 = vld [vmem:[%s10783_s0 + $0xb0] sm:$0x7f] }
   0xb   :  { %v3036_v43 = vsel %vm4104_vm2, %v2696_v33, %v3035_v17  ;;  %v31_v47 = vld [vmem:[%s10783_s0 + $0xb8] sm:$0x7f]  ;;  %v2698_v48 = vpack.c.bf16 %v2362_v37, %v2362_v37  ;;  %v2363_v49 = vmul.f32 0.25, %v2027_v39  ;;  %v3044_v50 = vld [vmem:[%s10784_s1 + $0xc] sm:$0xf]  ;;  %v1362_v52 = vadd.f32 %v30_v46, %v28_v42 }
   0xc   :  { %3037 = vst [vmem:[%s10784_s1] sm:$0xf] %v3036_v43  ;;  %v2028_v51 = vadd.f32 %v1361_v41, %v1360_v40  ;;  %v32_v53 = vld [vmem:[%s10783_s0 + $0xc0] sm:$0x7f]  ;;  %v3039_v54 = vsel %vm4104_vm2, %v2697_v44, %v3038_v27  ;;  %v1363_v55 = vadd.f32 %v31_v47, %v29_v45  ;;  %v33_v56 = vld [vmem:[%s10783_s0 + $0xc8] sm:$0x7f] }
   0xd   :  { %v34_v57 = vld [vmem:[%s10783_s0 + $0xd0] sm:$0x7f]  ;;  %v35_v58 = vld [vmem:[%s10783_s0 + $0xd8] sm:$0x7f]  ;;  %3040 = vst [vmem:[%s10784_s1 + $0x4] sm:$0xf] %v3039_v54  ;;  %v3042_v59 = vsel %vm4104_vm2, %v2698_v48, %v3041_v38  ;;  %v2699_v60 = vpack.c.bf16 %v2363_v49, %v2363_v49 }
   0xe   :  { %v2364_v61 = vmul.f32 0.25, %v2028_v51  ;;  %v3047_v62 = vld [vmem:[%s10784_s1 + $0x10] sm:$0xf]  ;;  %v1364_v63 = vadd.f32 %v34_v57, %v32_v53  ;;  %3043 = vst [vmem:[%s10784_s1 + $0x8] sm:$0xf] %v3042_v59  ;;  %v2029_v0 = vadd.f32 %v1363_v55, %v1362_v52  ;;  %v1365_v1 = vadd.f32 %v35_v58, %v33_v56 }
   0xf   :  { %v36_v2 = vld [vmem:[%s10783_s0 + $0xe0] sm:$0x7f]  ;;  %v37_v3 = vld [vmem:[%s10783_s0 + $0xe8] sm:$0x7f]  ;;  %v3045_v4 = vsel %vm4104_vm2, %v2699_v60, %v3044_v50  ;;  %v3050_v6 = vld [vmem:[%s10784_s1 + $0x14] sm:$0xf] }
  0x10   :  { %v2700_v5 = vpack.c.bf16 %v2364_v61, %v2364_v61  ;;  %v38_v7 = vld [vmem:[%s10783_s0 + $0xf0] sm:$0x7f]  ;;  %v39_v8 = vld [vmem:[%s10783_s0 + $0xf8] sm:$0x7f]  ;;  %3046 = vst [vmem:[%s10784_s1 + $0xc] sm:$0xf] %v3045_v4  ;;  %v2030_v10 = vadd.f32 %v1365_v1, %v1364_v63 }
  0x11   :  { %v2365_v9 = vmul.f32 0.25, %v2029_v0  ;;  %v1366_v11 = vadd.f32 %v38_v7, %v36_v2  ;;  %v1367_v12 = vadd.f32 %v39_v8, %v37_v3  ;;  %v40_v13 = vld [vmem:[%s10783_s0 + $0x100] sm:$0x7f]  ;;  %v41_v15 = vld [vmem:[%s10783_s0 + $0x108] sm:$0x7f] }
  0x12   :  { %v3048_v14 = vsel %vm4104_vm2, %v2700_v5, %v3047_v62  ;;  %v42_v16 = vld [vmem:[%s10783_s0 + $0x110] sm:$0x7f]  ;;  %v43_v17 = vld [vmem:[%s10783_s0 + $0x118] sm:$0x7f]  ;;  %v2366_v19 = vmul.f32 0.25, %v2030_v10 }
  0x13   :  { %3049 = vst [vmem:[%s10784_s1 + $0x10] sm:$0xf] %v3048_v14  ;;  %v2701_v18 = vpack.c.bf16 %v2365_v9, %v2365_v9  ;;  %v3053_v20 = vld [vmem:[%s10784_s1 + $0x18] sm:$0xf]  ;;  %v2031_v21 = vadd.f32 %v1367_v12, %v1366_v11  ;;  %v1368_v22 = vadd.f32 %v42_v16, %v40_v13  ;;  %v1369_v24 = vadd.f32 %v43_v17, %v41_v15  ;;  %v44_v25 = vld [vmem:[%s10783_s0 + $0x120] sm:$0x7f] }
  0x14   :  { %v45_v26 = vld [vmem:[%s10783_s0 + $0x128] sm:$0x7f]  ;;  %v46_v27 = vld [vmem:[%s10783_s0 + $0x130] sm:$0x7f]  ;;  %v2702_v29 = vpack.c.bf16 %v2366_v19, %v2366_v19  ;;  %v3056_v31 = vld [vmem:[%s10784_s1 + $0x1c] sm:$0xf] }
  0x15   :  { %v3051_v28 = vsel %vm4104_vm2, %v2701_v18, %v3050_v6  ;;  %v2367_v30 = vmul.f32 0.25, %v2031_v21  ;;  %v47_v32 = vld [vmem:[%s10783_s0 + $0x138] sm:$0x7f]  ;;  %v1370_v33 = vadd.f32 %v46_v27, %v44_v25  ;;  %v2032_v34 = vadd.f32 %v1369_v24, %v1368_v22  ;;  %v48_v36 = vld [vmem:[%s10783_s0 + $0x140] sm:$0x7f] }
  0x16   :  { %3052 = vst [vmem:[%s10784_s1 + $0x14] sm:$0xf] %v3051_v28  ;;  %v1371_v35 = vadd.f32 %v47_v32, %v45_v26  ;;  %v49_v37 = vld [vmem:[%s10783_s0 + $0x148] sm:$0x7f]  ;;  %v3054_v38 = vsel %vm4104_vm2, %v2702_v29, %v3053_v20  ;;  %v3059_v40 = vld [vmem:[%s10784_s1 + $0x20] sm:$0xf] }
  0x17   :  { %v2703_v39 = vpack.c.bf16 %v2367_v30, %v2367_v30  ;;  %v50_v41 = vld [vmem:[%s10783_s0 + $0x150] sm:$0x7f]  ;;  %v51_v42 = vld [vmem:[%s10783_s0 + $0x158] sm:$0x7f]  ;;  %3055 = vst [vmem:[%s10784_s1 + $0x18] sm:$0xf] %v3054_v38 }
  0x18   :  { %v2368_v43 = vmul.f32 0.25, %v2032_v34  ;;  %v2033_v44 = vadd.f32 %v1371_v35, %v1370_v33  ;;  %v1372_v45 = vadd.f32 %v50_v41, %v48_v36  ;;  %v1373_v46 = vadd.f32 %v51_v42, %v49_v37  ;;  %v52_v47 = vld [vmem:[%s10783_s0 + $0x160] sm:$0x7f]  ;;  %v53_v49 = vld [vmem:[%s10783_s0 + $0x168] sm:$0x7f] }
  0x19   :  { %v3057_v48 = vsel %vm4104_vm2, %v2703_v39, %v3056_v31  ;;  %v54_v50 = vld [vmem:[%s10783_s0 + $0x170] sm:$0x7f]  ;;  %v55_v51 = vld [vmem:[%s10783_s0 + $0x178] sm:$0x7f]  ;;  %v3062_v54 = vld [vmem:[%s10784_s1 + $0x24] sm:$0xf] }
  0x1a   :  { %3058 = vst [vmem:[%s10784_s1 + $0x1c] sm:$0xf] %v3057_v48  ;;  %v2704_v52 = vpack.c.bf16 %v2368_v43, %v2368_v43  ;;  %v2369_v53 = vmul.f32 0.25, %v2033_v44  ;;  %v2034_v55 = vadd.f32 %v1373_v46, %v1372_v45  ;;  %v1374_v56 = vadd.f32 %v54_v50, %v52_v47  ;;  %v56_v58 = vld [vmem:[%s10783_s0 + $0x180] sm:$0x7f] }
  0x1b   :  { %v1375_v57 = vadd.f32 %v55_v51, %v53_v49  ;;  %v57_v59 = vld [vmem:[%s10783_s0 + $0x188] sm:$0x7f]  ;;  %v58_v60 = vld [vmem:[%s10783_s0 + $0x190] sm:$0x7f]  ;;  %v59_v1 = vld [vmem:[%s10783_s0 + $0x198] sm:$0x7f] }
  0x1c   :  { %v3060_v61 = vsel %vm4104_vm2, %v2704_v52, %v3059_v40  ;;  %v2705_v62 = vpack.c.bf16 %v2369_v53, %v2369_v53  ;;  %v2370_v63 = vmul.f32 0.25, %v2034_v55  ;;  %v3065_v0 = vld [vmem:[%s10784_s1 + $0x28] sm:$0xf]  ;;  %v1376_v2 = vadd.f32 %v58_v60, %v56_v58  ;;  %v60_v5 = vld [vmem:[%s10783_s0 + $0x1a0] sm:$0x7f] }
  0x1d   :  { %3061 = vst [vmem:[%s10784_s1 + $0x20] sm:$0xf] %v3060_v61  ;;  %v2035_v3 = vadd.f32 %v1375_v57, %v1374_v56  ;;  %v1377_v4 = vadd.f32 %v59_v1, %v57_v59  ;;  %v61_v6 = vld [vmem:[%s10783_s0 + $0x1a8] sm:$0x7f]  ;;  %v62_v10 = vld [vmem:[%s10783_s0 + $0x1b0] sm:$0x7f] }
  0x1e   :  { %v3063_v7 = vsel %vm4104_vm2, %v2705_v62, %v3062_v54  ;;  %v2706_v8 = vpack.c.bf16 %v2370_v63, %v2370_v63  ;;  %v3068_v9 = vld [vmem:[%s10784_s1 + $0x2c] sm:$0xf]  ;;  %v63_v11 = vld [vmem:[%s10783_s0 + $0x1b8] sm:$0x7f]  ;;  %v1378_v14 = vadd.f32 %v62_v10, %v60_v5  ;;  %v64_v16 = vld [vmem:[%s10783_s0 + $0x1c0] sm:$0x7f] }
  0x1f   :  { %3064 = vst [vmem:[%s10784_s1 + $0x24] sm:$0xf] %v3063_v7  ;;  %v2371_v12 = vmul.f32 0.25, %v2035_v3  ;;  %v2036_v13 = vadd.f32 %v1377_v4, %v1376_v2  ;;  %v1379_v15 = vadd.f32 %v63_v11, %v61_v6  ;;  %v65_v18 = vld [vmem:[%s10783_s0 + $0x1c8] sm:$0x7f] }
  0x20   :  { %v3066_v17 = vsel %vm4104_vm2, %v2706_v8, %v3065_v0  ;;  %v66_v19 = vld [vmem:[%s10783_s0 + $0x1d0] sm:$0x7f]  ;;  %v67_v20 = vld [vmem:[%s10783_s0 + $0x1d8] sm:$0x7f]  ;;  %v68_v28 = vld [vmem:[%s10783_s0 + $0x1e0] sm:$0x7f] }
  0x21   :  { %3067 = vst [vmem:[%s10784_s1 + $0x28] sm:$0xf] %v3066_v17  ;;  %v2707_v21 = vpack.c.bf16 %v2371_v12, %v2371_v12  ;;  %v2372_v22 = vmul.f32 0.25, %v2036_v13  ;;  %v3071_v24 = vld [vmem:[%s10784_s1 + $0x30] sm:$0xf]  ;;  %v2037_v25 = vadd.f32 %v1379_v15, %v1378_v14  ;;  %v1380_v26 = vadd.f32 %v66_v19, %v64_v16 }
  0x22   :  { %v1381_v27 = vadd.f32 %v67_v20, %v65_v18  ;;  %v69_v29 = vld [vmem:[%s10783_s0 + $0x1e8] sm:$0x7f]  ;;  %v70_v30 = vld [vmem:[%s10783_s0 + $0x1f0] sm:$0x7f]  ;;  %v71_v35 = vld [vmem:[%s10783_s0 + $0x1f8] sm:$0x7f] }
  0x23   :  { %v3069_v31 = vsel %vm4104_vm2, %v2707_v21, %v3068_v9  ;;  %v2708_v32 = vpack.c.bf16 %v2372_v22, %v2372_v22  ;;  %v2373_v33 = vmul.f32 0.25, %v2037_v25  ;;  %v3074_v34 = vld [vmem:[%s10784_s1 + $0x34] sm:$0xf]  ;;  %v1382_v36 = vadd.f32 %v70_v30, %v68_v28  ;;  %v72_v39 = vld [vmem:[%s10783_s0 + $0x200] sm:$0x7f] }
  0x24   :  { %3070 = vst [vmem:[%s10784_s1 + $0x2c] sm:$0xf] %v3069_v31  ;;  %v2038_v37 = vadd.f32 %v1381_v27, %v1380_v26  ;;  %v1383_v38 = vadd.f32 %v71_v35, %v69_v29  ;;  %v73_v40 = vld [vmem:[%s10783_s0 + $0x208] sm:$0x7f]  ;;  %v3077_v43 = vld [vmem:[%s10784_s1 + $0x38] sm:$0xf] }
  0x25   :  { %v3072_v41 = vsel %vm4104_vm2, %v2708_v32, %v3071_v24  ;;  %v2709_v42 = vpack.c.bf16 %v2373_v33, %v2373_v33  ;;  %v74_v44 = vld [vmem:[%s10783_s0 + $0x210] sm:$0x7f]  ;;  %v75_v45 = vld [vmem:[%s10783_s0 + $0x218] sm:$0x7f]  ;;  %v76_v50 = vld [vmem:[%s10783_s0 + $0x220] sm:$0x7f] }
  0x26   :  { %3073 = vst [vmem:[%s10784_s1 + $0x30] sm:$0xf] %v3072_v41  ;;  %v2374_v46 = vmul.f32 0.25, %v2038_v37  ;;  %v2039_v47 = vadd.f32 %v1383_v38, %v1382_v36  ;;  %v1384_v48 = vadd.f32 %v74_v44, %v72_v39  ;;  %v1385_v49 = vadd.f32 %v75_v45, %v73_v40  ;;  %v77_v52 = vld [vmem:[%s10783_s0 + $0x228] sm:$0x7f] }
  0x27   :  { %v3075_v51 = vsel %vm4104_vm2, %v2709_v42, %v3074_v34  ;;  %v78_v53 = vld [vmem:[%s10783_s0 + $0x230] sm:$0x7f]  ;;  %v79_v54 = vld [vmem:[%s10783_s0 + $0x238] sm:$0x7f]  ;;  %v80_v61 = vld [vmem:[%s10783_s0 + $0x240] sm:$0x7f] }
  0x28   :  { %3076 = vst [vmem:[%s10784_s1 + $0x34] sm:$0xf] %v3075_v51  ;;  %v2710_v55 = vpack.c.bf16 %v2374_v46, %v2374_v46  ;;  %v2375_v56 = vmul.f32 0.25, %v2039_v47  ;;  %v3080_v57 = vld [vmem:[%s10784_s1 + $0x3c] sm:$0xf]  ;;  %v2040_v58 = vadd.f32 %v1385_v49, %v1384_v48  ;;  %v1386_v59 = vadd.f32 %v78_v53, %v76_v50 }
  0x29   :  { %v1387_v60 = vadd.f32 %v79_v54, %v77_v52  ;;  %v81_v62 = vld [vmem:[%s10783_s0 + $0x248] sm:$0x7f]  ;;  %v82_v63 = vld [vmem:[%s10783_s0 + $0x250] sm:$0x7f]  ;;  %v3083_v3 = vld [vmem:[%s10784_s1 + $0x40] sm:$0xf] }
  0x2a   :  { %v3078_v0 = vsel %vm4104_vm2, %v2710_v55, %v3077_v43  ;;  %v2711_v1 = vpack.c.bf16 %v2375_v56, %v2375_v56  ;;  %v2376_v2 = vmul.f32 0.25, %v2040_v58  ;;  %v83_v4 = vld [vmem:[%s10783_s0 + $0x258] sm:$0x7f]  ;;  %v1388_v5 = vadd.f32 %v82_v63, %v80_v61  ;;  %v84_v8 = vld [vmem:[%s10783_s0 + $0x260] sm:$0x7f] }
  0x2b   :  { %3079 = vst [vmem:[%s10784_s1 + $0x38] sm:$0xf] %v3078_v0  ;;  %v2041_v6 = vadd.f32 %v1387_v60, %v1386_v59  ;;  %v1389_v7 = vadd.f32 %v83_v4, %v81_v62  ;;  %v85_v9 = vld [vmem:[%s10783_s0 + $0x268] sm:$0x7f]  ;;  %v3086_v12 = vld [vmem:[%s10784_s1 + $0x44] sm:$0xf] }
  0x2c   :  { %v3081_v10 = vsel %vm4104_vm2, %v2711_v1, %v3080_v57  ;;  %v2712_v11 = vpack.c.bf16 %v2376_v2, %v2376_v2  ;;  %v86_v13 = vld [vmem:[%s10783_s0 + $0x270] sm:$0x7f]  ;;  %v87_v14 = vld [vmem:[%s10783_s0 + $0x278] sm:$0x7f]  ;;  %v88_v19 = vld [vmem:[%s10783_s0 + $0x280] sm:$0x7f] }
  0x2d   :  { %3082 = vst [vmem:[%s10784_s1 + $0x3c] sm:$0xf] %v3081_v10  ;;  %v2377_v15 = vmul.f32 0.25, %v2041_v6  ;;  %v2042_v16 = vadd.f32 %v1389_v7, %v1388_v5  ;;  %v1390_v17 = vadd.f32 %v86_v13, %v84_v8  ;;  %v1391_v18 = vadd.f32 %v87_v14, %v85_v9  ;;  %v89_v21 = vld [vmem:[%s10783_s0 + $0x288] sm:$0x7f] }
  0x2e   :  { %v3084_v20 = vsel %vm4104_vm2, %v2712_v11, %v3083_v3  ;;  %v90_v22 = vld [vmem:[%s10783_s0 + $0x290] sm:$0x7f]  ;;  %v91_v24 = vld [vmem:[%s10783_s0 + $0x298] sm:$0x7f]  ;;  %v3089_v27 = vld [vmem:[%s10784_s1 + $0x48] sm:$0xf] }
  0x2f   :  { %3085 = vst [vmem:[%s10784_s1 + $0x40] sm:$0xf] %v3084_v20  ;;  %v2713_v25 = vpack.c.bf16 %v2377_v15, %v2377_v15  ;;  %v2378_v26 = vmul.f32 0.25, %v2042_v16  ;;  %v2043_v28 = vadd.f32 %v1391_v18, %v1390_v17  ;;  %v1392_v29 = vadd.f32 %v90_v22, %v88_v19  ;;  %v92_v31 = vld [vmem:[%s10783_s0 + $0x2a0] sm:$0x7f] }
  0x30   :  { %v1393_v30 = vadd.f32 %v91_v24, %v89_v21  ;;  %v93_v32 = vld [vmem:[%s10783_s0 + $0x2a8] sm:$0x7f]  ;;  %v94_v33 = vld [vmem:[%s10783_s0 + $0x2b0] sm:$0x7f]  ;;  %v95_v38 = vld [vmem:[%s10783_s0 + $0x2b8] sm:$0x7f] }
  0x31   :  { %v3087_v34 = vsel %vm4104_vm2, %v2713_v25, %v3086_v12  ;;  %v2714_v35 = vpack.c.bf16 %v2378_v26, %v2378_v26  ;;  %v2379_v36 = vmul.f32 0.25, %v2043_v28  ;;  %v3092_v37 = vld [vmem:[%s10784_s1 + $0x4c] sm:$0xf]  ;;  %v1394_v39 = vadd.f32 %v94_v33, %v92_v31  ;;  %v96_v42 = vld [vmem:[%s10783_s0 + $0x2c0] sm:$0x7f] }
  0x32   :  { %3088 = vst [vmem:[%s10784_s1 + $0x44] sm:$0xf] %v3087_v34  ;;  %v2044_v40 = vadd.f32 %v1393_v30, %v1392_v29  ;;  %v1395_v41 = vadd.f32 %v95_v38, %v93_v32  ;;  %v97_v43 = vld [vmem:[%s10783_s0 + $0x2c8] sm:$0x7f]  ;;  %v3095_v46 = vld [vmem:[%s10784_s1 + $0x50] sm:$0xf] }
  0x33   :  { %v3090_v44 = vsel %vm4104_vm2, %v2714_v35, %v3089_v27  ;;  %v2715_v45 = vpack.c.bf16 %v2379_v36, %v2379_v36  ;;  %v98_v47 = vld [vmem:[%s10783_s0 + $0x2d0] sm:$0x7f]  ;;  %v99_v48 = vld [vmem:[%s10783_s0 + $0x2d8] sm:$0x7f]  ;;  %v100_v53 = vld [vmem:[%s10783_s0 + $0x2e0] sm:$0x7f] }
  0x34   :  { %3091 = vst [vmem:[%s10784_s1 + $0x48] sm:$0xf] %v3090_v44  ;;  %v2380_v49 = vmul.f32 0.25, %v2044_v40  ;;  %v2045_v50 = vadd.f32 %v1395_v41, %v1394_v39  ;;  %v1396_v51 = vadd.f32 %v98_v47, %v96_v42  ;;  %v1397_v52 = vadd.f32 %v99_v48, %v97_v43  ;;  %v101_v55 = vld [vmem:[%s10783_s0 + $0x2e8] sm:$0x7f] }
  0x35   :  { %v3093_v54 = vsel %vm4104_vm2, %v2715_v45, %v3092_v37  ;;  %v102_v56 = vld [vmem:[%s10783_s0 + $0x2f0] sm:$0x7f]  ;;  %v103_v57 = vld [vmem:[%s10783_s0 + $0x2f8] sm:$0x7f]  ;;  %v104_v0 = vld [vmem:[%s10783_s0 + $0x300] sm:$0x7f] }
  0x36   :  { %3094 = vst [vmem:[%s10784_s1 + $0x4c] sm:$0xf] %v3093_v54  ;;  %v2716_v58 = vpack.c.bf16 %v2380_v49, %v2380_v49  ;;  %v2381_v59 = vmul.f32 0.25, %v2045_v50  ;;  %v3098_v60 = vld [vmem:[%s10784_s1 + $0x54] sm:$0xf]  ;;  %v2046_v61 = vadd.f32 %v1397_v52, %v1396_v51  ;;  %v1398_v62 = vadd.f32 %v102_v56, %v100_v53 }
  0x37   :  { %v1399_v63 = vadd.f32 %v103_v57, %v101_v55  ;;  %v105_v1 = vld [vmem:[%s10783_s0 + $0x308] sm:$0x7f]  ;;  %v106_v2 = vld [vmem:[%s10783_s0 + $0x310] sm:$0x7f]  ;;  %v3101_v6 = vld [vmem:[%s10784_s1 + $0x58] sm:$0xf] }
  0x38   :  { %v3096_v3 = vsel %vm4104_vm2, %v2716_v58, %v3095_v46  ;;  %v2717_v4 = vpack.c.bf16 %v2381_v59, %v2381_v59  ;;  %v2382_v5 = vmul.f32 0.25, %v2046_v61  ;;  %v107_v7 = vld [vmem:[%s10783_s0 + $0x318] sm:$0x7f]  ;;  %v1400_v8 = vadd.f32 %v106_v2, %v104_v0  ;;  %v108_v11 = vld [vmem:[%s10783_s0 + $0x320] sm:$0x7f] }
  0x39   :  { %3097 = vst [vmem:[%s10784_s1 + $0x50] sm:$0xf] %v3096_v3  ;;  %v2047_v9 = vadd.f32 %v1399_v63, %v1398_v62  ;;  %v1401_v10 = vadd.f32 %v107_v7, %v105_v1  ;;  %v109_v12 = vld [vmem:[%s10783_s0 + $0x328] sm:$0x7f]  ;;  %v3104_v15 = vld [vmem:[%s10784_s1 + $0x5c] sm:$0xf] }
  0x3a   :  { %v3099_v13 = vsel %vm4104_vm2, %v2717_v4, %v3098_v60  ;;  %v2718_v14 = vpack.c.bf16 %v2382_v5, %v2382_v5  ;;  %v110_v16 = vld [vmem:[%s10783_s0 + $0x330] sm:$0x7f]  ;;  %v111_v17 = vld [vmem:[%s10783_s0 + $0x338] sm:$0x7f]  ;;  %v112_v22 = vld [vmem:[%s10783_s0 + $0x340] sm:$0x7f] }
  0x3b   :  { %3100 = vst [vmem:[%s10784_s1 + $0x54] sm:$0xf] %v3099_v13  ;;  %v2383_v18 = vmul.f32 0.25, %v2047_v9  ;;  %v2048_v19 = vadd.f32 %v1401_v10, %v1400_v8  ;;  %v1402_v20 = vadd.f32 %v110_v16, %v108_v11  ;;  %v1403_v21 = vadd.f32 %v111_v17, %v109_v12  ;;  %v113_v25 = vld [vmem:[%s10783_s0 + $0x348] sm:$0x7f] }
  0x3c   :  { %v3102_v24 = vsel %vm4104_vm2, %v2718_v14, %v3101_v6  ;;  %v114_v26 = vld [vmem:[%s10783_s0 + $0x350] sm:$0x7f]  ;;  %v115_v27 = vld [vmem:[%s10783_s0 + $0x358] sm:$0x7f]  ;;  %v3107_v30 = vld [vmem:[%s10784_s1 + $0x60] sm:$0xf] }
  0x3d   :  { %3103 = vst [vmem:[%s10784_s1 + $0x58] sm:$0xf] %v3102_v24  ;;  %v2719_v28 = vpack.c.bf16 %v2383_v18, %v2383_v18  ;;  %v2384_v29 = vmul.f32 0.25, %v2048_v19  ;;  %v2049_v31 = vadd.f32 %v1403_v21, %v1402_v20  ;;  %v1404_v32 = vadd.f32 %v114_v26, %v112_v22  ;;  %v116_v34 = vld [vmem:[%s10783_s0 + $0x360] sm:$0x7f] }
  0x3e   :  { %v1405_v33 = vadd.f32 %v115_v27, %v113_v25  ;;  %v117_v35 = vld [vmem:[%s10783_s0 + $0x368] sm:$0x7f]  ;;  %v118_v36 = vld [vmem:[%s10783_s0 + $0x370] sm:$0x7f]  ;;  %v3110_v40 = vld [vmem:[%s10784_s1 + $0x64] sm:$0xf] }
  0x3f   :  { %v3105_v37 = vsel %vm4104_vm2, %v2719_v28, %v3104_v15  ;;  %v2720_v38 = vpack.c.bf16 %v2384_v29, %v2384_v29  ;;  %v2385_v39 = vmul.f32 0.25, %v2049_v31  ;;  %v119_v41 = vld [vmem:[%s10783_s0 + $0x378] sm:$0x7f]  ;;  %v1406_v42 = vadd.f32 %v118_v36, %v116_v34  ;;  %v120_v45 = vld [vmem:[%s10783_s0 + $0x380] sm:$0x7f] }
  0x40   :  { %3106 = vst [vmem:[%s10784_s1 + $0x5c] sm:$0xf] %v3105_v37  ;;  %v2050_v43 = vadd.f32 %v1405_v33, %v1404_v32  ;;  %v1407_v44 = vadd.f32 %v119_v41, %v117_v35  ;;  %v121_v46 = vld [vmem:[%s10783_s0 + $0x388] sm:$0x7f]  ;;  %v122_v50 = vld [vmem:[%s10783_s0 + $0x390] sm:$0x7f] }
  0x41   :  { %v3108_v47 = vsel %vm4104_vm2, %v2720_v38, %v3107_v30  ;;  %v2721_v48 = vpack.c.bf16 %v2385_v39, %v2385_v39  ;;  %v3113_v49 = vld [vmem:[%s10784_s1 + $0x68] sm:$0xf]  ;;  %v123_v51 = vld [vmem:[%s10783_s0 + $0x398] sm:$0x7f]  ;;  %v1408_v54 = vadd.f32 %v122_v50, %v120_v45  ;;  %v124_v56 = vld [vmem:[%s10783_s0 + $0x3a0] sm:$0x7f] }
  0x42   :  { %3109 = vst [vmem:[%s10784_s1 + $0x60] sm:$0xf] %v3108_v47  ;;  %v2386_v52 = vmul.f32 0.25, %v2050_v43  ;;  %v2051_v53 = vadd.f32 %v1407_v44, %v1406_v42  ;;  %v1409_v55 = vadd.f32 %v123_v51, %v121_v46  ;;  %v125_v58 = vld [vmem:[%s10783_s0 + $0x3a8] sm:$0x7f] }
  0x43   :  { %v3111_v57 = vsel %vm4104_vm2, %v2721_v48, %v3110_v40  ;;  %v126_v59 = vld [vmem:[%s10783_s0 + $0x3b0] sm:$0x7f]  ;;  %v127_v60 = vld [vmem:[%s10783_s0 + $0x3b8] sm:$0x7f]  ;;  %v3116_v63 = vld [vmem:[%s10784_s1 + $0x6c] sm:$0xf] }
  0x44   :  { %3112 = vst [vmem:[%s10784_s1 + $0x64] sm:$0xf] %v3111_v57  ;;  %v2722_v61 = vpack.c.bf16 %v2386_v52, %v2386_v52  ;;  %v2387_v62 = vmul.f32 0.25, %v2051_v53  ;;  %v2052_v0 = vadd.f32 %v1409_v55, %v1408_v54  ;;  %v1410_v1 = vadd.f32 %v126_v59, %v124_v56  ;;  %v128_v3 = vld [vmem:[%s10783_s0 + $0x3c0] sm:$0x7f] }
  0x45   :  { %v1411_v2 = vadd.f32 %v127_v60, %v125_v58  ;;  %v129_v4 = vld [vmem:[%s10783_s0 + $0x3c8] sm:$0x7f]  ;;  %v130_v5 = vld [vmem:[%s10783_s0 + $0x3d0] sm:$0x7f]  ;;  %v131_v10 = vld [vmem:[%s10783_s0 + $0x3d8] sm:$0x7f] }
  0x46   :  { %v3114_v6 = vsel %vm4104_vm2, %v2722_v61, %v3113_v49  ;;  %v2723_v7 = vpack.c.bf16 %v2387_v62, %v2387_v62  ;;  %v2388_v8 = vmul.f32 0.25, %v2052_v0  ;;  %v3119_v9 = vld [vmem:[%s10784_s1 + $0x70] sm:$0xf]  ;;  %v1412_v11 = vadd.f32 %v130_v5, %v128_v3  ;;  %v132_v14 = vld [vmem:[%s10783_s0 + $0x3e0] sm:$0x7f] }
  0x47   :  { %3115 = vst [vmem:[%s10784_s1 + $0x68] sm:$0xf] %v3114_v6  ;;  %v2053_v12 = vadd.f32 %v1411_v2, %v1410_v1  ;;  %v1413_v13 = vadd.f32 %v131_v10, %v129_v4  ;;  %v133_v15 = vld [vmem:[%s10783_s0 + $0x3e8] sm:$0x7f]  ;;  %v3122_v18 = vld [vmem:[%s10784_s1 + $0x74] sm:$0xf] }
  0x48   :  { %v3117_v16 = vsel %vm4104_vm2, %v2723_v7, %v3116_v63  ;;  %v2724_v17 = vpack.c.bf16 %v2388_v8, %v2388_v8  ;;  %v134_v19 = vld [vmem:[%s10783_s0 + $0x3f0] sm:$0x7f]  ;;  %v135_v20 = vld [vmem:[%s10783_s0 + $0x3f8] sm:$0x7f]  ;;  %v136_v26 = vld [vmem:[%s10783_s0 + $0x400] sm:$0x7f] }
  0x49   :  { %3118 = vst [vmem:[%s10784_s1 + $0x6c] sm:$0xf] %v3117_v16  ;;  %v2389_v21 = vmul.f32 0.25, %v2053_v12  ;;  %v2054_v22 = vadd.f32 %v1413_v13, %v1412_v11  ;;  %v1414_v24 = vadd.f32 %v134_v19, %v132_v14  ;;  %v1415_v25 = vadd.f32 %v135_v20, %v133_v15  ;;  %v137_v28 = vld [vmem:[%s10783_s0 + $0x408] sm:$0x7f] }
  0x4a   :  { %v3120_v27 = vsel %vm4104_vm2, %v2724_v17, %v3119_v9  ;;  %v138_v29 = vld [vmem:[%s10783_s0 + $0x410] sm:$0x7f]  ;;  %v139_v30 = vld [vmem:[%s10783_s0 + $0x418] sm:$0x7f]  ;;  %v140_v37 = vld [vmem:[%s10783_s0 + $0x420] sm:$0x7f] }
  0x4b   :  { %3121 = vst [vmem:[%s10784_s1 + $0x70] sm:$0xf] %v3120_v27  ;;  %v2725_v31 = vpack.c.bf16 %v2389_v21, %v2389_v21  ;;  %v2390_v32 = vmul.f32 0.25, %v2054_v22  ;;  %v3125_v33 = vld [vmem:[%s10784_s1 + $0x78] sm:$0xf]  ;;  %v2055_v34 = vadd.f32 %v1415_v25, %v1414_v24  ;;  %v1416_v35 = vadd.f32 %v138_v29, %v136_v26 }
  0x4c   :  { %v1417_v36 = vadd.f32 %v139_v30, %v137_v28  ;;  %v141_v38 = vld [vmem:[%s10783_s0 + $0x428] sm:$0x7f]  ;;  %v142_v39 = vld [vmem:[%s10783_s0 + $0x430] sm:$0x7f]  ;;  %v3128_v43 = vld [vmem:[%s10784_s1 + $0x7c] sm:$0xf] }
  0x4d   :  { %v3123_v40 = vsel %vm4104_vm2, %v2725_v31, %v3122_v18  ;;  %v2726_v41 = vpack.c.bf16 %v2390_v32, %v2390_v32  ;;  %v2391_v42 = vmul.f32 0.25, %v2055_v34  ;;  %v143_v44 = vld [vmem:[%s10783_s0 + $0x438] sm:$0x7f]  ;;  %v1418_v45 = vadd.f32 %v142_v39, %v140_v37  ;;  %v144_v48 = vld [vmem:[%s10783_s0 + $0x440] sm:$0x7f] }
  0x4e   :  { %3124 = vst [vmem:[%s10784_s1 + $0x74] sm:$0xf] %v3123_v40  ;;  %v2056_v46 = vadd.f32 %v1417_v36, %v1416_v35  ;;  %v1419_v47 = vadd.f32 %v143_v44, %v141_v38  ;;  %v145_v49 = vld [vmem:[%s10783_s0 + $0x448] sm:$0x7f]  ;;  %v3131_v52 = vld [vmem:[%s10784_s1 + $0x80] sm:$0xf] }
  0x4f   :  { %v3126_v50 = vsel %vm4104_vm2, %v2726_v41, %v3125_v33  ;;  %v2727_v51 = vpack.c.bf16 %v2391_v42, %v2391_v42  ;;  %v146_v53 = vld [vmem:[%s10783_s0 + $0x450] sm:$0x7f]  ;;  %v147_v54 = vld [vmem:[%s10783_s0 + $0x458] sm:$0x7f]  ;;  %v148_v59 = vld [vmem:[%s10783_s0 + $0x460] sm:$0x7f] }
  0x50   :  { %3127 = vst [vmem:[%s10784_s1 + $0x78] sm:$0xf] %v3126_v50  ;;  %v2392_v55 = vmul.f32 0.25, %v2056_v46  ;;  %v2057_v56 = vadd.f32 %v1419_v47, %v1418_v45  ;;  %v1420_v57 = vadd.f32 %v146_v53, %v144_v48  ;;  %v1421_v58 = vadd.f32 %v147_v54, %v145_v49  ;;  %v149_v61 = vld [vmem:[%s10783_s0 + $0x468] sm:$0x7f] }
  0x51   :  { %v3129_v60 = vsel %vm4104_vm2, %v2727_v51, %v3128_v43  ;;  %v150_v62 = vld [vmem:[%s10783_s0 + $0x470] sm:$0x7f]  ;;  %v151_v63 = vld [vmem:[%s10783_s0 + $0x478] sm:$0x7f]  ;;  %v3134_v2 = vld [vmem:[%s10784_s1 + $0x84] sm:$0xf] }
  0x52   :  { %3130 = vst [vmem:[%s10784_s1 + $0x7c] sm:$0xf] %v3129_v60  ;;  %v2728_v0 = vpack.c.bf16 %v2392_v55, %v2392_v55  ;;  %v2393_v1 = vmul.f32 0.25, %v2057_v56  ;;  %v2058_v3 = vadd.f32 %v1421_v58, %v1420_v57  ;;  %v1422_v4 = vadd.f32 %v150_v62, %v148_v59  ;;  %v152_v6 = vld [vmem:[%s10783_s0 + $0x480] sm:$0x7f] }
  0x53   :  { %v1423_v5 = vadd.f32 %v151_v63, %v149_v61  ;;  %v153_v7 = vld [vmem:[%s10783_s0 + $0x488] sm:$0x7f]  ;;  %v154_v8 = vld [vmem:[%s10783_s0 + $0x490] sm:$0x7f]  ;;  %v155_v13 = vld [vmem:[%s10783_s0 + $0x498] sm:$0x7f] }
  0x54   :  { %v3132_v9 = vsel %vm4104_vm2, %v2728_v0, %v3131_v52  ;;  %v2729_v10 = vpack.c.bf16 %v2393_v1, %v2393_v1  ;;  %v2394_v11 = vmul.f32 0.25, %v2058_v3  ;;  %v3137_v12 = vld [vmem:[%s10784_s1 + $0x88] sm:$0xf]  ;;  %v1424_v14 = vadd.f32 %v154_v8, %v152_v6  ;;  %v156_v17 = vld [vmem:[%s10783_s0 + $0x4a0] sm:$0x7f] }
  0x55   :  { %3133 = vst [vmem:[%s10784_s1 + $0x80] sm:$0xf] %v3132_v9  ;;  %v2059_v15 = vadd.f32 %v1423_v5, %v1422_v4  ;;  %v1425_v16 = vadd.f32 %v155_v13, %v153_v7  ;;  %v157_v18 = vld [vmem:[%s10783_s0 + $0x4a8] sm:$0x7f]  ;;  %v158_v22 = vld [vmem:[%s10783_s0 + $0x4b0] sm:$0x7f] }
  0x56   :  { %v3135_v19 = vsel %vm4104_vm2, %v2729_v10, %v3134_v2  ;;  %v2730_v20 = vpack.c.bf16 %v2394_v11, %v2394_v11  ;;  %v3140_v21 = vld [vmem:[%s10784_s1 + $0x8c] sm:$0xf]  ;;  %v159_v24 = vld [vmem:[%s10783_s0 + $0x4b8] sm:$0x7f]  ;;  %v1426_v27 = vadd.f32 %v158_v22, %v156_v17  ;;  %v160_v29 = vld [vmem:[%s10783_s0 + $0x4c0] sm:$0x7f] }
  0x57   :  { %3136 = vst [vmem:[%s10784_s1 + $0x84] sm:$0xf] %v3135_v19  ;;  %v2395_v25 = vmul.f32 0.25, %v2059_v15  ;;  %v2060_v26 = vadd.f32 %v1425_v16, %v1424_v14  ;;  %v1427_v28 = vadd.f32 %v159_v24, %v157_v18  ;;  %v161_v31 = vld [vmem:[%s10783_s0 + $0x4c8] sm:$0x7f] }
  0x58   :  { %v3138_v30 = vsel %vm4104_vm2, %v2730_v20, %v3137_v12  ;;  %v162_v32 = vld [vmem:[%s10783_s0 + $0x4d0] sm:$0x7f]  ;;  %v163_v33 = vld [vmem:[%s10783_s0 + $0x4d8] sm:$0x7f]  ;;  %v164_v40 = vld [vmem:[%s10783_s0 + $0x4e0] sm:$0x7f] }
  0x59   :  { %3139 = vst [vmem:[%s10784_s1 + $0x88] sm:$0xf] %v3138_v30  ;;  %v2731_v34 = vpack.c.bf16 %v2395_v25, %v2395_v25  ;;  %v2396_v35 = vmul.f32 0.25, %v2060_v26  ;;  %v3143_v36 = vld [vmem:[%s10784_s1 + $0x90] sm:$0xf]  ;;  %v2061_v37 = vadd.f32 %v1427_v28, %v1426_v27  ;;  %v1428_v38 = vadd.f32 %v162_v32, %v160_v29 }
  0x5a   :  { %v1429_v39 = vadd.f32 %v163_v33, %v161_v31  ;;  %v165_v41 = vld [vmem:[%s10783_s0 + $0x4e8] sm:$0x7f]  ;;  %v166_v42 = vld [vmem:[%s10783_s0 + $0x4f0] sm:$0x7f]  ;;  %v167_v47 = vld [vmem:[%s10783_s0 + $0x4f8] sm:$0x7f] }
  0x5b   :  { %v3141_v43 = vsel %vm4104_vm2, %v2731_v34, %v3140_v21  ;;  %v2732_v44 = vpack.c.bf16 %v2396_v35, %v2396_v35  ;;  %v2397_v45 = vmul.f32 0.25, %v2061_v37  ;;  %v3146_v46 = vld [vmem:[%s10784_s1 + $0x94] sm:$0xf]  ;;  %v1430_v48 = vadd.f32 %v166_v42, %v164_v40  ;;  %v168_v51 = vld [vmem:[%s10783_s0 + $0x500] sm:$0x7f] }
  0x5c   :  { %3142 = vst [vmem:[%s10784_s1 + $0x8c] sm:$0xf] %v3141_v43  ;;  %v2062_v49 = vadd.f32 %v1429_v39, %v1428_v38  ;;  %v1431_v50 = vadd.f32 %v167_v47, %v165_v41  ;;  %v169_v52 = vld [vmem:[%s10783_s0 + $0x508] sm:$0x7f]  ;;  %v3149_v55 = vld [vmem:[%s10784_s1 + $0x98] sm:$0xf] }
  0x5d   :  { %v3144_v53 = vsel %vm4104_vm2, %v2732_v44, %v3143_v36  ;;  %v2733_v54 = vpack.c.bf16 %v2397_v45, %v2397_v45  ;;  %v170_v56 = vld [vmem:[%s10783_s0 + $0x510] sm:$0x7f]  ;;  %v171_v57 = vld [vmem:[%s10783_s0 + $0x518] sm:$0x7f]  ;;  %v172_v62 = vld [vmem:[%s10783_s0 + $0x520] sm:$0x7f] }
  0x5e   :  { %3145 = vst [vmem:[%s10784_s1 + $0x90] sm:$0xf] %v3144_v53  ;;  %v2398_v58 = vmul.f32 0.25, %v2062_v49  ;;  %v2063_v59 = vadd.f32 %v1431_v50, %v1430_v48  ;;  %v1432_v60 = vadd.f32 %v170_v56, %v168_v51  ;;  %v1433_v61 = vadd.f32 %v171_v57, %v169_v52  ;;  %v173_v0 = vld [vmem:[%s10783_s0 + $0x528] sm:$0x7f] }
  0x5f   :  { %v3147_v63 = vsel %vm4104_vm2, %v2733_v54, %v3146_v46  ;;  %v174_v1 = vld [vmem:[%s10783_s0 + $0x530] sm:$0x7f]  ;;  %v175_v2 = vld [vmem:[%s10783_s0 + $0x538] sm:$0x7f]  ;;  %v176_v9 = vld [vmem:[%s10783_s0 + $0x540] sm:$0x7f] }
  0x60   :  { %3148 = vst [vmem:[%s10784_s1 + $0x94] sm:$0xf] %v3147_v63  ;;  %v2734_v3 = vpack.c.bf16 %v2398_v58, %v2398_v58  ;;  %v2399_v4 = vmul.f32 0.25, %v2063_v59  ;;  %v3152_v5 = vld [vmem:[%s10784_s1 + $0x9c] sm:$0xf]  ;;  %v2064_v6 = vadd.f32 %v1433_v61, %v1432_v60  ;;  %v1434_v7 = vadd.f32 %v174_v1, %v172_v62 }
  0x61   :  { %v1435_v8 = vadd.f32 %v175_v2, %v173_v0  ;;  %v177_v10 = vld [vmem:[%s10783_s0 + $0x548] sm:$0x7f]  ;;  %v178_v11 = vld [vmem:[%s10783_s0 + $0x550] sm:$0x7f]  ;;  %v3155_v15 = vld [vmem:[%s10784_s1 + $0xa0] sm:$0xf] }
  0x62   :  { %v3150_v12 = vsel %vm4104_vm2, %v2734_v3, %v3149_v55  ;;  %v2735_v13 = vpack.c.bf16 %v2399_v4, %v2399_v4  ;;  %v2400_v14 = vmul.f32 0.25, %v2064_v6  ;;  %v179_v16 = vld [vmem:[%s10783_s0 + $0x558] sm:$0x7f]  ;;  %v1436_v17 = vadd.f32 %v178_v11, %v176_v9  ;;  %v180_v20 = vld [vmem:[%s10783_s0 + $0x560] sm:$0x7f] }
  0x63   :  { %3151 = vst [vmem:[%s10784_s1 + $0x98] sm:$0xf] %v3150_v12  ;;  %v2065_v18 = vadd.f32 %v1435_v8, %v1434_v7  ;;  %v1437_v19 = vadd.f32 %v179_v16, %v177_v10  ;;  %v181_v21 = vld [vmem:[%s10783_s0 + $0x568] sm:$0x7f]  ;;  %v3158_v25 = vld [vmem:[%s10784_s1 + $0xa4] sm:$0xf] }
  0x64   :  { %v3153_v22 = vsel %vm4104_vm2, %v2735_v13, %v3152_v5  ;;  %v2736_v24 = vpack.c.bf16 %v2400_v14, %v2400_v14  ;;  %v182_v26 = vld [vmem:[%s10783_s0 + $0x570] sm:$0x7f]  ;;  %v183_v27 = vld [vmem:[%s10783_s0 + $0x578] sm:$0x7f]  ;;  %v184_v32 = vld [vmem:[%s10783_s0 + $0x580] sm:$0x7f] }
  0x65   :  { %3154 = vst [vmem:[%s10784_s1 + $0x9c] sm:$0xf] %v3153_v22  ;;  %v2401_v28 = vmul.f32 0.25, %v2065_v18  ;;  %v2066_v29 = vadd.f32 %v1437_v19, %v1436_v17  ;;  %v1438_v30 = vadd.f32 %v182_v26, %v180_v20  ;;  %v1439_v31 = vadd.f32 %v183_v27, %v181_v21  ;;  %v185_v34 = vld [vmem:[%s10783_s0 + $0x588] sm:$0x7f] }
  0x66   :  { %v3156_v33 = vsel %vm4104_vm2, %v2736_v24, %v3155_v15  ;;  %v186_v35 = vld [vmem:[%s10783_s0 + $0x590] sm:$0x7f]  ;;  %v187_v36 = vld [vmem:[%s10783_s0 + $0x598] sm:$0x7f]  ;;  %v3161_v39 = vld [vmem:[%s10784_s1 + $0xa8] sm:$0xf] }
  0x67   :  { %3157 = vst [vmem:[%s10784_s1 + $0xa0] sm:$0xf] %v3156_v33  ;;  %v2737_v37 = vpack.c.bf16 %v2401_v28, %v2401_v28  ;;  %v2402_v38 = vmul.f32 0.25, %v2066_v29  ;;  %v2067_v40 = vadd.f32 %v1439_v31, %v1438_v30  ;;  %v1440_v41 = vadd.f32 %v186_v35, %v184_v32  ;;  %v188_v43 = vld [vmem:[%s10783_s0 + $0x5a0] sm:$0x7f] }
  0x68   :  { %v1441_v42 = vadd.f32 %v187_v36, %v185_v34  ;;  %v189_v44 = vld [vmem:[%s10783_s0 + $0x5a8] sm:$0x7f]  ;;  %v190_v45 = vld [vmem:[%s10783_s0 + $0x5b0] sm:$0x7f]  ;;  %v191_v50 = vld [vmem:[%s10783_s0 + $0x5b8] sm:$0x7f] }
  0x69   :  { %v3159_v46 = vsel %vm4104_vm2, %v2737_v37, %v3158_v25  ;;  %v2738_v47 = vpack.c.bf16 %v2402_v38, %v2402_v38  ;;  %v2403_v48 = vmul.f32 0.25, %v2067_v40  ;;  %v3164_v49 = vld [vmem:[%s10784_s1 + $0xac] sm:$0xf]  ;;  %v1442_v51 = vadd.f32 %v190_v45, %v188_v43  ;;  %v192_v54 = vld [vmem:[%s10783_s0 + $0x5c0] sm:$0x7f] }
  0x6a   :  { %3160 = vst [vmem:[%s10784_s1 + $0xa4] sm:$0xf] %v3159_v46  ;;  %v2068_v52 = vadd.f32 %v1441_v42, %v1440_v41  ;;  %v1443_v53 = vadd.f32 %v191_v50, %v189_v44  ;;  %v193_v55 = vld [vmem:[%s10783_s0 + $0x5c8] sm:$0x7f]  ;;  %v3167_v58 = vld [vmem:[%s10784_s1 + $0xb0] sm:$0xf] }
  0x6b   :  { %v3162_v56 = vsel %vm4104_vm2, %v2738_v47, %v3161_v39  ;;  %v2739_v57 = vpack.c.bf16 %v2403_v48, %v2403_v48  ;;  %v194_v59 = vld [vmem:[%s10783_s0 + $0x5d0] sm:$0x7f]  ;;  %v195_v60 = vld [vmem:[%s10783_s0 + $0x5d8] sm:$0x7f]  ;;  %v196_v1 = vld [vmem:[%s10783_s0 + $0x5e0] sm:$0x7f] }
  0x6c   :  { %3163 = vst [vmem:[%s10784_s1 + $0xa8] sm:$0xf] %v3162_v56  ;;  %v2404_v61 = vmul.f32 0.25, %v2068_v52  ;;  %v2069_v62 = vadd.f32 %v1443_v53, %v1442_v51  ;;  %v1444_v63 = vadd.f32 %v194_v59, %v192_v54  ;;  %v1445_v0 = vadd.f32 %v195_v60, %v193_v55  ;;  %v197_v3 = vld [vmem:[%s10783_s0 + $0x5e8] sm:$0x7f] }
  0x6d   :  { %v3165_v2 = vsel %vm4104_vm2, %v2739_v57, %v3164_v49  ;;  %v198_v4 = vld [vmem:[%s10783_s0 + $0x5f0] sm:$0x7f]  ;;  %v199_v5 = vld [vmem:[%s10783_s0 + $0x5f8] sm:$0x7f]  ;;  %v200_v12 = vld [vmem:[%s10783_s0 + $0x600] sm:$0x7f] }
  0x6e   :  { %3166 = vst [vmem:[%s10784_s1 + $0xac] sm:$0xf] %v3165_v2  ;;  %v2740_v6 = vpack.c.bf16 %v2404_v61, %v2404_v61  ;;  %v2405_v7 = vmul.f32 0.25, %v2069_v62  ;;  %v3170_v8 = vld [vmem:[%s10784_s1 + $0xb4] sm:$0xf]  ;;  %v2070_v9 = vadd.f32 %v1445_v0, %v1444_v63  ;;  %v1446_v10 = vadd.f32 %v198_v4, %v196_v1 }
  0x6f   :  { %v1447_v11 = vadd.f32 %v199_v5, %v197_v3  ;;  %v201_v13 = vld [vmem:[%s10783_s0 + $0x608] sm:$0x7f]  ;;  %v202_v14 = vld [vmem:[%s10783_s0 + $0x610] sm:$0x7f]  ;;  %v3173_v18 = vld [vmem:[%s10784_s1 + $0xb8] sm:$0xf] }
  0x70   :  { %v3168_v15 = vsel %vm4104_vm2, %v2740_v6, %v3167_v58  ;;  %v2741_v16 = vpack.c.bf16 %v2405_v7, %v2405_v7  ;;  %v2406_v17 = vmul.f32 0.25, %v2070_v9  ;;  %v203_v19 = vld [vmem:[%s10783_s0 + $0x618] sm:$0x7f]  ;;  %v1448_v20 = vadd.f32 %v202_v14, %v200_v12  ;;  %v204_v24 = vld [vmem:[%s10783_s0 + $0x620] sm:$0x7f] }
  0x71   :  { %3169 = vst [vmem:[%s10784_s1 + $0xb0] sm:$0xf] %v3168_v15  ;;  %v2071_v21 = vadd.f32 %v1447_v11, %v1446_v10  ;;  %v1449_v22 = vadd.f32 %v203_v19, %v201_v13  ;;  %v205_v25 = vld [vmem:[%s10783_s0 + $0x628] sm:$0x7f]  ;;  %v3176_v28 = vld [vmem:[%s10784_s1 + $0xbc] sm:$0xf] }
  0x72   :  { %v3171_v26 = vsel %vm4104_vm2, %v2741_v16, %v3170_v8  ;;  %v2742_v27 = vpack.c.bf16 %v2406_v17, %v2406_v17  ;;  %v206_v29 = vld [vmem:[%s10783_s0 + $0x630] sm:$0x7f]  ;;  %v207_v30 = vld [vmem:[%s10783_s0 + $0x638] sm:$0x7f]  ;;  %v208_v35 = vld [vmem:[%s10783_s0 + $0x640] sm:$0x7f] }
  0x73   :  { %3172 = vst [vmem:[%s10784_s1 + $0xb4] sm:$0xf] %v3171_v26  ;;  %v2407_v31 = vmul.f32 0.25, %v2071_v21  ;;  %v2072_v32 = vadd.f32 %v1449_v22, %v1448_v20  ;;  %v1450_v33 = vadd.f32 %v206_v29, %v204_v24  ;;  %v1451_v34 = vadd.f32 %v207_v30, %v205_v25  ;;  %v209_v37 = vld [vmem:[%s10783_s0 + $0x648] sm:$0x7f] }
  0x74   :  { %v3174_v36 = vsel %vm4104_vm2, %v2742_v27, %v3173_v18  ;;  %v210_v38 = vld [vmem:[%s10783_s0 + $0x650] sm:$0x7f]  ;;  %v211_v39 = vld [vmem:[%s10783_s0 + $0x658] sm:$0x7f]  ;;  %v3179_v42 = vld [vmem:[%s10784_s1 + $0xc0] sm:$0xf] }
  0x75   :  { %3175 = vst [vmem:[%s10784_s1 + $0xb8] sm:$0xf] %v3174_v36  ;;  %v2743_v40 = vpack.c.bf16 %v2407_v31, %v2407_v31  ;;  %v2408_v41 = vmul.f32 0.25, %v2072_v32  ;;  %v2073_v43 = vadd.f32 %v1451_v34, %v1450_v33  ;;  %v1452_v44 = vadd.f32 %v210_v38, %v208_v35  ;;  %v212_v46 = vld [vmem:[%s10783_s0 + $0x660] sm:$0x7f] }
  0x76   :  { %v1453_v45 = vadd.f32 %v211_v39, %v209_v37  ;;  %v213_v47 = vld [vmem:[%s10783_s0 + $0x668] sm:$0x7f]  ;;  %v214_v48 = vld [vmem:[%s10783_s0 + $0x670] sm:$0x7f]  ;;  %v3182_v52 = vld [vmem:[%s10784_s1 + $0xc4] sm:$0xf] }
  0x77   :  { %v3177_v49 = vsel %vm4104_vm2, %v2743_v40, %v3176_v28  ;;  %v2744_v50 = vpack.c.bf16 %v2408_v41, %v2408_v41  ;;  %v2409_v51 = vmul.f32 0.25, %v2073_v43  ;;  %v215_v53 = vld [vmem:[%s10783_s0 + $0x678] sm:$0x7f]  ;;  %v1454_v54 = vadd.f32 %v214_v48, %v212_v46  ;;  %v216_v57 = vld [vmem:[%s10783_s0 + $0x680] sm:$0x7f] }
  0x78   :  { %3178 = vst [vmem:[%s10784_s1 + $0xbc] sm:$0xf] %v3177_v49  ;;  %v2074_v55 = vadd.f32 %v1453_v45, %v1452_v44  ;;  %v1455_v56 = vadd.f32 %v215_v53, %v213_v47  ;;  %v217_v58 = vld [vmem:[%s10783_s0 + $0x688] sm:$0x7f]  ;;  %v218_v62 = vld [vmem:[%s10783_s0 + $0x690] sm:$0x7f] }
  0x79   :  { %v3180_v59 = vsel %vm4104_vm2, %v2744_v50, %v3179_v42  ;;  %v2745_v60 = vpack.c.bf16 %v2409_v51, %v2409_v51  ;;  %v3185_v61 = vld [vmem:[%s10784_s1 + $0xc8] sm:$0xf]  ;;  %v219_v63 = vld [vmem:[%s10783_s0 + $0x698] sm:$0x7f]  ;;  %v1456_v2 = vadd.f32 %v218_v62, %v216_v57  ;;  %v220_v4 = vld [vmem:[%s10783_s0 + $0x6a0] sm:$0x7f] }
  0x7a   :  { %3181 = vst [vmem:[%s10784_s1 + $0xc0] sm:$0xf] %v3180_v59  ;;  %v2410_v0 = vmul.f32 0.25, %v2074_v55  ;;  %v2075_v1 = vadd.f32 %v1455_v56, %v1454_v54  ;;  %v1457_v3 = vadd.f32 %v219_v63, %v217_v58  ;;  %v221_v6 = vld [vmem:[%s10783_s0 + $0x6a8] sm:$0x7f] }
  0x7b   :  { %v3183_v5 = vsel %vm4104_vm2, %v2745_v60, %v3182_v52  ;;  %v222_v7 = vld [vmem:[%s10783_s0 + $0x6b0] sm:$0x7f]  ;;  %v223_v8 = vld [vmem:[%s10783_s0 + $0x6b8] sm:$0x7f]  ;;  %v3188_v11 = vld [vmem:[%s10784_s1 + $0xcc] sm:$0xf] }
  0x7c   :  { %3184 = vst [vmem:[%s10784_s1 + $0xc4] sm:$0xf] %v3183_v5  ;;  %v2746_v9 = vpack.c.bf16 %v2410_v0, %v2410_v0  ;;  %v2411_v10 = vmul.f32 0.25, %v2075_v1  ;;  %v2076_v12 = vadd.f32 %v1457_v3, %v1456_v2  ;;  %v1458_v13 = vadd.f32 %v222_v7, %v220_v4  ;;  %v224_v15 = vld [vmem:[%s10783_s0 + $0x6c0] sm:$0x7f] }
  0x7d   :  { %v1459_v14 = vadd.f32 %v223_v8, %v221_v6  ;;  %v225_v16 = vld [vmem:[%s10783_s0 + $0x6c8] sm:$0x7f]  ;;  %v226_v17 = vld [vmem:[%s10783_s0 + $0x6d0] sm:$0x7f]  ;;  %v227_v22 = vld [vmem:[%s10783_s0 + $0x6d8] sm:$0x7f] }
  0x7e   :  { %v3186_v18 = vsel %vm4104_vm2, %v2746_v9, %v3185_v61  ;;  %v2747_v19 = vpack.c.bf16 %v2411_v10, %v2411_v10  ;;  %v2412_v20 = vmul.f32 0.25, %v2076_v12  ;;  %v3191_v21 = vld [vmem:[%s10784_s1 + $0xd0] sm:$0xf]  ;;  %v1460_v24 = vadd.f32 %v226_v17, %v224_v15  ;;  %v228_v27 = vld [vmem:[%s10783_s0 + $0x6e0] sm:$0x7f] }
  0x7f   :  { %3187 = vst [vmem:[%s10784_s1 + $0xc8] sm:$0xf] %v3186_v18  ;;  %v2077_v25 = vadd.f32 %v1459_v14, %v1458_v13  ;;  %v1461_v26 = vadd.f32 %v227_v22, %v225_v16  ;;  %v229_v28 = vld [vmem:[%s10783_s0 + $0x6e8] sm:$0x7f]  ;;  %v3194_v31 = vld [vmem:[%s10784_s1 + $0xd4] sm:$0xf] }
  0x80   :  { %v3189_v29 = vsel %vm4104_vm2, %v2747_v19, %v3188_v11  ;;  %v2748_v30 = vpack.c.bf16 %v2412_v20, %v2412_v20  ;;  %v230_v32 = vld [vmem:[%s10783_s0 + $0x6f0] sm:$0x7f]  ;;  %v231_v33 = vld [vmem:[%s10783_s0 + $0x6f8] sm:$0x7f]  ;;  %v232_v38 = vld [vmem:[%s10783_s0 + $0x700] sm:$0x7f] }
  0x81   :  { %3190 = vst [vmem:[%s10784_s1 + $0xcc] sm:$0xf] %v3189_v29  ;;  %v2413_v34 = vmul.f32 0.25, %v2077_v25  ;;  %v2078_v35 = vadd.f32 %v1461_v26, %v1460_v24  ;;  %v1462_v36 = vadd.f32 %v230_v32, %v228_v27  ;;  %v1463_v37 = vadd.f32 %v231_v33, %v229_v28  ;;  %v233_v40 = vld [vmem:[%s10783_s0 + $0x708] sm:$0x7f] }
  0x82   :  { %v3192_v39 = vsel %vm4104_vm2, %v2748_v30, %v3191_v21  ;;  %v234_v41 = vld [vmem:[%s10783_s0 + $0x710] sm:$0x7f]  ;;  %v235_v42 = vld [vmem:[%s10783_s0 + $0x718] sm:$0x7f]  ;;  %v236_v49 = vld [vmem:[%s10783_s0 + $0x720] sm:$0x7f] }
  0x83   :  { %3193 = vst [vmem:[%s10784_s1 + $0xd0] sm:$0xf] %v3192_v39  ;;  %v2749_v43 = vpack.c.bf16 %v2413_v34, %v2413_v34  ;;  %v2414_v44 = vmul.f32 0.25, %v2078_v35  ;;  %v3197_v45 = vld [vmem:[%s10784_s1 + $0xd8] sm:$0xf]  ;;  %v2079_v46 = vadd.f32 %v1463_v37, %v1462_v36  ;;  %v1464_v47 = vadd.f32 %v234_v41, %v232_v38 }
  0x84   :  { %v1465_v48 = vadd.f32 %v235_v42, %v233_v40  ;;  %v237_v50 = vld [vmem:[%s10783_s0 + $0x728] sm:$0x7f]  ;;  %v238_v51 = vld [vmem:[%s10783_s0 + $0x730] sm:$0x7f]  ;;  %v3200_v55 = vld [vmem:[%s10784_s1 + $0xdc] sm:$0xf] }
  0x85   :  { %v3195_v52 = vsel %vm4104_vm2, %v2749_v43, %v3194_v31  ;;  %v2750_v53 = vpack.c.bf16 %v2414_v44, %v2414_v44  ;;  %v2415_v54 = vmul.f32 0.25, %v2079_v46  ;;  %v239_v56 = vld [vmem:[%s10783_s0 + $0x738] sm:$0x7f]  ;;  %v1466_v57 = vadd.f32 %v238_v51, %v236_v49  ;;  %v240_v60 = vld [vmem:[%s10783_s0 + $0x740] sm:$0x7f] }
  0x86   :  { %3196 = vst [vmem:[%s10784_s1 + $0xd4] sm:$0xf] %v3195_v52  ;;  %v2080_v58 = vadd.f32 %v1465_v48, %v1464_v47  ;;  %v1467_v59 = vadd.f32 %v239_v56, %v237_v50  ;;  %v241_v61 = vld [vmem:[%s10783_s0 + $0x748] sm:$0x7f]  ;;  %v3203_v0 = vld [vmem:[%s10784_s1 + $0xe0] sm:$0xf] }
  0x87   :  { %v3198_v62 = vsel %vm4104_vm2, %v2750_v53, %v3197_v45  ;;  %v2751_v63 = vpack.c.bf16 %v2415_v54, %v2415_v54  ;;  %v242_v1 = vld [vmem:[%s10783_s0 + $0x750] sm:$0x7f]  ;;  %v243_v2 = vld [vmem:[%s10783_s0 + $0x758] sm:$0x7f]  ;;  %v244_v7 = vld [vmem:[%s10783_s0 + $0x760] sm:$0x7f] }
  0x88   :  { %3199 = vst [vmem:[%s10784_s1 + $0xd8] sm:$0xf] %v3198_v62  ;;  %v2416_v3 = vmul.f32 0.25, %v2080_v58  ;;  %v2081_v4 = vadd.f32 %v1467_v59, %v1466_v57  ;;  %v1468_v5 = vadd.f32 %v242_v1, %v240_v60  ;;  %v1469_v6 = vadd.f32 %v243_v2, %v241_v61  ;;  %v245_v9 = vld [vmem:[%s10783_s0 + $0x768] sm:$0x7f] }
  0x89   :  { %v3201_v8 = vsel %vm4104_vm2, %v2751_v63, %v3200_v55  ;;  %v246_v10 = vld [vmem:[%s10783_s0 + $0x770] sm:$0x7f]  ;;  %v247_v11 = vld [vmem:[%s10783_s0 + $0x778] sm:$0x7f]  ;;  %v3206_v14 = vld [vmem:[%s10784_s1 + $0xe4] sm:$0xf] }
  0x8a   :  { %3202 = vst [vmem:[%s10784_s1 + $0xdc] sm:$0xf] %v3201_v8  ;;  %v2752_v12 = vpack.c.bf16 %v2416_v3, %v2416_v3  ;;  %v2417_v13 = vmul.f32 0.25, %v2081_v4  ;;  %v2082_v15 = vadd.f32 %v1469_v6, %v1468_v5  ;;  %v1470_v16 = vadd.f32 %v246_v10, %v244_v7  ;;  %v248_v18 = vld [vmem:[%s10783_s0 + $0x780] sm:$0x7f] }
  0x8b   :  { %v1471_v17 = vadd.f32 %v247_v11, %v245_v9  ;;  %v249_v19 = vld [vmem:[%s10783_s0 + $0x788] sm:$0x7f]  ;;  %v250_v20 = vld [vmem:[%s10783_s0 + $0x790] sm:$0x7f]  ;;  %v251_v26 = vld [vmem:[%s10783_s0 + $0x798] sm:$0x7f] }
  0x8c   :  { %v3204_v21 = vsel %vm4104_vm2, %v2752_v12, %v3203_v0  ;;  %v2753_v22 = vpack.c.bf16 %v2417_v13, %v2417_v13  ;;  %v2418_v24 = vmul.f32 0.25, %v2082_v15  ;;  %v3209_v25 = vld [vmem:[%s10784_s1 + $0xe8] sm:$0xf]  ;;  %v1472_v27 = vadd.f32 %v250_v20, %v248_v18  ;;  %v252_v30 = vld [vmem:[%s10783_s0 + $0x7a0] sm:$0x7f] }
  0x8d   :  { %3205 = vst [vmem:[%s10784_s1 + $0xe0] sm:$0xf] %v3204_v21  ;;  %v2083_v28 = vadd.f32 %v1471_v17, %v1470_v16  ;;  %v1473_v29 = vadd.f32 %v251_v26, %v249_v19  ;;  %v253_v31 = vld [vmem:[%s10783_s0 + $0x7a8] sm:$0x7f]  ;;  %v254_v35 = vld [vmem:[%s10783_s0 + $0x7b0] sm:$0x7f] }
  0x8e   :  { %v3207_v32 = vsel %vm4104_vm2, %v2753_v22, %v3206_v14  ;;  %v2754_v33 = vpack.c.bf16 %v2418_v24, %v2418_v24  ;;  %v3212_v34 = vld [vmem:[%s10784_s1 + $0xec] sm:$0xf]  ;;  %v255_v36 = vld [vmem:[%s10783_s0 + $0x7b8] sm:$0x7f]  ;;  %v1474_v39 = vadd.f32 %v254_v35, %v252_v30  ;;  %v256_v41 = vld [vmem:[%s10783_s0 + $0x7c0] sm:$0x7f] }
  0x8f   :  { %3208 = vst [vmem:[%s10784_s1 + $0xe4] sm:$0xf] %v3207_v32  ;;  %v2419_v37 = vmul.f32 0.25, %v2083_v28  ;;  %v2084_v38 = vadd.f32 %v1473_v29, %v1472_v27  ;;  %v1475_v40 = vadd.f32 %v255_v36, %v253_v31  ;;  %v257_v43 = vld [vmem:[%s10783_s0 + $0x7c8] sm:$0x7f] }
  0x90   :  { %v3210_v42 = vsel %vm4104_vm2, %v2754_v33, %v3209_v25  ;;  %v258_v44 = vld [vmem:[%s10783_s0 + $0x7d0] sm:$0x7f]  ;;  %v259_v45 = vld [vmem:[%s10783_s0 + $0x7d8] sm:$0x7f]  ;;  %v260_v52 = vld [vmem:[%s10783_s0 + $0x7e0] sm:$0x7f] }
  0x91   :  { %3211 = vst [vmem:[%s10784_s1 + $0xe8] sm:$0xf] %v3210_v42  ;;  %v2755_v46 = vpack.c.bf16 %v2419_v37, %v2419_v37  ;;  %v2420_v47 = vmul.f32 0.25, %v2084_v38  ;;  %v3215_v48 = vld [vmem:[%s10784_s1 + $0xf0] sm:$0xf]  ;;  %v2085_v49 = vadd.f32 %v1475_v40, %v1474_v39  ;;  %v1476_v50 = vadd.f32 %v258_v44, %v256_v41 }
  0x92   :  { %v1477_v51 = vadd.f32 %v259_v45, %v257_v43  ;;  %v261_v53 = vld [vmem:[%s10783_s0 + $0x7e8] sm:$0x7f]  ;;  %v262_v54 = vld [vmem:[%s10783_s0 + $0x7f0] sm:$0x7f]  ;;  %v263_v59 = vld [vmem:[%s10783_s0 + $0x7f8] sm:$0x7f] }
  0x93   :  { %v3213_v55 = vsel %vm4104_vm2, %v2755_v46, %v3212_v34  ;;  %v2756_v56 = vpack.c.bf16 %v2420_v47, %v2420_v47  ;;  %v2421_v57 = vmul.f32 0.25, %v2085_v49  ;;  %v3218_v58 = vld [vmem:[%s10784_s1 + $0xf4] sm:$0xf]  ;;  %v1478_v60 = vadd.f32 %v262_v54, %v260_v52  ;;  %v264_v63 = vld [vmem:[%s10783_s0 + $0x800] sm:$0x7f] }
  0x94   :  { %3214 = vst [vmem:[%s10784_s1 + $0xec] sm:$0xf] %v3213_v55  ;;  %v2086_v61 = vadd.f32 %v1477_v51, %v1476_v50  ;;  %v1479_v62 = vadd.f32 %v263_v59, %v261_v53  ;;  %v265_v0 = vld [vmem:[%s10783_s0 + $0x808] sm:$0x7f]  ;;  %v3221_v3 = vld [vmem:[%s10784_s1 + $0xf8] sm:$0xf] }
  0x95   :  { %v3216_v1 = vsel %vm4104_vm2, %v2756_v56, %v3215_v48  ;;  %v2757_v2 = vpack.c.bf16 %v2421_v57, %v2421_v57  ;;  %v266_v4 = vld [vmem:[%s10783_s0 + $0x810] sm:$0x7f]  ;;  %v267_v5 = vld [vmem:[%s10783_s0 + $0x818] sm:$0x7f]  ;;  %v268_v10 = vld [vmem:[%s10783_s0 + $0x820] sm:$0x7f] }
  0x96   :  { %3217 = vst [vmem:[%s10784_s1 + $0xf0] sm:$0xf] %v3216_v1  ;;  %v2422_v6 = vmul.f32 0.25, %v2086_v61  ;;  %v2087_v7 = vadd.f32 %v1479_v62, %v1478_v60  ;;  %v1480_v8 = vadd.f32 %v266_v4, %v264_v63  ;;  %v1481_v9 = vadd.f32 %v267_v5, %v265_v0  ;;  %v269_v12 = vld [vmem:[%s10783_s0 + $0x828] sm:$0x7f] }
  0x97   :  { %v3219_v11 = vsel %vm4104_vm2, %v2757_v2, %v3218_v58  ;;  %v270_v13 = vld [vmem:[%s10783_s0 + $0x830] sm:$0x7f]  ;;  %v271_v14 = vld [vmem:[%s10783_s0 + $0x838] sm:$0x7f]  ;;  %v272_v21 = vld [vmem:[%s10783_s0 + $0x840] sm:$0x7f] }
  0x98   :  { %3220 = vst [vmem:[%s10784_s1 + $0xf4] sm:$0xf] %v3219_v11  ;;  %v2758_v15 = vpack.c.bf16 %v2422_v6, %v2422_v6  ;;  %v2423_v16 = vmul.f32 0.25, %v2087_v7  ;;  %v3224_v17 = vld [vmem:[%s10784_s1 + $0xfc] sm:$0xf]  ;;  %v2088_v18 = vadd.f32 %v1481_v9, %v1480_v8  ;;  %v1482_v19 = vadd.f32 %v270_v13, %v268_v10 }
  0x99   :  { %v1483_v20 = vadd.f32 %v271_v14, %v269_v12  ;;  %v273_v22 = vld [vmem:[%s10783_s0 + $0x848] sm:$0x7f]  ;;  %v274_v24 = vld [vmem:[%s10783_s0 + $0x850] sm:$0x7f]  ;;  %v3227_v28 = vld [vmem:[%s10784_s1 + $0x100] sm:$0xf] }
  0x9a   :  { %v3222_v25 = vsel %vm4104_vm2, %v2758_v15, %v3221_v3  ;;  %v2759_v26 = vpack.c.bf16 %v2423_v16, %v2423_v16  ;;  %v2424_v27 = vmul.f32 0.25, %v2088_v18  ;;  %v275_v29 = vld [vmem:[%s10783_s0 + $0x858] sm:$0x7f]  ;;  %v1484_v30 = vadd.f32 %v274_v24, %v272_v21  ;;  %v276_v33 = vld [vmem:[%s10783_s0 + $0x860] sm:$0x7f] }
  0x9b   :  { %3223 = vst [vmem:[%s10784_s1 + $0xf8] sm:$0xf] %v3222_v25  ;;  %v2089_v31 = vadd.f32 %v1483_v20, %v1482_v19  ;;  %v1485_v32 = vadd.f32 %v275_v29, %v273_v22  ;;  %v277_v34 = vld [vmem:[%s10783_s0 + $0x868] sm:$0x7f]  ;;  %v3230_v37 = vld [vmem:[%s10784_s1 + $0x104] sm:$0xf] }
  0x9c   :  { %v3225_v35 = vsel %vm4104_vm2, %v2759_v26, %v3224_v17  ;;  %v2760_v36 = vpack.c.bf16 %v2424_v27, %v2424_v27  ;;  %v278_v38 = vld [vmem:[%s10783_s0 + $0x870] sm:$0x7f]  ;;  %v279_v39 = vld [vmem:[%s10783_s0 + $0x878] sm:$0x7f]  ;;  %v280_v44 = vld [vmem:[%s10783_s0 + $0x880] sm:$0x7f] }
  0x9d   :  { %3226 = vst [vmem:[%s10784_s1 + $0xfc] sm:$0xf] %v3225_v35  ;;  %v2425_v40 = vmul.f32 0.25, %v2089_v31  ;;  %v2090_v41 = vadd.f32 %v1485_v32, %v1484_v30  ;;  %v1486_v42 = vadd.f32 %v278_v38, %v276_v33  ;;  %v1487_v43 = vadd.f32 %v279_v39, %v277_v34  ;;  %v281_v46 = vld [vmem:[%s10783_s0 + $0x888] sm:$0x7f] }
  0x9e   :  { %v3228_v45 = vsel %vm4104_vm2, %v2760_v36, %v3227_v28  ;;  %v282_v47 = vld [vmem:[%s10783_s0 + $0x890] sm:$0x7f]  ;;  %v283_v48 = vld [vmem:[%s10783_s0 + $0x898] sm:$0x7f]  ;;  %v3233_v51 = vld [vmem:[%s10784_s1 + $0x108] sm:$0xf] }
  0x9f   :  { %3229 = vst [vmem:[%s10784_s1 + $0x100] sm:$0xf] %v3228_v45  ;;  %v2761_v49 = vpack.c.bf16 %v2425_v40, %v2425_v40  ;;  %v2426_v50 = vmul.f32 0.25, %v2090_v41  ;;  %v2091_v52 = vadd.f32 %v1487_v43, %v1486_v42  ;;  %v1488_v53 = vadd.f32 %v282_v47, %v280_v44  ;;  %v284_v55 = vld [vmem:[%s10783_s0 + $0x8a0] sm:$0x7f] }
  0xa0   :  { %v1489_v54 = vadd.f32 %v283_v48, %v281_v46  ;;  %v285_v56 = vld [vmem:[%s10783_s0 + $0x8a8] sm:$0x7f]  ;;  %v286_v57 = vld [vmem:[%s10783_s0 + $0x8b0] sm:$0x7f]  ;;  %v287_v62 = vld [vmem:[%s10783_s0 + $0x8b8] sm:$0x7f] }
  0xa1   :  { %v3231_v58 = vsel %vm4104_vm2, %v2761_v49, %v3230_v37  ;;  %v2762_v59 = vpack.c.bf16 %v2426_v50, %v2426_v50  ;;  %v2427_v60 = vmul.f32 0.25, %v2091_v52  ;;  %v3236_v61 = vld [vmem:[%s10784_s1 + $0x10c] sm:$0xf]  ;;  %v1490_v63 = vadd.f32 %v286_v57, %v284_v55  ;;  %v288_v2 = vld [vmem:[%s10783_s0 + $0x8c0] sm:$0x7f] }
  0xa2   :  { %3232 = vst [vmem:[%s10784_s1 + $0x104] sm:$0xf] %v3231_v58  ;;  %v2092_v0 = vadd.f32 %v1489_v54, %v1488_v53  ;;  %v1491_v1 = vadd.f32 %v287_v62, %v285_v56  ;;  %v289_v3 = vld [vmem:[%s10783_s0 + $0x8c8] sm:$0x7f]  ;;  %v3239_v6 = vld [vmem:[%s10784_s1 + $0x110] sm:$0xf] }
  0xa3   :  { %v3234_v4 = vsel %vm4104_vm2, %v2762_v59, %v3233_v51  ;;  %v2763_v5 = vpack.c.bf16 %v2427_v60, %v2427_v60  ;;  %v290_v7 = vld [vmem:[%s10783_s0 + $0x8d0] sm:$0x7f]  ;;  %v291_v8 = vld [vmem:[%s10783_s0 + $0x8d8] sm:$0x7f]  ;;  %v292_v13 = vld [vmem:[%s10783_s0 + $0x8e0] sm:$0x7f] }
  0xa4   :  { %3235 = vst [vmem:[%s10784_s1 + $0x108] sm:$0xf] %v3234_v4  ;;  %v2428_v9 = vmul.f32 0.25, %v2092_v0  ;;  %v2093_v10 = vadd.f32 %v1491_v1, %v1490_v63  ;;  %v1492_v11 = vadd.f32 %v290_v7, %v288_v2  ;;  %v1493_v12 = vadd.f32 %v291_v8, %v289_v3  ;;  %v293_v15 = vld [vmem:[%s10783_s0 + $0x8e8] sm:$0x7f] }
  0xa5   :  { %v3237_v14 = vsel %vm4104_vm2, %v2763_v5, %v3236_v61  ;;  %v294_v16 = vld [vmem:[%s10783_s0 + $0x8f0] sm:$0x7f]  ;;  %v295_v17 = vld [vmem:[%s10783_s0 + $0x8f8] sm:$0x7f]  ;;  %v296_v25 = vld [vmem:[%s10783_s0 + $0x900] sm:$0x7f] }
  0xa6   :  { %3238 = vst [vmem:[%s10784_s1 + $0x10c] sm:$0xf] %v3237_v14  ;;  %v2764_v18 = vpack.c.bf16 %v2428_v9, %v2428_v9  ;;  %v2429_v19 = vmul.f32 0.25, %v2093_v10  ;;  %v3242_v20 = vld [vmem:[%s10784_s1 + $0x114] sm:$0xf]  ;;  %v2094_v21 = vadd.f32 %v1493_v12, %v1492_v11  ;;  %v1494_v22 = vadd.f32 %v294_v16, %v292_v13 }
  0xa7   :  { %v1495_v24 = vadd.f32 %v295_v17, %v293_v15  ;;  %v297_v26 = vld [vmem:[%s10783_s0 + $0x908] sm:$0x7f]  ;;  %v298_v27 = vld [vmem:[%s10783_s0 + $0x910] sm:$0x7f]  ;;  %v3245_v31 = vld [vmem:[%s10784_s1 + $0x118] sm:$0xf] }
  0xa8   :  { %v3240_v28 = vsel %vm4104_vm2, %v2764_v18, %v3239_v6  ;;  %v2765_v29 = vpack.c.bf16 %v2429_v19, %v2429_v19  ;;  %v2430_v30 = vmul.f32 0.25, %v2094_v21  ;;  %v299_v32 = vld [vmem:[%s10783_s0 + $0x918] sm:$0x7f]  ;;  %v1496_v33 = vadd.f32 %v298_v27, %v296_v25  ;;  %v300_v36 = vld [vmem:[%s10783_s0 + $0x920] sm:$0x7f] }
  0xa9   :  { %3241 = vst [vmem:[%s10784_s1 + $0x110] sm:$0xf] %v3240_v28  ;;  %v2095_v34 = vadd.f32 %v1495_v24, %v1494_v22  ;;  %v1497_v35 = vadd.f32 %v299_v32, %v297_v26  ;;  %v301_v37 = vld [vmem:[%s10783_s0 + $0x928] sm:$0x7f]  ;;  %v3248_v40 = vld [vmem:[%s10784_s1 + $0x11c] sm:$0xf] }
  0xaa   :  { %v3243_v38 = vsel %vm4104_vm2, %v2765_v29, %v3242_v20  ;;  %v2766_v39 = vpack.c.bf16 %v2430_v30, %v2430_v30  ;;  %v302_v41 = vld [vmem:[%s10783_s0 + $0x930] sm:$0x7f]  ;;  %v303_v42 = vld [vmem:[%s10783_s0 + $0x938] sm:$0x7f]  ;;  %v304_v47 = vld [vmem:[%s10783_s0 + $0x940] sm:$0x7f] }
  0xab   :  { %3244 = vst [vmem:[%s10784_s1 + $0x114] sm:$0xf] %v3243_v38  ;;  %v2431_v43 = vmul.f32 0.25, %v2095_v34  ;;  %v2096_v44 = vadd.f32 %v1497_v35, %v1496_v33  ;;  %v1498_v45 = vadd.f32 %v302_v41, %v300_v36  ;;  %v1499_v46 = vadd.f32 %v303_v42, %v301_v37  ;;  %v305_v49 = vld [vmem:[%s10783_s0 + $0x948] sm:$0x7f] }
  0xac   :  { %v3246_v48 = vsel %vm4104_vm2, %v2766_v39, %v3245_v31  ;;  %v306_v50 = vld [vmem:[%s10783_s0 + $0x950] sm:$0x7f]  ;;  %v307_v51 = vld [vmem:[%s10783_s0 + $0x958] sm:$0x7f]  ;;  %v3251_v54 = vld [vmem:[%s10784_s1 + $0x120] sm:$0xf] }
  0xad   :  { %3247 = vst [vmem:[%s10784_s1 + $0x118] sm:$0xf] %v3246_v48  ;;  %v2767_v52 = vpack.c.bf16 %v2431_v43, %v2431_v43  ;;  %v2432_v53 = vmul.f32 0.25, %v2096_v44  ;;  %v2097_v55 = vadd.f32 %v1499_v46, %v1498_v45  ;;  %v1500_v56 = vadd.f32 %v306_v50, %v304_v47  ;;  %v308_v58 = vld [vmem:[%s10783_s0 + $0x960] sm:$0x7f] }
  0xae   :  { %v1501_v57 = vadd.f32 %v307_v51, %v305_v49  ;;  %v309_v59 = vld [vmem:[%s10783_s0 + $0x968] sm:$0x7f]  ;;  %v310_v60 = vld [vmem:[%s10783_s0 + $0x970] sm:$0x7f]  ;;  %v3254_v0 = vld [vmem:[%s10784_s1 + $0x124] sm:$0xf] }
  0xaf   :  { %v3249_v61 = vsel %vm4104_vm2, %v2767_v52, %v3248_v40  ;;  %v2768_v62 = vpack.c.bf16 %v2432_v53, %v2432_v53  ;;  %v2433_v63 = vmul.f32 0.25, %v2097_v55  ;;  %v311_v1 = vld [vmem:[%s10783_s0 + $0x978] sm:$0x7f]  ;;  %v1502_v2 = vadd.f32 %v310_v60, %v308_v58  ;;  %v312_v5 = vld [vmem:[%s10783_s0 + $0x980] sm:$0x7f] }
  0xb0   :  { %3250 = vst [vmem:[%s10784_s1 + $0x11c] sm:$0xf] %v3249_v61  ;;  %v2098_v3 = vadd.f32 %v1501_v57, %v1500_v56  ;;  %v1503_v4 = vadd.f32 %v311_v1, %v309_v59  ;;  %v313_v6 = vld [vmem:[%s10783_s0 + $0x988] sm:$0x7f]  ;;  %v314_v10 = vld [vmem:[%s10783_s0 + $0x990] sm:$0x7f] }
  0xb1   :  { %v3252_v7 = vsel %vm4104_vm2, %v2768_v62, %v3251_v54  ;;  %v2769_v8 = vpack.c.bf16 %v2433_v63, %v2433_v63  ;;  %v3257_v9 = vld [vmem:[%s10784_s1 + $0x128] sm:$0xf]  ;;  %v315_v11 = vld [vmem:[%s10783_s0 + $0x998] sm:$0x7f]  ;;  %v1504_v14 = vadd.f32 %v314_v10, %v312_v5  ;;  %v316_v16 = vld [vmem:[%s10783_s0 + $0x9a0] sm:$0x7f] }
  0xb2   :  { %3253 = vst [vmem:[%s10784_s1 + $0x120] sm:$0xf] %v3252_v7  ;;  %v2434_v12 = vmul.f32 0.25, %v2098_v3  ;;  %v2099_v13 = vadd.f32 %v1503_v4, %v1502_v2  ;;  %v1505_v15 = vadd.f32 %v315_v11, %v313_v6  ;;  %v317_v18 = vld [vmem:[%s10783_s0 + $0x9a8] sm:$0x7f] }
  0xb3   :  { %v3255_v17 = vsel %vm4104_vm2, %v2769_v8, %v3254_v0  ;;  %v318_v19 = vld [vmem:[%s10783_s0 + $0x9b0] sm:$0x7f]  ;;  %v319_v20 = vld [vmem:[%s10783_s0 + $0x9b8] sm:$0x7f]  ;;  %v3260_v24 = vld [vmem:[%s10784_s1 + $0x12c] sm:$0xf] }
  0xb4   :  { %3256 = vst [vmem:[%s10784_s1 + $0x124] sm:$0xf] %v3255_v17  ;;  %v2770_v21 = vpack.c.bf16 %v2434_v12, %v2434_v12  ;;  %v2435_v22 = vmul.f32 0.25, %v2099_v13  ;;  %v2100_v25 = vadd.f32 %v1505_v15, %v1504_v14  ;;  %v1506_v26 = vadd.f32 %v318_v19, %v316_v16  ;;  %v320_v28 = vld [vmem:[%s10783_s0 + $0x9c0] sm:$0x7f] }
  0xb5   :  { %v1507_v27 = vadd.f32 %v319_v20, %v317_v18  ;;  %v321_v29 = vld [vmem:[%s10783_s0 + $0x9c8] sm:$0x7f]  ;;  %v322_v30 = vld [vmem:[%s10783_s0 + $0x9d0] sm:$0x7f]  ;;  %v323_v35 = vld [vmem:[%s10783_s0 + $0x9d8] sm:$0x7f] }
  0xb6   :  { %v3258_v31 = vsel %vm4104_vm2, %v2770_v21, %v3257_v9  ;;  %v2771_v32 = vpack.c.bf16 %v2435_v22, %v2435_v22  ;;  %v2436_v33 = vmul.f32 0.25, %v2100_v25  ;;  %v3263_v34 = vld [vmem:[%s10784_s1 + $0x130] sm:$0xf]  ;;  %v1508_v36 = vadd.f32 %v322_v30, %v320_v28  ;;  %v324_v39 = vld [vmem:[%s10783_s0 + $0x9e0] sm:$0x7f] }
  0xb7   :  { %3259 = vst [vmem:[%s10784_s1 + $0x128] sm:$0xf] %v3258_v31  ;;  %v2101_v37 = vadd.f32 %v1507_v27, %v1506_v26  ;;  %v1509_v38 = vadd.f32 %v323_v35, %v321_v29  ;;  %v325_v40 = vld [vmem:[%s10783_s0 + $0x9e8] sm:$0x7f]  ;;  %v3266_v43 = vld [vmem:[%s10784_s1 + $0x134] sm:$0xf] }
  0xb8   :  { %v3261_v41 = vsel %vm4104_vm2, %v2771_v32, %v3260_v24  ;;  %v2772_v42 = vpack.c.bf16 %v2436_v33, %v2436_v33  ;;  %v326_v44 = vld [vmem:[%s10783_s0 + $0x9f0] sm:$0x7f]  ;;  %v327_v45 = vld [vmem:[%s10783_s0 + $0x9f8] sm:$0x7f]  ;;  %v328_v50 = vld [vmem:[%s10783_s0 + $0xa00] sm:$0x7f] }
  0xb9   :  { %3262 = vst [vmem:[%s10784_s1 + $0x12c] sm:$0xf] %v3261_v41  ;;  %v2437_v46 = vmul.f32 0.25, %v2101_v37  ;;  %v2102_v47 = vadd.f32 %v1509_v38, %v1508_v36  ;;  %v1510_v48 = vadd.f32 %v326_v44, %v324_v39  ;;  %v1511_v49 = vadd.f32 %v327_v45, %v325_v40  ;;  %v329_v52 = vld [vmem:[%s10783_s0 + $0xa08] sm:$0x7f] }
  0xba   :  { %v3264_v51 = vsel %vm4104_vm2, %v2772_v42, %v3263_v34  ;;  %v330_v53 = vld [vmem:[%s10783_s0 + $0xa10] sm:$0x7f]  ;;  %v331_v54 = vld [vmem:[%s10783_s0 + $0xa18] sm:$0x7f]  ;;  %v332_v61 = vld [vmem:[%s10783_s0 + $0xa20] sm:$0x7f] }
  0xbb   :  { %3265 = vst [vmem:[%s10784_s1 + $0x130] sm:$0xf] %v3264_v51  ;;  %v2773_v55 = vpack.c.bf16 %v2437_v46, %v2437_v46  ;;  %v2438_v56 = vmul.f32 0.25, %v2102_v47  ;;  %v3269_v57 = vld [vmem:[%s10784_s1 + $0x138] sm:$0xf]  ;;  %v2103_v58 = vadd.f32 %v1511_v49, %v1510_v48  ;;  %v1512_v59 = vadd.f32 %v330_v53, %v328_v50 }
  0xbc   :  { %v1513_v60 = vadd.f32 %v331_v54, %v329_v52  ;;  %v333_v62 = vld [vmem:[%s10783_s0 + $0xa28] sm:$0x7f]  ;;  %v334_v63 = vld [vmem:[%s10783_s0 + $0xa30] sm:$0x7f]  ;;  %v3272_v3 = vld [vmem:[%s10784_s1 + $0x13c] sm:$0xf] }
  0xbd   :  { %v3267_v0 = vsel %vm4104_vm2, %v2773_v55, %v3266_v43  ;;  %v2774_v1 = vpack.c.bf16 %v2438_v56, %v2438_v56  ;;  %v2439_v2 = vmul.f32 0.25, %v2103_v58  ;;  %v335_v4 = vld [vmem:[%s10783_s0 + $0xa38] sm:$0x7f]  ;;  %v1514_v5 = vadd.f32 %v334_v63, %v332_v61  ;;  %v336_v8 = vld [vmem:[%s10783_s0 + $0xa40] sm:$0x7f] }
  0xbe   :  { %3268 = vst [vmem:[%s10784_s1 + $0x134] sm:$0xf] %v3267_v0  ;;  %v2104_v6 = vadd.f32 %v1513_v60, %v1512_v59  ;;  %v1515_v7 = vadd.f32 %v335_v4, %v333_v62  ;;  %v337_v9 = vld [vmem:[%s10783_s0 + $0xa48] sm:$0x7f]  ;;  %v3275_v12 = vld [vmem:[%s10784_s1 + $0x140] sm:$0xf] }
  0xbf   :  { %v3270_v10 = vsel %vm4104_vm2, %v2774_v1, %v3269_v57  ;;  %v2775_v11 = vpack.c.bf16 %v2439_v2, %v2439_v2  ;;  %v338_v13 = vld [vmem:[%s10783_s0 + $0xa50] sm:$0x7f]  ;;  %v339_v14 = vld [vmem:[%s10783_s0 + $0xa58] sm:$0x7f]  ;;  %v340_v19 = vld [vmem:[%s10783_s0 + $0xa60] sm:$0x7f] }
  0xc0   :  { %3271 = vst [vmem:[%s10784_s1 + $0x138] sm:$0xf] %v3270_v10  ;;  %v2440_v15 = vmul.f32 0.25, %v2104_v6  ;;  %v2105_v16 = vadd.f32 %v1515_v7, %v1514_v5  ;;  %v1516_v17 = vadd.f32 %v338_v13, %v336_v8  ;;  %v1517_v18 = vadd.f32 %v339_v14, %v337_v9  ;;  %v341_v21 = vld [vmem:[%s10783_s0 + $0xa68] sm:$0x7f] }
  0xc1   :  { %v3273_v20 = vsel %vm4104_vm2, %v2775_v11, %v3272_v3  ;;  %v342_v22 = vld [vmem:[%s10783_s0 + $0xa70] sm:$0x7f]  ;;  %v343_v24 = vld [vmem:[%s10783_s0 + $0xa78] sm:$0x7f]  ;;  %v3278_v27 = vld [vmem:[%s10784_s1 + $0x144] sm:$0xf] }
  0xc2   :  { %3274 = vst [vmem:[%s10784_s1 + $0x13c] sm:$0xf] %v3273_v20  ;;  %v2776_v25 = vpack.c.bf16 %v2440_v15, %v2440_v15  ;;  %v2441_v26 = vmul.f32 0.25, %v2105_v16  ;;  %v2106_v28 = vadd.f32 %v1517_v18, %v1516_v17  ;;  %v1518_v29 = vadd.f32 %v342_v22, %v340_v19  ;;  %v344_v31 = vld [vmem:[%s10783_s0 + $0xa80] sm:$0x7f] }
  0xc3   :  { %v1519_v30 = vadd.f32 %v343_v24, %v341_v21  ;;  %v345_v32 = vld [vmem:[%s10783_s0 + $0xa88] sm:$0x7f]  ;;  %v346_v33 = vld [vmem:[%s10783_s0 + $0xa90] sm:$0x7f]  ;;  %v347_v38 = vld [vmem:[%s10783_s0 + $0xa98] sm:$0x7f] }
  0xc4   :  { %v3276_v34 = vsel %vm4104_vm2, %v2776_v25, %v3275_v12  ;;  %v2777_v35 = vpack.c.bf16 %v2441_v26, %v2441_v26  ;;  %v2442_v36 = vmul.f32 0.25, %v2106_v28  ;;  %v3281_v37 = vld [vmem:[%s10784_s1 + $0x148] sm:$0xf]  ;;  %v1520_v39 = vadd.f32 %v346_v33, %v344_v31  ;;  %v348_v42 = vld [vmem:[%s10783_s0 + $0xaa0] sm:$0x7f] }
  0xc5   :  { %3277 = vst [vmem:[%s10784_s1 + $0x140] sm:$0xf] %v3276_v34  ;;  %v2107_v40 = vadd.f32 %v1519_v30, %v1518_v29  ;;  %v1521_v41 = vadd.f32 %v347_v38, %v345_v32  ;;  %v349_v43 = vld [vmem:[%s10783_s0 + $0xaa8] sm:$0x7f]  ;;  %v350_v47 = vld [vmem:[%s10783_s0 + $0xab0] sm:$0x7f] }
  0xc6   :  { %v3279_v44 = vsel %vm4104_vm2, %v2777_v35, %v3278_v27  ;;  %v2778_v45 = vpack.c.bf16 %v2442_v36, %v2442_v36  ;;  %v3284_v46 = vld [vmem:[%s10784_s1 + $0x14c] sm:$0xf]  ;;  %v351_v48 = vld [vmem:[%s10783_s0 + $0xab8] sm:$0x7f]  ;;  %v1522_v51 = vadd.f32 %v350_v47, %v348_v42  ;;  %v352_v53 = vld [vmem:[%s10783_s0 + $0xac0] sm:$0x7f] }
  0xc7   :  { %3280 = vst [vmem:[%s10784_s1 + $0x144] sm:$0xf] %v3279_v44  ;;  %v2443_v49 = vmul.f32 0.25, %v2107_v40  ;;  %v2108_v50 = vadd.f32 %v1521_v41, %v1520_v39  ;;  %v1523_v52 = vadd.f32 %v351_v48, %v349_v43  ;;  %v353_v55 = vld [vmem:[%s10783_s0 + $0xac8] sm:$0x7f] }
  0xc8   :  { %v3282_v54 = vsel %vm4104_vm2, %v2778_v45, %v3281_v37  ;;  %v354_v56 = vld [vmem:[%s10783_s0 + $0xad0] sm:$0x7f]  ;;  %v355_v57 = vld [vmem:[%s10783_s0 + $0xad8] sm:$0x7f]  ;;  %v356_v0 = vld [vmem:[%s10783_s0 + $0xae0] sm:$0x7f] }
  0xc9   :  { %3283 = vst [vmem:[%s10784_s1 + $0x148] sm:$0xf] %v3282_v54  ;;  %v2779_v58 = vpack.c.bf16 %v2443_v49, %v2443_v49  ;;  %v2444_v59 = vmul.f32 0.25, %v2108_v50  ;;  %v3287_v60 = vld [vmem:[%s10784_s1 + $0x150] sm:$0xf]  ;;  %v2109_v61 = vadd.f32 %v1523_v52, %v1522_v51  ;;  %v1524_v62 = vadd.f32 %v354_v56, %v352_v53 }
  0xca   :  { %v1525_v63 = vadd.f32 %v355_v57, %v353_v55  ;;  %v357_v1 = vld [vmem:[%s10783_s0 + $0xae8] sm:$0x7f]  ;;  %v358_v2 = vld [vmem:[%s10783_s0 + $0xaf0] sm:$0x7f]  ;;  %v359_v7 = vld [vmem:[%s10783_s0 + $0xaf8] sm:$0x7f] }
  0xcb   :  { %v3285_v3 = vsel %vm4104_vm2, %v2779_v58, %v3284_v46  ;;  %v2780_v4 = vpack.c.bf16 %v2444_v59, %v2444_v59  ;;  %v2445_v5 = vmul.f32 0.25, %v2109_v61  ;;  %v3290_v6 = vld [vmem:[%s10784_s1 + $0x154] sm:$0xf]  ;;  %v1526_v8 = vadd.f32 %v358_v2, %v356_v0  ;;  %v360_v11 = vld [vmem:[%s10783_s0 + $0xb00] sm:$0x7f] }
  0xcc   :  { %3286 = vst [vmem:[%s10784_s1 + $0x14c] sm:$0xf] %v3285_v3  ;;  %v2110_v9 = vadd.f32 %v1525_v63, %v1524_v62  ;;  %v1527_v10 = vadd.f32 %v359_v7, %v357_v1  ;;  %v361_v12 = vld [vmem:[%s10783_s0 + $0xb08] sm:$0x7f]  ;;  %v3293_v15 = vld [vmem:[%s10784_s1 + $0x158] sm:$0xf] }
  0xcd   :  { %v3288_v13 = vsel %vm4104_vm2, %v2780_v4, %v3287_v60  ;;  %v2781_v14 = vpack.c.bf16 %v2445_v5, %v2445_v5  ;;  %v362_v16 = vld [vmem:[%s10783_s0 + $0xb10] sm:$0x7f]  ;;  %v363_v17 = vld [vmem:[%s10783_s0 + $0xb18] sm:$0x7f]  ;;  %v364_v22 = vld [vmem:[%s10783_s0 + $0xb20] sm:$0x7f] }
  0xce   :  { %3289 = vst [vmem:[%s10784_s1 + $0x150] sm:$0xf] %v3288_v13  ;;  %v2446_v18 = vmul.f32 0.25, %v2110_v9  ;;  %v2111_v19 = vadd.f32 %v1527_v10, %v1526_v8  ;;  %v1528_v20 = vadd.f32 %v362_v16, %v360_v11  ;;  %v1529_v21 = vadd.f32 %v363_v17, %v361_v12  ;;  %v365_v25 = vld [vmem:[%s10783_s0 + $0xb28] sm:$0x7f] }
  0xcf   :  { %v3291_v24 = vsel %vm4104_vm2, %v2781_v14, %v3290_v6  ;;  %v366_v26 = vld [vmem:[%s10783_s0 + $0xb30] sm:$0x7f]  ;;  %v367_v27 = vld [vmem:[%s10783_s0 + $0xb38] sm:$0x7f]  ;;  %v368_v34 = vld [vmem:[%s10783_s0 + $0xb40] sm:$0x7f] }
  0xd0   :  { %3292 = vst [vmem:[%s10784_s1 + $0x154] sm:$0xf] %v3291_v24  ;;  %v2782_v28 = vpack.c.bf16 %v2446_v18, %v2446_v18  ;;  %v2447_v29 = vmul.f32 0.25, %v2111_v19  ;;  %v3296_v30 = vld [vmem:[%s10784_s1 + $0x15c] sm:$0xf]  ;;  %v2112_v31 = vadd.f32 %v1529_v21, %v1528_v20  ;;  %v1530_v32 = vadd.f32 %v366_v26, %v364_v22 }
  0xd1   :  { %v1531_v33 = vadd.f32 %v367_v27, %v365_v25  ;;  %v369_v35 = vld [vmem:[%s10783_s0 + $0xb48] sm:$0x7f]  ;;  %v370_v36 = vld [vmem:[%s10783_s0 + $0xb50] sm:$0x7f]  ;;  %v3299_v40 = vld [vmem:[%s10784_s1 + $0x160] sm:$0xf] }
  0xd2   :  { %v3294_v37 = vsel %vm4104_vm2, %v2782_v28, %v3293_v15  ;;  %v2783_v38 = vpack.c.bf16 %v2447_v29, %v2447_v29  ;;  %v2448_v39 = vmul.f32 0.25, %v2112_v31  ;;  %v371_v41 = vld [vmem:[%s10783_s0 + $0xb58] sm:$0x7f]  ;;  %v1532_v42 = vadd.f32 %v370_v36, %v368_v34  ;;  %v372_v45 = vld [vmem:[%s10783_s0 + $0xb60] sm:$0x7f] }
  0xd3   :  { %3295 = vst [vmem:[%s10784_s1 + $0x158] sm:$0xf] %v3294_v37  ;;  %v2113_v43 = vadd.f32 %v1531_v33, %v1530_v32  ;;  %v1533_v44 = vadd.f32 %v371_v41, %v369_v35  ;;  %v373_v46 = vld [vmem:[%s10783_s0 + $0xb68] sm:$0x7f]  ;;  %v3302_v49 = vld [vmem:[%s10784_s1 + $0x164] sm:$0xf] }
  0xd4   :  { %v3297_v47 = vsel %vm4104_vm2, %v2783_v38, %v3296_v30  ;;  %v2784_v48 = vpack.c.bf16 %v2448_v39, %v2448_v39  ;;  %v374_v50 = vld [vmem:[%s10783_s0 + $0xb70] sm:$0x7f]  ;;  %v375_v51 = vld [vmem:[%s10783_s0 + $0xb78] sm:$0x7f]  ;;  %v376_v56 = vld [vmem:[%s10783_s0 + $0xb80] sm:$0x7f] }
  0xd5   :  { %3298 = vst [vmem:[%s10784_s1 + $0x15c] sm:$0xf] %v3297_v47  ;;  %v2449_v52 = vmul.f32 0.25, %v2113_v43  ;;  %v2114_v53 = vadd.f32 %v1533_v44, %v1532_v42  ;;  %v1534_v54 = vadd.f32 %v374_v50, %v372_v45  ;;  %v1535_v55 = vadd.f32 %v375_v51, %v373_v46  ;;  %v377_v58 = vld [vmem:[%s10783_s0 + $0xb88] sm:$0x7f] }
  0xd6   :  { %v3300_v57 = vsel %vm4104_vm2, %v2784_v48, %v3299_v40  ;;  %v378_v59 = vld [vmem:[%s10783_s0 + $0xb90] sm:$0x7f]  ;;  %v379_v60 = vld [vmem:[%s10783_s0 + $0xb98] sm:$0x7f]  ;;  %v3305_v63 = vld [vmem:[%s10784_s1 + $0x168] sm:$0xf] }
  0xd7   :  { %3301 = vst [vmem:[%s10784_s1 + $0x160] sm:$0xf] %v3300_v57  ;;  %v2785_v61 = vpack.c.bf16 %v2449_v52, %v2449_v52  ;;  %v2450_v62 = vmul.f32 0.25, %v2114_v53  ;;  %v2115_v0 = vadd.f32 %v1535_v55, %v1534_v54  ;;  %v1536_v1 = vadd.f32 %v378_v59, %v376_v56  ;;  %v380_v3 = vld [vmem:[%s10783_s0 + $0xba0] sm:$0x7f] }
  0xd8   :  { %v1537_v2 = vadd.f32 %v379_v60, %v377_v58  ;;  %v381_v4 = vld [vmem:[%s10783_s0 + $0xba8] sm:$0x7f]  ;;  %v382_v5 = vld [vmem:[%s10783_s0 + $0xbb0] sm:$0x7f]  ;;  %v383_v10 = vld [vmem:[%s10783_s0 + $0xbb8] sm:$0x7f] }
  0xd9   :  { %v3303_v6 = vsel %vm4104_vm2, %v2785_v61, %v3302_v49  ;;  %v2786_v7 = vpack.c.bf16 %v2450_v62, %v2450_v62  ;;  %v2451_v8 = vmul.f32 0.25, %v2115_v0  ;;  %v3308_v9 = vld [vmem:[%s10784_s1 + $0x16c] sm:$0xf]  ;;  %v1538_v11 = vadd.f32 %v382_v5, %v380_v3  ;;  %v384_v14 = vld [vmem:[%s10783_s0 + $0xbc0] sm:$0x7f] }
  0xda   :  { %3304 = vst [vmem:[%s10784_s1 + $0x164] sm:$0xf] %v3303_v6  ;;  %v2116_v12 = vadd.f32 %v1537_v2, %v1536_v1  ;;  %v1539_v13 = vadd.f32 %v383_v10, %v381_v4  ;;  %v385_v15 = vld [vmem:[%s10783_s0 + $0xbc8] sm:$0x7f]  ;;  %v3311_v18 = vld [vmem:[%s10784_s1 + $0x170] sm:$0xf] }
  0xdb   :  { %v3306_v16 = vsel %vm4104_vm2, %v2786_v7, %v3305_v63  ;;  %v2787_v17 = vpack.c.bf16 %v2451_v8, %v2451_v8  ;;  %v386_v19 = vld [vmem:[%s10783_s0 + $0xbd0] sm:$0x7f]  ;;  %v387_v20 = vld [vmem:[%s10783_s0 + $0xbd8] sm:$0x7f]  ;;  %v388_v26 = vld [vmem:[%s10783_s0 + $0xbe0] sm:$0x7f] }
  0xdc   :  { %3307 = vst [vmem:[%s10784_s1 + $0x168] sm:$0xf] %v3306_v16  ;;  %v2452_v21 = vmul.f32 0.25, %v2116_v12  ;;  %v2117_v22 = vadd.f32 %v1539_v13, %v1538_v11  ;;  %v1540_v24 = vadd.f32 %v386_v19, %v384_v14  ;;  %v1541_v25 = vadd.f32 %v387_v20, %v385_v15  ;;  %v389_v28 = vld [vmem:[%s10783_s0 + $0xbe8] sm:$0x7f] }
  0xdd   :  { %v3309_v27 = vsel %vm4104_vm2, %v2787_v17, %v3308_v9  ;;  %v390_v29 = vld [vmem:[%s10783_s0 + $0xbf0] sm:$0x7f]  ;;  %v391_v30 = vld [vmem:[%s10783_s0 + $0xbf8] sm:$0x7f]  ;;  %v392_v37 = vld [vmem:[%s10783_s0 + $0xc00] sm:$0x7f] }
  0xde   :  { %3310 = vst [vmem:[%s10784_s1 + $0x16c] sm:$0xf] %v3309_v27  ;;  %v2788_v31 = vpack.c.bf16 %v2452_v21, %v2452_v21  ;;  %v2453_v32 = vmul.f32 0.25, %v2117_v22  ;;  %v3314_v33 = vld [vmem:[%s10784_s1 + $0x174] sm:$0xf]  ;;  %v2118_v34 = vadd.f32 %v1541_v25, %v1540_v24  ;;  %v1542_v35 = vadd.f32 %v390_v29, %v388_v26 }
  0xdf   :  { %v1543_v36 = vadd.f32 %v391_v30, %v389_v28  ;;  %v393_v38 = vld [vmem:[%s10783_s0 + $0xc08] sm:$0x7f]  ;;  %v394_v39 = vld [vmem:[%s10783_s0 + $0xc10] sm:$0x7f]  ;;  %v3317_v43 = vld [vmem:[%s10784_s1 + $0x178] sm:$0xf] }
  0xe0   :  { %v3312_v40 = vsel %vm4104_vm2, %v2788_v31, %v3311_v18  ;;  %v2789_v41 = vpack.c.bf16 %v2453_v32, %v2453_v32  ;;  %v2454_v42 = vmul.f32 0.25, %v2118_v34  ;;  %v395_v44 = vld [vmem:[%s10783_s0 + $0xc18] sm:$0x7f]  ;;  %v1544_v45 = vadd.f32 %v394_v39, %v392_v37  ;;  %v396_v48 = vld [vmem:[%s10783_s0 + $0xc20] sm:$0x7f] }
  0xe1   :  { %3313 = vst [vmem:[%s10784_s1 + $0x170] sm:$0xf] %v3312_v40  ;;  %v2119_v46 = vadd.f32 %v1543_v36, %v1542_v35  ;;  %v1545_v47 = vadd.f32 %v395_v44, %v393_v38  ;;  %v397_v49 = vld [vmem:[%s10783_s0 + $0xc28] sm:$0x7f]  ;;  %v3320_v52 = vld [vmem:[%s10784_s1 + $0x17c] sm:$0xf] }
  0xe2   :  { %v3315_v50 = vsel %vm4104_vm2, %v2789_v41, %v3314_v33  ;;  %v2790_v51 = vpack.c.bf16 %v2454_v42, %v2454_v42  ;;  %v398_v53 = vld [vmem:[%s10783_s0 + $0xc30] sm:$0x7f]  ;;  %v399_v54 = vld [vmem:[%s10783_s0 + $0xc38] sm:$0x7f]  ;;  %v400_v59 = vld [vmem:[%s10783_s0 + $0xc40] sm:$0x7f] }
  0xe3   :  { %3316 = vst [vmem:[%s10784_s1 + $0x174] sm:$0xf] %v3315_v50  ;;  %v2455_v55 = vmul.f32 0.25, %v2119_v46  ;;  %v2120_v56 = vadd.f32 %v1545_v47, %v1544_v45  ;;  %v1546_v57 = vadd.f32 %v398_v53, %v396_v48  ;;  %v1547_v58 = vadd.f32 %v399_v54, %v397_v49  ;;  %v401_v61 = vld [vmem:[%s10783_s0 + $0xc48] sm:$0x7f] }
  0xe4   :  { %v3318_v60 = vsel %vm4104_vm2, %v2790_v51, %v3317_v43  ;;  %v402_v62 = vld [vmem:[%s10783_s0 + $0xc50] sm:$0x7f]  ;;  %v403_v63 = vld [vmem:[%s10783_s0 + $0xc58] sm:$0x7f]  ;;  %v3323_v2 = vld [vmem:[%s10784_s1 + $0x180] sm:$0xf] }
  0xe5   :  { %3319 = vst [vmem:[%s10784_s1 + $0x178] sm:$0xf] %v3318_v60  ;;  %v2791_v0 = vpack.c.bf16 %v2455_v55, %v2455_v55  ;;  %v2456_v1 = vmul.f32 0.25, %v2120_v56  ;;  %v2121_v3 = vadd.f32 %v1547_v58, %v1546_v57  ;;  %v1548_v4 = vadd.f32 %v402_v62, %v400_v59  ;;  %v404_v6 = vld [vmem:[%s10783_s0 + $0xc60] sm:$0x7f] }
  0xe6   :  { %v1549_v5 = vadd.f32 %v403_v63, %v401_v61  ;;  %v405_v7 = vld [vmem:[%s10783_s0 + $0xc68] sm:$0x7f]  ;;  %v406_v8 = vld [vmem:[%s10783_s0 + $0xc70] sm:$0x7f]  ;;  %v3326_v12 = vld [vmem:[%s10784_s1 + $0x184] sm:$0xf] }
  0xe7   :  { %v3321_v9 = vsel %vm4104_vm2, %v2791_v0, %v3320_v52  ;;  %v2792_v10 = vpack.c.bf16 %v2456_v1, %v2456_v1  ;;  %v2457_v11 = vmul.f32 0.25, %v2121_v3  ;;  %v407_v13 = vld [vmem:[%s10783_s0 + $0xc78] sm:$0x7f]  ;;  %v1550_v14 = vadd.f32 %v406_v8, %v404_v6  ;;  %v408_v17 = vld [vmem:[%s10783_s0 + $0xc80] sm:$0x7f] }
  0xe8   :  { %3322 = vst [vmem:[%s10784_s1 + $0x17c] sm:$0xf] %v3321_v9  ;;  %v2122_v15 = vadd.f32 %v1549_v5, %v1548_v4  ;;  %v1551_v16 = vadd.f32 %v407_v13, %v405_v7  ;;  %v409_v18 = vld [vmem:[%s10783_s0 + $0xc88] sm:$0x7f]  ;;  %v410_v22 = vld [vmem:[%s10783_s0 + $0xc90] sm:$0x7f] }
  0xe9   :  { %v3324_v19 = vsel %vm4104_vm2, %v2792_v10, %v3323_v2  ;;  %v2793_v20 = vpack.c.bf16 %v2457_v11, %v2457_v11  ;;  %v3329_v21 = vld [vmem:[%s10784_s1 + $0x188] sm:$0xf]  ;;  %v411_v24 = vld [vmem:[%s10783_s0 + $0xc98] sm:$0x7f]  ;;  %v1552_v27 = vadd.f32 %v410_v22, %v408_v17  ;;  %v412_v29 = vld [vmem:[%s10783_s0 + $0xca0] sm:$0x7f] }
  0xea   :  { %3325 = vst [vmem:[%s10784_s1 + $0x180] sm:$0xf] %v3324_v19  ;;  %v2458_v25 = vmul.f32 0.25, %v2122_v15  ;;  %v2123_v26 = vadd.f32 %v1551_v16, %v1550_v14  ;;  %v1553_v28 = vadd.f32 %v411_v24, %v409_v18  ;;  %v413_v31 = vld [vmem:[%s10783_s0 + $0xca8] sm:$0x7f] }
  0xeb   :  { %v3327_v30 = vsel %vm4104_vm2, %v2793_v20, %v3326_v12  ;;  %v414_v32 = vld [vmem:[%s10783_s0 + $0xcb0] sm:$0x7f]  ;;  %v415_v33 = vld [vmem:[%s10783_s0 + $0xcb8] sm:$0x7f]  ;;  %v3332_v36 = vld [vmem:[%s10784_s1 + $0x18c] sm:$0xf] }
  0xec   :  { %3328 = vst [vmem:[%s10784_s1 + $0x184] sm:$0xf] %v3327_v30  ;;  %v2794_v34 = vpack.c.bf16 %v2458_v25, %v2458_v25  ;;  %v2459_v35 = vmul.f32 0.25, %v2123_v26  ;;  %v2124_v37 = vadd.f32 %v1553_v28, %v1552_v27  ;;  %v1554_v38 = vadd.f32 %v414_v32, %v412_v29  ;;  %v416_v40 = vld [vmem:[%s10783_s0 + $0xcc0] sm:$0x7f] }
  0xed   :  { %v1555_v39 = vadd.f32 %v415_v33, %v413_v31  ;;  %v417_v41 = vld [vmem:[%s10783_s0 + $0xcc8] sm:$0x7f]  ;;  %v418_v42 = vld [vmem:[%s10783_s0 + $0xcd0] sm:$0x7f]  ;;  %v419_v47 = vld [vmem:[%s10783_s0 + $0xcd8] sm:$0x7f] }
  0xee   :  { %v3330_v43 = vsel %vm4104_vm2, %v2794_v34, %v3329_v21  ;;  %v2795_v44 = vpack.c.bf16 %v2459_v35, %v2459_v35  ;;  %v2460_v45 = vmul.f32 0.25, %v2124_v37  ;;  %v3335_v46 = vld [vmem:[%s10784_s1 + $0x190] sm:$0xf]  ;;  %v1556_v48 = vadd.f32 %v418_v42, %v416_v40  ;;  %v420_v51 = vld [vmem:[%s10783_s0 + $0xce0] sm:$0x7f] }
  0xef   :  { %3331 = vst [vmem:[%s10784_s1 + $0x188] sm:$0xf] %v3330_v43  ;;  %v2125_v49 = vadd.f32 %v1555_v39, %v1554_v38  ;;  %v1557_v50 = vadd.f32 %v419_v47, %v417_v41  ;;  %v421_v52 = vld [vmem:[%s10783_s0 + $0xce8] sm:$0x7f]  ;;  %v3338_v55 = vld [vmem:[%s10784_s1 + $0x194] sm:$0xf] }
  0xf0   :  { %v3333_v53 = vsel %vm4104_vm2, %v2795_v44, %v3332_v36  ;;  %v2796_v54 = vpack.c.bf16 %v2460_v45, %v2460_v45  ;;  %v422_v56 = vld [vmem:[%s10783_s0 + $0xcf0] sm:$0x7f]  ;;  %v423_v57 = vld [vmem:[%s10783_s0 + $0xcf8] sm:$0x7f]  ;;  %v424_v62 = vld [vmem:[%s10783_s0 + $0xd00] sm:$0x7f] }
  0xf1   :  { %3334 = vst [vmem:[%s10784_s1 + $0x18c] sm:$0xf] %v3333_v53  ;;  %v2461_v58 = vmul.f32 0.25, %v2125_v49  ;;  %v2126_v59 = vadd.f32 %v1557_v50, %v1556_v48  ;;  %v1558_v60 = vadd.f32 %v422_v56, %v420_v51  ;;  %v1559_v61 = vadd.f32 %v423_v57, %v421_v52  ;;  %v425_v0 = vld [vmem:[%s10783_s0 + $0xd08] sm:$0x7f] }
  0xf2   :  { %v3336_v63 = vsel %vm4104_vm2, %v2796_v54, %v3335_v46  ;;  %v426_v1 = vld [vmem:[%s10783_s0 + $0xd10] sm:$0x7f]  ;;  %v427_v2 = vld [vmem:[%s10783_s0 + $0xd18] sm:$0x7f]  ;;  %v428_v9 = vld [vmem:[%s10783_s0 + $0xd20] sm:$0x7f] }
  0xf3   :  { %3337 = vst [vmem:[%s10784_s1 + $0x190] sm:$0xf] %v3336_v63  ;;  %v2797_v3 = vpack.c.bf16 %v2461_v58, %v2461_v58  ;;  %v2462_v4 = vmul.f32 0.25, %v2126_v59  ;;  %v3341_v5 = vld [vmem:[%s10784_s1 + $0x198] sm:$0xf]  ;;  %v2127_v6 = vadd.f32 %v1559_v61, %v1558_v60  ;;  %v1560_v7 = vadd.f32 %v426_v1, %v424_v62 }
  0xf4   :  { %v1561_v8 = vadd.f32 %v427_v2, %v425_v0  ;;  %v429_v10 = vld [vmem:[%s10783_s0 + $0xd28] sm:$0x7f]  ;;  %v430_v11 = vld [vmem:[%s10783_s0 + $0xd30] sm:$0x7f]  ;;  %v3344_v15 = vld [vmem:[%s10784_s1 + $0x19c] sm:$0xf] }
  0xf5   :  { %v3339_v12 = vsel %vm4104_vm2, %v2797_v3, %v3338_v55  ;;  %v2798_v13 = vpack.c.bf16 %v2462_v4, %v2462_v4  ;;  %v2463_v14 = vmul.f32 0.25, %v2127_v6  ;;  %v431_v16 = vld [vmem:[%s10783_s0 + $0xd38] sm:$0x7f]  ;;  %v1562_v17 = vadd.f32 %v430_v11, %v428_v9  ;;  %v432_v20 = vld [vmem:[%s10783_s0 + $0xd40] sm:$0x7f] }
  0xf6   :  { %3340 = vst [vmem:[%s10784_s1 + $0x194] sm:$0xf] %v3339_v12  ;;  %v2128_v18 = vadd.f32 %v1561_v8, %v1560_v7  ;;  %v1563_v19 = vadd.f32 %v431_v16, %v429_v10  ;;  %v433_v21 = vld [vmem:[%s10783_s0 + $0xd48] sm:$0x7f]  ;;  %v3347_v25 = vld [vmem:[%s10784_s1 + $0x1a0] sm:$0xf] }
  0xf7   :  { %v3342_v22 = vsel %vm4104_vm2, %v2798_v13, %v3341_v5  ;;  %v2799_v24 = vpack.c.bf16 %v2463_v14, %v2463_v14  ;;  %v434_v26 = vld [vmem:[%s10783_s0 + $0xd50] sm:$0x7f]  ;;  %v435_v27 = vld [vmem:[%s10783_s0 + $0xd58] sm:$0x7f]  ;;  %v436_v32 = vld [vmem:[%s10783_s0 + $0xd60] sm:$0x7f] }
  0xf8   :  { %3343 = vst [vmem:[%s10784_s1 + $0x198] sm:$0xf] %v3342_v22  ;;  %v2464_v28 = vmul.f32 0.25, %v2128_v18  ;;  %v2129_v29 = vadd.f32 %v1563_v19, %v1562_v17  ;;  %v1564_v30 = vadd.f32 %v434_v26, %v432_v20  ;;  %v1565_v31 = vadd.f32 %v435_v27, %v433_v21  ;;  %v437_v34 = vld [vmem:[%s10783_s0 + $0xd68] sm:$0x7f] }
  0xf9   :  { %v3345_v33 = vsel %vm4104_vm2, %v2799_v24, %v3344_v15  ;;  %v438_v35 = vld [vmem:[%s10783_s0 + $0xd70] sm:$0x7f]  ;;  %v439_v36 = vld [vmem:[%s10783_s0 + $0xd78] sm:$0x7f]  ;;  %v3350_v39 = vld [vmem:[%s10784_s1 + $0x1a4] sm:$0xf] }
  0xfa   :  { %3346 = vst [vmem:[%s10784_s1 + $0x19c] sm:$0xf] %v3345_v33  ;;  %v2800_v37 = vpack.c.bf16 %v2464_v28, %v2464_v28  ;;  %v2465_v38 = vmul.f32 0.25, %v2129_v29  ;;  %v2130_v40 = vadd.f32 %v1565_v31, %v1564_v30  ;;  %v1566_v41 = vadd.f32 %v438_v35, %v436_v32  ;;  %v440_v43 = vld [vmem:[%s10783_s0 + $0xd80] sm:$0x7f] }
  0xfb   :  { %v1567_v42 = vadd.f32 %v439_v36, %v437_v34  ;;  %v441_v44 = vld [vmem:[%s10783_s0 + $0xd88] sm:$0x7f]  ;;  %v442_v45 = vld [vmem:[%s10783_s0 + $0xd90] sm:$0x7f]  ;;  %v443_v50 = vld [vmem:[%s10783_s0 + $0xd98] sm:$0x7f] }
  0xfc   :  { %v3348_v46 = vsel %vm4104_vm2, %v2800_v37, %v3347_v25  ;;  %v2801_v47 = vpack.c.bf16 %v2465_v38, %v2465_v38  ;;  %v2466_v48 = vmul.f32 0.25, %v2130_v40  ;;  %v3353_v49 = vld [vmem:[%s10784_s1 + $0x1a8] sm:$0xf]  ;;  %v1568_v51 = vadd.f32 %v442_v45, %v440_v43  ;;  %v444_v54 = vld [vmem:[%s10783_s0 + $0xda0] sm:$0x7f] }
  0xfd   :  { %3349 = vst [vmem:[%s10784_s1 + $0x1a0] sm:$0xf] %v3348_v46  ;;  %v2131_v52 = vadd.f32 %v1567_v42, %v1566_v41  ;;  %v1569_v53 = vadd.f32 %v443_v50, %v441_v44  ;;  %v445_v55 = vld [vmem:[%s10783_s0 + $0xda8] sm:$0x7f]  ;;  %v446_v59 = vld [vmem:[%s10783_s0 + $0xdb0] sm:$0x7f] }
  0xfe   :  { %v3351_v56 = vsel %vm4104_vm2, %v2801_v47, %v3350_v39  ;;  %v2802_v57 = vpack.c.bf16 %v2466_v48, %v2466_v48  ;;  %v3356_v58 = vld [vmem:[%s10784_s1 + $0x1ac] sm:$0xf]  ;;  %v447_v60 = vld [vmem:[%s10783_s0 + $0xdb8] sm:$0x7f]  ;;  %v1570_v63 = vadd.f32 %v446_v59, %v444_v54  ;;  %v448_v1 = vld [vmem:[%s10783_s0 + $0xdc0] sm:$0x7f] }
  0xff   :  { %3352 = vst [vmem:[%s10784_s1 + $0x1a4] sm:$0xf] %v3351_v56  ;;  %v2467_v61 = vmul.f32 0.25, %v2131_v52  ;;  %v2132_v62 = vadd.f32 %v1569_v53, %v1568_v51  ;;  %v1571_v0 = vadd.f32 %v447_v60, %v445_v55  ;;  %v449_v3 = vld [vmem:[%s10783_s0 + $0xdc8] sm:$0x7f] }
 0x100   :  { %v3354_v2 = vsel %vm4104_vm2, %v2802_v57, %v3353_v49  ;;  %v450_v4 = vld [vmem:[%s10783_s0 + $0xdd0] sm:$0x7f]  ;;  %v451_v5 = vld [vmem:[%s10783_s0 + $0xdd8] sm:$0x7f]  ;;  %v452_v12 = vld [vmem:[%s10783_s0 + $0xde0] sm:$0x7f] }
 0x101   :  { %3355 = vst [vmem:[%s10784_s1 + $0x1a8] sm:$0xf] %v3354_v2  ;;  %v2803_v6 = vpack.c.bf16 %v2467_v61, %v2467_v61  ;;  %v2468_v7 = vmul.f32 0.25, %v2132_v62  ;;  %v3359_v8 = vld [vmem:[%s10784_s1 + $0x1b0] sm:$0xf]  ;;  %v2133_v9 = vadd.f32 %v1571_v0, %v1570_v63  ;;  %v1572_v10 = vadd.f32 %v450_v4, %v448_v1 }
 0x102   :  { %v1573_v11 = vadd.f32 %v451_v5, %v449_v3  ;;  %v453_v13 = vld [vmem:[%s10783_s0 + $0xde8] sm:$0x7f]  ;;  %v454_v14 = vld [vmem:[%s10783_s0 + $0xdf0] sm:$0x7f]  ;;  %v455_v19 = vld [vmem:[%s10783_s0 + $0xdf8] sm:$0x7f] }
 0x103   :  { %v3357_v15 = vsel %vm4104_vm2, %v2803_v6, %v3356_v58  ;;  %v2804_v16 = vpack.c.bf16 %v2468_v7, %v2468_v7  ;;  %v2469_v17 = vmul.f32 0.25, %v2133_v9  ;;  %v3362_v18 = vld [vmem:[%s10784_s1 + $0x1b4] sm:$0xf]  ;;  %v1574_v20 = vadd.f32 %v454_v14, %v452_v12  ;;  %v456_v24 = vld [vmem:[%s10783_s0 + $0xe00] sm:$0x7f] }
 0x104   :  { %3358 = vst [vmem:[%s10784_s1 + $0x1ac] sm:$0xf] %v3357_v15  ;;  %v2134_v21 = vadd.f32 %v1573_v11, %v1572_v10  ;;  %v1575_v22 = vadd.f32 %v455_v19, %v453_v13  ;;  %v457_v25 = vld [vmem:[%s10783_s0 + $0xe08] sm:$0x7f]  ;;  %v3365_v28 = vld [vmem:[%s10784_s1 + $0x1b8] sm:$0xf] }
 0x105   :  { %v3360_v26 = vsel %vm4104_vm2, %v2804_v16, %v3359_v8  ;;  %v2805_v27 = vpack.c.bf16 %v2469_v17, %v2469_v17  ;;  %v458_v29 = vld [vmem:[%s10783_s0 + $0xe10] sm:$0x7f]  ;;  %v459_v30 = vld [vmem:[%s10783_s0 + $0xe18] sm:$0x7f]  ;;  %v460_v35 = vld [vmem:[%s10783_s0 + $0xe20] sm:$0x7f] }
 0x106   :  { %3361 = vst [vmem:[%s10784_s1 + $0x1b0] sm:$0xf] %v3360_v26  ;;  %v2470_v31 = vmul.f32 0.25, %v2134_v21  ;;  %v2135_v32 = vadd.f32 %v1575_v22, %v1574_v20  ;;  %v1576_v33 = vadd.f32 %v458_v29, %v456_v24  ;;  %v1577_v34 = vadd.f32 %v459_v30, %v457_v25  ;;  %v461_v37 = vld [vmem:[%s10783_s0 + $0xe28] sm:$0x7f] }
 0x107   :  { %v3363_v36 = vsel %vm4104_vm2, %v2805_v27, %v3362_v18  ;;  %v462_v38 = vld [vmem:[%s10783_s0 + $0xe30] sm:$0x7f]  ;;  %v463_v39 = vld [vmem:[%s10783_s0 + $0xe38] sm:$0x7f]  ;;  %v464_v46 = vld [vmem:[%s10783_s0 + $0xe40] sm:$0x7f] }
 0x108   :  { %3364 = vst [vmem:[%s10784_s1 + $0x1b4] sm:$0xf] %v3363_v36  ;;  %v2806_v40 = vpack.c.bf16 %v2470_v31, %v2470_v31  ;;  %v2471_v41 = vmul.f32 0.25, %v2135_v32  ;;  %v3368_v42 = vld [vmem:[%s10784_s1 + $0x1bc] sm:$0xf]  ;;  %v2136_v43 = vadd.f32 %v1577_v34, %v1576_v33  ;;  %v1578_v44 = vadd.f32 %v462_v38, %v460_v35 }
 0x109   :  { %v1579_v45 = vadd.f32 %v463_v39, %v461_v37  ;;  %v465_v47 = vld [vmem:[%s10783_s0 + $0xe48] sm:$0x7f]  ;;  %v466_v48 = vld [vmem:[%s10783_s0 + $0xe50] sm:$0x7f]  ;;  %v3371_v52 = vld [vmem:[%s10784_s1 + $0x1c0] sm:$0xf] }
 0x10a   :  { %v3366_v49 = vsel %vm4104_vm2, %v2806_v40, %v3365_v28  ;;  %v2807_v50 = vpack.c.bf16 %v2471_v41, %v2471_v41  ;;  %v2472_v51 = vmul.f32 0.25, %v2136_v43  ;;  %v467_v53 = vld [vmem:[%s10783_s0 + $0xe58] sm:$0x7f]  ;;  %v1580_v54 = vadd.f32 %v466_v48, %v464_v46  ;;  %v468_v57 = vld [vmem:[%s10783_s0 + $0xe60] sm:$0x7f] }
 0x10b   :  { %3367 = vst [vmem:[%s10784_s1 + $0x1b8] sm:$0xf] %v3366_v49  ;;  %v2137_v55 = vadd.f32 %v1579_v45, %v1578_v44  ;;  %v1581_v56 = vadd.f32 %v467_v53, %v465_v47  ;;  %v469_v58 = vld [vmem:[%s10783_s0 + $0xe68] sm:$0x7f]  ;;  %v3374_v61 = vld [vmem:[%s10784_s1 + $0x1c4] sm:$0xf] }
 0x10c   :  { %v3369_v59 = vsel %vm4104_vm2, %v2807_v50, %v3368_v42  ;;  %v2808_v60 = vpack.c.bf16 %v2472_v51, %v2472_v51  ;;  %v470_v62 = vld [vmem:[%s10783_s0 + $0xe70] sm:$0x7f]  ;;  %v471_v63 = vld [vmem:[%s10783_s0 + $0xe78] sm:$0x7f]  ;;  %v472_v4 = vld [vmem:[%s10783_s0 + $0xe80] sm:$0x7f] }
 0x10d   :  { %3370 = vst [vmem:[%s10784_s1 + $0x1bc] sm:$0xf] %v3369_v59  ;;  %v2473_v0 = vmul.f32 0.25, %v2137_v55  ;;  %v2138_v1 = vadd.f32 %v1581_v56, %v1580_v54  ;;  %v1582_v2 = vadd.f32 %v470_v62, %v468_v57  ;;  %v1583_v3 = vadd.f32 %v471_v63, %v469_v58  ;;  %v473_v6 = vld [vmem:[%s10783_s0 + $0xe88] sm:$0x7f] }
 0x10e   :  { %v3372_v5 = vsel %vm4104_vm2, %v2808_v60, %v3371_v52  ;;  %v474_v7 = vld [vmem:[%s10783_s0 + $0xe90] sm:$0x7f]  ;;  %v475_v8 = vld [vmem:[%s10783_s0 + $0xe98] sm:$0x7f]  ;;  %v3377_v11 = vld [vmem:[%s10784_s1 + $0x1c8] sm:$0xf] }
 0x10f   :  { %3373 = vst [vmem:[%s10784_s1 + $0x1c0] sm:$0xf] %v3372_v5  ;;  %v2809_v9 = vpack.c.bf16 %v2473_v0, %v2473_v0  ;;  %v2474_v10 = vmul.f32 0.25, %v2138_v1  ;;  %v2139_v12 = vadd.f32 %v1583_v3, %v1582_v2  ;;  %v1584_v13 = vadd.f32 %v474_v7, %v472_v4  ;;  %v476_v15 = vld [vmem:[%s10783_s0 + $0xea0] sm:$0x7f] }
 0x110   :  { %v1585_v14 = vadd.f32 %v475_v8, %v473_v6  ;;  %v477_v16 = vld [vmem:[%s10783_s0 + $0xea8] sm:$0x7f]  ;;  %v478_v17 = vld [vmem:[%s10783_s0 + $0xeb0] sm:$0x7f]  ;;  %v479_v22 = vld [vmem:[%s10783_s0 + $0xeb8] sm:$0x7f] }
 0x111   :  { %v3375_v18 = vsel %vm4104_vm2, %v2809_v9, %v3374_v61  ;;  %v2810_v19 = vpack.c.bf16 %v2474_v10, %v2474_v10  ;;  %v2475_v20 = vmul.f32 0.25, %v2139_v12  ;;  %v3380_v21 = vld [vmem:[%s10784_s1 + $0x1cc] sm:$0xf]  ;;  %v1586_v24 = vadd.f32 %v478_v17, %v476_v15  ;;  %v480_v27 = vld [vmem:[%s10783_s0 + $0xec0] sm:$0x7f] }
 0x112   :  { %3376 = vst [vmem:[%s10784_s1 + $0x1c4] sm:$0xf] %v3375_v18  ;;  %v2140_v25 = vadd.f32 %v1585_v14, %v1584_v13  ;;  %v1587_v26 = vadd.f32 %v479_v22, %v477_v16  ;;  %v481_v28 = vld [vmem:[%s10783_s0 + $0xec8] sm:$0x7f]  ;;  %v3383_v31 = vld [vmem:[%s10784_s1 + $0x1d0] sm:$0xf] }
 0x113   :  { %v3378_v29 = vsel %vm4104_vm2, %v2810_v19, %v3377_v11  ;;  %v2811_v30 = vpack.c.bf16 %v2475_v20, %v2475_v20  ;;  %v482_v32 = vld [vmem:[%s10783_s0 + $0xed0] sm:$0x7f]  ;;  %v483_v33 = vld [vmem:[%s10783_s0 + $0xed8] sm:$0x7f]  ;;  %v484_v38 = vld [vmem:[%s10783_s0 + $0xee0] sm:$0x7f] }
 0x114   :  { %3379 = vst [vmem:[%s10784_s1 + $0x1c8] sm:$0xf] %v3378_v29  ;;  %v2476_v34 = vmul.f32 0.25, %v2140_v25  ;;  %v2141_v35 = vadd.f32 %v1587_v26, %v1586_v24  ;;  %v1588_v36 = vadd.f32 %v482_v32, %v480_v27  ;;  %v1589_v37 = vadd.f32 %v483_v33, %v481_v28  ;;  %v485_v40 = vld [vmem:[%s10783_s0 + $0xee8] sm:$0x7f] }
 0x115   :  { %v3381_v39 = vsel %vm4104_vm2, %v2811_v30, %v3380_v21  ;;  %v486_v41 = vld [vmem:[%s10783_s0 + $0xef0] sm:$0x7f]  ;;  %v487_v42 = vld [vmem:[%s10783_s0 + $0xef8] sm:$0x7f]  ;;  %v488_v49 = vld [vmem:[%s10783_s0 + $0xf00] sm:$0x7f] }
 0x116   :  { %3382 = vst [vmem:[%s10784_s1 + $0x1cc] sm:$0xf] %v3381_v39  ;;  %v2812_v43 = vpack.c.bf16 %v2476_v34, %v2476_v34  ;;  %v2477_v44 = vmul.f32 0.25, %v2141_v35  ;;  %v3386_v45 = vld [vmem:[%s10784_s1 + $0x1d4] sm:$0xf]  ;;  %v2142_v46 = vadd.f32 %v1589_v37, %v1588_v36  ;;  %v1590_v47 = vadd.f32 %v486_v41, %v484_v38 }
 0x117   :  { %v1591_v48 = vadd.f32 %v487_v42, %v485_v40  ;;  %v489_v50 = vld [vmem:[%s10783_s0 + $0xf08] sm:$0x7f]  ;;  %v490_v51 = vld [vmem:[%s10783_s0 + $0xf10] sm:$0x7f]  ;;  %v3389_v55 = vld [vmem:[%s10784_s1 + $0x1d8] sm:$0xf] }
 0x118   :  { %v3384_v52 = vsel %vm4104_vm2, %v2812_v43, %v3383_v31  ;;  %v2813_v53 = vpack.c.bf16 %v2477_v44, %v2477_v44  ;;  %v2478_v54 = vmul.f32 0.25, %v2142_v46  ;;  %v491_v56 = vld [vmem:[%s10783_s0 + $0xf18] sm:$0x7f]  ;;  %v1592_v57 = vadd.f32 %v490_v51, %v488_v49  ;;  %v492_v60 = vld [vmem:[%s10783_s0 + $0xf20] sm:$0x7f] }
 0x119   :  { %3385 = vst [vmem:[%s10784_s1 + $0x1d0] sm:$0xf] %v3384_v52  ;;  %v2143_v58 = vadd.f32 %v1591_v48, %v1590_v47  ;;  %v1593_v59 = vadd.f32 %v491_v56, %v489_v50  ;;  %v493_v61 = vld [vmem:[%s10783_s0 + $0xf28] sm:$0x7f]  ;;  %v3392_v0 = vld [vmem:[%s10784_s1 + $0x1dc] sm:$0xf] }
 0x11a   :  { %v3387_v62 = vsel %vm4104_vm2, %v2813_v53, %v3386_v45  ;;  %v2814_v63 = vpack.c.bf16 %v2478_v54, %v2478_v54  ;;  %v494_v1 = vld [vmem:[%s10783_s0 + $0xf30] sm:$0x7f]  ;;  %v495_v2 = vld [vmem:[%s10783_s0 + $0xf38] sm:$0x7f]  ;;  %v496_v7 = vld [vmem:[%s10783_s0 + $0xf40] sm:$0x7f] }
 0x11b   :  { %3388 = vst [vmem:[%s10784_s1 + $0x1d4] sm:$0xf] %v3387_v62  ;;  %v2479_v3 = vmul.f32 0.25, %v2143_v58  ;;  %v2144_v4 = vadd.f32 %v1593_v59, %v1592_v57  ;;  %v1594_v5 = vadd.f32 %v494_v1, %v492_v60  ;;  %v1595_v6 = vadd.f32 %v495_v2, %v493_v61  ;;  %v497_v9 = vld [vmem:[%s10783_s0 + $0xf48] sm:$0x7f] }
 0x11c   :  { %v3390_v8 = vsel %vm4104_vm2, %v2814_v63, %v3389_v55  ;;  %v498_v10 = vld [vmem:[%s10783_s0 + $0xf50] sm:$0x7f]  ;;  %v499_v11 = vld [vmem:[%s10783_s0 + $0xf58] sm:$0x7f]  ;;  %v3395_v14 = vld [vmem:[%s10784_s1 + $0x1e0] sm:$0xf] }
 0x11d   :  { %3391 = vst [vmem:[%s10784_s1 + $0x1d8] sm:$0xf] %v3390_v8  ;;  %v2815_v12 = vpack.c.bf16 %v2479_v3, %v2479_v3  ;;  %v2480_v13 = vmul.f32 0.25, %v2144_v4  ;;  %v2145_v15 = vadd.f32 %v1595_v6, %v1594_v5  ;;  %v1596_v16 = vadd.f32 %v498_v10, %v496_v7  ;;  %v500_v18 = vld [vmem:[%s10783_s0 + $0xf60] sm:$0x7f] }
 0x11e   :  { %v1597_v17 = vadd.f32 %v499_v11, %v497_v9  ;;  %v501_v19 = vld [vmem:[%s10783_s0 + $0xf68] sm:$0x7f]  ;;  %v502_v20 = vld [vmem:[%s10783_s0 + $0xf70] sm:$0x7f]  ;;  %v3398_v25 = vld [vmem:[%s10784_s1 + $0x1e4] sm:$0xf] }
 0x11f   :  { %v3393_v21 = vsel %vm4104_vm2, %v2815_v12, %v3392_v0  ;;  %v2816_v22 = vpack.c.bf16 %v2480_v13, %v2480_v13  ;;  %v2481_v24 = vmul.f32 0.25, %v2145_v15  ;;  %v503_v26 = vld [vmem:[%s10783_s0 + $0xf78] sm:$0x7f]  ;;  %v1598_v27 = vadd.f32 %v502_v20, %v500_v18  ;;  %v504_v30 = vld [vmem:[%s10783_s0 + $0xf80] sm:$0x7f] }
 0x120   :  { %3394 = vst [vmem:[%s10784_s1 + $0x1dc] sm:$0xf] %v3393_v21  ;;  %v2146_v28 = vadd.f32 %v1597_v17, %v1596_v16  ;;  %v1599_v29 = vadd.f32 %v503_v26, %v501_v19  ;;  %v505_v31 = vld [vmem:[%s10783_s0 + $0xf88] sm:$0x7f]  ;;  %v506_v35 = vld [vmem:[%s10783_s0 + $0xf90] sm:$0x7f] }
 0x121   :  { %v3396_v32 = vsel %vm4104_vm2, %v2816_v22, %v3395_v14  ;;  %v2817_v33 = vpack.c.bf16 %v2481_v24, %v2481_v24  ;;  %v3401_v34 = vld [vmem:[%s10784_s1 + $0x1e8] sm:$0xf]  ;;  %v507_v36 = vld [vmem:[%s10783_s0 + $0xf98] sm:$0x7f]  ;;  %v1600_v39 = vadd.f32 %v506_v35, %v504_v30  ;;  %v508_v41 = vld [vmem:[%s10783_s0 + $0xfa0] sm:$0x7f] }
 0x122   :  { %3397 = vst [vmem:[%s10784_s1 + $0x1e0] sm:$0xf] %v3396_v32  ;;  %v2482_v37 = vmul.f32 0.25, %v2146_v28  ;;  %v2147_v38 = vadd.f32 %v1599_v29, %v1598_v27  ;;  %v1601_v40 = vadd.f32 %v507_v36, %v505_v31  ;;  %v509_v43 = vld [vmem:[%s10783_s0 + $0xfa8] sm:$0x7f] }
 0x123   :  { %v3399_v42 = vsel %vm4104_vm2, %v2817_v33, %v3398_v25  ;;  %v510_v44 = vld [vmem:[%s10783_s0 + $0xfb0] sm:$0x7f]  ;;  %v511_v45 = vld [vmem:[%s10783_s0 + $0xfb8] sm:$0x7f]  ;;  %v3404_v48 = vld [vmem:[%s10784_s1 + $0x1ec] sm:$0xf] }
 0x124   :  { %3400 = vst [vmem:[%s10784_s1 + $0x1e4] sm:$0xf] %v3399_v42  ;;  %v2818_v46 = vpack.c.bf16 %v2482_v37, %v2482_v37  ;;  %v2483_v47 = vmul.f32 0.25, %v2147_v38  ;;  %v2148_v49 = vadd.f32 %v1601_v40, %v1600_v39  ;;  %v1602_v50 = vadd.f32 %v510_v44, %v508_v41  ;;  %v512_v52 = vld [vmem:[%s10783_s0 + $0xfc0] sm:$0x7f] }
 0x125   :  { %v1603_v51 = vadd.f32 %v511_v45, %v509_v43  ;;  %v513_v53 = vld [vmem:[%s10783_s0 + $0xfc8] sm:$0x7f]  ;;  %v514_v54 = vld [vmem:[%s10783_s0 + $0xfd0] sm:$0x7f]  ;;  %v515_v59 = vld [vmem:[%s10783_s0 + $0xfd8] sm:$0x7f] }
 0x126   :  { %v3402_v55 = vsel %vm4104_vm2, %v2818_v46, %v3401_v34  ;;  %v2819_v56 = vpack.c.bf16 %v2483_v47, %v2483_v47  ;;  %v2484_v57 = vmul.f32 0.25, %v2148_v49  ;;  %v3407_v58 = vld [vmem:[%s10784_s1 + $0x1f0] sm:$0xf]  ;;  %v1604_v60 = vadd.f32 %v514_v54, %v512_v52  ;;  %v516_v63 = vld [vmem:[%s10783_s0 + $0xfe0] sm:$0x7f] }
 0x127   :  { %3403 = vst [vmem:[%s10784_s1 + $0x1e8] sm:$0xf] %v3402_v55  ;;  %v2149_v61 = vadd.f32 %v1603_v51, %v1602_v50  ;;  %v1605_v62 = vadd.f32 %v515_v59, %v513_v53  ;;  %v517_v0 = vld [vmem:[%s10783_s0 + $0xfe8] sm:$0x7f]  ;;  %v3410_v3 = vld [vmem:[%s10784_s1 + $0x1f4] sm:$0xf] }
 0x128   :  { %v3405_v1 = vsel %vm4104_vm2, %v2819_v56, %v3404_v48  ;;  %v2820_v2 = vpack.c.bf16 %v2484_v57, %v2484_v57  ;;  %v518_v4 = vld [vmem:[%s10783_s0 + $0xff0] sm:$0x7f]  ;;  %v519_v5 = vld [vmem:[%s10783_s0 + $0xff8] sm:$0x7f]  ;;  %v520_v10 = vld [vmem:[%s10783_s0 + $0x1000] sm:$0x7f] }
 0x129   :  { %3406 = vst [vmem:[%s10784_s1 + $0x1ec] sm:$0xf] %v3405_v1  ;;  %v2485_v6 = vmul.f32 0.25, %v2149_v61  ;;  %v2150_v7 = vadd.f32 %v1605_v62, %v1604_v60  ;;  %v1606_v8 = vadd.f32 %v518_v4, %v516_v63  ;;  %v1607_v9 = vadd.f32 %v519_v5, %v517_v0  ;;  %v521_v12 = vld [vmem:[%s10783_s0 + $0x1008] sm:$0x7f] }
 0x12a   :  { %v3408_v11 = vsel %vm4104_vm2, %v2820_v2, %v3407_v58  ;;  %v522_v13 = vld [vmem:[%s10783_s0 + $0x1010] sm:$0x7f]  ;;  %v523_v14 = vld [vmem:[%s10783_s0 + $0x1018] sm:$0x7f]  ;;  %v524_v21 = vld [vmem:[%s10783_s0 + $0x1020] sm:$0x7f] }
 0x12b   :  { %3409 = vst [vmem:[%s10784_s1 + $0x1f0] sm:$0xf] %v3408_v11  ;;  %v2821_v15 = vpack.c.bf16 %v2485_v6, %v2485_v6  ;;  %v2486_v16 = vmul.f32 0.25, %v2150_v7  ;;  %v3413_v17 = vld [vmem:[%s10784_s1 + $0x1f8] sm:$0xf]  ;;  %v2151_v18 = vadd.f32 %v1607_v9, %v1606_v8  ;;  %v1608_v19 = vadd.f32 %v522_v13, %v520_v10 }
 0x12c   :  { %v1609_v20 = vadd.f32 %v523_v14, %v521_v12  ;;  %v525_v22 = vld [vmem:[%s10783_s0 + $0x1028] sm:$0x7f]  ;;  %v526_v24 = vld [vmem:[%s10783_s0 + $0x1030] sm:$0x7f]  ;;  %v3416_v28 = vld [vmem:[%s10784_s1 + $0x1fc] sm:$0xf] }
 0x12d   :  { %v3411_v25 = vsel %vm4104_vm2, %v2821_v15, %v3410_v3  ;;  %v2822_v26 = vpack.c.bf16 %v2486_v16, %v2486_v16  ;;  %v2487_v27 = vmul.f32 0.25, %v2151_v18  ;;  %v527_v29 = vld [vmem:[%s10783_s0 + $0x1038] sm:$0x7f]  ;;  %v1610_v30 = vadd.f32 %v526_v24, %v524_v21  ;;  %v528_v33 = vld [vmem:[%s10783_s0 + $0x1040] sm:$0x7f] }
 0x12e   :  { %3412 = vst [vmem:[%s10784_s1 + $0x1f4] sm:$0xf] %v3411_v25  ;;  %v2152_v31 = vadd.f32 %v1609_v20, %v1608_v19  ;;  %v1611_v32 = vadd.f32 %v527_v29, %v525_v22  ;;  %v529_v34 = vld [vmem:[%s10783_s0 + $0x1048] sm:$0x7f]  ;;  %v3419_v37 = vld [vmem:[%s10784_s1 + $0x200] sm:$0xf] }
 0x12f   :  { %v3414_v35 = vsel %vm4104_vm2, %v2822_v26, %v3413_v17  ;;  %v2823_v36 = vpack.c.bf16 %v2487_v27, %v2487_v27  ;;  %v530_v38 = vld [vmem:[%s10783_s0 + $0x1050] sm:$0x7f]  ;;  %v531_v39 = vld [vmem:[%s10783_s0 + $0x1058] sm:$0x7f]  ;;  %v532_v44 = vld [vmem:[%s10783_s0 + $0x1060] sm:$0x7f] }
 0x130   :  { %3415 = vst [vmem:[%s10784_s1 + $0x1f8] sm:$0xf] %v3414_v35  ;;  %v2488_v40 = vmul.f32 0.25, %v2152_v31  ;;  %v2153_v41 = vadd.f32 %v1611_v32, %v1610_v30  ;;  %v1612_v42 = vadd.f32 %v530_v38, %v528_v33  ;;  %v1613_v43 = vadd.f32 %v531_v39, %v529_v34  ;;  %v533_v46 = vld [vmem:[%s10783_s0 + $0x1068] sm:$0x7f] }
 0x131   :  { %v3417_v45 = vsel %vm4104_vm2, %v2823_v36, %v3416_v28  ;;  %v534_v47 = vld [vmem:[%s10783_s0 + $0x1070] sm:$0x7f]  ;;  %v535_v48 = vld [vmem:[%s10783_s0 + $0x1078] sm:$0x7f]  ;;  %v3422_v51 = vld [vmem:[%s10784_s1 + $0x204] sm:$0xf] }
 0x132   :  { %3418 = vst [vmem:[%s10784_s1 + $0x1fc] sm:$0xf] %v3417_v45  ;;  %v2824_v49 = vpack.c.bf16 %v2488_v40, %v2488_v40  ;;  %v2489_v50 = vmul.f32 0.25, %v2153_v41  ;;  %v2154_v52 = vadd.f32 %v1613_v43, %v1612_v42  ;;  %v1614_v53 = vadd.f32 %v534_v47, %v532_v44  ;;  %v536_v55 = vld [vmem:[%s10783_s0 + $0x1080] sm:$0x7f] }
 0x133   :  { %v1615_v54 = vadd.f32 %v535_v48, %v533_v46  ;;  %v537_v56 = vld [vmem:[%s10783_s0 + $0x1088] sm:$0x7f]  ;;  %v538_v57 = vld [vmem:[%s10783_s0 + $0x1090] sm:$0x7f]  ;;  %v539_v62 = vld [vmem:[%s10783_s0 + $0x1098] sm:$0x7f] }
 0x134   :  { %v3420_v58 = vsel %vm4104_vm2, %v2824_v49, %v3419_v37  ;;  %v2825_v59 = vpack.c.bf16 %v2489_v50, %v2489_v50  ;;  %v2490_v60 = vmul.f32 0.25, %v2154_v52  ;;  %v3425_v61 = vld [vmem:[%s10784_s1 + $0x208] sm:$0xf]  ;;  %v1616_v63 = vadd.f32 %v538_v57, %v536_v55  ;;  %v540_v2 = vld [vmem:[%s10783_s0 + $0x10a0] sm:$0x7f] }
 0x135   :  { %3421 = vst [vmem:[%s10784_s1 + $0x200] sm:$0xf] %v3420_v58  ;;  %v2155_v0 = vadd.f32 %v1615_v54, %v1614_v53  ;;  %v1617_v1 = vadd.f32 %v539_v62, %v537_v56  ;;  %v541_v3 = vld [vmem:[%s10783_s0 + $0x10a8] sm:$0x7f]  ;;  %v542_v7 = vld [vmem:[%s10783_s0 + $0x10b0] sm:$0x7f] }
 0x136   :  { %v3423_v4 = vsel %vm4104_vm2, %v2825_v59, %v3422_v51  ;;  %v2826_v5 = vpack.c.bf16 %v2490_v60, %v2490_v60  ;;  %v3428_v6 = vld [vmem:[%s10784_s1 + $0x20c] sm:$0xf]  ;;  %v543_v8 = vld [vmem:[%s10783_s0 + $0x10b8] sm:$0x7f]  ;;  %v1618_v11 = vadd.f32 %v542_v7, %v540_v2  ;;  %v544_v13 = vld [vmem:[%s10783_s0 + $0x10c0] sm:$0x7f] }
 0x137   :  { %3424 = vst [vmem:[%s10784_s1 + $0x204] sm:$0xf] %v3423_v4  ;;  %v2491_v9 = vmul.f32 0.25, %v2155_v0  ;;  %v2156_v10 = vadd.f32 %v1617_v1, %v1616_v63  ;;  %v1619_v12 = vadd.f32 %v543_v8, %v541_v3  ;;  %v545_v15 = vld [vmem:[%s10783_s0 + $0x10c8] sm:$0x7f] }
 0x138   :  { %v3426_v14 = vsel %vm4104_vm2, %v2826_v5, %v3425_v61  ;;  %v546_v16 = vld [vmem:[%s10783_s0 + $0x10d0] sm:$0x7f]  ;;  %v547_v17 = vld [vmem:[%s10783_s0 + $0x10d8] sm:$0x7f]  ;;  %v548_v25 = vld [vmem:[%s10783_s0 + $0x10e0] sm:$0x7f] }
 0x139   :  { %3427 = vst [vmem:[%s10784_s1 + $0x208] sm:$0xf] %v3426_v14  ;;  %v2827_v18 = vpack.c.bf16 %v2491_v9, %v2491_v9  ;;  %v2492_v19 = vmul.f32 0.25, %v2156_v10  ;;  %v3431_v20 = vld [vmem:[%s10784_s1 + $0x210] sm:$0xf]  ;;  %v2157_v21 = vadd.f32 %v1619_v12, %v1618_v11  ;;  %v1620_v22 = vadd.f32 %v546_v16, %v544_v13 }
 0x13a   :  { %v1621_v24 = vadd.f32 %v547_v17, %v545_v15  ;;  %v549_v26 = vld [vmem:[%s10783_s0 + $0x10e8] sm:$0x7f]  ;;  %v550_v27 = vld [vmem:[%s10783_s0 + $0x10f0] sm:$0x7f]  ;;  %v551_v32 = vld [vmem:[%s10783_s0 + $0x10f8] sm:$0x7f] }
 0x13b   :  { %v3429_v28 = vsel %vm4104_vm2, %v2827_v18, %v3428_v6  ;;  %v2828_v29 = vpack.c.bf16 %v2492_v19, %v2492_v19  ;;  %v2493_v30 = vmul.f32 0.25, %v2157_v21  ;;  %v3434_v31 = vld [vmem:[%s10784_s1 + $0x214] sm:$0xf]  ;;  %v1622_v33 = vadd.f32 %v550_v27, %v548_v25  ;;  %v552_v36 = vld [vmem:[%s10783_s0 + $0x1100] sm:$0x7f] }
 0x13c   :  { %3430 = vst [vmem:[%s10784_s1 + $0x20c] sm:$0xf] %v3429_v28  ;;  %v2158_v34 = vadd.f32 %v1621_v24, %v1620_v22  ;;  %v1623_v35 = vadd.f32 %v551_v32, %v549_v26  ;;  %v553_v37 = vld [vmem:[%s10783_s0 + $0x1108] sm:$0x7f]  ;;  %v3437_v40 = vld [vmem:[%s10784_s1 + $0x218] sm:$0xf] }
 0x13d   :  { %v3432_v38 = vsel %vm4104_vm2, %v2828_v29, %v3431_v20  ;;  %v2829_v39 = vpack.c.bf16 %v2493_v30, %v2493_v30  ;;  %v554_v41 = vld [vmem:[%s10783_s0 + $0x1110] sm:$0x7f]  ;;  %v555_v42 = vld [vmem:[%s10783_s0 + $0x1118] sm:$0x7f]  ;;  %v556_v47 = vld [vmem:[%s10783_s0 + $0x1120] sm:$0x7f] }
 0x13e   :  { %3433 = vst [vmem:[%s10784_s1 + $0x210] sm:$0xf] %v3432_v38  ;;  %v2494_v43 = vmul.f32 0.25, %v2158_v34  ;;  %v2159_v44 = vadd.f32 %v1623_v35, %v1622_v33  ;;  %v1624_v45 = vadd.f32 %v554_v41, %v552_v36  ;;  %v1625_v46 = vadd.f32 %v555_v42, %v553_v37  ;;  %v557_v49 = vld [vmem:[%s10783_s0 + $0x1128] sm:$0x7f] }
 0x13f   :  { %v3435_v48 = vsel %vm4104_vm2, %v2829_v39, %v3434_v31  ;;  %v558_v50 = vld [vmem:[%s10783_s0 + $0x1130] sm:$0x7f]  ;;  %v559_v51 = vld [vmem:[%s10783_s0 + $0x1138] sm:$0x7f]  ;;  %v560_v58 = vld [vmem:[%s10783_s0 + $0x1140] sm:$0x7f] }
 0x140   :  { %3436 = vst [vmem:[%s10784_s1 + $0x214] sm:$0xf] %v3435_v48  ;;  %v2830_v52 = vpack.c.bf16 %v2494_v43, %v2494_v43  ;;  %v2495_v53 = vmul.f32 0.25, %v2159_v44  ;;  %v3440_v54 = vld [vmem:[%s10784_s1 + $0x21c] sm:$0xf]  ;;  %v2160_v55 = vadd.f32 %v1625_v46, %v1624_v45  ;;  %v1626_v56 = vadd.f32 %v558_v50, %v556_v47 }
 0x141   :  { %v1627_v57 = vadd.f32 %v559_v51, %v557_v49  ;;  %v561_v59 = vld [vmem:[%s10783_s0 + $0x1148] sm:$0x7f]  ;;  %v562_v60 = vld [vmem:[%s10783_s0 + $0x1150] sm:$0x7f]  ;;  %v3443_v0 = vld [vmem:[%s10784_s1 + $0x220] sm:$0xf] }
 0x142   :  { %v3438_v61 = vsel %vm4104_vm2, %v2830_v52, %v3437_v40  ;;  %v2831_v62 = vpack.c.bf16 %v2495_v53, %v2495_v53  ;;  %v2496_v63 = vmul.f32 0.25, %v2160_v55  ;;  %v563_v1 = vld [vmem:[%s10783_s0 + $0x1158] sm:$0x7f]  ;;  %v1628_v2 = vadd.f32 %v562_v60, %v560_v58  ;;  %v564_v5 = vld [vmem:[%s10783_s0 + $0x1160] sm:$0x7f] }
 0x143   :  { %3439 = vst [vmem:[%s10784_s1 + $0x218] sm:$0xf] %v3438_v61  ;;  %v2161_v3 = vadd.f32 %v1627_v57, %v1626_v56  ;;  %v1629_v4 = vadd.f32 %v563_v1, %v561_v59  ;;  %v565_v6 = vld [vmem:[%s10783_s0 + $0x1168] sm:$0x7f]  ;;  %v3446_v9 = vld [vmem:[%s10784_s1 + $0x224] sm:$0xf] }
 0x144   :  { %v3441_v7 = vsel %vm4104_vm2, %v2831_v62, %v3440_v54  ;;  %v2832_v8 = vpack.c.bf16 %v2496_v63, %v2496_v63  ;;  %v566_v10 = vld [vmem:[%s10783_s0 + $0x1170] sm:$0x7f]  ;;  %v567_v11 = vld [vmem:[%s10783_s0 + $0x1178] sm:$0x7f]  ;;  %v568_v16 = vld [vmem:[%s10783_s0 + $0x1180] sm:$0x7f] }
 0x145   :  { %3442 = vst [vmem:[%s10784_s1 + $0x21c] sm:$0xf] %v3441_v7  ;;  %v2497_v12 = vmul.f32 0.25, %v2161_v3  ;;  %v2162_v13 = vadd.f32 %v1629_v4, %v1628_v2  ;;  %v1630_v14 = vadd.f32 %v566_v10, %v564_v5  ;;  %v1631_v15 = vadd.f32 %v567_v11, %v565_v6  ;;  %v569_v18 = vld [vmem:[%s10783_s0 + $0x1188] sm:$0x7f] }
 0x146   :  { %v3444_v17 = vsel %vm4104_vm2, %v2832_v8, %v3443_v0  ;;  %v570_v19 = vld [vmem:[%s10783_s0 + $0x1190] sm:$0x7f]  ;;  %v571_v20 = vld [vmem:[%s10783_s0 + $0x1198] sm:$0x7f]  ;;  %v3449_v24 = vld [vmem:[%s10784_s1 + $0x228] sm:$0xf] }
 0x147   :  { %3445 = vst [vmem:[%s10784_s1 + $0x220] sm:$0xf] %v3444_v17  ;;  %v2833_v21 = vpack.c.bf16 %v2497_v12, %v2497_v12  ;;  %v2498_v22 = vmul.f32 0.25, %v2162_v13  ;;  %v2163_v25 = vadd.f32 %v1631_v15, %v1630_v14  ;;  %v1632_v26 = vadd.f32 %v570_v19, %v568_v16  ;;  %v572_v28 = vld [vmem:[%s10783_s0 + $0x11a0] sm:$0x7f] }
 0x148   :  { %v1633_v27 = vadd.f32 %v571_v20, %v569_v18  ;;  %v573_v29 = vld [vmem:[%s10783_s0 + $0x11a8] sm:$0x7f]  ;;  %v574_v30 = vld [vmem:[%s10783_s0 + $0x11b0] sm:$0x7f]  ;;  %v575_v35 = vld [vmem:[%s10783_s0 + $0x11b8] sm:$0x7f] }
 0x149   :  { %v3447_v31 = vsel %vm4104_vm2, %v2833_v21, %v3446_v9  ;;  %v2834_v32 = vpack.c.bf16 %v2498_v22, %v2498_v22  ;;  %v2499_v33 = vmul.f32 0.25, %v2163_v25  ;;  %v3452_v34 = vld [vmem:[%s10784_s1 + $0x22c] sm:$0xf]  ;;  %v1634_v36 = vadd.f32 %v574_v30, %v572_v28  ;;  %v576_v39 = vld [vmem:[%s10783_s0 + $0x11c0] sm:$0x7f] }
 0x14a   :  { %3448 = vst [vmem:[%s10784_s1 + $0x224] sm:$0xf] %v3447_v31  ;;  %v2164_v37 = vadd.f32 %v1633_v27, %v1632_v26  ;;  %v1635_v38 = vadd.f32 %v575_v35, %v573_v29  ;;  %v577_v40 = vld [vmem:[%s10783_s0 + $0x11c8] sm:$0x7f]  ;;  %v3455_v43 = vld [vmem:[%s10784_s1 + $0x230] sm:$0xf] }
 0x14b   :  { %v3450_v41 = vsel %vm4104_vm2, %v2834_v32, %v3449_v24  ;;  %v2835_v42 = vpack.c.bf16 %v2499_v33, %v2499_v33  ;;  %v578_v44 = vld [vmem:[%s10783_s0 + $0x11d0] sm:$0x7f]  ;;  %v579_v45 = vld [vmem:[%s10783_s0 + $0x11d8] sm:$0x7f]  ;;  %v580_v50 = vld [vmem:[%s10783_s0 + $0x11e0] sm:$0x7f] }
 0x14c   :  { %3451 = vst [vmem:[%s10784_s1 + $0x228] sm:$0xf] %v3450_v41  ;;  %v2500_v46 = vmul.f32 0.25, %v2164_v37  ;;  %v2165_v47 = vadd.f32 %v1635_v38, %v1634_v36  ;;  %v1636_v48 = vadd.f32 %v578_v44, %v576_v39  ;;  %v1637_v49 = vadd.f32 %v579_v45, %v577_v40  ;;  %v581_v52 = vld [vmem:[%s10783_s0 + $0x11e8] sm:$0x7f] }
 0x14d   :  { %v3453_v51 = vsel %vm4104_vm2, %v2835_v42, %v3452_v34  ;;  %v582_v53 = vld [vmem:[%s10783_s0 + $0x11f0] sm:$0x7f]  ;;  %v583_v54 = vld [vmem:[%s10783_s0 + $0x11f8] sm:$0x7f]  ;;  %v584_v61 = vld [vmem:[%s10783_s0 + $0x1200] sm:$0x7f] }
 0x14e   :  { %3454 = vst [vmem:[%s10784_s1 + $0x22c] sm:$0xf] %v3453_v51  ;;  %v2836_v55 = vpack.c.bf16 %v2500_v46, %v2500_v46  ;;  %v2501_v56 = vmul.f32 0.25, %v2165_v47  ;;  %v3458_v57 = vld [vmem:[%s10784_s1 + $0x234] sm:$0xf]  ;;  %v2166_v58 = vadd.f32 %v1637_v49, %v1636_v48  ;;  %v1638_v59 = vadd.f32 %v582_v53, %v580_v50 }
 0x14f   :  { %v1639_v60 = vadd.f32 %v583_v54, %v581_v52  ;;  %v585_v62 = vld [vmem:[%s10783_s0 + $0x1208] sm:$0x7f]  ;;  %v586_v63 = vld [vmem:[%s10783_s0 + $0x1210] sm:$0x7f]  ;;  %v3461_v3 = vld [vmem:[%s10784_s1 + $0x238] sm:$0xf] }
 0x150   :  { %v3456_v0 = vsel %vm4104_vm2, %v2836_v55, %v3455_v43  ;;  %v2837_v1 = vpack.c.bf16 %v2501_v56, %v2501_v56  ;;  %v2502_v2 = vmul.f32 0.25, %v2166_v58  ;;  %v587_v4 = vld [vmem:[%s10783_s0 + $0x1218] sm:$0x7f]  ;;  %v1640_v5 = vadd.f32 %v586_v63, %v584_v61  ;;  %v588_v8 = vld [vmem:[%s10783_s0 + $0x1220] sm:$0x7f] }
 0x151   :  { %3457 = vst [vmem:[%s10784_s1 + $0x230] sm:$0xf] %v3456_v0  ;;  %v2167_v6 = vadd.f32 %v1639_v60, %v1638_v59  ;;  %v1641_v7 = vadd.f32 %v587_v4, %v585_v62  ;;  %v589_v9 = vld [vmem:[%s10783_s0 + $0x1228] sm:$0x7f]  ;;  %v3464_v12 = vld [vmem:[%s10784_s1 + $0x23c] sm:$0xf] }
 0x152   :  { %v3459_v10 = vsel %vm4104_vm2, %v2837_v1, %v3458_v57  ;;  %v2838_v11 = vpack.c.bf16 %v2502_v2, %v2502_v2  ;;  %v590_v13 = vld [vmem:[%s10783_s0 + $0x1230] sm:$0x7f]  ;;  %v591_v14 = vld [vmem:[%s10783_s0 + $0x1238] sm:$0x7f]  ;;  %v592_v19 = vld [vmem:[%s10783_s0 + $0x1240] sm:$0x7f] }
 0x153   :  { %3460 = vst [vmem:[%s10784_s1 + $0x234] sm:$0xf] %v3459_v10  ;;  %v2503_v15 = vmul.f32 0.25, %v2167_v6  ;;  %v2168_v16 = vadd.f32 %v1641_v7, %v1640_v5  ;;  %v1642_v17 = vadd.f32 %v590_v13, %v588_v8  ;;  %v1643_v18 = vadd.f32 %v591_v14, %v589_v9  ;;  %v593_v21 = vld [vmem:[%s10783_s0 + $0x1248] sm:$0x7f] }
 0x154   :  { %v3462_v20 = vsel %vm4104_vm2, %v2838_v11, %v3461_v3  ;;  %v594_v22 = vld [vmem:[%s10783_s0 + $0x1250] sm:$0x7f]  ;;  %v595_v24 = vld [vmem:[%s10783_s0 + $0x1258] sm:$0x7f]  ;;  %v3467_v27 = vld [vmem:[%s10784_s1 + $0x240] sm:$0xf] }
 0x155   :  { %3463 = vst [vmem:[%s10784_s1 + $0x238] sm:$0xf] %v3462_v20  ;;  %v2839_v25 = vpack.c.bf16 %v2503_v15, %v2503_v15  ;;  %v2504_v26 = vmul.f32 0.25, %v2168_v16  ;;  %v2169_v28 = vadd.f32 %v1643_v18, %v1642_v17  ;;  %v1644_v29 = vadd.f32 %v594_v22, %v592_v19  ;;  %v596_v31 = vld [vmem:[%s10783_s0 + $0x1260] sm:$0x7f] }
 0x156   :  { %v1645_v30 = vadd.f32 %v595_v24, %v593_v21  ;;  %v597_v32 = vld [vmem:[%s10783_s0 + $0x1268] sm:$0x7f]  ;;  %v598_v33 = vld [vmem:[%s10783_s0 + $0x1270] sm:$0x7f]  ;;  %v3470_v37 = vld [vmem:[%s10784_s1 + $0x244] sm:$0xf] }
 0x157   :  { %v3465_v34 = vsel %vm4104_vm2, %v2839_v25, %v3464_v12  ;;  %v2840_v35 = vpack.c.bf16 %v2504_v26, %v2504_v26  ;;  %v2505_v36 = vmul.f32 0.25, %v2169_v28  ;;  %v599_v38 = vld [vmem:[%s10783_s0 + $0x1278] sm:$0x7f]  ;;  %v1646_v39 = vadd.f32 %v598_v33, %v596_v31  ;;  %v600_v42 = vld [vmem:[%s10783_s0 + $0x1280] sm:$0x7f] }
 0x158   :  { %3466 = vst [vmem:[%s10784_s1 + $0x23c] sm:$0xf] %v3465_v34  ;;  %v2170_v40 = vadd.f32 %v1645_v30, %v1644_v29  ;;  %v1647_v41 = vadd.f32 %v599_v38, %v597_v32  ;;  %v601_v43 = vld [vmem:[%s10783_s0 + $0x1288] sm:$0x7f]  ;;  %v602_v47 = vld [vmem:[%s10783_s0 + $0x1290] sm:$0x7f] }
 0x159   :  { %v3468_v44 = vsel %vm4104_vm2, %v2840_v35, %v3467_v27  ;;  %v2841_v45 = vpack.c.bf16 %v2505_v36, %v2505_v36  ;;  %v3473_v46 = vld [vmem:[%s10784_s1 + $0x248] sm:$0xf]  ;;  %v603_v48 = vld [vmem:[%s10783_s0 + $0x1298] sm:$0x7f]  ;;  %v1648_v51 = vadd.f32 %v602_v47, %v600_v42  ;;  %v604_v53 = vld [vmem:[%s10783_s0 + $0x12a0] sm:$0x7f] }
 0x15a   :  { %3469 = vst [vmem:[%s10784_s1 + $0x240] sm:$0xf] %v3468_v44  ;;  %v2506_v49 = vmul.f32 0.25, %v2170_v40  ;;  %v2171_v50 = vadd.f32 %v1647_v41, %v1646_v39  ;;  %v1649_v52 = vadd.f32 %v603_v48, %v601_v43  ;;  %v605_v55 = vld [vmem:[%s10783_s0 + $0x12a8] sm:$0x7f] }
 0x15b   :  { %v3471_v54 = vsel %vm4104_vm2, %v2841_v45, %v3470_v37  ;;  %v606_v56 = vld [vmem:[%s10783_s0 + $0x12b0] sm:$0x7f]  ;;  %v607_v57 = vld [vmem:[%s10783_s0 + $0x12b8] sm:$0x7f]  ;;  %v3476_v60 = vld [vmem:[%s10784_s1 + $0x24c] sm:$0xf] }
 0x15c   :  { %3472 = vst [vmem:[%s10784_s1 + $0x244] sm:$0xf] %v3471_v54  ;;  %v2842_v58 = vpack.c.bf16 %v2506_v49, %v2506_v49  ;;  %v2507_v59 = vmul.f32 0.25, %v2171_v50  ;;  %v2172_v61 = vadd.f32 %v1649_v52, %v1648_v51  ;;  %v1650_v62 = vadd.f32 %v606_v56, %v604_v53  ;;  %v608_v0 = vld [vmem:[%s10783_s0 + $0x12c0] sm:$0x7f] }
 0x15d   :  { %v1651_v63 = vadd.f32 %v607_v57, %v605_v55  ;;  %v609_v1 = vld [vmem:[%s10783_s0 + $0x12c8] sm:$0x7f]  ;;  %v610_v2 = vld [vmem:[%s10783_s0 + $0x12d0] sm:$0x7f]  ;;  %v611_v7 = vld [vmem:[%s10783_s0 + $0x12d8] sm:$0x7f] }
 0x15e   :  { %v3474_v3 = vsel %vm4104_vm2, %v2842_v58, %v3473_v46  ;;  %v2843_v4 = vpack.c.bf16 %v2507_v59, %v2507_v59  ;;  %v2508_v5 = vmul.f32 0.25, %v2172_v61  ;;  %v3479_v6 = vld [vmem:[%s10784_s1 + $0x250] sm:$0xf]  ;;  %v1652_v8 = vadd.f32 %v610_v2, %v608_v0  ;;  %v612_v11 = vld [vmem:[%s10783_s0 + $0x12e0] sm:$0x7f] }
 0x15f   :  { %3475 = vst [vmem:[%s10784_s1 + $0x248] sm:$0xf] %v3474_v3  ;;  %v2173_v9 = vadd.f32 %v1651_v63, %v1650_v62  ;;  %v1653_v10 = vadd.f32 %v611_v7, %v609_v1  ;;  %v613_v12 = vld [vmem:[%s10783_s0 + $0x12e8] sm:$0x7f]  ;;  %v3482_v15 = vld [vmem:[%s10784_s1 + $0x254] sm:$0xf] }
 0x160   :  { %v3477_v13 = vsel %vm4104_vm2, %v2843_v4, %v3476_v60  ;;  %v2844_v14 = vpack.c.bf16 %v2508_v5, %v2508_v5  ;;  %v614_v16 = vld [vmem:[%s10783_s0 + $0x12f0] sm:$0x7f]  ;;  %v615_v17 = vld [vmem:[%s10783_s0 + $0x12f8] sm:$0x7f]  ;;  %v616_v22 = vld [vmem:[%s10783_s0 + $0x1300] sm:$0x7f] }
 0x161   :  { %3478 = vst [vmem:[%s10784_s1 + $0x24c] sm:$0xf] %v3477_v13  ;;  %v2509_v18 = vmul.f32 0.25, %v2173_v9  ;;  %v2174_v19 = vadd.f32 %v1653_v10, %v1652_v8  ;;  %v1654_v20 = vadd.f32 %v614_v16, %v612_v11  ;;  %v1655_v21 = vadd.f32 %v615_v17, %v613_v12  ;;  %v617_v25 = vld [vmem:[%s10783_s0 + $0x1308] sm:$0x7f] }
 0x162   :  { %v3480_v24 = vsel %vm4104_vm2, %v2844_v14, %v3479_v6  ;;  %v618_v26 = vld [vmem:[%s10783_s0 + $0x1310] sm:$0x7f]  ;;  %v619_v27 = vld [vmem:[%s10783_s0 + $0x1318] sm:$0x7f]  ;;  %v620_v34 = vld [vmem:[%s10783_s0 + $0x1320] sm:$0x7f] }
 0x163   :  { %3481 = vst [vmem:[%s10784_s1 + $0x250] sm:$0xf] %v3480_v24  ;;  %v2845_v28 = vpack.c.bf16 %v2509_v18, %v2509_v18  ;;  %v2510_v29 = vmul.f32 0.25, %v2174_v19  ;;  %v3485_v30 = vld [vmem:[%s10784_s1 + $0x258] sm:$0xf]  ;;  %v2175_v31 = vadd.f32 %v1655_v21, %v1654_v20  ;;  %v1656_v32 = vadd.f32 %v618_v26, %v616_v22 }
 0x164   :  { %v1657_v33 = vadd.f32 %v619_v27, %v617_v25  ;;  %v621_v35 = vld [vmem:[%s10783_s0 + $0x1328] sm:$0x7f]  ;;  %v622_v36 = vld [vmem:[%s10783_s0 + $0x1330] sm:$0x7f]  ;;  %v3488_v40 = vld [vmem:[%s10784_s1 + $0x25c] sm:$0xf] }
 0x165   :  { %v3483_v37 = vsel %vm4104_vm2, %v2845_v28, %v3482_v15  ;;  %v2846_v38 = vpack.c.bf16 %v2510_v29, %v2510_v29  ;;  %v2511_v39 = vmul.f32 0.25, %v2175_v31  ;;  %v623_v41 = vld [vmem:[%s10783_s0 + $0x1338] sm:$0x7f]  ;;  %v1658_v42 = vadd.f32 %v622_v36, %v620_v34  ;;  %v624_v45 = vld [vmem:[%s10783_s0 + $0x1340] sm:$0x7f] }
 0x166   :  { %3484 = vst [vmem:[%s10784_s1 + $0x254] sm:$0xf] %v3483_v37  ;;  %v2176_v43 = vadd.f32 %v1657_v33, %v1656_v32  ;;  %v1659_v44 = vadd.f32 %v623_v41, %v621_v35  ;;  %v625_v46 = vld [vmem:[%s10783_s0 + $0x1348] sm:$0x7f]  ;;  %v3491_v49 = vld [vmem:[%s10784_s1 + $0x260] sm:$0xf] }
 0x167   :  { %v3486_v47 = vsel %vm4104_vm2, %v2846_v38, %v3485_v30  ;;  %v2847_v48 = vpack.c.bf16 %v2511_v39, %v2511_v39  ;;  %v626_v50 = vld [vmem:[%s10783_s0 + $0x1350] sm:$0x7f]  ;;  %v627_v51 = vld [vmem:[%s10783_s0 + $0x1358] sm:$0x7f]  ;;  %v628_v56 = vld [vmem:[%s10783_s0 + $0x1360] sm:$0x7f] }
 0x168   :  { %3487 = vst [vmem:[%s10784_s1 + $0x258] sm:$0xf] %v3486_v47  ;;  %v2512_v52 = vmul.f32 0.25, %v2176_v43  ;;  %v2177_v53 = vadd.f32 %v1659_v44, %v1658_v42  ;;  %v1660_v54 = vadd.f32 %v626_v50, %v624_v45  ;;  %v1661_v55 = vadd.f32 %v627_v51, %v625_v46  ;;  %v629_v58 = vld [vmem:[%s10783_s0 + $0x1368] sm:$0x7f] }
 0x169   :  { %v3489_v57 = vsel %vm4104_vm2, %v2847_v48, %v3488_v40  ;;  %v630_v59 = vld [vmem:[%s10783_s0 + $0x1370] sm:$0x7f]  ;;  %v631_v60 = vld [vmem:[%s10783_s0 + $0x1378] sm:$0x7f]  ;;  %v3494_v63 = vld [vmem:[%s10784_s1 + $0x264] sm:$0xf] }
 0x16a   :  { %3490 = vst [vmem:[%s10784_s1 + $0x25c] sm:$0xf] %v3489_v57  ;;  %v2848_v61 = vpack.c.bf16 %v2512_v52, %v2512_v52  ;;  %v2513_v62 = vmul.f32 0.25, %v2177_v53  ;;  %v2178_v0 = vadd.f32 %v1661_v55, %v1660_v54  ;;  %v1662_v1 = vadd.f32 %v630_v59, %v628_v56  ;;  %v632_v3 = vld [vmem:[%s10783_s0 + $0x1380] sm:$0x7f] }
 0x16b   :  { %v1663_v2 = vadd.f32 %v631_v60, %v629_v58  ;;  %v633_v4 = vld [vmem:[%s10783_s0 + $0x1388] sm:$0x7f]  ;;  %v634_v5 = vld [vmem:[%s10783_s0 + $0x1390] sm:$0x7f]  ;;  %v635_v10 = vld [vmem:[%s10783_s0 + $0x1398] sm:$0x7f] }
 0x16c   :  { %v3492_v6 = vsel %vm4104_vm2, %v2848_v61, %v3491_v49  ;;  %v2849_v7 = vpack.c.bf16 %v2513_v62, %v2513_v62  ;;  %v2514_v8 = vmul.f32 0.25, %v2178_v0  ;;  %v3497_v9 = vld [vmem:[%s10784_s1 + $0x268] sm:$0xf]  ;;  %v1664_v11 = vadd.f32 %v634_v5, %v632_v3  ;;  %v636_v14 = vld [vmem:[%s10783_s0 + $0x13a0] sm:$0x7f] }
 0x16d   :  { %3493 = vst [vmem:[%s10784_s1 + $0x260] sm:$0xf] %v3492_v6  ;;  %v2179_v12 = vadd.f32 %v1663_v2, %v1662_v1  ;;  %v1665_v13 = vadd.f32 %v635_v10, %v633_v4  ;;  %v637_v15 = vld [vmem:[%s10783_s0 + $0x13a8] sm:$0x7f]  ;;  %v638_v19 = vld [vmem:[%s10783_s0 + $0x13b0] sm:$0x7f] }
 0x16e   :  { %v3495_v16 = vsel %vm4104_vm2, %v2849_v7, %v3494_v63  ;;  %v2850_v17 = vpack.c.bf16 %v2514_v8, %v2514_v8  ;;  %v3500_v18 = vld [vmem:[%s10784_s1 + $0x26c] sm:$0xf]  ;;  %v639_v20 = vld [vmem:[%s10783_s0 + $0x13b8] sm:$0x7f]  ;;  %v1666_v24 = vadd.f32 %v638_v19, %v636_v14  ;;  %v640_v26 = vld [vmem:[%s10783_s0 + $0x13c0] sm:$0x7f] }
 0x16f   :  { %3496 = vst [vmem:[%s10784_s1 + $0x264] sm:$0xf] %v3495_v16  ;;  %v2515_v21 = vmul.f32 0.25, %v2179_v12  ;;  %v2180_v22 = vadd.f32 %v1665_v13, %v1664_v11  ;;  %v1667_v25 = vadd.f32 %v639_v20, %v637_v15  ;;  %v641_v28 = vld [vmem:[%s10783_s0 + $0x13c8] sm:$0x7f] }
 0x170   :  { %v3498_v27 = vsel %vm4104_vm2, %v2850_v17, %v3497_v9  ;;  %v642_v29 = vld [vmem:[%s10783_s0 + $0x13d0] sm:$0x7f]  ;;  %v643_v30 = vld [vmem:[%s10783_s0 + $0x13d8] sm:$0x7f]  ;;  %v644_v37 = vld [vmem:[%s10783_s0 + $0x13e0] sm:$0x7f] }
 0x171   :  { %3499 = vst [vmem:[%s10784_s1 + $0x268] sm:$0xf] %v3498_v27  ;;  %v2851_v31 = vpack.c.bf16 %v2515_v21, %v2515_v21  ;;  %v2516_v32 = vmul.f32 0.25, %v2180_v22  ;;  %v3503_v33 = vld [vmem:[%s10784_s1 + $0x270] sm:$0xf]  ;;  %v2181_v34 = vadd.f32 %v1667_v25, %v1666_v24  ;;  %v1668_v35 = vadd.f32 %v642_v29, %v640_v26 }
 0x172   :  { %v1669_v36 = vadd.f32 %v643_v30, %v641_v28  ;;  %v645_v38 = vld [vmem:[%s10783_s0 + $0x13e8] sm:$0x7f]  ;;  %v646_v39 = vld [vmem:[%s10783_s0 + $0x13f0] sm:$0x7f]  ;;  %v647_v44 = vld [vmem:[%s10783_s0 + $0x13f8] sm:$0x7f] }
 0x173   :  { %v3501_v40 = vsel %vm4104_vm2, %v2851_v31, %v3500_v18  ;;  %v2852_v41 = vpack.c.bf16 %v2516_v32, %v2516_v32  ;;  %v2517_v42 = vmul.f32 0.25, %v2181_v34  ;;  %v3506_v43 = vld [vmem:[%s10784_s1 + $0x274] sm:$0xf]  ;;  %v1670_v45 = vadd.f32 %v646_v39, %v644_v37  ;;  %v648_v48 = vld [vmem:[%s10783_s0 + $0x1400] sm:$0x7f] }
 0x174   :  { %3502 = vst [vmem:[%s10784_s1 + $0x26c] sm:$0xf] %v3501_v40  ;;  %v2182_v46 = vadd.f32 %v1669_v36, %v1668_v35  ;;  %v1671_v47 = vadd.f32 %v647_v44, %v645_v38  ;;  %v649_v49 = vld [vmem:[%s10783_s0 + $0x1408] sm:$0x7f]  ;;  %v3509_v52 = vld [vmem:[%s10784_s1 + $0x278] sm:$0xf] }
 0x175   :  { %v3504_v50 = vsel %vm4104_vm2, %v2852_v41, %v3503_v33  ;;  %v2853_v51 = vpack.c.bf16 %v2517_v42, %v2517_v42  ;;  %v650_v53 = vld [vmem:[%s10783_s0 + $0x1410] sm:$0x7f]  ;;  %v651_v54 = vld [vmem:[%s10783_s0 + $0x1418] sm:$0x7f]  ;;  %v652_v59 = vld [vmem:[%s10783_s0 + $0x1420] sm:$0x7f] }
 0x176   :  { %3505 = vst [vmem:[%s10784_s1 + $0x270] sm:$0xf] %v3504_v50  ;;  %v2518_v55 = vmul.f32 0.25, %v2182_v46  ;;  %v2183_v56 = vadd.f32 %v1671_v47, %v1670_v45  ;;  %v1672_v57 = vadd.f32 %v650_v53, %v648_v48  ;;  %v1673_v58 = vadd.f32 %v651_v54, %v649_v49  ;;  %v653_v61 = vld [vmem:[%s10783_s0 + $0x1428] sm:$0x7f] }
 0x177   :  { %v3507_v60 = vsel %vm4104_vm2, %v2853_v51, %v3506_v43  ;;  %v654_v62 = vld [vmem:[%s10783_s0 + $0x1430] sm:$0x7f]  ;;  %v655_v63 = vld [vmem:[%s10783_s0 + $0x1438] sm:$0x7f]  ;;  %v656_v6 = vld [vmem:[%s10783_s0 + $0x1440] sm:$0x7f] }
 0x178   :  { %3508 = vst [vmem:[%s10784_s1 + $0x274] sm:$0xf] %v3507_v60  ;;  %v2854_v0 = vpack.c.bf16 %v2518_v55, %v2518_v55  ;;  %v2519_v1 = vmul.f32 0.25, %v2183_v56  ;;  %v3512_v2 = vld [vmem:[%s10784_s1 + $0x27c] sm:$0xf]  ;;  %v2184_v3 = vadd.f32 %v1673_v58, %v1672_v57  ;;  %v1674_v4 = vadd.f32 %v654_v62, %v652_v59 }
 0x179   :  { %v1675_v5 = vadd.f32 %v655_v63, %v653_v61  ;;  %v657_v7 = vld [vmem:[%s10783_s0 + $0x1448] sm:$0x7f]  ;;  %v658_v8 = vld [vmem:[%s10783_s0 + $0x1450] sm:$0x7f]  ;;  %v3515_v12 = vld [vmem:[%s10784_s1 + $0x280] sm:$0xf] }
 0x17a   :  { %v3510_v9 = vsel %vm4104_vm2, %v2854_v0, %v3509_v52  ;;  %v2855_v10 = vpack.c.bf16 %v2519_v1, %v2519_v1  ;;  %v2520_v11 = vmul.f32 0.25, %v2184_v3  ;;  %v659_v13 = vld [vmem:[%s10783_s0 + $0x1458] sm:$0x7f]  ;;  %v1676_v14 = vadd.f32 %v658_v8, %v656_v6  ;;  %v660_v17 = vld [vmem:[%s10783_s0 + $0x1460] sm:$0x7f] }
 0x17b   :  { %3511 = vst [vmem:[%s10784_s1 + $0x278] sm:$0xf] %v3510_v9  ;;  %v2185_v15 = vadd.f32 %v1675_v5, %v1674_v4  ;;  %v1677_v16 = vadd.f32 %v659_v13, %v657_v7  ;;  %v661_v18 = vld [vmem:[%s10783_s0 + $0x1468] sm:$0x7f]  ;;  %v3518_v21 = vld [vmem:[%s10784_s1 + $0x284] sm:$0xf] }
 0x17c   :  { %v3513_v19 = vsel %vm4104_vm2, %v2855_v10, %v3512_v2  ;;  %v2856_v20 = vpack.c.bf16 %v2520_v11, %v2520_v11  ;;  %v662_v22 = vld [vmem:[%s10783_s0 + $0x1470] sm:$0x7f]  ;;  %v663_v24 = vld [vmem:[%s10783_s0 + $0x1478] sm:$0x7f]  ;;  %v664_v29 = vld [vmem:[%s10783_s0 + $0x1480] sm:$0x7f] }
 0x17d   :  { %3514 = vst [vmem:[%s10784_s1 + $0x27c] sm:$0xf] %v3513_v19  ;;  %v2521_v25 = vmul.f32 0.25, %v2185_v15  ;;  %v2186_v26 = vadd.f32 %v1677_v16, %v1676_v14  ;;  %v1678_v27 = vadd.f32 %v662_v22, %v660_v17  ;;  %v1679_v28 = vadd.f32 %v663_v24, %v661_v18  ;;  %v665_v31 = vld [vmem:[%s10783_s0 + $0x1488] sm:$0x7f] }
 0x17e   :  { %v3516_v30 = vsel %vm4104_vm2, %v2856_v20, %v3515_v12  ;;  %v666_v32 = vld [vmem:[%s10783_s0 + $0x1490] sm:$0x7f]  ;;  %v667_v33 = vld [vmem:[%s10783_s0 + $0x1498] sm:$0x7f]  ;;  %v3521_v36 = vld [vmem:[%s10784_s1 + $0x288] sm:$0xf] }
 0x17f   :  { %3517 = vst [vmem:[%s10784_s1 + $0x280] sm:$0xf] %v3516_v30  ;;  %v2857_v34 = vpack.c.bf16 %v2521_v25, %v2521_v25  ;;  %v2522_v35 = vmul.f32 0.25, %v2186_v26  ;;  %v2187_v37 = vadd.f32 %v1679_v28, %v1678_v27  ;;  %v1680_v38 = vadd.f32 %v666_v32, %v664_v29  ;;  %v668_v40 = vld [vmem:[%s10783_s0 + $0x14a0] sm:$0x7f] }
 0x180   :  { %v1681_v39 = vadd.f32 %v667_v33, %v665_v31  ;;  %v669_v41 = vld [vmem:[%s10783_s0 + $0x14a8] sm:$0x7f]  ;;  %v670_v42 = vld [vmem:[%s10783_s0 + $0x14b0] sm:$0x7f]  ;;  %v671_v47 = vld [vmem:[%s10783_s0 + $0x14b8] sm:$0x7f] }
 0x181   :  { %v3519_v43 = vsel %vm4104_vm2, %v2857_v34, %v3518_v21  ;;  %v2858_v44 = vpack.c.bf16 %v2522_v35, %v2522_v35  ;;  %v2523_v45 = vmul.f32 0.25, %v2187_v37  ;;  %v3524_v46 = vld [vmem:[%s10784_s1 + $0x28c] sm:$0xf]  ;;  %v1682_v48 = vadd.f32 %v670_v42, %v668_v40  ;;  %v672_v51 = vld [vmem:[%s10783_s0 + $0x14c0] sm:$0x7f] }
 0x182   :  { %3520 = vst [vmem:[%s10784_s1 + $0x284] sm:$0xf] %v3519_v43  ;;  %v2188_v49 = vadd.f32 %v1681_v39, %v1680_v38  ;;  %v1683_v50 = vadd.f32 %v671_v47, %v669_v41  ;;  %v673_v52 = vld [vmem:[%s10783_s0 + $0x14c8] sm:$0x7f]  ;;  %v3527_v55 = vld [vmem:[%s10784_s1 + $0x290] sm:$0xf] }
 0x183   :  { %v3522_v53 = vsel %vm4104_vm2, %v2858_v44, %v3521_v36  ;;  %v2859_v54 = vpack.c.bf16 %v2523_v45, %v2523_v45  ;;  %v674_v56 = vld [vmem:[%s10783_s0 + $0x14d0] sm:$0x7f]  ;;  %v675_v57 = vld [vmem:[%s10783_s0 + $0x14d8] sm:$0x7f]  ;;  %v676_v62 = vld [vmem:[%s10783_s0 + $0x14e0] sm:$0x7f] }
 0x184   :  { %3523 = vst [vmem:[%s10784_s1 + $0x288] sm:$0xf] %v3522_v53  ;;  %v2524_v58 = vmul.f32 0.25, %v2188_v49  ;;  %v2189_v59 = vadd.f32 %v1683_v50, %v1682_v48  ;;  %v1684_v60 = vadd.f32 %v674_v56, %v672_v51  ;;  %v1685_v61 = vadd.f32 %v675_v57, %v673_v52  ;;  %v677_v0 = vld [vmem:[%s10783_s0 + $0x14e8] sm:$0x7f] }
 0x185   :  { %v3525_v63 = vsel %vm4104_vm2, %v2859_v54, %v3524_v46  ;;  %v678_v1 = vld [vmem:[%s10783_s0 + $0x14f0] sm:$0x7f]  ;;  %v679_v2 = vld [vmem:[%s10783_s0 + $0x14f8] sm:$0x7f]  ;;  %v680_v9 = vld [vmem:[%s10783_s0 + $0x1500] sm:$0x7f] }
 0x186   :  { %3526 = vst [vmem:[%s10784_s1 + $0x28c] sm:$0xf] %v3525_v63  ;;  %v2860_v3 = vpack.c.bf16 %v2524_v58, %v2524_v58  ;;  %v2525_v4 = vmul.f32 0.25, %v2189_v59  ;;  %v3530_v5 = vld [vmem:[%s10784_s1 + $0x294] sm:$0xf]  ;;  %v2190_v6 = vadd.f32 %v1685_v61, %v1684_v60  ;;  %v1686_v7 = vadd.f32 %v678_v1, %v676_v62 }
 0x187   :  { %v1687_v8 = vadd.f32 %v679_v2, %v677_v0  ;;  %v681_v10 = vld [vmem:[%s10783_s0 + $0x1508] sm:$0x7f]  ;;  %v682_v11 = vld [vmem:[%s10783_s0 + $0x1510] sm:$0x7f]  ;;  %v3533_v15 = vld [vmem:[%s10784_s1 + $0x298] sm:$0xf] }
 0x188   :  { %v3528_v12 = vsel %vm4104_vm2, %v2860_v3, %v3527_v55  ;;  %v2861_v13 = vpack.c.bf16 %v2525_v4, %v2525_v4  ;;  %v2526_v14 = vmul.f32 0.25, %v2190_v6  ;;  %v683_v16 = vld [vmem:[%s10783_s0 + $0x1518] sm:$0x7f]  ;;  %v1688_v17 = vadd.f32 %v682_v11, %v680_v9  ;;  %v684_v20 = vld [vmem:[%s10783_s0 + $0x1520] sm:$0x7f] }
 0x189   :  { %3529 = vst [vmem:[%s10784_s1 + $0x290] sm:$0xf] %v3528_v12  ;;  %v2191_v18 = vadd.f32 %v1687_v8, %v1686_v7  ;;  %v1689_v19 = vadd.f32 %v683_v16, %v681_v10  ;;  %v685_v21 = vld [vmem:[%s10783_s0 + $0x1528] sm:$0x7f]  ;;  %v3536_v25 = vld [vmem:[%s10784_s1 + $0x29c] sm:$0xf] }
 0x18a   :  { %v3531_v22 = vsel %vm4104_vm2, %v2861_v13, %v3530_v5  ;;  %v2862_v24 = vpack.c.bf16 %v2526_v14, %v2526_v14  ;;  %v686_v26 = vld [vmem:[%s10783_s0 + $0x1530] sm:$0x7f]  ;;  %v687_v27 = vld [vmem:[%s10783_s0 + $0x1538] sm:$0x7f]  ;;  %v688_v32 = vld [vmem:[%s10783_s0 + $0x1540] sm:$0x7f] }
 0x18b   :  { %3532 = vst [vmem:[%s10784_s1 + $0x294] sm:$0xf] %v3531_v22  ;;  %v2527_v28 = vmul.f32 0.25, %v2191_v18  ;;  %v2192_v29 = vadd.f32 %v1689_v19, %v1688_v17  ;;  %v1690_v30 = vadd.f32 %v686_v26, %v684_v20  ;;  %v1691_v31 = vadd.f32 %v687_v27, %v685_v21  ;;  %v689_v34 = vld [vmem:[%s10783_s0 + $0x1548] sm:$0x7f] }
 0x18c   :  { %v3534_v33 = vsel %vm4104_vm2, %v2862_v24, %v3533_v15  ;;  %v690_v35 = vld [vmem:[%s10783_s0 + $0x1550] sm:$0x7f]  ;;  %v691_v36 = vld [vmem:[%s10783_s0 + $0x1558] sm:$0x7f]  ;;  %v3539_v39 = vld [vmem:[%s10784_s1 + $0x2a0] sm:$0xf] }
 0x18d   :  { %3535 = vst [vmem:[%s10784_s1 + $0x298] sm:$0xf] %v3534_v33  ;;  %v2863_v37 = vpack.c.bf16 %v2527_v28, %v2527_v28  ;;  %v2528_v38 = vmul.f32 0.25, %v2192_v29  ;;  %v2193_v40 = vadd.f32 %v1691_v31, %v1690_v30  ;;  %v1692_v41 = vadd.f32 %v690_v35, %v688_v32  ;;  %v692_v43 = vld [vmem:[%s10783_s0 + $0x1560] sm:$0x7f] }
 0x18e   :  { %v1693_v42 = vadd.f32 %v691_v36, %v689_v34  ;;  %v693_v44 = vld [vmem:[%s10783_s0 + $0x1568] sm:$0x7f]  ;;  %v694_v45 = vld [vmem:[%s10783_s0 + $0x1570] sm:$0x7f]  ;;  %v3542_v49 = vld [vmem:[%s10784_s1 + $0x2a4] sm:$0xf] }
 0x18f   :  { %v3537_v46 = vsel %vm4104_vm2, %v2863_v37, %v3536_v25  ;;  %v2864_v47 = vpack.c.bf16 %v2528_v38, %v2528_v38  ;;  %v2529_v48 = vmul.f32 0.25, %v2193_v40  ;;  %v695_v50 = vld [vmem:[%s10783_s0 + $0x1578] sm:$0x7f]  ;;  %v1694_v51 = vadd.f32 %v694_v45, %v692_v43  ;;  %v696_v54 = vld [vmem:[%s10783_s0 + $0x1580] sm:$0x7f] }
 0x190   :  { %3538 = vst [vmem:[%s10784_s1 + $0x29c] sm:$0xf] %v3537_v46  ;;  %v2194_v52 = vadd.f32 %v1693_v42, %v1692_v41  ;;  %v1695_v53 = vadd.f32 %v695_v50, %v693_v44  ;;  %v697_v55 = vld [vmem:[%s10783_s0 + $0x1588] sm:$0x7f]  ;;  %v698_v59 = vld [vmem:[%s10783_s0 + $0x1590] sm:$0x7f] }
 0x191   :  { %v3540_v56 = vsel %vm4104_vm2, %v2864_v47, %v3539_v39  ;;  %v2865_v57 = vpack.c.bf16 %v2529_v48, %v2529_v48  ;;  %v3545_v58 = vld [vmem:[%s10784_s1 + $0x2a8] sm:$0xf]  ;;  %v699_v60 = vld [vmem:[%s10783_s0 + $0x1598] sm:$0x7f]  ;;  %v1696_v63 = vadd.f32 %v698_v59, %v696_v54  ;;  %v700_v1 = vld [vmem:[%s10783_s0 + $0x15a0] sm:$0x7f] }
 0x192   :  { %3541 = vst [vmem:[%s10784_s1 + $0x2a0] sm:$0xf] %v3540_v56  ;;  %v2530_v61 = vmul.f32 0.25, %v2194_v52  ;;  %v2195_v62 = vadd.f32 %v1695_v53, %v1694_v51  ;;  %v1697_v0 = vadd.f32 %v699_v60, %v697_v55  ;;  %v701_v3 = vld [vmem:[%s10783_s0 + $0x15a8] sm:$0x7f] }
 0x193   :  { %v3543_v2 = vsel %vm4104_vm2, %v2865_v57, %v3542_v49  ;;  %v702_v4 = vld [vmem:[%s10783_s0 + $0x15b0] sm:$0x7f]  ;;  %v703_v5 = vld [vmem:[%s10783_s0 + $0x15b8] sm:$0x7f]  ;;  %v3548_v8 = vld [vmem:[%s10784_s1 + $0x2ac] sm:$0xf] }
 0x194   :  { %3544 = vst [vmem:[%s10784_s1 + $0x2a4] sm:$0xf] %v3543_v2  ;;  %v2866_v6 = vpack.c.bf16 %v2530_v61, %v2530_v61  ;;  %v2531_v7 = vmul.f32 0.25, %v2195_v62  ;;  %v2196_v9 = vadd.f32 %v1697_v0, %v1696_v63  ;;  %v1698_v10 = vadd.f32 %v702_v4, %v700_v1  ;;  %v704_v12 = vld [vmem:[%s10783_s0 + $0x15c0] sm:$0x7f] }
 0x195   :  { %v1699_v11 = vadd.f32 %v703_v5, %v701_v3  ;;  %v705_v13 = vld [vmem:[%s10783_s0 + $0x15c8] sm:$0x7f]  ;;  %v706_v14 = vld [vmem:[%s10783_s0 + $0x15d0] sm:$0x7f]  ;;  %v707_v19 = vld [vmem:[%s10783_s0 + $0x15d8] sm:$0x7f] }
 0x196   :  { %v3546_v15 = vsel %vm4104_vm2, %v2866_v6, %v3545_v58  ;;  %v2867_v16 = vpack.c.bf16 %v2531_v7, %v2531_v7  ;;  %v2532_v17 = vmul.f32 0.25, %v2196_v9  ;;  %v3551_v18 = vld [vmem:[%s10784_s1 + $0x2b0] sm:$0xf]  ;;  %v1700_v20 = vadd.f32 %v706_v14, %v704_v12  ;;  %v708_v24 = vld [vmem:[%s10783_s0 + $0x15e0] sm:$0x7f] }
 0x197   :  { %3547 = vst [vmem:[%s10784_s1 + $0x2a8] sm:$0xf] %v3546_v15  ;;  %v2197_v21 = vadd.f32 %v1699_v11, %v1698_v10  ;;  %v1701_v22 = vadd.f32 %v707_v19, %v705_v13  ;;  %v709_v25 = vld [vmem:[%s10783_s0 + $0x15e8] sm:$0x7f]  ;;  %v3554_v28 = vld [vmem:[%s10784_s1 + $0x2b4] sm:$0xf] }
 0x198   :  { %v3549_v26 = vsel %vm4104_vm2, %v2867_v16, %v3548_v8  ;;  %v2868_v27 = vpack.c.bf16 %v2532_v17, %v2532_v17  ;;  %v710_v29 = vld [vmem:[%s10783_s0 + $0x15f0] sm:$0x7f]  ;;  %v711_v30 = vld [vmem:[%s10783_s0 + $0x15f8] sm:$0x7f]  ;;  %v712_v35 = vld [vmem:[%s10783_s0 + $0x1600] sm:$0x7f] }
 0x199   :  { %3550 = vst [vmem:[%s10784_s1 + $0x2ac] sm:$0xf] %v3549_v26  ;;  %v2533_v31 = vmul.f32 0.25, %v2197_v21  ;;  %v2198_v32 = vadd.f32 %v1701_v22, %v1700_v20  ;;  %v1702_v33 = vadd.f32 %v710_v29, %v708_v24  ;;  %v1703_v34 = vadd.f32 %v711_v30, %v709_v25  ;;  %v713_v37 = vld [vmem:[%s10783_s0 + $0x1608] sm:$0x7f] }
 0x19a   :  { %v3552_v36 = vsel %vm4104_vm2, %v2868_v27, %v3551_v18  ;;  %v714_v38 = vld [vmem:[%s10783_s0 + $0x1610] sm:$0x7f]  ;;  %v715_v39 = vld [vmem:[%s10783_s0 + $0x1618] sm:$0x7f]  ;;  %v716_v46 = vld [vmem:[%s10783_s0 + $0x1620] sm:$0x7f] }
 0x19b   :  { %3553 = vst [vmem:[%s10784_s1 + $0x2b0] sm:$0xf] %v3552_v36  ;;  %v2869_v40 = vpack.c.bf16 %v2533_v31, %v2533_v31  ;;  %v2534_v41 = vmul.f32 0.25, %v2198_v32  ;;  %v3557_v42 = vld [vmem:[%s10784_s1 + $0x2b8] sm:$0xf]  ;;  %v2199_v43 = vadd.f32 %v1703_v34, %v1702_v33  ;;  %v1704_v44 = vadd.f32 %v714_v38, %v712_v35 }
 0x19c   :  { %v1705_v45 = vadd.f32 %v715_v39, %v713_v37  ;;  %v717_v47 = vld [vmem:[%s10783_s0 + $0x1628] sm:$0x7f]  ;;  %v718_v48 = vld [vmem:[%s10783_s0 + $0x1630] sm:$0x7f]  ;;  %v3560_v52 = vld [vmem:[%s10784_s1 + $0x2bc] sm:$0xf] }
 0x19d   :  { %v3555_v49 = vsel %vm4104_vm2, %v2869_v40, %v3554_v28  ;;  %v2870_v50 = vpack.c.bf16 %v2534_v41, %v2534_v41  ;;  %v2535_v51 = vmul.f32 0.25, %v2199_v43  ;;  %v719_v53 = vld [vmem:[%s10783_s0 + $0x1638] sm:$0x7f]  ;;  %v1706_v54 = vadd.f32 %v718_v48, %v716_v46  ;;  %v720_v57 = vld [vmem:[%s10783_s0 + $0x1640] sm:$0x7f] }
 0x19e   :  { %3556 = vst [vmem:[%s10784_s1 + $0x2b4] sm:$0xf] %v3555_v49  ;;  %v2200_v55 = vadd.f32 %v1705_v45, %v1704_v44  ;;  %v1707_v56 = vadd.f32 %v719_v53, %v717_v47  ;;  %v721_v58 = vld [vmem:[%s10783_s0 + $0x1648] sm:$0x7f]  ;;  %v3563_v61 = vld [vmem:[%s10784_s1 + $0x2c0] sm:$0xf] }
 0x19f   :  { %v3558_v59 = vsel %vm4104_vm2, %v2870_v50, %v3557_v42  ;;  %v2871_v60 = vpack.c.bf16 %v2535_v51, %v2535_v51  ;;  %v722_v62 = vld [vmem:[%s10783_s0 + $0x1650] sm:$0x7f]  ;;  %v723_v63 = vld [vmem:[%s10783_s0 + $0x1658] sm:$0x7f]  ;;  %v724_v4 = vld [vmem:[%s10783_s0 + $0x1660] sm:$0x7f] }
 0x1a0   :  { %3559 = vst [vmem:[%s10784_s1 + $0x2b8] sm:$0xf] %v3558_v59  ;;  %v2536_v0 = vmul.f32 0.25, %v2200_v55  ;;  %v2201_v1 = vadd.f32 %v1707_v56, %v1706_v54  ;;  %v1708_v2 = vadd.f32 %v722_v62, %v720_v57  ;;  %v1709_v3 = vadd.f32 %v723_v63, %v721_v58  ;;  %v725_v6 = vld [vmem:[%s10783_s0 + $0x1668] sm:$0x7f] }
 0x1a1   :  { %v3561_v5 = vsel %vm4104_vm2, %v2871_v60, %v3560_v52  ;;  %v726_v7 = vld [vmem:[%s10783_s0 + $0x1670] sm:$0x7f]  ;;  %v727_v8 = vld [vmem:[%s10783_s0 + $0x1678] sm:$0x7f]  ;;  %v3566_v11 = vld [vmem:[%s10784_s1 + $0x2c4] sm:$0xf] }
 0x1a2   :  { %3562 = vst [vmem:[%s10784_s1 + $0x2bc] sm:$0xf] %v3561_v5  ;;  %v2872_v9 = vpack.c.bf16 %v2536_v0, %v2536_v0  ;;  %v2537_v10 = vmul.f32 0.25, %v2201_v1  ;;  %v2202_v12 = vadd.f32 %v1709_v3, %v1708_v2  ;;  %v1710_v13 = vadd.f32 %v726_v7, %v724_v4  ;;  %v728_v15 = vld [vmem:[%s10783_s0 + $0x1680] sm:$0x7f] }
 0x1a3   :  { %v1711_v14 = vadd.f32 %v727_v8, %v725_v6  ;;  %v729_v16 = vld [vmem:[%s10783_s0 + $0x1688] sm:$0x7f]  ;;  %v730_v17 = vld [vmem:[%s10783_s0 + $0x1690] sm:$0x7f]  ;;  %v731_v22 = vld [vmem:[%s10783_s0 + $0x1698] sm:$0x7f] }
 0x1a4   :  { %v3564_v18 = vsel %vm4104_vm2, %v2872_v9, %v3563_v61  ;;  %v2873_v19 = vpack.c.bf16 %v2537_v10, %v2537_v10  ;;  %v2538_v20 = vmul.f32 0.25, %v2202_v12  ;;  %v3569_v21 = vld [vmem:[%s10784_s1 + $0x2c8] sm:$0xf]  ;;  %v1712_v24 = vadd.f32 %v730_v17, %v728_v15  ;;  %v732_v27 = vld [vmem:[%s10783_s0 + $0x16a0] sm:$0x7f] }
 0x1a5   :  { %3565 = vst [vmem:[%s10784_s1 + $0x2c0] sm:$0xf] %v3564_v18  ;;  %v2203_v25 = vadd.f32 %v1711_v14, %v1710_v13  ;;  %v1713_v26 = vadd.f32 %v731_v22, %v729_v16  ;;  %v733_v28 = vld [vmem:[%s10783_s0 + $0x16a8] sm:$0x7f]  ;;  %v734_v32 = vld [vmem:[%s10783_s0 + $0x16b0] sm:$0x7f] }
 0x1a6   :  { %v3567_v29 = vsel %vm4104_vm2, %v2873_v19, %v3566_v11  ;;  %v2874_v30 = vpack.c.bf16 %v2538_v20, %v2538_v20  ;;  %v3572_v31 = vld [vmem:[%s10784_s1 + $0x2cc] sm:$0xf]  ;;  %v735_v33 = vld [vmem:[%s10783_s0 + $0x16b8] sm:$0x7f]  ;;  %v1714_v36 = vadd.f32 %v734_v32, %v732_v27  ;;  %v736_v38 = vld [vmem:[%s10783_s0 + $0x16c0] sm:$0x7f] }
 0x1a7   :  { %3568 = vst [vmem:[%s10784_s1 + $0x2c4] sm:$0xf] %v3567_v29  ;;  %v2539_v34 = vmul.f32 0.25, %v2203_v25  ;;  %v2204_v35 = vadd.f32 %v1713_v26, %v1712_v24  ;;  %v1715_v37 = vadd.f32 %v735_v33, %v733_v28  ;;  %v737_v40 = vld [vmem:[%s10783_s0 + $0x16c8] sm:$0x7f] }
 0x1a8   :  { %v3570_v39 = vsel %vm4104_vm2, %v2874_v30, %v3569_v21  ;;  %v738_v41 = vld [vmem:[%s10783_s0 + $0x16d0] sm:$0x7f]  ;;  %v739_v42 = vld [vmem:[%s10783_s0 + $0x16d8] sm:$0x7f]  ;;  %v740_v49 = vld [vmem:[%s10783_s0 + $0x16e0] sm:$0x7f] }
 0x1a9   :  { %3571 = vst [vmem:[%s10784_s1 + $0x2c8] sm:$0xf] %v3570_v39  ;;  %v2875_v43 = vpack.c.bf16 %v2539_v34, %v2539_v34  ;;  %v2540_v44 = vmul.f32 0.25, %v2204_v35  ;;  %v3575_v45 = vld [vmem:[%s10784_s1 + $0x2d0] sm:$0xf]  ;;  %v2205_v46 = vadd.f32 %v1715_v37, %v1714_v36  ;;  %v1716_v47 = vadd.f32 %v738_v41, %v736_v38 }
 0x1aa   :  { %v1717_v48 = vadd.f32 %v739_v42, %v737_v40  ;;  %v741_v50 = vld [vmem:[%s10783_s0 + $0x16e8] sm:$0x7f]  ;;  %v742_v51 = vld [vmem:[%s10783_s0 + $0x16f0] sm:$0x7f]  ;;  %v743_v56 = vld [vmem:[%s10783_s0 + $0x16f8] sm:$0x7f] }
 0x1ab   :  { %v3573_v52 = vsel %vm4104_vm2, %v2875_v43, %v3572_v31  ;;  %v2876_v53 = vpack.c.bf16 %v2540_v44, %v2540_v44  ;;  %v2541_v54 = vmul.f32 0.25, %v2205_v46  ;;  %v3578_v55 = vld [vmem:[%s10784_s1 + $0x2d4] sm:$0xf]  ;;  %v1718_v57 = vadd.f32 %v742_v51, %v740_v49  ;;  %v744_v60 = vld [vmem:[%s10783_s0 + $0x1700] sm:$0x7f] }
 0x1ac   :  { %3574 = vst [vmem:[%s10784_s1 + $0x2cc] sm:$0xf] %v3573_v52  ;;  %v2206_v58 = vadd.f32 %v1717_v48, %v1716_v47  ;;  %v1719_v59 = vadd.f32 %v743_v56, %v741_v50  ;;  %v745_v61 = vld [vmem:[%s10783_s0 + $0x1708] sm:$0x7f]  ;;  %v3581_v0 = vld [vmem:[%s10784_s1 + $0x2d8] sm:$0xf] }
 0x1ad   :  { %v3576_v62 = vsel %vm4104_vm2, %v2876_v53, %v3575_v45  ;;  %v2877_v63 = vpack.c.bf16 %v2541_v54, %v2541_v54  ;;  %v746_v1 = vld [vmem:[%s10783_s0 + $0x1710] sm:$0x7f]  ;;  %v747_v2 = vld [vmem:[%s10783_s0 + $0x1718] sm:$0x7f]  ;;  %v748_v7 = vld [vmem:[%s10783_s0 + $0x1720] sm:$0x7f] }
 0x1ae   :  { %3577 = vst [vmem:[%s10784_s1 + $0x2d0] sm:$0xf] %v3576_v62  ;;  %v2542_v3 = vmul.f32 0.25, %v2206_v58  ;;  %v2207_v4 = vadd.f32 %v1719_v59, %v1718_v57  ;;  %v1720_v5 = vadd.f32 %v746_v1, %v744_v60  ;;  %v1721_v6 = vadd.f32 %v747_v2, %v745_v61  ;;  %v749_v9 = vld [vmem:[%s10783_s0 + $0x1728] sm:$0x7f] }
 0x1af   :  { %v3579_v8 = vsel %vm4104_vm2, %v2877_v63, %v3578_v55  ;;  %v750_v10 = vld [vmem:[%s10783_s0 + $0x1730] sm:$0x7f]  ;;  %v751_v11 = vld [vmem:[%s10783_s0 + $0x1738] sm:$0x7f]  ;;  %v752_v18 = vld [vmem:[%s10783_s0 + $0x1740] sm:$0x7f] }
 0x1b0   :  { %3580 = vst [vmem:[%s10784_s1 + $0x2d4] sm:$0xf] %v3579_v8  ;;  %v2878_v12 = vpack.c.bf16 %v2542_v3, %v2542_v3  ;;  %v2543_v13 = vmul.f32 0.25, %v2207_v4  ;;  %v3584_v14 = vld [vmem:[%s10784_s1 + $0x2dc] sm:$0xf]  ;;  %v2208_v15 = vadd.f32 %v1721_v6, %v1720_v5  ;;  %v1722_v16 = vadd.f32 %v750_v10, %v748_v7 }
 0x1b1   :  { %v1723_v17 = vadd.f32 %v751_v11, %v749_v9  ;;  %v753_v19 = vld [vmem:[%s10783_s0 + $0x1748] sm:$0x7f]  ;;  %v754_v20 = vld [vmem:[%s10783_s0 + $0x1750] sm:$0x7f]  ;;  %v3587_v25 = vld [vmem:[%s10784_s1 + $0x2e0] sm:$0xf] }
 0x1b2   :  { %v3582_v21 = vsel %vm4104_vm2, %v2878_v12, %v3581_v0  ;;  %v2879_v22 = vpack.c.bf16 %v2543_v13, %v2543_v13  ;;  %v2544_v24 = vmul.f32 0.25, %v2208_v15  ;;  %v755_v26 = vld [vmem:[%s10783_s0 + $0x1758] sm:$0x7f]  ;;  %v1724_v27 = vadd.f32 %v754_v20, %v752_v18  ;;  %v756_v30 = vld [vmem:[%s10783_s0 + $0x1760] sm:$0x7f] }
 0x1b3   :  { %3583 = vst [vmem:[%s10784_s1 + $0x2d8] sm:$0xf] %v3582_v21  ;;  %v2209_v28 = vadd.f32 %v1723_v17, %v1722_v16  ;;  %v1725_v29 = vadd.f32 %v755_v26, %v753_v19  ;;  %v757_v31 = vld [vmem:[%s10783_s0 + $0x1768] sm:$0x7f]  ;;  %v3590_v34 = vld [vmem:[%s10784_s1 + $0x2e4] sm:$0xf] }
 0x1b4   :  { %v3585_v32 = vsel %vm4104_vm2, %v2879_v22, %v3584_v14  ;;  %v2880_v33 = vpack.c.bf16 %v2544_v24, %v2544_v24  ;;  %v758_v35 = vld [vmem:[%s10783_s0 + $0x1770] sm:$0x7f]  ;;  %v759_v36 = vld [vmem:[%s10783_s0 + $0x1778] sm:$0x7f]  ;;  %v760_v41 = vld [vmem:[%s10783_s0 + $0x1780] sm:$0x7f] }
 0x1b5   :  { %3586 = vst [vmem:[%s10784_s1 + $0x2dc] sm:$0xf] %v3585_v32  ;;  %v2545_v37 = vmul.f32 0.25, %v2209_v28  ;;  %v2210_v38 = vadd.f32 %v1725_v29, %v1724_v27  ;;  %v1726_v39 = vadd.f32 %v758_v35, %v756_v30  ;;  %v1727_v40 = vadd.f32 %v759_v36, %v757_v31  ;;  %v761_v43 = vld [vmem:[%s10783_s0 + $0x1788] sm:$0x7f] }
 0x1b6   :  { %v3588_v42 = vsel %vm4104_vm2, %v2880_v33, %v3587_v25  ;;  %v762_v44 = vld [vmem:[%s10783_s0 + $0x1790] sm:$0x7f]  ;;  %v763_v45 = vld [vmem:[%s10783_s0 + $0x1798] sm:$0x7f]  ;;  %v3593_v48 = vld [vmem:[%s10784_s1 + $0x2e8] sm:$0xf] }
 0x1b7   :  { %3589 = vst [vmem:[%s10784_s1 + $0x2e0] sm:$0xf] %v3588_v42  ;;  %v2881_v46 = vpack.c.bf16 %v2545_v37, %v2545_v37  ;;  %v2546_v47 = vmul.f32 0.25, %v2210_v38  ;;  %v2211_v49 = vadd.f32 %v1727_v40, %v1726_v39  ;;  %v1728_v50 = vadd.f32 %v762_v44, %v760_v41  ;;  %v764_v52 = vld [vmem:[%s10783_s0 + $0x17a0] sm:$0x7f] }
 0x1b8   :  { %v1729_v51 = vadd.f32 %v763_v45, %v761_v43  ;;  %v765_v53 = vld [vmem:[%s10783_s0 + $0x17a8] sm:$0x7f]  ;;  %v766_v54 = vld [vmem:[%s10783_s0 + $0x17b0] sm:$0x7f]  ;;  %v767_v59 = vld [vmem:[%s10783_s0 + $0x17b8] sm:$0x7f] }
 0x1b9   :  { %v3591_v55 = vsel %vm4104_vm2, %v2881_v46, %v3590_v34  ;;  %v2882_v56 = vpack.c.bf16 %v2546_v47, %v2546_v47  ;;  %v2547_v57 = vmul.f32 0.25, %v2211_v49  ;;  %v3596_v58 = vld [vmem:[%s10784_s1 + $0x2ec] sm:$0xf]  ;;  %v1730_v60 = vadd.f32 %v766_v54, %v764_v52  ;;  %v768_v63 = vld [vmem:[%s10783_s0 + $0x17c0] sm:$0x7f] }
 0x1ba   :  { %3592 = vst [vmem:[%s10784_s1 + $0x2e4] sm:$0xf] %v3591_v55  ;;  %v2212_v61 = vadd.f32 %v1729_v51, %v1728_v50  ;;  %v1731_v62 = vadd.f32 %v767_v59, %v765_v53  ;;  %v769_v0 = vld [vmem:[%s10783_s0 + $0x17c8] sm:$0x7f]  ;;  %v3599_v3 = vld [vmem:[%s10784_s1 + $0x2f0] sm:$0xf] }
 0x1bb   :  { %v3594_v1 = vsel %vm4104_vm2, %v2882_v56, %v3593_v48  ;;  %v2883_v2 = vpack.c.bf16 %v2547_v57, %v2547_v57  ;;  %v770_v4 = vld [vmem:[%s10783_s0 + $0x17d0] sm:$0x7f]  ;;  %v771_v5 = vld [vmem:[%s10783_s0 + $0x17d8] sm:$0x7f]  ;;  %v772_v10 = vld [vmem:[%s10783_s0 + $0x17e0] sm:$0x7f] }
 0x1bc   :  { %3595 = vst [vmem:[%s10784_s1 + $0x2e8] sm:$0xf] %v3594_v1  ;;  %v2548_v6 = vmul.f32 0.25, %v2212_v61  ;;  %v2213_v7 = vadd.f32 %v1731_v62, %v1730_v60  ;;  %v1732_v8 = vadd.f32 %v770_v4, %v768_v63  ;;  %v1733_v9 = vadd.f32 %v771_v5, %v769_v0  ;;  %v773_v12 = vld [vmem:[%s10783_s0 + $0x17e8] sm:$0x7f] }
 0x1bd   :  { %v3597_v11 = vsel %vm4104_vm2, %v2883_v2, %v3596_v58  ;;  %v774_v13 = vld [vmem:[%s10783_s0 + $0x17f0] sm:$0x7f]  ;;  %v775_v14 = vld [vmem:[%s10783_s0 + $0x17f8] sm:$0x7f]  ;;  %v776_v21 = vld [vmem:[%s10783_s0 + $0x1800] sm:$0x7f] }
 0x1be   :  { %3598 = vst [vmem:[%s10784_s1 + $0x2ec] sm:$0xf] %v3597_v11  ;;  %v2884_v15 = vpack.c.bf16 %v2548_v6, %v2548_v6  ;;  %v2549_v16 = vmul.f32 0.25, %v2213_v7  ;;  %v3602_v17 = vld [vmem:[%s10784_s1 + $0x2f4] sm:$0xf]  ;;  %v2214_v18 = vadd.f32 %v1733_v9, %v1732_v8  ;;  %v1734_v19 = vadd.f32 %v774_v13, %v772_v10 }
 0x1bf   :  { %v1735_v20 = vadd.f32 %v775_v14, %v773_v12  ;;  %v777_v22 = vld [vmem:[%s10783_s0 + $0x1808] sm:$0x7f]  ;;  %v778_v24 = vld [vmem:[%s10783_s0 + $0x1810] sm:$0x7f]  ;;  %v3605_v28 = vld [vmem:[%s10784_s1 + $0x2f8] sm:$0xf] }
 0x1c0   :  { %v3600_v25 = vsel %vm4104_vm2, %v2884_v15, %v3599_v3  ;;  %v2885_v26 = vpack.c.bf16 %v2549_v16, %v2549_v16  ;;  %v2550_v27 = vmul.f32 0.25, %v2214_v18  ;;  %v779_v29 = vld [vmem:[%s10783_s0 + $0x1818] sm:$0x7f]  ;;  %v1736_v30 = vadd.f32 %v778_v24, %v776_v21  ;;  %v780_v33 = vld [vmem:[%s10783_s0 + $0x1820] sm:$0x7f] }
 0x1c1   :  { %3601 = vst [vmem:[%s10784_s1 + $0x2f0] sm:$0xf] %v3600_v25  ;;  %v2215_v31 = vadd.f32 %v1735_v20, %v1734_v19  ;;  %v1737_v32 = vadd.f32 %v779_v29, %v777_v22  ;;  %v781_v34 = vld [vmem:[%s10783_s0 + $0x1828] sm:$0x7f]  ;;  %v3608_v37 = vld [vmem:[%s10784_s1 + $0x2fc] sm:$0xf] }
 0x1c2   :  { %v3603_v35 = vsel %vm4104_vm2, %v2885_v26, %v3602_v17  ;;  %v2886_v36 = vpack.c.bf16 %v2550_v27, %v2550_v27  ;;  %v782_v38 = vld [vmem:[%s10783_s0 + $0x1830] sm:$0x7f]  ;;  %v783_v39 = vld [vmem:[%s10783_s0 + $0x1838] sm:$0x7f]  ;;  %v784_v44 = vld [vmem:[%s10783_s0 + $0x1840] sm:$0x7f] }
 0x1c3   :  { %3604 = vst [vmem:[%s10784_s1 + $0x2f4] sm:$0xf] %v3603_v35  ;;  %v2551_v40 = vmul.f32 0.25, %v2215_v31  ;;  %v2216_v41 = vadd.f32 %v1737_v32, %v1736_v30  ;;  %v1738_v42 = vadd.f32 %v782_v38, %v780_v33  ;;  %v1739_v43 = vadd.f32 %v783_v39, %v781_v34  ;;  %v785_v46 = vld [vmem:[%s10783_s0 + $0x1848] sm:$0x7f] }
 0x1c4   :  { %v3606_v45 = vsel %vm4104_vm2, %v2886_v36, %v3605_v28  ;;  %v786_v47 = vld [vmem:[%s10783_s0 + $0x1850] sm:$0x7f]  ;;  %v787_v48 = vld [vmem:[%s10783_s0 + $0x1858] sm:$0x7f]  ;;  %v3611_v51 = vld [vmem:[%s10784_s1 + $0x300] sm:$0xf] }
 0x1c5   :  { %3607 = vst [vmem:[%s10784_s1 + $0x2f8] sm:$0xf] %v3606_v45  ;;  %v2887_v49 = vpack.c.bf16 %v2551_v40, %v2551_v40  ;;  %v2552_v50 = vmul.f32 0.25, %v2216_v41  ;;  %v2217_v52 = vadd.f32 %v1739_v43, %v1738_v42  ;;  %v1740_v53 = vadd.f32 %v786_v47, %v784_v44  ;;  %v788_v55 = vld [vmem:[%s10783_s0 + $0x1860] sm:$0x7f] }
 0x1c6   :  { %v1741_v54 = vadd.f32 %v787_v48, %v785_v46  ;;  %v789_v56 = vld [vmem:[%s10783_s0 + $0x1868] sm:$0x7f]  ;;  %v790_v57 = vld [vmem:[%s10783_s0 + $0x1870] sm:$0x7f]  ;;  %v3614_v61 = vld [vmem:[%s10784_s1 + $0x304] sm:$0xf] }
 0x1c7   :  { %v3609_v58 = vsel %vm4104_vm2, %v2887_v49, %v3608_v37  ;;  %v2888_v59 = vpack.c.bf16 %v2552_v50, %v2552_v50  ;;  %v2553_v60 = vmul.f32 0.25, %v2217_v52  ;;  %v791_v62 = vld [vmem:[%s10783_s0 + $0x1878] sm:$0x7f]  ;;  %v1742_v63 = vadd.f32 %v790_v57, %v788_v55  ;;  %v792_v2 = vld [vmem:[%s10783_s0 + $0x1880] sm:$0x7f] }
 0x1c8   :  { %3610 = vst [vmem:[%s10784_s1 + $0x2fc] sm:$0xf] %v3609_v58  ;;  %v2218_v0 = vadd.f32 %v1741_v54, %v1740_v53  ;;  %v1743_v1 = vadd.f32 %v791_v62, %v789_v56  ;;  %v793_v3 = vld [vmem:[%s10783_s0 + $0x1888] sm:$0x7f]  ;;  %v794_v7 = vld [vmem:[%s10783_s0 + $0x1890] sm:$0x7f] }
 0x1c9   :  { %v3612_v4 = vsel %vm4104_vm2, %v2888_v59, %v3611_v51  ;;  %v2889_v5 = vpack.c.bf16 %v2553_v60, %v2553_v60  ;;  %v3617_v6 = vld [vmem:[%s10784_s1 + $0x308] sm:$0xf]  ;;  %v795_v8 = vld [vmem:[%s10783_s0 + $0x1898] sm:$0x7f]  ;;  %v1744_v11 = vadd.f32 %v794_v7, %v792_v2  ;;  %v796_v13 = vld [vmem:[%s10783_s0 + $0x18a0] sm:$0x7f] }
 0x1ca   :  { %3613 = vst [vmem:[%s10784_s1 + $0x300] sm:$0xf] %v3612_v4  ;;  %v2554_v9 = vmul.f32 0.25, %v2218_v0  ;;  %v2219_v10 = vadd.f32 %v1743_v1, %v1742_v63  ;;  %v1745_v12 = vadd.f32 %v795_v8, %v793_v3  ;;  %v797_v15 = vld [vmem:[%s10783_s0 + $0x18a8] sm:$0x7f] }
 0x1cb   :  { %v3615_v14 = vsel %vm4104_vm2, %v2889_v5, %v3614_v61  ;;  %v798_v16 = vld [vmem:[%s10783_s0 + $0x18b0] sm:$0x7f]  ;;  %v799_v17 = vld [vmem:[%s10783_s0 + $0x18b8] sm:$0x7f]  ;;  %v3620_v20 = vld [vmem:[%s10784_s1 + $0x30c] sm:$0xf] }
 0x1cc   :  { %3616 = vst [vmem:[%s10784_s1 + $0x304] sm:$0xf] %v3615_v14  ;;  %v2890_v18 = vpack.c.bf16 %v2554_v9, %v2554_v9  ;;  %v2555_v19 = vmul.f32 0.25, %v2219_v10  ;;  %v2220_v21 = vadd.f32 %v1745_v12, %v1744_v11  ;;  %v1746_v22 = vadd.f32 %v798_v16, %v796_v13  ;;  %v800_v25 = vld [vmem:[%s10783_s0 + $0x18c0] sm:$0x7f] }
 0x1cd   :  { %v1747_v24 = vadd.f32 %v799_v17, %v797_v15  ;;  %v801_v26 = vld [vmem:[%s10783_s0 + $0x18c8] sm:$0x7f]  ;;  %v802_v27 = vld [vmem:[%s10783_s0 + $0x18d0] sm:$0x7f]  ;;  %v803_v32 = vld [vmem:[%s10783_s0 + $0x18d8] sm:$0x7f] }
 0x1ce   :  { %v3618_v28 = vsel %vm4104_vm2, %v2890_v18, %v3617_v6  ;;  %v2891_v29 = vpack.c.bf16 %v2555_v19, %v2555_v19  ;;  %v2556_v30 = vmul.f32 0.25, %v2220_v21  ;;  %v3623_v31 = vld [vmem:[%s10784_s1 + $0x310] sm:$0xf]  ;;  %v1748_v33 = vadd.f32 %v802_v27, %v800_v25  ;;  %v804_v36 = vld [vmem:[%s10783_s0 + $0x18e0] sm:$0x7f] }
 0x1cf   :  { %3619 = vst [vmem:[%s10784_s1 + $0x308] sm:$0xf] %v3618_v28  ;;  %v2221_v34 = vadd.f32 %v1747_v24, %v1746_v22  ;;  %v1749_v35 = vadd.f32 %v803_v32, %v801_v26  ;;  %v805_v37 = vld [vmem:[%s10783_s0 + $0x18e8] sm:$0x7f]  ;;  %v3626_v40 = vld [vmem:[%s10784_s1 + $0x314] sm:$0xf] }
 0x1d0   :  { %v3621_v38 = vsel %vm4104_vm2, %v2891_v29, %v3620_v20  ;;  %v2892_v39 = vpack.c.bf16 %v2556_v30, %v2556_v30  ;;  %v806_v41 = vld [vmem:[%s10783_s0 + $0x18f0] sm:$0x7f]  ;;  %v807_v42 = vld [vmem:[%s10783_s0 + $0x18f8] sm:$0x7f]  ;;  %v808_v47 = vld [vmem:[%s10783_s0 + $0x1900] sm:$0x7f] }
 0x1d1   :  { %3622 = vst [vmem:[%s10784_s1 + $0x30c] sm:$0xf] %v3621_v38  ;;  %v2557_v43 = vmul.f32 0.25, %v2221_v34  ;;  %v2222_v44 = vadd.f32 %v1749_v35, %v1748_v33  ;;  %v1750_v45 = vadd.f32 %v806_v41, %v804_v36  ;;  %v1751_v46 = vadd.f32 %v807_v42, %v805_v37  ;;  %v809_v49 = vld [vmem:[%s10783_s0 + $0x1908] sm:$0x7f] }
 0x1d2   :  { %v3624_v48 = vsel %vm4104_vm2, %v2892_v39, %v3623_v31  ;;  %v810_v50 = vld [vmem:[%s10783_s0 + $0x1910] sm:$0x7f]  ;;  %v811_v51 = vld [vmem:[%s10783_s0 + $0x1918] sm:$0x7f]  ;;  %v812_v58 = vld [vmem:[%s10783_s0 + $0x1920] sm:$0x7f] }
 0x1d3   :  { %3625 = vst [vmem:[%s10784_s1 + $0x310] sm:$0xf] %v3624_v48  ;;  %v2893_v52 = vpack.c.bf16 %v2557_v43, %v2557_v43  ;;  %v2558_v53 = vmul.f32 0.25, %v2222_v44  ;;  %v3629_v54 = vld [vmem:[%s10784_s1 + $0x318] sm:$0xf]  ;;  %v2223_v55 = vadd.f32 %v1751_v46, %v1750_v45  ;;  %v1752_v56 = vadd.f32 %v810_v50, %v808_v47 }
 0x1d4   :  { %v1753_v57 = vadd.f32 %v811_v51, %v809_v49  ;;  %v813_v59 = vld [vmem:[%s10783_s0 + $0x1928] sm:$0x7f]  ;;  %v814_v60 = vld [vmem:[%s10783_s0 + $0x1930] sm:$0x7f]  ;;  %v3632_v0 = vld [vmem:[%s10784_s1 + $0x31c] sm:$0xf] }
 0x1d5   :  { %v3627_v61 = vsel %vm4104_vm2, %v2893_v52, %v3626_v40  ;;  %v2894_v62 = vpack.c.bf16 %v2558_v53, %v2558_v53  ;;  %v2559_v63 = vmul.f32 0.25, %v2223_v55  ;;  %v815_v1 = vld [vmem:[%s10783_s0 + $0x1938] sm:$0x7f]  ;;  %v1754_v2 = vadd.f32 %v814_v60, %v812_v58  ;;  %v816_v5 = vld [vmem:[%s10783_s0 + $0x1940] sm:$0x7f] }
 0x1d6   :  { %3628 = vst [vmem:[%s10784_s1 + $0x314] sm:$0xf] %v3627_v61  ;;  %v2224_v3 = vadd.f32 %v1753_v57, %v1752_v56  ;;  %v1755_v4 = vadd.f32 %v815_v1, %v813_v59  ;;  %v817_v6 = vld [vmem:[%s10783_s0 + $0x1948] sm:$0x7f]  ;;  %v3635_v9 = vld [vmem:[%s10784_s1 + $0x320] sm:$0xf] }
 0x1d7   :  { %v3630_v7 = vsel %vm4104_vm2, %v2894_v62, %v3629_v54  ;;  %v2895_v8 = vpack.c.bf16 %v2559_v63, %v2559_v63  ;;  %v818_v10 = vld [vmem:[%s10783_s0 + $0x1950] sm:$0x7f]  ;;  %v819_v11 = vld [vmem:[%s10783_s0 + $0x1958] sm:$0x7f]  ;;  %v820_v16 = vld [vmem:[%s10783_s0 + $0x1960] sm:$0x7f] }
 0x1d8   :  { %3631 = vst [vmem:[%s10784_s1 + $0x318] sm:$0xf] %v3630_v7  ;;  %v2560_v12 = vmul.f32 0.25, %v2224_v3  ;;  %v2225_v13 = vadd.f32 %v1755_v4, %v1754_v2  ;;  %v1756_v14 = vadd.f32 %v818_v10, %v816_v5  ;;  %v1757_v15 = vadd.f32 %v819_v11, %v817_v6  ;;  %v821_v18 = vld [vmem:[%s10783_s0 + $0x1968] sm:$0x7f] }
 0x1d9   :  { %v3633_v17 = vsel %vm4104_vm2, %v2895_v8, %v3632_v0  ;;  %v822_v19 = vld [vmem:[%s10783_s0 + $0x1970] sm:$0x7f]  ;;  %v823_v20 = vld [vmem:[%s10783_s0 + $0x1978] sm:$0x7f]  ;;  %v3638_v24 = vld [vmem:[%s10784_s1 + $0x324] sm:$0xf] }
 0x1da   :  { %3634 = vst [vmem:[%s10784_s1 + $0x31c] sm:$0xf] %v3633_v17  ;;  %v2896_v21 = vpack.c.bf16 %v2560_v12, %v2560_v12  ;;  %v2561_v22 = vmul.f32 0.25, %v2225_v13  ;;  %v2226_v25 = vadd.f32 %v1757_v15, %v1756_v14  ;;  %v1758_v26 = vadd.f32 %v822_v19, %v820_v16  ;;  %v824_v28 = vld [vmem:[%s10783_s0 + $0x1980] sm:$0x7f] }
 0x1db   :  { %v1759_v27 = vadd.f32 %v823_v20, %v821_v18  ;;  %v825_v29 = vld [vmem:[%s10783_s0 + $0x1988] sm:$0x7f]  ;;  %v826_v30 = vld [vmem:[%s10783_s0 + $0x1990] sm:$0x7f]  ;;  %v827_v35 = vld [vmem:[%s10783_s0 + $0x1998] sm:$0x7f] }
 0x1dc   :  { %v3636_v31 = vsel %vm4104_vm2, %v2896_v21, %v3635_v9  ;;  %v2897_v32 = vpack.c.bf16 %v2561_v22, %v2561_v22  ;;  %v2562_v33 = vmul.f32 0.25, %v2226_v25  ;;  %v3641_v34 = vld [vmem:[%s10784_s1 + $0x328] sm:$0xf]  ;;  %v1760_v36 = vadd.f32 %v826_v30, %v824_v28  ;;  %v828_v39 = vld [vmem:[%s10783_s0 + $0x19a0] sm:$0x7f] }
 0x1dd   :  { %3637 = vst [vmem:[%s10784_s1 + $0x320] sm:$0xf] %v3636_v31  ;;  %v2227_v37 = vadd.f32 %v1759_v27, %v1758_v26  ;;  %v1761_v38 = vadd.f32 %v827_v35, %v825_v29  ;;  %v829_v40 = vld [vmem:[%s10783_s0 + $0x19a8] sm:$0x7f]  ;;  %v830_v44 = vld [vmem:[%s10783_s0 + $0x19b0] sm:$0x7f] }
 0x1de   :  { %v3639_v41 = vsel %vm4104_vm2, %v2897_v32, %v3638_v24  ;;  %v2898_v42 = vpack.c.bf16 %v2562_v33, %v2562_v33  ;;  %v3644_v43 = vld [vmem:[%s10784_s1 + $0x32c] sm:$0xf]  ;;  %v831_v45 = vld [vmem:[%s10783_s0 + $0x19b8] sm:$0x7f]  ;;  %v1762_v48 = vadd.f32 %v830_v44, %v828_v39  ;;  %v832_v50 = vld [vmem:[%s10783_s0 + $0x19c0] sm:$0x7f] }
 0x1df   :  { %3640 = vst [vmem:[%s10784_s1 + $0x324] sm:$0xf] %v3639_v41  ;;  %v2563_v46 = vmul.f32 0.25, %v2227_v37  ;;  %v2228_v47 = vadd.f32 %v1761_v38, %v1760_v36  ;;  %v1763_v49 = vadd.f32 %v831_v45, %v829_v40  ;;  %v833_v52 = vld [vmem:[%s10783_s0 + $0x19c8] sm:$0x7f] }
 0x1e0   :  { %v3642_v51 = vsel %vm4104_vm2, %v2898_v42, %v3641_v34  ;;  %v834_v53 = vld [vmem:[%s10783_s0 + $0x19d0] sm:$0x7f]  ;;  %v835_v54 = vld [vmem:[%s10783_s0 + $0x19d8] sm:$0x7f]  ;;  %v836_v61 = vld [vmem:[%s10783_s0 + $0x19e0] sm:$0x7f] }
 0x1e1   :  { %3643 = vst [vmem:[%s10784_s1 + $0x328] sm:$0xf] %v3642_v51  ;;  %v2899_v55 = vpack.c.bf16 %v2563_v46, %v2563_v46  ;;  %v2564_v56 = vmul.f32 0.25, %v2228_v47  ;;  %v3647_v57 = vld [vmem:[%s10784_s1 + $0x330] sm:$0xf]  ;;  %v2229_v58 = vadd.f32 %v1763_v49, %v1762_v48  ;;  %v1764_v59 = vadd.f32 %v834_v53, %v832_v50 }
 0x1e2   :  { %v1765_v60 = vadd.f32 %v835_v54, %v833_v52  ;;  %v837_v62 = vld [vmem:[%s10783_s0 + $0x19e8] sm:$0x7f]  ;;  %v838_v63 = vld [vmem:[%s10783_s0 + $0x19f0] sm:$0x7f]  ;;  %v839_v4 = vld [vmem:[%s10783_s0 + $0x19f8] sm:$0x7f] }
 0x1e3   :  { %v3645_v0 = vsel %vm4104_vm2, %v2899_v55, %v3644_v43  ;;  %v2900_v1 = vpack.c.bf16 %v2564_v56, %v2564_v56  ;;  %v2565_v2 = vmul.f32 0.25, %v2229_v58  ;;  %v3650_v3 = vld [vmem:[%s10784_s1 + $0x334] sm:$0xf]  ;;  %v1766_v5 = vadd.f32 %v838_v63, %v836_v61  ;;  %v840_v8 = vld [vmem:[%s10783_s0 + $0x1a00] sm:$0x7f] }
 0x1e4   :  { %3646 = vst [vmem:[%s10784_s1 + $0x32c] sm:$0xf] %v3645_v0  ;;  %v2230_v6 = vadd.f32 %v1765_v60, %v1764_v59  ;;  %v1767_v7 = vadd.f32 %v839_v4, %v837_v62  ;;  %v841_v9 = vld [vmem:[%s10783_s0 + $0x1a08] sm:$0x7f]  ;;  %v3653_v12 = vld [vmem:[%s10784_s1 + $0x338] sm:$0xf] }
 0x1e5   :  { %v3648_v10 = vsel %vm4104_vm2, %v2900_v1, %v3647_v57  ;;  %v2901_v11 = vpack.c.bf16 %v2565_v2, %v2565_v2  ;;  %v842_v13 = vld [vmem:[%s10783_s0 + $0x1a10] sm:$0x7f]  ;;  %v843_v14 = vld [vmem:[%s10783_s0 + $0x1a18] sm:$0x7f]  ;;  %v844_v19 = vld [vmem:[%s10783_s0 + $0x1a20] sm:$0x7f] }
 0x1e6   :  { %3649 = vst [vmem:[%s10784_s1 + $0x330] sm:$0xf] %v3648_v10  ;;  %v2566_v15 = vmul.f32 0.25, %v2230_v6  ;;  %v2231_v16 = vadd.f32 %v1767_v7, %v1766_v5  ;;  %v1768_v17 = vadd.f32 %v842_v13, %v840_v8  ;;  %v1769_v18 = vadd.f32 %v843_v14, %v841_v9  ;;  %v845_v21 = vld [vmem:[%s10783_s0 + $0x1a28] sm:$0x7f] }
 0x1e7   :  { %v3651_v20 = vsel %vm4104_vm2, %v2901_v11, %v3650_v3  ;;  %v846_v22 = vld [vmem:[%s10783_s0 + $0x1a30] sm:$0x7f]  ;;  %v847_v24 = vld [vmem:[%s10783_s0 + $0x1a38] sm:$0x7f]  ;;  %v848_v31 = vld [vmem:[%s10783_s0 + $0x1a40] sm:$0x7f] }
 0x1e8   :  { %3652 = vst [vmem:[%s10784_s1 + $0x334] sm:$0xf] %v3651_v20  ;;  %v2902_v25 = vpack.c.bf16 %v2566_v15, %v2566_v15  ;;  %v2567_v26 = vmul.f32 0.25, %v2231_v16  ;;  %v3656_v27 = vld [vmem:[%s10784_s1 + $0x33c] sm:$0xf]  ;;  %v2232_v28 = vadd.f32 %v1769_v18, %v1768_v17  ;;  %v1770_v29 = vadd.f32 %v846_v22, %v844_v19 }
 0x1e9   :  { %v1771_v30 = vadd.f32 %v847_v24, %v845_v21  ;;  %v849_v32 = vld [vmem:[%s10783_s0 + $0x1a48] sm:$0x7f]  ;;  %v850_v33 = vld [vmem:[%s10783_s0 + $0x1a50] sm:$0x7f]  ;;  %v3659_v37 = vld [vmem:[%s10784_s1 + $0x340] sm:$0xf] }
 0x1ea   :  { %v3654_v34 = vsel %vm4104_vm2, %v2902_v25, %v3653_v12  ;;  %v2903_v35 = vpack.c.bf16 %v2567_v26, %v2567_v26  ;;  %v2568_v36 = vmul.f32 0.25, %v2232_v28  ;;  %v851_v38 = vld [vmem:[%s10783_s0 + $0x1a58] sm:$0x7f]  ;;  %v1772_v39 = vadd.f32 %v850_v33, %v848_v31  ;;  %v852_v42 = vld [vmem:[%s10783_s0 + $0x1a60] sm:$0x7f] }
 0x1eb   :  { %3655 = vst [vmem:[%s10784_s1 + $0x338] sm:$0xf] %v3654_v34  ;;  %v2233_v40 = vadd.f32 %v1771_v30, %v1770_v29  ;;  %v1773_v41 = vadd.f32 %v851_v38, %v849_v32  ;;  %v853_v43 = vld [vmem:[%s10783_s0 + $0x1a68] sm:$0x7f]  ;;  %v3662_v46 = vld [vmem:[%s10784_s1 + $0x344] sm:$0xf] }
 0x1ec   :  { %v3657_v44 = vsel %vm4104_vm2, %v2903_v35, %v3656_v27  ;;  %v2904_v45 = vpack.c.bf16 %v2568_v36, %v2568_v36  ;;  %v854_v47 = vld [vmem:[%s10783_s0 + $0x1a70] sm:$0x7f]  ;;  %v855_v48 = vld [vmem:[%s10783_s0 + $0x1a78] sm:$0x7f]  ;;  %v856_v53 = vld [vmem:[%s10783_s0 + $0x1a80] sm:$0x7f] }
 0x1ed   :  { %3658 = vst [vmem:[%s10784_s1 + $0x33c] sm:$0xf] %v3657_v44  ;;  %v2569_v49 = vmul.f32 0.25, %v2233_v40  ;;  %v2234_v50 = vadd.f32 %v1773_v41, %v1772_v39  ;;  %v1774_v51 = vadd.f32 %v854_v47, %v852_v42  ;;  %v1775_v52 = vadd.f32 %v855_v48, %v853_v43  ;;  %v857_v55 = vld [vmem:[%s10783_s0 + $0x1a88] sm:$0x7f] }
 0x1ee   :  { %v3660_v54 = vsel %vm4104_vm2, %v2904_v45, %v3659_v37  ;;  %v858_v56 = vld [vmem:[%s10783_s0 + $0x1a90] sm:$0x7f]  ;;  %v859_v57 = vld [vmem:[%s10783_s0 + $0x1a98] sm:$0x7f]  ;;  %v3665_v60 = vld [vmem:[%s10784_s1 + $0x348] sm:$0xf] }
 0x1ef   :  { %3661 = vst [vmem:[%s10784_s1 + $0x340] sm:$0xf] %v3660_v54  ;;  %v2905_v58 = vpack.c.bf16 %v2569_v49, %v2569_v49  ;;  %v2570_v59 = vmul.f32 0.25, %v2234_v50  ;;  %v2235_v61 = vadd.f32 %v1775_v52, %v1774_v51  ;;  %v1776_v62 = vadd.f32 %v858_v56, %v856_v53  ;;  %v860_v0 = vld [vmem:[%s10783_s0 + $0x1aa0] sm:$0x7f] }
 0x1f0   :  { %v1777_v63 = vadd.f32 %v859_v57, %v857_v55  ;;  %v861_v1 = vld [vmem:[%s10783_s0 + $0x1aa8] sm:$0x7f]  ;;  %v862_v2 = vld [vmem:[%s10783_s0 + $0x1ab0] sm:$0x7f]  ;;  %v863_v7 = vld [vmem:[%s10783_s0 + $0x1ab8] sm:$0x7f] }
 0x1f1   :  { %v3663_v3 = vsel %vm4104_vm2, %v2905_v58, %v3662_v46  ;;  %v2906_v4 = vpack.c.bf16 %v2570_v59, %v2570_v59  ;;  %v2571_v5 = vmul.f32 0.25, %v2235_v61  ;;  %v3668_v6 = vld [vmem:[%s10784_s1 + $0x34c] sm:$0xf]  ;;  %v1778_v8 = vadd.f32 %v862_v2, %v860_v0  ;;  %v864_v11 = vld [vmem:[%s10783_s0 + $0x1ac0] sm:$0x7f] }
 0x1f2   :  { %3664 = vst [vmem:[%s10784_s1 + $0x344] sm:$0xf] %v3663_v3  ;;  %v2236_v9 = vadd.f32 %v1777_v63, %v1776_v62  ;;  %v1779_v10 = vadd.f32 %v863_v7, %v861_v1  ;;  %v865_v12 = vld [vmem:[%s10783_s0 + $0x1ac8] sm:$0x7f]  ;;  %v3671_v15 = vld [vmem:[%s10784_s1 + $0x350] sm:$0xf] }
 0x1f3   :  { %v3666_v13 = vsel %vm4104_vm2, %v2906_v4, %v3665_v60  ;;  %v2907_v14 = vpack.c.bf16 %v2571_v5, %v2571_v5  ;;  %v866_v16 = vld [vmem:[%s10783_s0 + $0x1ad0] sm:$0x7f]  ;;  %v867_v17 = vld [vmem:[%s10783_s0 + $0x1ad8] sm:$0x7f]  ;;  %v868_v22 = vld [vmem:[%s10783_s0 + $0x1ae0] sm:$0x7f] }
 0x1f4   :  { %3667 = vst [vmem:[%s10784_s1 + $0x348] sm:$0xf] %v3666_v13  ;;  %v2572_v18 = vmul.f32 0.25, %v2236_v9  ;;  %v2237_v19 = vadd.f32 %v1779_v10, %v1778_v8  ;;  %v1780_v20 = vadd.f32 %v866_v16, %v864_v11  ;;  %v1781_v21 = vadd.f32 %v867_v17, %v865_v12  ;;  %v869_v25 = vld [vmem:[%s10783_s0 + $0x1ae8] sm:$0x7f] }
 0x1f5   :  { %v3669_v24 = vsel %vm4104_vm2, %v2907_v14, %v3668_v6  ;;  %v870_v26 = vld [vmem:[%s10783_s0 + $0x1af0] sm:$0x7f]  ;;  %v871_v27 = vld [vmem:[%s10783_s0 + $0x1af8] sm:$0x7f]  ;;  %v872_v34 = vld [vmem:[%s10783_s0 + $0x1b00] sm:$0x7f] }
 0x1f6   :  { %3670 = vst [vmem:[%s10784_s1 + $0x34c] sm:$0xf] %v3669_v24  ;;  %v2908_v28 = vpack.c.bf16 %v2572_v18, %v2572_v18  ;;  %v2573_v29 = vmul.f32 0.25, %v2237_v19  ;;  %v3674_v30 = vld [vmem:[%s10784_s1 + $0x354] sm:$0xf]  ;;  %v2238_v31 = vadd.f32 %v1781_v21, %v1780_v20  ;;  %v1782_v32 = vadd.f32 %v870_v26, %v868_v22 }
 0x1f7   :  { %v1783_v33 = vadd.f32 %v871_v27, %v869_v25  ;;  %v873_v35 = vld [vmem:[%s10783_s0 + $0x1b08] sm:$0x7f]  ;;  %v874_v36 = vld [vmem:[%s10783_s0 + $0x1b10] sm:$0x7f]  ;;  %v3677_v40 = vld [vmem:[%s10784_s1 + $0x358] sm:$0xf] }
 0x1f8   :  { %v3672_v37 = vsel %vm4104_vm2, %v2908_v28, %v3671_v15  ;;  %v2909_v38 = vpack.c.bf16 %v2573_v29, %v2573_v29  ;;  %v2574_v39 = vmul.f32 0.25, %v2238_v31  ;;  %v875_v41 = vld [vmem:[%s10783_s0 + $0x1b18] sm:$0x7f]  ;;  %v1784_v42 = vadd.f32 %v874_v36, %v872_v34  ;;  %v876_v45 = vld [vmem:[%s10783_s0 + $0x1b20] sm:$0x7f] }
 0x1f9   :  { %3673 = vst [vmem:[%s10784_s1 + $0x350] sm:$0xf] %v3672_v37  ;;  %v2239_v43 = vadd.f32 %v1783_v33, %v1782_v32  ;;  %v1785_v44 = vadd.f32 %v875_v41, %v873_v35  ;;  %v877_v46 = vld [vmem:[%s10783_s0 + $0x1b28] sm:$0x7f]  ;;  %v3680_v49 = vld [vmem:[%s10784_s1 + $0x35c] sm:$0xf] }
 0x1fa   :  { %v3675_v47 = vsel %vm4104_vm2, %v2909_v38, %v3674_v30  ;;  %v2910_v48 = vpack.c.bf16 %v2574_v39, %v2574_v39  ;;  %v878_v50 = vld [vmem:[%s10783_s0 + $0x1b30] sm:$0x7f]  ;;  %v879_v51 = vld [vmem:[%s10783_s0 + $0x1b38] sm:$0x7f]  ;;  %v880_v56 = vld [vmem:[%s10783_s0 + $0x1b40] sm:$0x7f] }
 0x1fb   :  { %3676 = vst [vmem:[%s10784_s1 + $0x354] sm:$0xf] %v3675_v47  ;;  %v2575_v52 = vmul.f32 0.25, %v2239_v43  ;;  %v2240_v53 = vadd.f32 %v1785_v44, %v1784_v42  ;;  %v1786_v54 = vadd.f32 %v878_v50, %v876_v45  ;;  %v1787_v55 = vadd.f32 %v879_v51, %v877_v46  ;;  %v881_v58 = vld [vmem:[%s10783_s0 + $0x1b48] sm:$0x7f] }
 0x1fc   :  { %v3678_v57 = vsel %vm4104_vm2, %v2910_v48, %v3677_v40  ;;  %v882_v59 = vld [vmem:[%s10783_s0 + $0x1b50] sm:$0x7f]  ;;  %v883_v60 = vld [vmem:[%s10783_s0 + $0x1b58] sm:$0x7f]  ;;  %v3683_v63 = vld [vmem:[%s10784_s1 + $0x360] sm:$0xf] }
 0x1fd   :  { %3679 = vst [vmem:[%s10784_s1 + $0x358] sm:$0xf] %v3678_v57  ;;  %v2911_v61 = vpack.c.bf16 %v2575_v52, %v2575_v52  ;;  %v2576_v62 = vmul.f32 0.25, %v2240_v53  ;;  %v2241_v0 = vadd.f32 %v1787_v55, %v1786_v54  ;;  %v1788_v1 = vadd.f32 %v882_v59, %v880_v56  ;;  %v884_v3 = vld [vmem:[%s10783_s0 + $0x1b60] sm:$0x7f] }
 0x1fe   :  { %v1789_v2 = vadd.f32 %v883_v60, %v881_v58  ;;  %v885_v4 = vld [vmem:[%s10783_s0 + $0x1b68] sm:$0x7f]  ;;  %v886_v5 = vld [vmem:[%s10783_s0 + $0x1b70] sm:$0x7f]  ;;  %v3686_v9 = vld [vmem:[%s10784_s1 + $0x364] sm:$0xf] }
 0x1ff   :  { %v3681_v6 = vsel %vm4104_vm2, %v2911_v61, %v3680_v49  ;;  %v2912_v7 = vpack.c.bf16 %v2576_v62, %v2576_v62  ;;  %v2577_v8 = vmul.f32 0.25, %v2241_v0  ;;  %v887_v10 = vld [vmem:[%s10783_s0 + $0x1b78] sm:$0x7f]  ;;  %v1790_v11 = vadd.f32 %v886_v5, %v884_v3  ;;  %v888_v14 = vld [vmem:[%s10783_s0 + $0x1b80] sm:$0x7f] }
 0x200   :  { %3682 = vst [vmem:[%s10784_s1 + $0x35c] sm:$0xf] %v3681_v6  ;;  %v2242_v12 = vadd.f32 %v1789_v2, %v1788_v1  ;;  %v1791_v13 = vadd.f32 %v887_v10, %v885_v4  ;;  %v889_v15 = vld [vmem:[%s10783_s0 + $0x1b88] sm:$0x7f]  ;;  %v890_v19 = vld [vmem:[%s10783_s0 + $0x1b90] sm:$0x7f] }
 0x201   :  { %v3684_v16 = vsel %vm4104_vm2, %v2912_v7, %v3683_v63  ;;  %v2913_v17 = vpack.c.bf16 %v2577_v8, %v2577_v8  ;;  %v3689_v18 = vld [vmem:[%s10784_s1 + $0x368] sm:$0xf]  ;;  %v891_v20 = vld [vmem:[%s10783_s0 + $0x1b98] sm:$0x7f]  ;;  %v1792_v24 = vadd.f32 %v890_v19, %v888_v14  ;;  %v892_v26 = vld [vmem:[%s10783_s0 + $0x1ba0] sm:$0x7f] }
 0x202   :  { %3685 = vst [vmem:[%s10784_s1 + $0x360] sm:$0xf] %v3684_v16  ;;  %v2578_v21 = vmul.f32 0.25, %v2242_v12  ;;  %v2243_v22 = vadd.f32 %v1791_v13, %v1790_v11  ;;  %v1793_v25 = vadd.f32 %v891_v20, %v889_v15  ;;  %v893_v28 = vld [vmem:[%s10783_s0 + $0x1ba8] sm:$0x7f] }
 0x203   :  { %v3687_v27 = vsel %vm4104_vm2, %v2913_v17, %v3686_v9  ;;  %v894_v29 = vld [vmem:[%s10783_s0 + $0x1bb0] sm:$0x7f]  ;;  %v895_v30 = vld [vmem:[%s10783_s0 + $0x1bb8] sm:$0x7f]  ;;  %v3692_v33 = vld [vmem:[%s10784_s1 + $0x36c] sm:$0xf] }
 0x204   :  { %3688 = vst [vmem:[%s10784_s1 + $0x364] sm:$0xf] %v3687_v27  ;;  %v2914_v31 = vpack.c.bf16 %v2578_v21, %v2578_v21  ;;  %v2579_v32 = vmul.f32 0.25, %v2243_v22  ;;  %v2244_v34 = vadd.f32 %v1793_v25, %v1792_v24  ;;  %v1794_v35 = vadd.f32 %v894_v29, %v892_v26  ;;  %v896_v37 = vld [vmem:[%s10783_s0 + $0x1bc0] sm:$0x7f] }
 0x205   :  { %v1795_v36 = vadd.f32 %v895_v30, %v893_v28  ;;  %v897_v38 = vld [vmem:[%s10783_s0 + $0x1bc8] sm:$0x7f]  ;;  %v898_v39 = vld [vmem:[%s10783_s0 + $0x1bd0] sm:$0x7f]  ;;  %v899_v44 = vld [vmem:[%s10783_s0 + $0x1bd8] sm:$0x7f] }
 0x206   :  { %v3690_v40 = vsel %vm4104_vm2, %v2914_v31, %v3689_v18  ;;  %v2915_v41 = vpack.c.bf16 %v2579_v32, %v2579_v32  ;;  %v2580_v42 = vmul.f32 0.25, %v2244_v34  ;;  %v3695_v43 = vld [vmem:[%s10784_s1 + $0x370] sm:$0xf]  ;;  %v1796_v45 = vadd.f32 %v898_v39, %v896_v37  ;;  %v900_v48 = vld [vmem:[%s10783_s0 + $0x1be0] sm:$0x7f] }
 0x207   :  { %3691 = vst [vmem:[%s10784_s1 + $0x368] sm:$0xf] %v3690_v40  ;;  %v2245_v46 = vadd.f32 %v1795_v36, %v1794_v35  ;;  %v1797_v47 = vadd.f32 %v899_v44, %v897_v38  ;;  %v901_v49 = vld [vmem:[%s10783_s0 + $0x1be8] sm:$0x7f]  ;;  %v3698_v52 = vld [vmem:[%s10784_s1 + $0x374] sm:$0xf] }
 0x208   :  { %v3693_v50 = vsel %vm4104_vm2, %v2915_v41, %v3692_v33  ;;  %v2916_v51 = vpack.c.bf16 %v2580_v42, %v2580_v42  ;;  %v902_v53 = vld [vmem:[%s10783_s0 + $0x1bf0] sm:$0x7f]  ;;  %v903_v54 = vld [vmem:[%s10783_s0 + $0x1bf8] sm:$0x7f]  ;;  %v904_v59 = vld [vmem:[%s10783_s0 + $0x1c00] sm:$0x7f] }
 0x209   :  { %3694 = vst [vmem:[%s10784_s1 + $0x36c] sm:$0xf] %v3693_v50  ;;  %v2581_v55 = vmul.f32 0.25, %v2245_v46  ;;  %v2246_v56 = vadd.f32 %v1797_v47, %v1796_v45  ;;  %v1798_v57 = vadd.f32 %v902_v53, %v900_v48  ;;  %v1799_v58 = vadd.f32 %v903_v54, %v901_v49  ;;  %v905_v61 = vld [vmem:[%s10783_s0 + $0x1c08] sm:$0x7f] }
 0x20a   :  { %v3696_v60 = vsel %vm4104_vm2, %v2916_v51, %v3695_v43  ;;  %v906_v62 = vld [vmem:[%s10783_s0 + $0x1c10] sm:$0x7f]  ;;  %v907_v63 = vld [vmem:[%s10783_s0 + $0x1c18] sm:$0x7f]  ;;  %v908_v6 = vld [vmem:[%s10783_s0 + $0x1c20] sm:$0x7f] }
 0x20b   :  { %3697 = vst [vmem:[%s10784_s1 + $0x370] sm:$0xf] %v3696_v60  ;;  %v2917_v0 = vpack.c.bf16 %v2581_v55, %v2581_v55  ;;  %v2582_v1 = vmul.f32 0.25, %v2246_v56  ;;  %v3701_v2 = vld [vmem:[%s10784_s1 + $0x378] sm:$0xf]  ;;  %v2247_v3 = vadd.f32 %v1799_v58, %v1798_v57  ;;  %v1800_v4 = vadd.f32 %v906_v62, %v904_v59 }
 0x20c   :  { %v1801_v5 = vadd.f32 %v907_v63, %v905_v61  ;;  %v909_v7 = vld [vmem:[%s10783_s0 + $0x1c28] sm:$0x7f]  ;;  %v910_v8 = vld [vmem:[%s10783_s0 + $0x1c30] sm:$0x7f]  ;;  %v3704_v12 = vld [vmem:[%s10784_s1 + $0x37c] sm:$0xf] }
 0x20d   :  { %v3699_v9 = vsel %vm4104_vm2, %v2917_v0, %v3698_v52  ;;  %v2918_v10 = vpack.c.bf16 %v2582_v1, %v2582_v1  ;;  %v2583_v11 = vmul.f32 0.25, %v2247_v3  ;;  %v911_v13 = vld [vmem:[%s10783_s0 + $0x1c38] sm:$0x7f]  ;;  %v1802_v14 = vadd.f32 %v910_v8, %v908_v6  ;;  %v912_v17 = vld [vmem:[%s10783_s0 + $0x1c40] sm:$0x7f] }
 0x20e   :  { %3700 = vst [vmem:[%s10784_s1 + $0x374] sm:$0xf] %v3699_v9  ;;  %v2248_v15 = vadd.f32 %v1801_v5, %v1800_v4  ;;  %v1803_v16 = vadd.f32 %v911_v13, %v909_v7  ;;  %v913_v18 = vld [vmem:[%s10783_s0 + $0x1c48] sm:$0x7f]  ;;  %v3707_v21 = vld [vmem:[%s10784_s1 + $0x380] sm:$0xf] }
 0x20f   :  { %v3702_v19 = vsel %vm4104_vm2, %v2918_v10, %v3701_v2  ;;  %v2919_v20 = vpack.c.bf16 %v2583_v11, %v2583_v11  ;;  %v914_v22 = vld [vmem:[%s10783_s0 + $0x1c50] sm:$0x7f]  ;;  %v915_v24 = vld [vmem:[%s10783_s0 + $0x1c58] sm:$0x7f]  ;;  %v916_v29 = vld [vmem:[%s10783_s0 + $0x1c60] sm:$0x7f] }
 0x210   :  { %3703 = vst [vmem:[%s10784_s1 + $0x378] sm:$0xf] %v3702_v19  ;;  %v2584_v25 = vmul.f32 0.25, %v2248_v15  ;;  %v2249_v26 = vadd.f32 %v1803_v16, %v1802_v14  ;;  %v1804_v27 = vadd.f32 %v914_v22, %v912_v17  ;;  %v1805_v28 = vadd.f32 %v915_v24, %v913_v18  ;;  %v917_v31 = vld [vmem:[%s10783_s0 + $0x1c68] sm:$0x7f] }
 0x211   :  { %v3705_v30 = vsel %vm4104_vm2, %v2919_v20, %v3704_v12  ;;  %v918_v32 = vld [vmem:[%s10783_s0 + $0x1c70] sm:$0x7f]  ;;  %v919_v33 = vld [vmem:[%s10783_s0 + $0x1c78] sm:$0x7f]  ;;  %v3710_v36 = vld [vmem:[%s10784_s1 + $0x384] sm:$0xf] }
 0x212   :  { %3706 = vst [vmem:[%s10784_s1 + $0x37c] sm:$0xf] %v3705_v30  ;;  %v2920_v34 = vpack.c.bf16 %v2584_v25, %v2584_v25  ;;  %v2585_v35 = vmul.f32 0.25, %v2249_v26  ;;  %v2250_v37 = vadd.f32 %v1805_v28, %v1804_v27  ;;  %v1806_v38 = vadd.f32 %v918_v32, %v916_v29  ;;  %v920_v40 = vld [vmem:[%s10783_s0 + $0x1c80] sm:$0x7f] }
 0x213   :  { %v1807_v39 = vadd.f32 %v919_v33, %v917_v31  ;;  %v921_v41 = vld [vmem:[%s10783_s0 + $0x1c88] sm:$0x7f]  ;;  %v922_v42 = vld [vmem:[%s10783_s0 + $0x1c90] sm:$0x7f]  ;;  %v923_v47 = vld [vmem:[%s10783_s0 + $0x1c98] sm:$0x7f] }
 0x214   :  { %v3708_v43 = vsel %vm4104_vm2, %v2920_v34, %v3707_v21  ;;  %v2921_v44 = vpack.c.bf16 %v2585_v35, %v2585_v35  ;;  %v2586_v45 = vmul.f32 0.25, %v2250_v37  ;;  %v3713_v46 = vld [vmem:[%s10784_s1 + $0x388] sm:$0xf]  ;;  %v1808_v48 = vadd.f32 %v922_v42, %v920_v40  ;;  %v924_v51 = vld [vmem:[%s10783_s0 + $0x1ca0] sm:$0x7f] }
 0x215   :  { %3709 = vst [vmem:[%s10784_s1 + $0x380] sm:$0xf] %v3708_v43  ;;  %v2251_v49 = vadd.f32 %v1807_v39, %v1806_v38  ;;  %v1809_v50 = vadd.f32 %v923_v47, %v921_v41  ;;  %v925_v52 = vld [vmem:[%s10783_s0 + $0x1ca8] sm:$0x7f]  ;;  %v926_v56 = vld [vmem:[%s10783_s0 + $0x1cb0] sm:$0x7f] }
 0x216   :  { %v3711_v53 = vsel %vm4104_vm2, %v2921_v44, %v3710_v36  ;;  %v2922_v54 = vpack.c.bf16 %v2586_v45, %v2586_v45  ;;  %v3716_v55 = vld [vmem:[%s10784_s1 + $0x38c] sm:$0xf]  ;;  %v927_v57 = vld [vmem:[%s10783_s0 + $0x1cb8] sm:$0x7f]  ;;  %v1810_v60 = vadd.f32 %v926_v56, %v924_v51  ;;  %v928_v62 = vld [vmem:[%s10783_s0 + $0x1cc0] sm:$0x7f] }
 0x217   :  { %3712 = vst [vmem:[%s10784_s1 + $0x384] sm:$0xf] %v3711_v53  ;;  %v2587_v58 = vmul.f32 0.25, %v2251_v49  ;;  %v2252_v59 = vadd.f32 %v1809_v50, %v1808_v48  ;;  %v1811_v61 = vadd.f32 %v927_v57, %v925_v52  ;;  %v929_v0 = vld [vmem:[%s10783_s0 + $0x1cc8] sm:$0x7f] }
 0x218   :  { %v3714_v63 = vsel %vm4104_vm2, %v2922_v54, %v3713_v46  ;;  %v930_v1 = vld [vmem:[%s10783_s0 + $0x1cd0] sm:$0x7f]  ;;  %v931_v2 = vld [vmem:[%s10783_s0 + $0x1cd8] sm:$0x7f]  ;;  %v932_v9 = vld [vmem:[%s10783_s0 + $0x1ce0] sm:$0x7f] }
 0x219   :  { %3715 = vst [vmem:[%s10784_s1 + $0x388] sm:$0xf] %v3714_v63  ;;  %v2923_v3 = vpack.c.bf16 %v2587_v58, %v2587_v58  ;;  %v2588_v4 = vmul.f32 0.25, %v2252_v59  ;;  %v3719_v5 = vld [vmem:[%s10784_s1 + $0x390] sm:$0xf]  ;;  %v2253_v6 = vadd.f32 %v1811_v61, %v1810_v60  ;;  %v1812_v7 = vadd.f32 %v930_v1, %v928_v62 }
 0x21a   :  { %v1813_v8 = vadd.f32 %v931_v2, %v929_v0  ;;  %v933_v10 = vld [vmem:[%s10783_s0 + $0x1ce8] sm:$0x7f]  ;;  %v934_v11 = vld [vmem:[%s10783_s0 + $0x1cf0] sm:$0x7f]  ;;  %v935_v16 = vld [vmem:[%s10783_s0 + $0x1cf8] sm:$0x7f] }
 0x21b   :  { %v3717_v12 = vsel %vm4104_vm2, %v2923_v3, %v3716_v55  ;;  %v2924_v13 = vpack.c.bf16 %v2588_v4, %v2588_v4  ;;  %v2589_v14 = vmul.f32 0.25, %v2253_v6  ;;  %v3722_v15 = vld [vmem:[%s10784_s1 + $0x394] sm:$0xf]  ;;  %v1814_v17 = vadd.f32 %v934_v11, %v932_v9  ;;  %v936_v20 = vld [vmem:[%s10783_s0 + $0x1d00] sm:$0x7f] }
 0x21c   :  { %3718 = vst [vmem:[%s10784_s1 + $0x38c] sm:$0xf] %v3717_v12  ;;  %v2254_v18 = vadd.f32 %v1813_v8, %v1812_v7  ;;  %v1815_v19 = vadd.f32 %v935_v16, %v933_v10  ;;  %v937_v21 = vld [vmem:[%s10783_s0 + $0x1d08] sm:$0x7f]  ;;  %v3725_v25 = vld [vmem:[%s10784_s1 + $0x398] sm:$0xf] }
 0x21d   :  { %v3720_v22 = vsel %vm4104_vm2, %v2924_v13, %v3719_v5  ;;  %v2925_v24 = vpack.c.bf16 %v2589_v14, %v2589_v14  ;;  %v938_v26 = vld [vmem:[%s10783_s0 + $0x1d10] sm:$0x7f]  ;;  %v939_v27 = vld [vmem:[%s10783_s0 + $0x1d18] sm:$0x7f]  ;;  %v940_v32 = vld [vmem:[%s10783_s0 + $0x1d20] sm:$0x7f] }
 0x21e   :  { %3721 = vst [vmem:[%s10784_s1 + $0x390] sm:$0xf] %v3720_v22  ;;  %v2590_v28 = vmul.f32 0.25, %v2254_v18  ;;  %v2255_v29 = vadd.f32 %v1815_v19, %v1814_v17  ;;  %v1816_v30 = vadd.f32 %v938_v26, %v936_v20  ;;  %v1817_v31 = vadd.f32 %v939_v27, %v937_v21  ;;  %v941_v34 = vld [vmem:[%s10783_s0 + $0x1d28] sm:$0x7f] }
 0x21f   :  { %v3723_v33 = vsel %vm4104_vm2, %v2925_v24, %v3722_v15  ;;  %v942_v35 = vld [vmem:[%s10783_s0 + $0x1d30] sm:$0x7f]  ;;  %v943_v36 = vld [vmem:[%s10783_s0 + $0x1d38] sm:$0x7f]  ;;  %v944_v43 = vld [vmem:[%s10783_s0 + $0x1d40] sm:$0x7f] }
 0x220   :  { %3724 = vst [vmem:[%s10784_s1 + $0x394] sm:$0xf] %v3723_v33  ;;  %v2926_v37 = vpack.c.bf16 %v2590_v28, %v2590_v28  ;;  %v2591_v38 = vmul.f32 0.25, %v2255_v29  ;;  %v3728_v39 = vld [vmem:[%s10784_s1 + $0x39c] sm:$0xf]  ;;  %v2256_v40 = vadd.f32 %v1817_v31, %v1816_v30  ;;  %v1818_v41 = vadd.f32 %v942_v35, %v940_v32 }
 0x221   :  { %v1819_v42 = vadd.f32 %v943_v36, %v941_v34  ;;  %v945_v44 = vld [vmem:[%s10783_s0 + $0x1d48] sm:$0x7f]  ;;  %v946_v45 = vld [vmem:[%s10783_s0 + $0x1d50] sm:$0x7f]  ;;  %v3731_v49 = vld [vmem:[%s10784_s1 + $0x3a0] sm:$0xf] }
 0x222   :  { %v3726_v46 = vsel %vm4104_vm2, %v2926_v37, %v3725_v25  ;;  %v2927_v47 = vpack.c.bf16 %v2591_v38, %v2591_v38  ;;  %v2592_v48 = vmul.f32 0.25, %v2256_v40  ;;  %v947_v50 = vld [vmem:[%s10783_s0 + $0x1d58] sm:$0x7f]  ;;  %v1820_v51 = vadd.f32 %v946_v45, %v944_v43  ;;  %v948_v54 = vld [vmem:[%s10783_s0 + $0x1d60] sm:$0x7f] }
 0x223   :  { %3727 = vst [vmem:[%s10784_s1 + $0x398] sm:$0xf] %v3726_v46  ;;  %v2257_v52 = vadd.f32 %v1819_v42, %v1818_v41  ;;  %v1821_v53 = vadd.f32 %v947_v50, %v945_v44  ;;  %v949_v55 = vld [vmem:[%s10783_s0 + $0x1d68] sm:$0x7f]  ;;  %v3734_v58 = vld [vmem:[%s10784_s1 + $0x3a4] sm:$0xf] }
 0x224   :  { %v3729_v56 = vsel %vm4104_vm2, %v2927_v47, %v3728_v39  ;;  %v2928_v57 = vpack.c.bf16 %v2592_v48, %v2592_v48  ;;  %v950_v59 = vld [vmem:[%s10783_s0 + $0x1d70] sm:$0x7f]  ;;  %v951_v60 = vld [vmem:[%s10783_s0 + $0x1d78] sm:$0x7f]  ;;  %v952_v1 = vld [vmem:[%s10783_s0 + $0x1d80] sm:$0x7f] }
 0x225   :  { %3730 = vst [vmem:[%s10784_s1 + $0x39c] sm:$0xf] %v3729_v56  ;;  %v2593_v61 = vmul.f32 0.25, %v2257_v52  ;;  %v2258_v62 = vadd.f32 %v1821_v53, %v1820_v51  ;;  %v1822_v63 = vadd.f32 %v950_v59, %v948_v54  ;;  %v1823_v0 = vadd.f32 %v951_v60, %v949_v55  ;;  %v953_v3 = vld [vmem:[%s10783_s0 + $0x1d88] sm:$0x7f] }
 0x226   :  { %v3732_v2 = vsel %vm4104_vm2, %v2928_v57, %v3731_v49  ;;  %v954_v4 = vld [vmem:[%s10783_s0 + $0x1d90] sm:$0x7f]  ;;  %v955_v5 = vld [vmem:[%s10783_s0 + $0x1d98] sm:$0x7f]  ;;  %v3737_v8 = vld [vmem:[%s10784_s1 + $0x3a8] sm:$0xf] }
 0x227   :  { %3733 = vst [vmem:[%s10784_s1 + $0x3a0] sm:$0xf] %v3732_v2  ;;  %v2929_v6 = vpack.c.bf16 %v2593_v61, %v2593_v61  ;;  %v2594_v7 = vmul.f32 0.25, %v2258_v62  ;;  %v2259_v9 = vadd.f32 %v1823_v0, %v1822_v63  ;;  %v1824_v10 = vadd.f32 %v954_v4, %v952_v1  ;;  %v956_v12 = vld [vmem:[%s10783_s0 + $0x1da0] sm:$0x7f] }
 0x228   :  { %v1825_v11 = vadd.f32 %v955_v5, %v953_v3  ;;  %v957_v13 = vld [vmem:[%s10783_s0 + $0x1da8] sm:$0x7f]  ;;  %v958_v14 = vld [vmem:[%s10783_s0 + $0x1db0] sm:$0x7f]  ;;  %v959_v19 = vld [vmem:[%s10783_s0 + $0x1db8] sm:$0x7f] }
 0x229   :  { %v3735_v15 = vsel %vm4104_vm2, %v2929_v6, %v3734_v58  ;;  %v2930_v16 = vpack.c.bf16 %v2594_v7, %v2594_v7  ;;  %v2595_v17 = vmul.f32 0.25, %v2259_v9  ;;  %v3740_v18 = vld [vmem:[%s10784_s1 + $0x3ac] sm:$0xf]  ;;  %v1826_v20 = vadd.f32 %v958_v14, %v956_v12  ;;  %v960_v24 = vld [vmem:[%s10783_s0 + $0x1dc0] sm:$0x7f] }
 0x22a   :  { %3736 = vst [vmem:[%s10784_s1 + $0x3a4] sm:$0xf] %v3735_v15  ;;  %v2260_v21 = vadd.f32 %v1825_v11, %v1824_v10  ;;  %v1827_v22 = vadd.f32 %v959_v19, %v957_v13  ;;  %v961_v25 = vld [vmem:[%s10783_s0 + $0x1dc8] sm:$0x7f]  ;;  %v3743_v28 = vld [vmem:[%s10784_s1 + $0x3b0] sm:$0xf] }
 0x22b   :  { %v3738_v26 = vsel %vm4104_vm2, %v2930_v16, %v3737_v8  ;;  %v2931_v27 = vpack.c.bf16 %v2595_v17, %v2595_v17  ;;  %v962_v29 = vld [vmem:[%s10783_s0 + $0x1dd0] sm:$0x7f]  ;;  %v963_v30 = vld [vmem:[%s10783_s0 + $0x1dd8] sm:$0x7f]  ;;  %v964_v35 = vld [vmem:[%s10783_s0 + $0x1de0] sm:$0x7f] }
 0x22c   :  { %3739 = vst [vmem:[%s10784_s1 + $0x3a8] sm:$0xf] %v3738_v26  ;;  %v2596_v31 = vmul.f32 0.25, %v2260_v21  ;;  %v2261_v32 = vadd.f32 %v1827_v22, %v1826_v20  ;;  %v1828_v33 = vadd.f32 %v962_v29, %v960_v24  ;;  %v1829_v34 = vadd.f32 %v963_v30, %v961_v25  ;;  %v965_v37 = vld [vmem:[%s10783_s0 + $0x1de8] sm:$0x7f] }
 0x22d   :  { %v3741_v36 = vsel %vm4104_vm2, %v2931_v27, %v3740_v18  ;;  %v966_v38 = vld [vmem:[%s10783_s0 + $0x1df0] sm:$0x7f]  ;;  %v967_v39 = vld [vmem:[%s10783_s0 + $0x1df8] sm:$0x7f]  ;;  %v968_v46 = vld [vmem:[%s10783_s0 + $0x1e00] sm:$0x7f] }
 0x22e   :  { %3742 = vst [vmem:[%s10784_s1 + $0x3ac] sm:$0xf] %v3741_v36  ;;  %v2932_v40 = vpack.c.bf16 %v2596_v31, %v2596_v31  ;;  %v2597_v41 = vmul.f32 0.25, %v2261_v32  ;;  %v3746_v42 = vld [vmem:[%s10784_s1 + $0x3b4] sm:$0xf]  ;;  %v2262_v43 = vadd.f32 %v1829_v34, %v1828_v33  ;;  %v1830_v44 = vadd.f32 %v966_v38, %v964_v35 }
 0x22f   :  { %v1831_v45 = vadd.f32 %v967_v39, %v965_v37  ;;  %v969_v47 = vld [vmem:[%s10783_s0 + $0x1e08] sm:$0x7f]  ;;  %v970_v48 = vld [vmem:[%s10783_s0 + $0x1e10] sm:$0x7f]  ;;  %v3749_v52 = vld [vmem:[%s10784_s1 + $0x3b8] sm:$0xf] }
 0x230   :  { %v3744_v49 = vsel %vm4104_vm2, %v2932_v40, %v3743_v28  ;;  %v2933_v50 = vpack.c.bf16 %v2597_v41, %v2597_v41  ;;  %v2598_v51 = vmul.f32 0.25, %v2262_v43  ;;  %v971_v53 = vld [vmem:[%s10783_s0 + $0x1e18] sm:$0x7f]  ;;  %v1832_v54 = vadd.f32 %v970_v48, %v968_v46  ;;  %v972_v57 = vld [vmem:[%s10783_s0 + $0x1e20] sm:$0x7f] }
 0x231   :  { %3745 = vst [vmem:[%s10784_s1 + $0x3b0] sm:$0xf] %v3744_v49  ;;  %v2263_v55 = vadd.f32 %v1831_v45, %v1830_v44  ;;  %v1833_v56 = vadd.f32 %v971_v53, %v969_v47  ;;  %v973_v58 = vld [vmem:[%s10783_s0 + $0x1e28] sm:$0x7f]  ;;  %v3752_v61 = vld [vmem:[%s10784_s1 + $0x3bc] sm:$0xf] }
 0x232   :  { %v3747_v59 = vsel %vm4104_vm2, %v2933_v50, %v3746_v42  ;;  %v2934_v60 = vpack.c.bf16 %v2598_v51, %v2598_v51  ;;  %v974_v62 = vld [vmem:[%s10783_s0 + $0x1e30] sm:$0x7f]  ;;  %v975_v63 = vld [vmem:[%s10783_s0 + $0x1e38] sm:$0x7f]  ;;  %v976_v4 = vld [vmem:[%s10783_s0 + $0x1e40] sm:$0x7f] }
 0x233   :  { %3748 = vst [vmem:[%s10784_s1 + $0x3b4] sm:$0xf] %v3747_v59  ;;  %v2599_v0 = vmul.f32 0.25, %v2263_v55  ;;  %v2264_v1 = vadd.f32 %v1833_v56, %v1832_v54  ;;  %v1834_v2 = vadd.f32 %v974_v62, %v972_v57  ;;  %v1835_v3 = vadd.f32 %v975_v63, %v973_v58  ;;  %v977_v6 = vld [vmem:[%s10783_s0 + $0x1e48] sm:$0x7f] }
 0x234   :  { %v3750_v5 = vsel %vm4104_vm2, %v2934_v60, %v3749_v52  ;;  %v978_v7 = vld [vmem:[%s10783_s0 + $0x1e50] sm:$0x7f]  ;;  %v979_v8 = vld [vmem:[%s10783_s0 + $0x1e58] sm:$0x7f]  ;;  %v3755_v11 = vld [vmem:[%s10784_s1 + $0x3c0] sm:$0xf] }
 0x235   :  { %3751 = vst [vmem:[%s10784_s1 + $0x3b8] sm:$0xf] %v3750_v5  ;;  %v2935_v9 = vpack.c.bf16 %v2599_v0, %v2599_v0  ;;  %v2600_v10 = vmul.f32 0.25, %v2264_v1  ;;  %v2265_v12 = vadd.f32 %v1835_v3, %v1834_v2  ;;  %v1836_v13 = vadd.f32 %v978_v7, %v976_v4  ;;  %v980_v15 = vld [vmem:[%s10783_s0 + $0x1e60] sm:$0x7f] }
 0x236   :  { %v1837_v14 = vadd.f32 %v979_v8, %v977_v6  ;;  %v981_v16 = vld [vmem:[%s10783_s0 + $0x1e68] sm:$0x7f]  ;;  %v982_v17 = vld [vmem:[%s10783_s0 + $0x1e70] sm:$0x7f]  ;;  %v3758_v21 = vld [vmem:[%s10784_s1 + $0x3c4] sm:$0xf] }
 0x237   :  { %v3753_v18 = vsel %vm4104_vm2, %v2935_v9, %v3752_v61  ;;  %v2936_v19 = vpack.c.bf16 %v2600_v10, %v2600_v10  ;;  %v2601_v20 = vmul.f32 0.25, %v2265_v12  ;;  %v983_v22 = vld [vmem:[%s10783_s0 + $0x1e78] sm:$0x7f]  ;;  %v1838_v24 = vadd.f32 %v982_v17, %v980_v15  ;;  %v984_v27 = vld [vmem:[%s10783_s0 + $0x1e80] sm:$0x7f] }
 0x238   :  { %3754 = vst [vmem:[%s10784_s1 + $0x3bc] sm:$0xf] %v3753_v18  ;;  %v2266_v25 = vadd.f32 %v1837_v14, %v1836_v13  ;;  %v1839_v26 = vadd.f32 %v983_v22, %v981_v16  ;;  %v985_v28 = vld [vmem:[%s10783_s0 + $0x1e88] sm:$0x7f]  ;;  %v986_v32 = vld [vmem:[%s10783_s0 + $0x1e90] sm:$0x7f] }
 0x239   :  { %v3756_v29 = vsel %vm4104_vm2, %v2936_v19, %v3755_v11  ;;  %v2937_v30 = vpack.c.bf16 %v2601_v20, %v2601_v20  ;;  %v3761_v31 = vld [vmem:[%s10784_s1 + $0x3c8] sm:$0xf]  ;;  %v987_v33 = vld [vmem:[%s10783_s0 + $0x1e98] sm:$0x7f]  ;;  %v1840_v36 = vadd.f32 %v986_v32, %v984_v27  ;;  %v988_v38 = vld [vmem:[%s10783_s0 + $0x1ea0] sm:$0x7f] }
 0x23a   :  { %3757 = vst [vmem:[%s10784_s1 + $0x3c0] sm:$0xf] %v3756_v29  ;;  %v2602_v34 = vmul.f32 0.25, %v2266_v25  ;;  %v2267_v35 = vadd.f32 %v1839_v26, %v1838_v24  ;;  %v1841_v37 = vadd.f32 %v987_v33, %v985_v28  ;;  %v989_v40 = vld [vmem:[%s10783_s0 + $0x1ea8] sm:$0x7f] }
 0x23b   :  { %v3759_v39 = vsel %vm4104_vm2, %v2937_v30, %v3758_v21  ;;  %v990_v41 = vld [vmem:[%s10783_s0 + $0x1eb0] sm:$0x7f]  ;;  %v991_v42 = vld [vmem:[%s10783_s0 + $0x1eb8] sm:$0x7f]  ;;  %v3764_v45 = vld [vmem:[%s10784_s1 + $0x3cc] sm:$0xf] }
 0x23c   :  { %3760 = vst [vmem:[%s10784_s1 + $0x3c4] sm:$0xf] %v3759_v39  ;;  %v2938_v43 = vpack.c.bf16 %v2602_v34, %v2602_v34  ;;  %v2603_v44 = vmul.f32 0.25, %v2267_v35  ;;  %v2268_v46 = vadd.f32 %v1841_v37, %v1840_v36  ;;  %v1842_v47 = vadd.f32 %v990_v41, %v988_v38  ;;  %v992_v49 = vld [vmem:[%s10783_s0 + $0x1ec0] sm:$0x7f] }
 0x23d   :  { %v1843_v48 = vadd.f32 %v991_v42, %v989_v40  ;;  %v993_v50 = vld [vmem:[%s10783_s0 + $0x1ec8] sm:$0x7f]  ;;  %v994_v51 = vld [vmem:[%s10783_s0 + $0x1ed0] sm:$0x7f]  ;;  %v995_v56 = vld [vmem:[%s10783_s0 + $0x1ed8] sm:$0x7f] }
 0x23e   :  { %v3762_v52 = vsel %vm4104_vm2, %v2938_v43, %v3761_v31  ;;  %v2939_v53 = vpack.c.bf16 %v2603_v44, %v2603_v44  ;;  %v2604_v54 = vmul.f32 0.25, %v2268_v46  ;;  %v3767_v55 = vld [vmem:[%s10784_s1 + $0x3d0] sm:$0xf]  ;;  %v1844_v57 = vadd.f32 %v994_v51, %v992_v49  ;;  %v996_v60 = vld [vmem:[%s10783_s0 + $0x1ee0] sm:$0x7f] }
 0x23f   :  { %3763 = vst [vmem:[%s10784_s1 + $0x3c8] sm:$0xf] %v3762_v52  ;;  %v2269_v58 = vadd.f32 %v1843_v48, %v1842_v47  ;;  %v1845_v59 = vadd.f32 %v995_v56, %v993_v50  ;;  %v997_v61 = vld [vmem:[%s10783_s0 + $0x1ee8] sm:$0x7f]  ;;  %v3770_v0 = vld [vmem:[%s10784_s1 + $0x3d4] sm:$0xf] }
 0x240   :  { %v3765_v62 = vsel %vm4104_vm2, %v2939_v53, %v3764_v45  ;;  %v2940_v63 = vpack.c.bf16 %v2604_v54, %v2604_v54  ;;  %v998_v1 = vld [vmem:[%s10783_s0 + $0x1ef0] sm:$0x7f]  ;;  %v999_v2 = vld [vmem:[%s10783_s0 + $0x1ef8] sm:$0x7f]  ;;  %v1000_v7 = vld [vmem:[%s10783_s0 + $0x1f00] sm:$0x7f] }
 0x241   :  { %3766 = vst [vmem:[%s10784_s1 + $0x3cc] sm:$0xf] %v3765_v62  ;;  %v2605_v3 = vmul.f32 0.25, %v2269_v58  ;;  %v2270_v4 = vadd.f32 %v1845_v59, %v1844_v57  ;;  %v1846_v5 = vadd.f32 %v998_v1, %v996_v60  ;;  %v1847_v6 = vadd.f32 %v999_v2, %v997_v61  ;;  %v1001_v9 = vld [vmem:[%s10783_s0 + $0x1f08] sm:$0x7f] }
 0x242   :  { %v3768_v8 = vsel %vm4104_vm2, %v2940_v63, %v3767_v55  ;;  %v1002_v10 = vld [vmem:[%s10783_s0 + $0x1f10] sm:$0x7f]  ;;  %v1003_v11 = vld [vmem:[%s10783_s0 + $0x1f18] sm:$0x7f]  ;;  %v1004_v18 = vld [vmem:[%s10783_s0 + $0x1f20] sm:$0x7f] }
 0x243   :  { %3769 = vst [vmem:[%s10784_s1 + $0x3d0] sm:$0xf] %v3768_v8  ;;  %v2941_v12 = vpack.c.bf16 %v2605_v3, %v2605_v3  ;;  %v2606_v13 = vmul.f32 0.25, %v2270_v4  ;;  %v3773_v14 = vld [vmem:[%s10784_s1 + $0x3d8] sm:$0xf]  ;;  %v2271_v15 = vadd.f32 %v1847_v6, %v1846_v5  ;;  %v1848_v16 = vadd.f32 %v1002_v10, %v1000_v7 }
 0x244   :  { %v1849_v17 = vadd.f32 %v1003_v11, %v1001_v9  ;;  %v1005_v19 = vld [vmem:[%s10783_s0 + $0x1f28] sm:$0x7f]  ;;  %v1006_v20 = vld [vmem:[%s10783_s0 + $0x1f30] sm:$0x7f]  ;;  %v3776_v25 = vld [vmem:[%s10784_s1 + $0x3dc] sm:$0xf] }
 0x245   :  { %v3771_v21 = vsel %vm4104_vm2, %v2941_v12, %v3770_v0  ;;  %v2942_v22 = vpack.c.bf16 %v2606_v13, %v2606_v13  ;;  %v2607_v24 = vmul.f32 0.25, %v2271_v15  ;;  %v1007_v26 = vld [vmem:[%s10783_s0 + $0x1f38] sm:$0x7f]  ;;  %v1850_v27 = vadd.f32 %v1006_v20, %v1004_v18  ;;  %v1008_v30 = vld [vmem:[%s10783_s0 + $0x1f40] sm:$0x7f] }
 0x246   :  { %3772 = vst [vmem:[%s10784_s1 + $0x3d4] sm:$0xf] %v3771_v21  ;;  %v2272_v28 = vadd.f32 %v1849_v17, %v1848_v16  ;;  %v1851_v29 = vadd.f32 %v1007_v26, %v1005_v19  ;;  %v1009_v31 = vld [vmem:[%s10783_s0 + $0x1f48] sm:$0x7f]  ;;  %v3779_v34 = vld [vmem:[%s10784_s1 + $0x3e0] sm:$0xf] }
 0x247   :  { %v3774_v32 = vsel %vm4104_vm2, %v2942_v22, %v3773_v14  ;;  %v2943_v33 = vpack.c.bf16 %v2607_v24, %v2607_v24  ;;  %v1010_v35 = vld [vmem:[%s10783_s0 + $0x1f50] sm:$0x7f]  ;;  %v1011_v36 = vld [vmem:[%s10783_s0 + $0x1f58] sm:$0x7f]  ;;  %v1012_v41 = vld [vmem:[%s10783_s0 + $0x1f60] sm:$0x7f] }
 0x248   :  { %3775 = vst [vmem:[%s10784_s1 + $0x3d8] sm:$0xf] %v3774_v32  ;;  %v2608_v37 = vmul.f32 0.25, %v2272_v28  ;;  %v2273_v38 = vadd.f32 %v1851_v29, %v1850_v27  ;;  %v1852_v39 = vadd.f32 %v1010_v35, %v1008_v30  ;;  %v1853_v40 = vadd.f32 %v1011_v36, %v1009_v31  ;;  %v1013_v43 = vld [vmem:[%s10783_s0 + $0x1f68] sm:$0x7f] }
 0x249   :  { %v3777_v42 = vsel %vm4104_vm2, %v2943_v33, %v3776_v25  ;;  %v1014_v44 = vld [vmem:[%s10783_s0 + $0x1f70] sm:$0x7f]  ;;  %v1015_v45 = vld [vmem:[%s10783_s0 + $0x1f78] sm:$0x7f]  ;;  %v3782_v48 = vld [vmem:[%s10784_s1 + $0x3e4] sm:$0xf] }
 0x24a   :  { %3778 = vst [vmem:[%s10784_s1 + $0x3dc] sm:$0xf] %v3777_v42  ;;  %v2944_v46 = vpack.c.bf16 %v2608_v37, %v2608_v37  ;;  %v2609_v47 = vmul.f32 0.25, %v2273_v38  ;;  %v2274_v49 = vadd.f32 %v1853_v40, %v1852_v39  ;;  %v1854_v50 = vadd.f32 %v1014_v44, %v1012_v41  ;;  %v1016_v52 = vld [vmem:[%s10783_s0 + $0x1f80] sm:$0x7f] }
 0x24b   :  { %v1855_v51 = vadd.f32 %v1015_v45, %v1013_v43  ;;  %v1017_v53 = vld [vmem:[%s10783_s0 + $0x1f88] sm:$0x7f]  ;;  %v1018_v54 = vld [vmem:[%s10783_s0 + $0x1f90] sm:$0x7f]  ;;  %v1019_v59 = vld [vmem:[%s10783_s0 + $0x1f98] sm:$0x7f] }
 0x24c   :  { %v3780_v55 = vsel %vm4104_vm2, %v2944_v46, %v3779_v34  ;;  %v2945_v56 = vpack.c.bf16 %v2609_v47, %v2609_v47  ;;  %v2610_v57 = vmul.f32 0.25, %v2274_v49  ;;  %v3785_v58 = vld [vmem:[%s10784_s1 + $0x3e8] sm:$0xf]  ;;  %v1856_v60 = vadd.f32 %v1018_v54, %v1016_v52  ;;  %v1020_v63 = vld [vmem:[%s10783_s0 + $0x1fa0] sm:$0x7f] }
 0x24d   :  { %3781 = vst [vmem:[%s10784_s1 + $0x3e0] sm:$0xf] %v3780_v55  ;;  %v2275_v61 = vadd.f32 %v1855_v51, %v1854_v50  ;;  %v1857_v62 = vadd.f32 %v1019_v59, %v1017_v53  ;;  %v1021_v0 = vld [vmem:[%s10783_s0 + $0x1fa8] sm:$0x7f]  ;;  %v1022_v4 = vld [vmem:[%s10783_s0 + $0x1fb0] sm:$0x7f] }
 0x24e   :  { %v3783_v1 = vsel %vm4104_vm2, %v2945_v56, %v3782_v48  ;;  %v2946_v2 = vpack.c.bf16 %v2610_v57, %v2610_v57  ;;  %v3788_v3 = vld [vmem:[%s10784_s1 + $0x3ec] sm:$0xf]  ;;  %v1023_v5 = vld [vmem:[%s10783_s0 + $0x1fb8] sm:$0x7f]  ;;  %v1858_v8 = vadd.f32 %v1022_v4, %v1020_v63  ;;  %v1024_v10 = vld [vmem:[%s10783_s0 + $0x1fc0] sm:$0x7f] }
 0x24f   :  { %3784 = vst [vmem:[%s10784_s1 + $0x3e4] sm:$0xf] %v3783_v1  ;;  %v2611_v6 = vmul.f32 0.25, %v2275_v61  ;;  %v2276_v7 = vadd.f32 %v1857_v62, %v1856_v60  ;;  %v1859_v9 = vadd.f32 %v1023_v5, %v1021_v0  ;;  %v1025_v12 = vld [vmem:[%s10783_s0 + $0x1fc8] sm:$0x7f] }
 0x250   :  { %v3786_v11 = vsel %vm4104_vm2, %v2946_v2, %v3785_v58  ;;  %v1026_v13 = vld [vmem:[%s10783_s0 + $0x1fd0] sm:$0x7f]  ;;  %v1027_v14 = vld [vmem:[%s10783_s0 + $0x1fd8] sm:$0x7f]  ;;  %v1028_v21 = vld [vmem:[%s10783_s0 + $0x1fe0] sm:$0x7f] }
 0x251   :  { %3787 = vst [vmem:[%s10784_s1 + $0x3e8] sm:$0xf] %v3786_v11  ;;  %v2947_v15 = vpack.c.bf16 %v2611_v6, %v2611_v6  ;;  %v2612_v16 = vmul.f32 0.25, %v2276_v7  ;;  %v3791_v17 = vld [vmem:[%s10784_s1 + $0x3f0] sm:$0xf]  ;;  %v2277_v18 = vadd.f32 %v1859_v9, %v1858_v8  ;;  %v1860_v19 = vadd.f32 %v1026_v13, %v1024_v10 }
 0x252   :  { %v1861_v20 = vadd.f32 %v1027_v14, %v1025_v12  ;;  %v1029_v22 = vld [vmem:[%s10783_s0 + $0x1fe8] sm:$0x7f]  ;;  %v1030_v24 = vld [vmem:[%s10783_s0 + $0x1ff0] sm:$0x7f]  ;;  %v1031_v29 = vld [vmem:[%s10783_s0 + $0x1ff8] sm:$0x7f] }
 0x253   :  { %v3789_v25 = vsel %vm4104_vm2, %v2947_v15, %v3788_v3  ;;  %v2948_v26 = vpack.c.bf16 %v2612_v16, %v2612_v16  ;;  %v2613_v27 = vmul.f32 0.25, %v2277_v18  ;;  %v3794_v28 = vld [vmem:[%s10784_s1 + $0x3f4] sm:$0xf]  ;;  %v1862_v30 = vadd.f32 %v1030_v24, %v1028_v21  ;;  %v1032_v33 = vld [vmem:[%s10783_s0 + $0x2000] sm:$0x7f] }
 0x254   :  { %3790 = vst [vmem:[%s10784_s1 + $0x3ec] sm:$0xf] %v3789_v25  ;;  %v2278_v31 = vadd.f32 %v1861_v20, %v1860_v19  ;;  %v1863_v32 = vadd.f32 %v1031_v29, %v1029_v22  ;;  %v1033_v34 = vld [vmem:[%s10783_s0 + $0x2008] sm:$0x7f]  ;;  %v3797_v37 = vld [vmem:[%s10784_s1 + $0x3f8] sm:$0xf] }
 0x255   :  { %v3792_v35 = vsel %vm4104_vm2, %v2948_v26, %v3791_v17  ;;  %v2949_v36 = vpack.c.bf16 %v2613_v27, %v2613_v27  ;;  %v1034_v38 = vld [vmem:[%s10783_s0 + $0x2010] sm:$0x7f]  ;;  %v1035_v39 = vld [vmem:[%s10783_s0 + $0x2018] sm:$0x7f]  ;;  %v1036_v44 = vld [vmem:[%s10783_s0 + $0x2020] sm:$0x7f] }
 0x256   :  { %3793 = vst [vmem:[%s10784_s1 + $0x3f0] sm:$0xf] %v3792_v35  ;;  %v2614_v40 = vmul.f32 0.25, %v2278_v31  ;;  %v2279_v41 = vadd.f32 %v1863_v32, %v1862_v30  ;;  %v1864_v42 = vadd.f32 %v1034_v38, %v1032_v33  ;;  %v1865_v43 = vadd.f32 %v1035_v39, %v1033_v34  ;;  %v1037_v46 = vld [vmem:[%s10783_s0 + $0x2028] sm:$0x7f] }
 0x257   :  { %v3795_v45 = vsel %vm4104_vm2, %v2949_v36, %v3794_v28  ;;  %v1038_v47 = vld [vmem:[%s10783_s0 + $0x2030] sm:$0x7f]  ;;  %v1039_v48 = vld [vmem:[%s10783_s0 + $0x2038] sm:$0x7f]  ;;  %v1040_v55 = vld [vmem:[%s10783_s0 + $0x2040] sm:$0x7f] }
 0x258   :  { %3796 = vst [vmem:[%s10784_s1 + $0x3f4] sm:$0xf] %v3795_v45  ;;  %v2950_v49 = vpack.c.bf16 %v2614_v40, %v2614_v40  ;;  %v2615_v50 = vmul.f32 0.25, %v2279_v41  ;;  %v3800_v51 = vld [vmem:[%s10784_s1 + $0x3fc] sm:$0xf]  ;;  %v2280_v52 = vadd.f32 %v1865_v43, %v1864_v42  ;;  %v1866_v53 = vadd.f32 %v1038_v47, %v1036_v44 }
 0x259   :  { %v1867_v54 = vadd.f32 %v1039_v48, %v1037_v46  ;;  %v1041_v56 = vld [vmem:[%s10783_s0 + $0x2048] sm:$0x7f]  ;;  %v1042_v57 = vld [vmem:[%s10783_s0 + $0x2050] sm:$0x7f]  ;;  %v3803_v61 = vld [vmem:[%s10784_s1 + $0x400] sm:$0xf] }
 0x25a   :  { %v3798_v58 = vsel %vm4104_vm2, %v2950_v49, %v3797_v37  ;;  %v2951_v59 = vpack.c.bf16 %v2615_v50, %v2615_v50  ;;  %v2616_v60 = vmul.f32 0.25, %v2280_v52  ;;  %v1043_v62 = vld [vmem:[%s10783_s0 + $0x2058] sm:$0x7f]  ;;  %v1868_v63 = vadd.f32 %v1042_v57, %v1040_v55  ;;  %v1044_v2 = vld [vmem:[%s10783_s0 + $0x2060] sm:$0x7f] }
 0x25b   :  { %3799 = vst [vmem:[%s10784_s1 + $0x3f8] sm:$0xf] %v3798_v58  ;;  %v2281_v0 = vadd.f32 %v1867_v54, %v1866_v53  ;;  %v1869_v1 = vadd.f32 %v1043_v62, %v1041_v56  ;;  %v1045_v3 = vld [vmem:[%s10783_s0 + $0x2068] sm:$0x7f]  ;;  %v3806_v6 = vld [vmem:[%s10784_s1 + $0x404] sm:$0xf] }
 0x25c   :  { %v3801_v4 = vsel %vm4104_vm2, %v2951_v59, %v3800_v51  ;;  %v2952_v5 = vpack.c.bf16 %v2616_v60, %v2616_v60  ;;  %v1046_v7 = vld [vmem:[%s10783_s0 + $0x2070] sm:$0x7f]  ;;  %v1047_v8 = vld [vmem:[%s10783_s0 + $0x2078] sm:$0x7f]  ;;  %v1048_v13 = vld [vmem:[%s10783_s0 + $0x2080] sm:$0x7f] }
 0x25d   :  { %3802 = vst [vmem:[%s10784_s1 + $0x3fc] sm:$0xf] %v3801_v4  ;;  %v2617_v9 = vmul.f32 0.25, %v2281_v0  ;;  %v2282_v10 = vadd.f32 %v1869_v1, %v1868_v63  ;;  %v1870_v11 = vadd.f32 %v1046_v7, %v1044_v2  ;;  %v1871_v12 = vadd.f32 %v1047_v8, %v1045_v3  ;;  %v1049_v15 = vld [vmem:[%s10783_s0 + $0x2088] sm:$0x7f] }
 0x25e   :  { %v3804_v14 = vsel %vm4104_vm2, %v2952_v5, %v3803_v61  ;;  %v1050_v16 = vld [vmem:[%s10783_s0 + $0x2090] sm:$0x7f]  ;;  %v1051_v17 = vld [vmem:[%s10783_s0 + $0x2098] sm:$0x7f]  ;;  %v3809_v20 = vld [vmem:[%s10784_s1 + $0x408] sm:$0xf] }
 0x25f   :  { %3805 = vst [vmem:[%s10784_s1 + $0x400] sm:$0xf] %v3804_v14  ;;  %v2953_v18 = vpack.c.bf16 %v2617_v9, %v2617_v9  ;;  %v2618_v19 = vmul.f32 0.25, %v2282_v10  ;;  %v2283_v21 = vadd.f32 %v1871_v12, %v1870_v11  ;;  %v1872_v22 = vadd.f32 %v1050_v16, %v1048_v13  ;;  %v1052_v25 = vld [vmem:[%s10783_s0 + $0x20a0] sm:$0x7f] }
 0x260   :  { %v1873_v24 = vadd.f32 %v1051_v17, %v1049_v15  ;;  %v1053_v26 = vld [vmem:[%s10783_s0 + $0x20a8] sm:$0x7f]  ;;  %v1054_v27 = vld [vmem:[%s10783_s0 + $0x20b0] sm:$0x7f]  ;;  %v1055_v32 = vld [vmem:[%s10783_s0 + $0x20b8] sm:$0x7f] }
 0x261   :  { %v3807_v28 = vsel %vm4104_vm2, %v2953_v18, %v3806_v6  ;;  %v2954_v29 = vpack.c.bf16 %v2618_v19, %v2618_v19  ;;  %v2619_v30 = vmul.f32 0.25, %v2283_v21  ;;  %v3812_v31 = vld [vmem:[%s10784_s1 + $0x40c] sm:$0xf]  ;;  %v1874_v33 = vadd.f32 %v1054_v27, %v1052_v25  ;;  %v1056_v36 = vld [vmem:[%s10783_s0 + $0x20c0] sm:$0x7f] }
 0x262   :  { %3808 = vst [vmem:[%s10784_s1 + $0x404] sm:$0xf] %v3807_v28  ;;  %v2284_v34 = vadd.f32 %v1873_v24, %v1872_v22  ;;  %v1875_v35 = vadd.f32 %v1055_v32, %v1053_v26  ;;  %v1057_v37 = vld [vmem:[%s10783_s0 + $0x20c8] sm:$0x7f]  ;;  %v3815_v40 = vld [vmem:[%s10784_s1 + $0x410] sm:$0xf] }
 0x263   :  { %v3810_v38 = vsel %vm4104_vm2, %v2954_v29, %v3809_v20  ;;  %v2955_v39 = vpack.c.bf16 %v2619_v30, %v2619_v30  ;;  %v1058_v41 = vld [vmem:[%s10783_s0 + $0x20d0] sm:$0x7f]  ;;  %v1059_v42 = vld [vmem:[%s10783_s0 + $0x20d8] sm:$0x7f]  ;;  %v1060_v47 = vld [vmem:[%s10783_s0 + $0x20e0] sm:$0x7f] }
 0x264   :  { %3811 = vst [vmem:[%s10784_s1 + $0x408] sm:$0xf] %v3810_v38  ;;  %v2620_v43 = vmul.f32 0.25, %v2284_v34  ;;  %v2285_v44 = vadd.f32 %v1875_v35, %v1874_v33  ;;  %v1876_v45 = vadd.f32 %v1058_v41, %v1056_v36  ;;  %v1877_v46 = vadd.f32 %v1059_v42, %v1057_v37  ;;  %v1061_v49 = vld [vmem:[%s10783_s0 + $0x20e8] sm:$0x7f] }
 0x265   :  { %v3813_v48 = vsel %vm4104_vm2, %v2955_v39, %v3812_v31  ;;  %v1062_v50 = vld [vmem:[%s10783_s0 + $0x20f0] sm:$0x7f]  ;;  %v1063_v51 = vld [vmem:[%s10783_s0 + $0x20f8] sm:$0x7f]  ;;  %v1064_v58 = vld [vmem:[%s10783_s0 + $0x2100] sm:$0x7f] }
 0x266   :  { %3814 = vst [vmem:[%s10784_s1 + $0x40c] sm:$0xf] %v3813_v48  ;;  %v2956_v52 = vpack.c.bf16 %v2620_v43, %v2620_v43  ;;  %v2621_v53 = vmul.f32 0.25, %v2285_v44  ;;  %v3818_v54 = vld [vmem:[%s10784_s1 + $0x414] sm:$0xf]  ;;  %v2286_v55 = vadd.f32 %v1877_v46, %v1876_v45  ;;  %v1878_v56 = vadd.f32 %v1062_v50, %v1060_v47 }
 0x267   :  { %v1879_v57 = vadd.f32 %v1063_v51, %v1061_v49  ;;  %v1065_v59 = vld [vmem:[%s10783_s0 + $0x2108] sm:$0x7f]  ;;  %v1066_v60 = vld [vmem:[%s10783_s0 + $0x2110] sm:$0x7f]  ;;  %v3821_v0 = vld [vmem:[%s10784_s1 + $0x418] sm:$0xf] }
 0x268   :  { %v3816_v61 = vsel %vm4104_vm2, %v2956_v52, %v3815_v40  ;;  %v2957_v62 = vpack.c.bf16 %v2621_v53, %v2621_v53  ;;  %v2622_v63 = vmul.f32 0.25, %v2286_v55  ;;  %v1067_v1 = vld [vmem:[%s10783_s0 + $0x2118] sm:$0x7f]  ;;  %v1880_v2 = vadd.f32 %v1066_v60, %v1064_v58  ;;  %v1068_v5 = vld [vmem:[%s10783_s0 + $0x2120] sm:$0x7f] }
 0x269   :  { %3817 = vst [vmem:[%s10784_s1 + $0x410] sm:$0xf] %v3816_v61  ;;  %v2287_v3 = vadd.f32 %v1879_v57, %v1878_v56  ;;  %v1881_v4 = vadd.f32 %v1067_v1, %v1065_v59  ;;  %v1069_v6 = vld [vmem:[%s10783_s0 + $0x2128] sm:$0x7f]  ;;  %v3824_v9 = vld [vmem:[%s10784_s1 + $0x41c] sm:$0xf] }
 0x26a   :  { %v3819_v7 = vsel %vm4104_vm2, %v2957_v62, %v3818_v54  ;;  %v2958_v8 = vpack.c.bf16 %v2622_v63, %v2622_v63  ;;  %v1070_v10 = vld [vmem:[%s10783_s0 + $0x2130] sm:$0x7f]  ;;  %v1071_v11 = vld [vmem:[%s10783_s0 + $0x2138] sm:$0x7f]  ;;  %v1072_v16 = vld [vmem:[%s10783_s0 + $0x2140] sm:$0x7f] }
 0x26b   :  { %3820 = vst [vmem:[%s10784_s1 + $0x414] sm:$0xf] %v3819_v7  ;;  %v2623_v12 = vmul.f32 0.25, %v2287_v3  ;;  %v2288_v13 = vadd.f32 %v1881_v4, %v1880_v2  ;;  %v1882_v14 = vadd.f32 %v1070_v10, %v1068_v5  ;;  %v1883_v15 = vadd.f32 %v1071_v11, %v1069_v6  ;;  %v1073_v18 = vld [vmem:[%s10783_s0 + $0x2148] sm:$0x7f] }
 0x26c   :  { %v3822_v17 = vsel %vm4104_vm2, %v2958_v8, %v3821_v0  ;;  %v1074_v19 = vld [vmem:[%s10783_s0 + $0x2150] sm:$0x7f]  ;;  %v1075_v20 = vld [vmem:[%s10783_s0 + $0x2158] sm:$0x7f]  ;;  %v3827_v24 = vld [vmem:[%s10784_s1 + $0x420] sm:$0xf] }
 0x26d   :  { %3823 = vst [vmem:[%s10784_s1 + $0x418] sm:$0xf] %v3822_v17  ;;  %v2959_v21 = vpack.c.bf16 %v2623_v12, %v2623_v12  ;;  %v2624_v22 = vmul.f32 0.25, %v2288_v13  ;;  %v2289_v25 = vadd.f32 %v1883_v15, %v1882_v14  ;;  %v1884_v26 = vadd.f32 %v1074_v19, %v1072_v16  ;;  %v1076_v28 = vld [vmem:[%s10783_s0 + $0x2160] sm:$0x7f] }
 0x26e   :  { %v1885_v27 = vadd.f32 %v1075_v20, %v1073_v18  ;;  %v1077_v29 = vld [vmem:[%s10783_s0 + $0x2168] sm:$0x7f]  ;;  %v1078_v30 = vld [vmem:[%s10783_s0 + $0x2170] sm:$0x7f]  ;;  %v3830_v34 = vld [vmem:[%s10784_s1 + $0x424] sm:$0xf] }
 0x26f   :  { %v3825_v31 = vsel %vm4104_vm2, %v2959_v21, %v3824_v9  ;;  %v2960_v32 = vpack.c.bf16 %v2624_v22, %v2624_v22  ;;  %v2625_v33 = vmul.f32 0.25, %v2289_v25  ;;  %v1079_v35 = vld [vmem:[%s10783_s0 + $0x2178] sm:$0x7f]  ;;  %v1886_v36 = vadd.f32 %v1078_v30, %v1076_v28  ;;  %v1080_v39 = vld [vmem:[%s10783_s0 + $0x2180] sm:$0x7f] }
 0x270   :  { %3826 = vst [vmem:[%s10784_s1 + $0x41c] sm:$0xf] %v3825_v31  ;;  %v2290_v37 = vadd.f32 %v1885_v27, %v1884_v26  ;;  %v1887_v38 = vadd.f32 %v1079_v35, %v1077_v29  ;;  %v1081_v40 = vld [vmem:[%s10783_s0 + $0x2188] sm:$0x7f]  ;;  %v1082_v44 = vld [vmem:[%s10783_s0 + $0x2190] sm:$0x7f] }
 0x271   :  { %v3828_v41 = vsel %vm4104_vm2, %v2960_v32, %v3827_v24  ;;  %v2961_v42 = vpack.c.bf16 %v2625_v33, %v2625_v33  ;;  %v3833_v43 = vld [vmem:[%s10784_s1 + $0x428] sm:$0xf]  ;;  %v1083_v45 = vld [vmem:[%s10783_s0 + $0x2198] sm:$0x7f]  ;;  %v1888_v48 = vadd.f32 %v1082_v44, %v1080_v39  ;;  %v1084_v50 = vld [vmem:[%s10783_s0 + $0x21a0] sm:$0x7f] }
 0x272   :  { %3829 = vst [vmem:[%s10784_s1 + $0x420] sm:$0xf] %v3828_v41  ;;  %v2626_v46 = vmul.f32 0.25, %v2290_v37  ;;  %v2291_v47 = vadd.f32 %v1887_v38, %v1886_v36  ;;  %v1889_v49 = vadd.f32 %v1083_v45, %v1081_v40  ;;  %v1085_v52 = vld [vmem:[%s10783_s0 + $0x21a8] sm:$0x7f] }
 0x273   :  { %v3831_v51 = vsel %vm4104_vm2, %v2961_v42, %v3830_v34  ;;  %v1086_v53 = vld [vmem:[%s10783_s0 + $0x21b0] sm:$0x7f]  ;;  %v1087_v54 = vld [vmem:[%s10783_s0 + $0x21b8] sm:$0x7f]  ;;  %v3836_v57 = vld [vmem:[%s10784_s1 + $0x42c] sm:$0xf] }
 0x274   :  { %3832 = vst [vmem:[%s10784_s1 + $0x424] sm:$0xf] %v3831_v51  ;;  %v2962_v55 = vpack.c.bf16 %v2626_v46, %v2626_v46  ;;  %v2627_v56 = vmul.f32 0.25, %v2291_v47  ;;  %v2292_v58 = vadd.f32 %v1889_v49, %v1888_v48  ;;  %v1890_v59 = vadd.f32 %v1086_v53, %v1084_v50  ;;  %v1088_v61 = vld [vmem:[%s10783_s0 + $0x21c0] sm:$0x7f] }
 0x275   :  { %v1891_v60 = vadd.f32 %v1087_v54, %v1085_v52  ;;  %v1089_v62 = vld [vmem:[%s10783_s0 + $0x21c8] sm:$0x7f]  ;;  %v1090_v63 = vld [vmem:[%s10783_s0 + $0x21d0] sm:$0x7f]  ;;  %v1091_v4 = vld [vmem:[%s10783_s0 + $0x21d8] sm:$0x7f] }
 0x276   :  { %v3834_v0 = vsel %vm4104_vm2, %v2962_v55, %v3833_v43  ;;  %v2963_v1 = vpack.c.bf16 %v2627_v56, %v2627_v56  ;;  %v2628_v2 = vmul.f32 0.25, %v2292_v58  ;;  %v3839_v3 = vld [vmem:[%s10784_s1 + $0x430] sm:$0xf]  ;;  %v1892_v5 = vadd.f32 %v1090_v63, %v1088_v61  ;;  %v1092_v8 = vld [vmem:[%s10783_s0 + $0x21e0] sm:$0x7f] }
 0x277   :  { %3835 = vst [vmem:[%s10784_s1 + $0x428] sm:$0xf] %v3834_v0  ;;  %v2293_v6 = vadd.f32 %v1891_v60, %v1890_v59  ;;  %v1893_v7 = vadd.f32 %v1091_v4, %v1089_v62  ;;  %v1093_v9 = vld [vmem:[%s10783_s0 + $0x21e8] sm:$0x7f]  ;;  %v3842_v12 = vld [vmem:[%s10784_s1 + $0x434] sm:$0xf] }
 0x278   :  { %v3837_v10 = vsel %vm4104_vm2, %v2963_v1, %v3836_v57  ;;  %v2964_v11 = vpack.c.bf16 %v2628_v2, %v2628_v2  ;;  %v1094_v13 = vld [vmem:[%s10783_s0 + $0x21f0] sm:$0x7f]  ;;  %v1095_v14 = vld [vmem:[%s10783_s0 + $0x21f8] sm:$0x7f]  ;;  %v1096_v19 = vld [vmem:[%s10783_s0 + $0x2200] sm:$0x7f] }
 0x279   :  { %3838 = vst [vmem:[%s10784_s1 + $0x42c] sm:$0xf] %v3837_v10  ;;  %v2629_v15 = vmul.f32 0.25, %v2293_v6  ;;  %v2294_v16 = vadd.f32 %v1893_v7, %v1892_v5  ;;  %v1894_v17 = vadd.f32 %v1094_v13, %v1092_v8  ;;  %v1895_v18 = vadd.f32 %v1095_v14, %v1093_v9  ;;  %v1097_v21 = vld [vmem:[%s10783_s0 + $0x2208] sm:$0x7f] }
 0x27a   :  { %v3840_v20 = vsel %vm4104_vm2, %v2964_v11, %v3839_v3  ;;  %v1098_v22 = vld [vmem:[%s10783_s0 + $0x2210] sm:$0x7f]  ;;  %v1099_v24 = vld [vmem:[%s10783_s0 + $0x2218] sm:$0x7f]  ;;  %v1100_v31 = vld [vmem:[%s10783_s0 + $0x2220] sm:$0x7f] }
 0x27b   :  { %3841 = vst [vmem:[%s10784_s1 + $0x430] sm:$0xf] %v3840_v20  ;;  %v2965_v25 = vpack.c.bf16 %v2629_v15, %v2629_v15  ;;  %v2630_v26 = vmul.f32 0.25, %v2294_v16  ;;  %v3845_v27 = vld [vmem:[%s10784_s1 + $0x438] sm:$0xf]  ;;  %v2295_v28 = vadd.f32 %v1895_v18, %v1894_v17  ;;  %v1896_v29 = vadd.f32 %v1098_v22, %v1096_v19 }
 0x27c   :  { %v1897_v30 = vadd.f32 %v1099_v24, %v1097_v21  ;;  %v1101_v32 = vld [vmem:[%s10783_s0 + $0x2228] sm:$0x7f]  ;;  %v1102_v33 = vld [vmem:[%s10783_s0 + $0x2230] sm:$0x7f]  ;;  %v3848_v37 = vld [vmem:[%s10784_s1 + $0x43c] sm:$0xf] }
 0x27d   :  { %v3843_v34 = vsel %vm4104_vm2, %v2965_v25, %v3842_v12  ;;  %v2966_v35 = vpack.c.bf16 %v2630_v26, %v2630_v26  ;;  %v2631_v36 = vmul.f32 0.25, %v2295_v28  ;;  %v1103_v38 = vld [vmem:[%s10783_s0 + $0x2238] sm:$0x7f]  ;;  %v1898_v39 = vadd.f32 %v1102_v33, %v1100_v31  ;;  %v1104_v42 = vld [vmem:[%s10783_s0 + $0x2240] sm:$0x7f] }
 0x27e   :  { %3844 = vst [vmem:[%s10784_s1 + $0x434] sm:$0xf] %v3843_v34  ;;  %v2296_v40 = vadd.f32 %v1897_v30, %v1896_v29  ;;  %v1899_v41 = vadd.f32 %v1103_v38, %v1101_v32  ;;  %v1105_v43 = vld [vmem:[%s10783_s0 + $0x2248] sm:$0x7f]  ;;  %v3851_v46 = vld [vmem:[%s10784_s1 + $0x440] sm:$0xf] }
 0x27f   :  { %v3846_v44 = vsel %vm4104_vm2, %v2966_v35, %v3845_v27  ;;  %v2967_v45 = vpack.c.bf16 %v2631_v36, %v2631_v36  ;;  %v1106_v47 = vld [vmem:[%s10783_s0 + $0x2250] sm:$0x7f]  ;;  %v1107_v48 = vld [vmem:[%s10783_s0 + $0x2258] sm:$0x7f]  ;;  %v1108_v53 = vld [vmem:[%s10783_s0 + $0x2260] sm:$0x7f] }
 0x280   :  { %3847 = vst [vmem:[%s10784_s1 + $0x438] sm:$0xf] %v3846_v44  ;;  %v2632_v49 = vmul.f32 0.25, %v2296_v40  ;;  %v2297_v50 = vadd.f32 %v1899_v41, %v1898_v39  ;;  %v1900_v51 = vadd.f32 %v1106_v47, %v1104_v42  ;;  %v1901_v52 = vadd.f32 %v1107_v48, %v1105_v43  ;;  %v1109_v55 = vld [vmem:[%s10783_s0 + $0x2268] sm:$0x7f] }
 0x281   :  { %v3849_v54 = vsel %vm4104_vm2, %v2967_v45, %v3848_v37  ;;  %v1110_v56 = vld [vmem:[%s10783_s0 + $0x2270] sm:$0x7f]  ;;  %v1111_v57 = vld [vmem:[%s10783_s0 + $0x2278] sm:$0x7f]  ;;  %v3854_v60 = vld [vmem:[%s10784_s1 + $0x444] sm:$0xf] }
 0x282   :  { %3850 = vst [vmem:[%s10784_s1 + $0x43c] sm:$0xf] %v3849_v54  ;;  %v2968_v58 = vpack.c.bf16 %v2632_v49, %v2632_v49  ;;  %v2633_v59 = vmul.f32 0.25, %v2297_v50  ;;  %v2298_v61 = vadd.f32 %v1901_v52, %v1900_v51  ;;  %v1902_v62 = vadd.f32 %v1110_v56, %v1108_v53  ;;  %v1112_v0 = vld [vmem:[%s10783_s0 + $0x2280] sm:$0x7f] }
 0x283   :  { %v1903_v63 = vadd.f32 %v1111_v57, %v1109_v55  ;;  %v1113_v1 = vld [vmem:[%s10783_s0 + $0x2288] sm:$0x7f]  ;;  %v1114_v2 = vld [vmem:[%s10783_s0 + $0x2290] sm:$0x7f]  ;;  %v1115_v7 = vld [vmem:[%s10783_s0 + $0x2298] sm:$0x7f] }
 0x284   :  { %v3852_v3 = vsel %vm4104_vm2, %v2968_v58, %v3851_v46  ;;  %v2969_v4 = vpack.c.bf16 %v2633_v59, %v2633_v59  ;;  %v2634_v5 = vmul.f32 0.25, %v2298_v61  ;;  %v3857_v6 = vld [vmem:[%s10784_s1 + $0x448] sm:$0xf]  ;;  %v1904_v8 = vadd.f32 %v1114_v2, %v1112_v0  ;;  %v1116_v11 = vld [vmem:[%s10783_s0 + $0x22a0] sm:$0x7f] }
 0x285   :  { %3853 = vst [vmem:[%s10784_s1 + $0x440] sm:$0xf] %v3852_v3  ;;  %v2299_v9 = vadd.f32 %v1903_v63, %v1902_v62  ;;  %v1905_v10 = vadd.f32 %v1115_v7, %v1113_v1  ;;  %v1117_v12 = vld [vmem:[%s10783_s0 + $0x22a8] sm:$0x7f]  ;;  %v1118_v16 = vld [vmem:[%s10783_s0 + $0x22b0] sm:$0x7f] }
 0x286   :  { %v3855_v13 = vsel %vm4104_vm2, %v2969_v4, %v3854_v60  ;;  %v2970_v14 = vpack.c.bf16 %v2634_v5, %v2634_v5  ;;  %v3860_v15 = vld [vmem:[%s10784_s1 + $0x44c] sm:$0xf]  ;;  %v1119_v17 = vld [vmem:[%s10783_s0 + $0x22b8] sm:$0x7f]  ;;  %v1906_v20 = vadd.f32 %v1118_v16, %v1116_v11  ;;  %v1120_v22 = vld [vmem:[%s10783_s0 + $0x22c0] sm:$0x7f] }
 0x287   :  { %3856 = vst [vmem:[%s10784_s1 + $0x444] sm:$0xf] %v3855_v13  ;;  %v2635_v18 = vmul.f32 0.25, %v2299_v9  ;;  %v2300_v19 = vadd.f32 %v1905_v10, %v1904_v8  ;;  %v1907_v21 = vadd.f32 %v1119_v17, %v1117_v12  ;;  %v1121_v25 = vld [vmem:[%s10783_s0 + $0x22c8] sm:$0x7f] }
 0x288   :  { %v3858_v24 = vsel %vm4104_vm2, %v2970_v14, %v3857_v6  ;;  %v1122_v26 = vld [vmem:[%s10783_s0 + $0x22d0] sm:$0x7f]  ;;  %v1123_v27 = vld [vmem:[%s10783_s0 + $0x22d8] sm:$0x7f]  ;;  %v1124_v34 = vld [vmem:[%s10783_s0 + $0x22e0] sm:$0x7f] }
 0x289   :  { %3859 = vst [vmem:[%s10784_s1 + $0x448] sm:$0xf] %v3858_v24  ;;  %v2971_v28 = vpack.c.bf16 %v2635_v18, %v2635_v18  ;;  %v2636_v29 = vmul.f32 0.25, %v2300_v19  ;;  %v3863_v30 = vld [vmem:[%s10784_s1 + $0x450] sm:$0xf]  ;;  %v2301_v31 = vadd.f32 %v1907_v21, %v1906_v20  ;;  %v1908_v32 = vadd.f32 %v1122_v26, %v1120_v22 }
 0x28a   :  { %v1909_v33 = vadd.f32 %v1123_v27, %v1121_v25  ;;  %v1125_v35 = vld [vmem:[%s10783_s0 + $0x22e8] sm:$0x7f]  ;;  %v1126_v36 = vld [vmem:[%s10783_s0 + $0x22f0] sm:$0x7f]  ;;  %v1127_v41 = vld [vmem:[%s10783_s0 + $0x22f8] sm:$0x7f] }
 0x28b   :  { %v3861_v37 = vsel %vm4104_vm2, %v2971_v28, %v3860_v15  ;;  %v2972_v38 = vpack.c.bf16 %v2636_v29, %v2636_v29  ;;  %v2637_v39 = vmul.f32 0.25, %v2301_v31  ;;  %v3866_v40 = vld [vmem:[%s10784_s1 + $0x454] sm:$0xf]  ;;  %v1910_v42 = vadd.f32 %v1126_v36, %v1124_v34  ;;  %v1128_v45 = vld [vmem:[%s10783_s0 + $0x2300] sm:$0x7f] }
 0x28c   :  { %3862 = vst [vmem:[%s10784_s1 + $0x44c] sm:$0xf] %v3861_v37  ;;  %v2302_v43 = vadd.f32 %v1909_v33, %v1908_v32  ;;  %v1911_v44 = vadd.f32 %v1127_v41, %v1125_v35  ;;  %v1129_v46 = vld [vmem:[%s10783_s0 + $0x2308] sm:$0x7f]  ;;  %v3869_v49 = vld [vmem:[%s10784_s1 + $0x458] sm:$0xf] }
 0x28d   :  { %v3864_v47 = vsel %vm4104_vm2, %v2972_v38, %v3863_v30  ;;  %v2973_v48 = vpack.c.bf16 %v2637_v39, %v2637_v39  ;;  %v1130_v50 = vld [vmem:[%s10783_s0 + $0x2310] sm:$0x7f]  ;;  %v1131_v51 = vld [vmem:[%s10783_s0 + $0x2318] sm:$0x7f]  ;;  %v1132_v56 = vld [vmem:[%s10783_s0 + $0x2320] sm:$0x7f] }
 0x28e   :  { %3865 = vst [vmem:[%s10784_s1 + $0x450] sm:$0xf] %v3864_v47  ;;  %v2638_v52 = vmul.f32 0.25, %v2302_v43  ;;  %v2303_v53 = vadd.f32 %v1911_v44, %v1910_v42  ;;  %v1912_v54 = vadd.f32 %v1130_v50, %v1128_v45  ;;  %v1913_v55 = vadd.f32 %v1131_v51, %v1129_v46  ;;  %v1133_v58 = vld [vmem:[%s10783_s0 + $0x2328] sm:$0x7f] }
 0x28f   :  { %v3867_v57 = vsel %vm4104_vm2, %v2973_v48, %v3866_v40  ;;  %v1134_v59 = vld [vmem:[%s10783_s0 + $0x2330] sm:$0x7f]  ;;  %v1135_v60 = vld [vmem:[%s10783_s0 + $0x2338] sm:$0x7f]  ;;  %v1136_v3 = vld [vmem:[%s10783_s0 + $0x2340] sm:$0x7f] }
 0x290   :  { %3868 = vst [vmem:[%s10784_s1 + $0x454] sm:$0xf] %v3867_v57  ;;  %v2974_v61 = vpack.c.bf16 %v2638_v52, %v2638_v52  ;;  %v2639_v62 = vmul.f32 0.25, %v2303_v53  ;;  %v3872_v63 = vld [vmem:[%s10784_s1 + $0x45c] sm:$0xf]  ;;  %v2304_v0 = vadd.f32 %v1913_v55, %v1912_v54  ;;  %v1914_v1 = vadd.f32 %v1134_v59, %v1132_v56 }
 0x291   :  { %v1915_v2 = vadd.f32 %v1135_v60, %v1133_v58  ;;  %v1137_v4 = vld [vmem:[%s10783_s0 + $0x2348] sm:$0x7f]  ;;  %v1138_v5 = vld [vmem:[%s10783_s0 + $0x2350] sm:$0x7f]  ;;  %v3875_v9 = vld [vmem:[%s10784_s1 + $0x460] sm:$0xf] }
 0x292   :  { %v3870_v6 = vsel %vm4104_vm2, %v2974_v61, %v3869_v49  ;;  %v2975_v7 = vpack.c.bf16 %v2639_v62, %v2639_v62  ;;  %v2640_v8 = vmul.f32 0.25, %v2304_v0  ;;  %v1139_v10 = vld [vmem:[%s10783_s0 + $0x2358] sm:$0x7f]  ;;  %v1916_v11 = vadd.f32 %v1138_v5, %v1136_v3  ;;  %v1140_v14 = vld [vmem:[%s10783_s0 + $0x2360] sm:$0x7f] }
 0x293   :  { %3871 = vst [vmem:[%s10784_s1 + $0x458] sm:$0xf] %v3870_v6  ;;  %v2305_v12 = vadd.f32 %v1915_v2, %v1914_v1  ;;  %v1917_v13 = vadd.f32 %v1139_v10, %v1137_v4  ;;  %v1141_v15 = vld [vmem:[%s10783_s0 + $0x2368] sm:$0x7f]  ;;  %v3878_v18 = vld [vmem:[%s10784_s1 + $0x464] sm:$0xf] }
 0x294   :  { %v3873_v16 = vsel %vm4104_vm2, %v2975_v7, %v3872_v63  ;;  %v2976_v17 = vpack.c.bf16 %v2640_v8, %v2640_v8  ;;  %v1142_v19 = vld [vmem:[%s10783_s0 + $0x2370] sm:$0x7f]  ;;  %v1143_v20 = vld [vmem:[%s10783_s0 + $0x2378] sm:$0x7f]  ;;  %v1144_v26 = vld [vmem:[%s10783_s0 + $0x2380] sm:$0x7f] }
 0x295   :  { %3874 = vst [vmem:[%s10784_s1 + $0x45c] sm:$0xf] %v3873_v16  ;;  %v2641_v21 = vmul.f32 0.25, %v2305_v12  ;;  %v2306_v22 = vadd.f32 %v1917_v13, %v1916_v11  ;;  %v1918_v24 = vadd.f32 %v1142_v19, %v1140_v14  ;;  %v1919_v25 = vadd.f32 %v1143_v20, %v1141_v15  ;;  %v1145_v28 = vld [vmem:[%s10783_s0 + $0x2388] sm:$0x7f] }
 0x296   :  { %v3876_v27 = vsel %vm4104_vm2, %v2976_v17, %v3875_v9  ;;  %v1146_v29 = vld [vmem:[%s10783_s0 + $0x2390] sm:$0x7f]  ;;  %v1147_v30 = vld [vmem:[%s10783_s0 + $0x2398] sm:$0x7f]  ;;  %v3881_v33 = vld [vmem:[%s10784_s1 + $0x468] sm:$0xf] }
 0x297   :  { %3877 = vst [vmem:[%s10784_s1 + $0x460] sm:$0xf] %v3876_v27  ;;  %v2977_v31 = vpack.c.bf16 %v2641_v21, %v2641_v21  ;;  %v2642_v32 = vmul.f32 0.25, %v2306_v22  ;;  %v2307_v34 = vadd.f32 %v1919_v25, %v1918_v24  ;;  %v1920_v35 = vadd.f32 %v1146_v29, %v1144_v26  ;;  %v1148_v37 = vld [vmem:[%s10783_s0 + $0x23a0] sm:$0x7f] }
 0x298   :  { %v1921_v36 = vadd.f32 %v1147_v30, %v1145_v28  ;;  %v1149_v38 = vld [vmem:[%s10783_s0 + $0x23a8] sm:$0x7f]  ;;  %v1150_v39 = vld [vmem:[%s10783_s0 + $0x23b0] sm:$0x7f]  ;;  %v1151_v44 = vld [vmem:[%s10783_s0 + $0x23b8] sm:$0x7f] }
 0x299   :  { %v3879_v40 = vsel %vm4104_vm2, %v2977_v31, %v3878_v18  ;;  %v2978_v41 = vpack.c.bf16 %v2642_v32, %v2642_v32  ;;  %v2643_v42 = vmul.f32 0.25, %v2307_v34  ;;  %v3884_v43 = vld [vmem:[%s10784_s1 + $0x46c] sm:$0xf]  ;;  %v1922_v45 = vadd.f32 %v1150_v39, %v1148_v37  ;;  %v1152_v48 = vld [vmem:[%s10783_s0 + $0x23c0] sm:$0x7f] }
 0x29a   :  { %3880 = vst [vmem:[%s10784_s1 + $0x464] sm:$0xf] %v3879_v40  ;;  %v2308_v46 = vadd.f32 %v1921_v36, %v1920_v35  ;;  %v1923_v47 = vadd.f32 %v1151_v44, %v1149_v38  ;;  %v1153_v49 = vld [vmem:[%s10783_s0 + $0x23c8] sm:$0x7f]  ;;  %v3887_v52 = vld [vmem:[%s10784_s1 + $0x470] sm:$0xf] }
 0x29b   :  { %v3882_v50 = vsel %vm4104_vm2, %v2978_v41, %v3881_v33  ;;  %v2979_v51 = vpack.c.bf16 %v2643_v42, %v2643_v42  ;;  %v1154_v53 = vld [vmem:[%s10783_s0 + $0x23d0] sm:$0x7f]  ;;  %v1155_v54 = vld [vmem:[%s10783_s0 + $0x23d8] sm:$0x7f]  ;;  %v1156_v59 = vld [vmem:[%s10783_s0 + $0x23e0] sm:$0x7f] }
 0x29c   :  { %3883 = vst [vmem:[%s10784_s1 + $0x468] sm:$0xf] %v3882_v50  ;;  %v2644_v55 = vmul.f32 0.25, %v2308_v46  ;;  %v2309_v56 = vadd.f32 %v1923_v47, %v1922_v45  ;;  %v1924_v57 = vadd.f32 %v1154_v53, %v1152_v48  ;;  %v1925_v58 = vadd.f32 %v1155_v54, %v1153_v49  ;;  %v1157_v61 = vld [vmem:[%s10783_s0 + $0x23e8] sm:$0x7f] }
 0x29d   :  { %v3885_v60 = vsel %vm4104_vm2, %v2979_v51, %v3884_v43  ;;  %v1158_v62 = vld [vmem:[%s10783_s0 + $0x23f0] sm:$0x7f]  ;;  %v1159_v63 = vld [vmem:[%s10783_s0 + $0x23f8] sm:$0x7f]  ;;  %v1160_v6 = vld [vmem:[%s10783_s0 + $0x2400] sm:$0x7f] }
 0x29e   :  { %3886 = vst [vmem:[%s10784_s1 + $0x46c] sm:$0xf] %v3885_v60  ;;  %v2980_v0 = vpack.c.bf16 %v2644_v55, %v2644_v55  ;;  %v2645_v1 = vmul.f32 0.25, %v2309_v56  ;;  %v3890_v2 = vld [vmem:[%s10784_s1 + $0x474] sm:$0xf]  ;;  %v2310_v3 = vadd.f32 %v1925_v58, %v1924_v57  ;;  %v1926_v4 = vadd.f32 %v1158_v62, %v1156_v59 }
 0x29f   :  { %v1927_v5 = vadd.f32 %v1159_v63, %v1157_v61  ;;  %v1161_v7 = vld [vmem:[%s10783_s0 + $0x2408] sm:$0x7f]  ;;  %v1162_v8 = vld [vmem:[%s10783_s0 + $0x2410] sm:$0x7f]  ;;  %v3893_v12 = vld [vmem:[%s10784_s1 + $0x478] sm:$0xf] }
 0x2a0   :  { %v3888_v9 = vsel %vm4104_vm2, %v2980_v0, %v3887_v52  ;;  %v2981_v10 = vpack.c.bf16 %v2645_v1, %v2645_v1  ;;  %v2646_v11 = vmul.f32 0.25, %v2310_v3  ;;  %v1163_v13 = vld [vmem:[%s10783_s0 + $0x2418] sm:$0x7f]  ;;  %v1928_v14 = vadd.f32 %v1162_v8, %v1160_v6  ;;  %v1164_v17 = vld [vmem:[%s10783_s0 + $0x2420] sm:$0x7f] }
 0x2a1   :  { %3889 = vst [vmem:[%s10784_s1 + $0x470] sm:$0xf] %v3888_v9  ;;  %v2311_v15 = vadd.f32 %v1927_v5, %v1926_v4  ;;  %v1929_v16 = vadd.f32 %v1163_v13, %v1161_v7  ;;  %v1165_v18 = vld [vmem:[%s10783_s0 + $0x2428] sm:$0x7f]  ;;  %v3896_v21 = vld [vmem:[%s10784_s1 + $0x47c] sm:$0xf] }
 0x2a2   :  { %v3891_v19 = vsel %vm4104_vm2, %v2981_v10, %v3890_v2  ;;  %v2982_v20 = vpack.c.bf16 %v2646_v11, %v2646_v11  ;;  %v1166_v22 = vld [vmem:[%s10783_s0 + $0x2430] sm:$0x7f]  ;;  %v1167_v24 = vld [vmem:[%s10783_s0 + $0x2438] sm:$0x7f]  ;;  %v1168_v29 = vld [vmem:[%s10783_s0 + $0x2440] sm:$0x7f] }
 0x2a3   :  { %3892 = vst [vmem:[%s10784_s1 + $0x474] sm:$0xf] %v3891_v19  ;;  %v2647_v25 = vmul.f32 0.25, %v2311_v15  ;;  %v2312_v26 = vadd.f32 %v1929_v16, %v1928_v14  ;;  %v1930_v27 = vadd.f32 %v1166_v22, %v1164_v17  ;;  %v1931_v28 = vadd.f32 %v1167_v24, %v1165_v18  ;;  %v1169_v31 = vld [vmem:[%s10783_s0 + $0x2448] sm:$0x7f] }
 0x2a4   :  { %v3894_v30 = vsel %vm4104_vm2, %v2982_v20, %v3893_v12  ;;  %v1170_v32 = vld [vmem:[%s10783_s0 + $0x2450] sm:$0x7f]  ;;  %v1171_v33 = vld [vmem:[%s10783_s0 + $0x2458] sm:$0x7f]  ;;  %v3899_v36 = vld [vmem:[%s10784_s1 + $0x480] sm:$0xf] }
 0x2a5   :  { %3895 = vst [vmem:[%s10784_s1 + $0x478] sm:$0xf] %v3894_v30  ;;  %v2983_v34 = vpack.c.bf16 %v2647_v25, %v2647_v25  ;;  %v2648_v35 = vmul.f32 0.25, %v2312_v26  ;;  %v2313_v37 = vadd.f32 %v1931_v28, %v1930_v27  ;;  %v1932_v38 = vadd.f32 %v1170_v32, %v1168_v29  ;;  %v1172_v40 = vld [vmem:[%s10783_s0 + $0x2460] sm:$0x7f] }
 0x2a6   :  { %v1933_v39 = vadd.f32 %v1171_v33, %v1169_v31  ;;  %v1173_v41 = vld [vmem:[%s10783_s0 + $0x2468] sm:$0x7f]  ;;  %v1174_v42 = vld [vmem:[%s10783_s0 + $0x2470] sm:$0x7f]  ;;  %v3902_v46 = vld [vmem:[%s10784_s1 + $0x484] sm:$0xf] }
 0x2a7   :  { %v3897_v43 = vsel %vm4104_vm2, %v2983_v34, %v3896_v21  ;;  %v2984_v44 = vpack.c.bf16 %v2648_v35, %v2648_v35  ;;  %v2649_v45 = vmul.f32 0.25, %v2313_v37  ;;  %v1175_v47 = vld [vmem:[%s10783_s0 + $0x2478] sm:$0x7f]  ;;  %v1934_v48 = vadd.f32 %v1174_v42, %v1172_v40  ;;  %v1176_v51 = vld [vmem:[%s10783_s0 + $0x2480] sm:$0x7f] }
 0x2a8   :  { %3898 = vst [vmem:[%s10784_s1 + $0x47c] sm:$0xf] %v3897_v43  ;;  %v2314_v49 = vadd.f32 %v1933_v39, %v1932_v38  ;;  %v1935_v50 = vadd.f32 %v1175_v47, %v1173_v41  ;;  %v1177_v52 = vld [vmem:[%s10783_s0 + $0x2488] sm:$0x7f]  ;;  %v1178_v56 = vld [vmem:[%s10783_s0 + $0x2490] sm:$0x7f] }
 0x2a9   :  { %v3900_v53 = vsel %vm4104_vm2, %v2984_v44, %v3899_v36  ;;  %v2985_v54 = vpack.c.bf16 %v2649_v45, %v2649_v45  ;;  %v3905_v55 = vld [vmem:[%s10784_s1 + $0x488] sm:$0xf]  ;;  %v1179_v57 = vld [vmem:[%s10783_s0 + $0x2498] sm:$0x7f]  ;;  %v1936_v60 = vadd.f32 %v1178_v56, %v1176_v51  ;;  %v1180_v62 = vld [vmem:[%s10783_s0 + $0x24a0] sm:$0x7f] }
 0x2aa   :  { %3901 = vst [vmem:[%s10784_s1 + $0x480] sm:$0xf] %v3900_v53  ;;  %v2650_v58 = vmul.f32 0.25, %v2314_v49  ;;  %v2315_v59 = vadd.f32 %v1935_v50, %v1934_v48  ;;  %v1937_v61 = vadd.f32 %v1179_v57, %v1177_v52  ;;  %v1181_v0 = vld [vmem:[%s10783_s0 + $0x24a8] sm:$0x7f] }
 0x2ab   :  { %v3903_v63 = vsel %vm4104_vm2, %v2985_v54, %v3902_v46  ;;  %v1182_v1 = vld [vmem:[%s10783_s0 + $0x24b0] sm:$0x7f]  ;;  %v1183_v2 = vld [vmem:[%s10783_s0 + $0x24b8] sm:$0x7f]  ;;  %v3908_v5 = vld [vmem:[%s10784_s1 + $0x48c] sm:$0xf] }
 0x2ac   :  { %3904 = vst [vmem:[%s10784_s1 + $0x484] sm:$0xf] %v3903_v63  ;;  %v2986_v3 = vpack.c.bf16 %v2650_v58, %v2650_v58  ;;  %v2651_v4 = vmul.f32 0.25, %v2315_v59  ;;  %v2316_v6 = vadd.f32 %v1937_v61, %v1936_v60  ;;  %v1938_v7 = vadd.f32 %v1182_v1, %v1180_v62  ;;  %v1184_v9 = vld [vmem:[%s10783_s0 + $0x24c0] sm:$0x7f] }
 0x2ad   :  { %v1939_v8 = vadd.f32 %v1183_v2, %v1181_v0  ;;  %v1185_v10 = vld [vmem:[%s10783_s0 + $0x24c8] sm:$0x7f]  ;;  %v1186_v11 = vld [vmem:[%s10783_s0 + $0x24d0] sm:$0x7f]  ;;  %v1187_v16 = vld [vmem:[%s10783_s0 + $0x24d8] sm:$0x7f] }
 0x2ae   :  { %v3906_v12 = vsel %vm4104_vm2, %v2986_v3, %v3905_v55  ;;  %v2987_v13 = vpack.c.bf16 %v2651_v4, %v2651_v4  ;;  %v2652_v14 = vmul.f32 0.25, %v2316_v6  ;;  %v3911_v15 = vld [vmem:[%s10784_s1 + $0x490] sm:$0xf]  ;;  %v1940_v17 = vadd.f32 %v1186_v11, %v1184_v9  ;;  %v1188_v20 = vld [vmem:[%s10783_s0 + $0x24e0] sm:$0x7f] }
 0x2af   :  { %3907 = vst [vmem:[%s10784_s1 + $0x488] sm:$0xf] %v3906_v12  ;;  %v2317_v18 = vadd.f32 %v1939_v8, %v1938_v7  ;;  %v1941_v19 = vadd.f32 %v1187_v16, %v1185_v10  ;;  %v1189_v21 = vld [vmem:[%s10783_s0 + $0x24e8] sm:$0x7f]  ;;  %v3914_v25 = vld [vmem:[%s10784_s1 + $0x494] sm:$0xf] }
 0x2b0   :  { %v3909_v22 = vsel %vm4104_vm2, %v2987_v13, %v3908_v5  ;;  %v2988_v24 = vpack.c.bf16 %v2652_v14, %v2652_v14  ;;  %v1190_v26 = vld [vmem:[%s10783_s0 + $0x24f0] sm:$0x7f]  ;;  %v1191_v27 = vld [vmem:[%s10783_s0 + $0x24f8] sm:$0x7f]  ;;  %v1192_v32 = vld [vmem:[%s10783_s0 + $0x2500] sm:$0x7f] }
 0x2b1   :  { %3910 = vst [vmem:[%s10784_s1 + $0x48c] sm:$0xf] %v3909_v22  ;;  %v2653_v28 = vmul.f32 0.25, %v2317_v18  ;;  %v2318_v29 = vadd.f32 %v1941_v19, %v1940_v17  ;;  %v1942_v30 = vadd.f32 %v1190_v26, %v1188_v20  ;;  %v1943_v31 = vadd.f32 %v1191_v27, %v1189_v21  ;;  %v1193_v34 = vld [vmem:[%s10783_s0 + $0x2508] sm:$0x7f] }
 0x2b2   :  { %v3912_v33 = vsel %vm4104_vm2, %v2988_v24, %v3911_v15  ;;  %v1194_v35 = vld [vmem:[%s10783_s0 + $0x2510] sm:$0x7f]  ;;  %v1195_v36 = vld [vmem:[%s10783_s0 + $0x2518] sm:$0x7f]  ;;  %v1196_v43 = vld [vmem:[%s10783_s0 + $0x2520] sm:$0x7f] }
 0x2b3   :  { %3913 = vst [vmem:[%s10784_s1 + $0x490] sm:$0xf] %v3912_v33  ;;  %v2989_v37 = vpack.c.bf16 %v2653_v28, %v2653_v28  ;;  %v2654_v38 = vmul.f32 0.25, %v2318_v29  ;;  %v3917_v39 = vld [vmem:[%s10784_s1 + $0x498] sm:$0xf]  ;;  %v2319_v40 = vadd.f32 %v1943_v31, %v1942_v30  ;;  %v1944_v41 = vadd.f32 %v1194_v35, %v1192_v32 }
 0x2b4   :  { %v1945_v42 = vadd.f32 %v1195_v36, %v1193_v34  ;;  %v1197_v44 = vld [vmem:[%s10783_s0 + $0x2528] sm:$0x7f]  ;;  %v1198_v45 = vld [vmem:[%s10783_s0 + $0x2530] sm:$0x7f]  ;;  %v3920_v49 = vld [vmem:[%s10784_s1 + $0x49c] sm:$0xf] }
 0x2b5   :  { %v3915_v46 = vsel %vm4104_vm2, %v2989_v37, %v3914_v25  ;;  %v2990_v47 = vpack.c.bf16 %v2654_v38, %v2654_v38  ;;  %v2655_v48 = vmul.f32 0.25, %v2319_v40  ;;  %v1199_v50 = vld [vmem:[%s10783_s0 + $0x2538] sm:$0x7f]  ;;  %v1946_v51 = vadd.f32 %v1198_v45, %v1196_v43  ;;  %v1200_v54 = vld [vmem:[%s10783_s0 + $0x2540] sm:$0x7f] }
 0x2b6   :  { %3916 = vst [vmem:[%s10784_s1 + $0x494] sm:$0xf] %v3915_v46  ;;  %v2320_v52 = vadd.f32 %v1945_v42, %v1944_v41  ;;  %v1947_v53 = vadd.f32 %v1199_v50, %v1197_v44  ;;  %v1201_v55 = vld [vmem:[%s10783_s0 + $0x2548] sm:$0x7f]  ;;  %v3923_v58 = vld [vmem:[%s10784_s1 + $0x4a0] sm:$0xf] }
 0x2b7   :  { %v3918_v56 = vsel %vm4104_vm2, %v2990_v47, %v3917_v39  ;;  %v2991_v57 = vpack.c.bf16 %v2655_v48, %v2655_v48  ;;  %v1202_v59 = vld [vmem:[%s10783_s0 + $0x2550] sm:$0x7f]  ;;  %v1203_v60 = vld [vmem:[%s10783_s0 + $0x2558] sm:$0x7f]  ;;  %v1204_v1 = vld [vmem:[%s10783_s0 + $0x2560] sm:$0x7f] }
 0x2b8   :  { %3919 = vst [vmem:[%s10784_s1 + $0x498] sm:$0xf] %v3918_v56  ;;  %v2656_v61 = vmul.f32 0.25, %v2320_v52  ;;  %v2321_v62 = vadd.f32 %v1947_v53, %v1946_v51  ;;  %v1948_v63 = vadd.f32 %v1202_v59, %v1200_v54  ;;  %v1949_v0 = vadd.f32 %v1203_v60, %v1201_v55  ;;  %v1205_v3 = vld [vmem:[%s10783_s0 + $0x2568] sm:$0x7f] }
 0x2b9   :  { %v3921_v2 = vsel %vm4104_vm2, %v2991_v57, %v3920_v49  ;;  %v1206_v4 = vld [vmem:[%s10783_s0 + $0x2570] sm:$0x7f]  ;;  %v1207_v5 = vld [vmem:[%s10783_s0 + $0x2578] sm:$0x7f]  ;;  %v3926_v8 = vld [vmem:[%s10784_s1 + $0x4a4] sm:$0xf] }
 0x2ba   :  { %3922 = vst [vmem:[%s10784_s1 + $0x49c] sm:$0xf] %v3921_v2  ;;  %v2992_v6 = vpack.c.bf16 %v2656_v61, %v2656_v61  ;;  %v2657_v7 = vmul.f32 0.25, %v2321_v62  ;;  %v2322_v9 = vadd.f32 %v1949_v0, %v1948_v63  ;;  %v1950_v10 = vadd.f32 %v1206_v4, %v1204_v1  ;;  %v1208_v12 = vld [vmem:[%s10783_s0 + $0x2580] sm:$0x7f] }
 0x2bb   :  { %v1951_v11 = vadd.f32 %v1207_v5, %v1205_v3  ;;  %v1209_v13 = vld [vmem:[%s10783_s0 + $0x2588] sm:$0x7f]  ;;  %v1210_v14 = vld [vmem:[%s10783_s0 + $0x2590] sm:$0x7f]  ;;  %v1211_v19 = vld [vmem:[%s10783_s0 + $0x2598] sm:$0x7f] }
 0x2bc   :  { %v3924_v15 = vsel %vm4104_vm2, %v2992_v6, %v3923_v58  ;;  %v2993_v16 = vpack.c.bf16 %v2657_v7, %v2657_v7  ;;  %v2658_v17 = vmul.f32 0.25, %v2322_v9  ;;  %v3929_v18 = vld [vmem:[%s10784_s1 + $0x4a8] sm:$0xf]  ;;  %v1952_v20 = vadd.f32 %v1210_v14, %v1208_v12  ;;  %v1212_v24 = vld [vmem:[%s10783_s0 + $0x25a0] sm:$0x7f] }
 0x2bd   :  { %3925 = vst [vmem:[%s10784_s1 + $0x4a0] sm:$0xf] %v3924_v15  ;;  %v2323_v21 = vadd.f32 %v1951_v11, %v1950_v10  ;;  %v1953_v22 = vadd.f32 %v1211_v19, %v1209_v13  ;;  %v1213_v25 = vld [vmem:[%s10783_s0 + $0x25a8] sm:$0x7f]  ;;  %v1214_v29 = vld [vmem:[%s10783_s0 + $0x25b0] sm:$0x7f] }
 0x2be   :  { %v3927_v26 = vsel %vm4104_vm2, %v2993_v16, %v3926_v8  ;;  %v2994_v27 = vpack.c.bf16 %v2658_v17, %v2658_v17  ;;  %v3932_v28 = vld [vmem:[%s10784_s1 + $0x4ac] sm:$0xf]  ;;  %v1215_v30 = vld [vmem:[%s10783_s0 + $0x25b8] sm:$0x7f]  ;;  %v1954_v33 = vadd.f32 %v1214_v29, %v1212_v24  ;;  %v1216_v35 = vld [vmem:[%s10783_s0 + $0x25c0] sm:$0x7f] }
 0x2bf   :  { %3928 = vst [vmem:[%s10784_s1 + $0x4a4] sm:$0xf] %v3927_v26  ;;  %v2659_v31 = vmul.f32 0.25, %v2323_v21  ;;  %v2324_v32 = vadd.f32 %v1953_v22, %v1952_v20  ;;  %v1955_v34 = vadd.f32 %v1215_v30, %v1213_v25  ;;  %v1217_v37 = vld [vmem:[%s10783_s0 + $0x25c8] sm:$0x7f] }
 0x2c0   :  { %v3930_v36 = vsel %vm4104_vm2, %v2994_v27, %v3929_v18  ;;  %v1218_v38 = vld [vmem:[%s10783_s0 + $0x25d0] sm:$0x7f]  ;;  %v1219_v39 = vld [vmem:[%s10783_s0 + $0x25d8] sm:$0x7f]  ;;  %v1220_v46 = vld [vmem:[%s10783_s0 + $0x25e0] sm:$0x7f] }
 0x2c1   :  { %3931 = vst [vmem:[%s10784_s1 + $0x4a8] sm:$0xf] %v3930_v36  ;;  %v2995_v40 = vpack.c.bf16 %v2659_v31, %v2659_v31  ;;  %v2660_v41 = vmul.f32 0.25, %v2324_v32  ;;  %v3935_v42 = vld [vmem:[%s10784_s1 + $0x4b0] sm:$0xf]  ;;  %v2325_v43 = vadd.f32 %v1955_v34, %v1954_v33  ;;  %v1956_v44 = vadd.f32 %v1218_v38, %v1216_v35 }
 0x2c2   :  { %v1957_v45 = vadd.f32 %v1219_v39, %v1217_v37  ;;  %v1221_v47 = vld [vmem:[%s10783_s0 + $0x25e8] sm:$0x7f]  ;;  %v1222_v48 = vld [vmem:[%s10783_s0 + $0x25f0] sm:$0x7f]  ;;  %v1223_v53 = vld [vmem:[%s10783_s0 + $0x25f8] sm:$0x7f] }
 0x2c3   :  { %v3933_v49 = vsel %vm4104_vm2, %v2995_v40, %v3932_v28  ;;  %v2996_v50 = vpack.c.bf16 %v2660_v41, %v2660_v41  ;;  %v2661_v51 = vmul.f32 0.25, %v2325_v43  ;;  %v3938_v52 = vld [vmem:[%s10784_s1 + $0x4b4] sm:$0xf]  ;;  %v1958_v54 = vadd.f32 %v1222_v48, %v1220_v46  ;;  %v1224_v57 = vld [vmem:[%s10783_s0 + $0x2600] sm:$0x7f] }
 0x2c4   :  { %3934 = vst [vmem:[%s10784_s1 + $0x4ac] sm:$0xf] %v3933_v49  ;;  %v2326_v55 = vadd.f32 %v1957_v45, %v1956_v44  ;;  %v1959_v56 = vadd.f32 %v1223_v53, %v1221_v47  ;;  %v1225_v58 = vld [vmem:[%s10783_s0 + $0x2608] sm:$0x7f]  ;;  %v3941_v61 = vld [vmem:[%s10784_s1 + $0x4b8] sm:$0xf] }
 0x2c5   :  { %v3936_v59 = vsel %vm4104_vm2, %v2996_v50, %v3935_v42  ;;  %v2997_v60 = vpack.c.bf16 %v2661_v51, %v2661_v51  ;;  %v1226_v62 = vld [vmem:[%s10783_s0 + $0x2610] sm:$0x7f]  ;;  %v1227_v63 = vld [vmem:[%s10783_s0 + $0x2618] sm:$0x7f]  ;;  %v1228_v4 = vld [vmem:[%s10783_s0 + $0x2620] sm:$0x7f] }
 0x2c6   :  { %3937 = vst [vmem:[%s10784_s1 + $0x4b0] sm:$0xf] %v3936_v59  ;;  %v2662_v0 = vmul.f32 0.25, %v2326_v55  ;;  %v2327_v1 = vadd.f32 %v1959_v56, %v1958_v54  ;;  %v1960_v2 = vadd.f32 %v1226_v62, %v1224_v57  ;;  %v1961_v3 = vadd.f32 %v1227_v63, %v1225_v58  ;;  %v1229_v6 = vld [vmem:[%s10783_s0 + $0x2628] sm:$0x7f] }
 0x2c7   :  { %v3939_v5 = vsel %vm4104_vm2, %v2997_v60, %v3938_v52  ;;  %v1230_v7 = vld [vmem:[%s10783_s0 + $0x2630] sm:$0x7f]  ;;  %v1231_v8 = vld [vmem:[%s10783_s0 + $0x2638] sm:$0x7f]  ;;  %v1232_v15 = vld [vmem:[%s10783_s0 + $0x2640] sm:$0x7f] }
 0x2c8   :  { %3940 = vst [vmem:[%s10784_s1 + $0x4b4] sm:$0xf] %v3939_v5  ;;  %v2998_v9 = vpack.c.bf16 %v2662_v0, %v2662_v0  ;;  %v2663_v10 = vmul.f32 0.25, %v2327_v1  ;;  %v3944_v11 = vld [vmem:[%s10784_s1 + $0x4bc] sm:$0xf]  ;;  %v2328_v12 = vadd.f32 %v1961_v3, %v1960_v2  ;;  %v1962_v13 = vadd.f32 %v1230_v7, %v1228_v4 }
 0x2c9   :  { %v1963_v14 = vadd.f32 %v1231_v8, %v1229_v6  ;;  %v1233_v16 = vld [vmem:[%s10783_s0 + $0x2648] sm:$0x7f]  ;;  %v1234_v17 = vld [vmem:[%s10783_s0 + $0x2650] sm:$0x7f]  ;;  %v3947_v21 = vld [vmem:[%s10784_s1 + $0x4c0] sm:$0xf] }
 0x2ca   :  { %v3942_v18 = vsel %vm4104_vm2, %v2998_v9, %v3941_v61  ;;  %v2999_v19 = vpack.c.bf16 %v2663_v10, %v2663_v10  ;;  %v2664_v20 = vmul.f32 0.25, %v2328_v12  ;;  %v1235_v22 = vld [vmem:[%s10783_s0 + $0x2658] sm:$0x7f]  ;;  %v1964_v24 = vadd.f32 %v1234_v17, %v1232_v15  ;;  %v1236_v27 = vld [vmem:[%s10783_s0 + $0x2660] sm:$0x7f] }
 0x2cb   :  { %3943 = vst [vmem:[%s10784_s1 + $0x4b8] sm:$0xf] %v3942_v18  ;;  %v2329_v25 = vadd.f32 %v1963_v14, %v1962_v13  ;;  %v1965_v26 = vadd.f32 %v1235_v22, %v1233_v16  ;;  %v1237_v28 = vld [vmem:[%s10783_s0 + $0x2668] sm:$0x7f]  ;;  %v3950_v31 = vld [vmem:[%s10784_s1 + $0x4c4] sm:$0xf] }
 0x2cc   :  { %v3945_v29 = vsel %vm4104_vm2, %v2999_v19, %v3944_v11  ;;  %v3000_v30 = vpack.c.bf16 %v2664_v20, %v2664_v20  ;;  %v1238_v32 = vld [vmem:[%s10783_s0 + $0x2670] sm:$0x7f]  ;;  %v1239_v33 = vld [vmem:[%s10783_s0 + $0x2678] sm:$0x7f]  ;;  %v1240_v38 = vld [vmem:[%s10783_s0 + $0x2680] sm:$0x7f] }
 0x2cd   :  { %3946 = vst [vmem:[%s10784_s1 + $0x4bc] sm:$0xf] %v3945_v29  ;;  %v2665_v34 = vmul.f32 0.25, %v2329_v25  ;;  %v2330_v35 = vadd.f32 %v1965_v26, %v1964_v24  ;;  %v1966_v36 = vadd.f32 %v1238_v32, %v1236_v27  ;;  %v1967_v37 = vadd.f32 %v1239_v33, %v1237_v28  ;;  %v1241_v40 = vld [vmem:[%s10783_s0 + $0x2688] sm:$0x7f] }
 0x2ce   :  { %v3948_v39 = vsel %vm4104_vm2, %v3000_v30, %v3947_v21  ;;  %v1242_v41 = vld [vmem:[%s10783_s0 + $0x2690] sm:$0x7f]  ;;  %v1243_v42 = vld [vmem:[%s10783_s0 + $0x2698] sm:$0x7f]  ;;  %v3953_v45 = vld [vmem:[%s10784_s1 + $0x4c8] sm:$0xf] }
 0x2cf   :  { %3949 = vst [vmem:[%s10784_s1 + $0x4c0] sm:$0xf] %v3948_v39  ;;  %v3001_v43 = vpack.c.bf16 %v2665_v34, %v2665_v34  ;;  %v2666_v44 = vmul.f32 0.25, %v2330_v35  ;;  %v2331_v46 = vadd.f32 %v1967_v37, %v1966_v36  ;;  %v1968_v47 = vadd.f32 %v1242_v41, %v1240_v38  ;;  %v1244_v49 = vld [vmem:[%s10783_s0 + $0x26a0] sm:$0x7f] }
 0x2d0   :  { %v1969_v48 = vadd.f32 %v1243_v42, %v1241_v40  ;;  %v1245_v50 = vld [vmem:[%s10783_s0 + $0x26a8] sm:$0x7f]  ;;  %v1246_v51 = vld [vmem:[%s10783_s0 + $0x26b0] sm:$0x7f]  ;;  %v1247_v56 = vld [vmem:[%s10783_s0 + $0x26b8] sm:$0x7f] }
 0x2d1   :  { %v3951_v52 = vsel %vm4104_vm2, %v3001_v43, %v3950_v31  ;;  %v3002_v53 = vpack.c.bf16 %v2666_v44, %v2666_v44  ;;  %v2667_v54 = vmul.f32 0.25, %v2331_v46  ;;  %v3956_v55 = vld [vmem:[%s10784_s1 + $0x4cc] sm:$0xf]  ;;  %v1970_v57 = vadd.f32 %v1246_v51, %v1244_v49  ;;  %v1248_v60 = vld [vmem:[%s10783_s0 + $0x26c0] sm:$0x7f] }
 0x2d2   :  { %3952 = vst [vmem:[%s10784_s1 + $0x4c4] sm:$0xf] %v3951_v52  ;;  %v2332_v58 = vadd.f32 %v1969_v48, %v1968_v47  ;;  %v1971_v59 = vadd.f32 %v1247_v56, %v1245_v50  ;;  %v1249_v61 = vld [vmem:[%s10783_s0 + $0x26c8] sm:$0x7f]  ;;  %v3959_v0 = vld [vmem:[%s10784_s1 + $0x4d0] sm:$0xf] }
 0x2d3   :  { %v3954_v62 = vsel %vm4104_vm2, %v3002_v53, %v3953_v45  ;;  %v3003_v63 = vpack.c.bf16 %v2667_v54, %v2667_v54  ;;  %v1250_v1 = vld [vmem:[%s10783_s0 + $0x26d0] sm:$0x7f]  ;;  %v1251_v2 = vld [vmem:[%s10783_s0 + $0x26d8] sm:$0x7f]  ;;  %v1252_v7 = vld [vmem:[%s10783_s0 + $0x26e0] sm:$0x7f] }
 0x2d4   :  { %3955 = vst [vmem:[%s10784_s1 + $0x4c8] sm:$0xf] %v3954_v62  ;;  %v2668_v3 = vmul.f32 0.25, %v2332_v58  ;;  %v2333_v4 = vadd.f32 %v1971_v59, %v1970_v57  ;;  %v1972_v5 = vadd.f32 %v1250_v1, %v1248_v60  ;;  %v1973_v6 = vadd.f32 %v1251_v2, %v1249_v61  ;;  %v1253_v9 = vld [vmem:[%s10783_s0 + $0x26e8] sm:$0x7f] }
 0x2d5   :  { %v3957_v8 = vsel %vm4104_vm2, %v3003_v63, %v3956_v55  ;;  %v1254_v10 = vld [vmem:[%s10783_s0 + $0x26f0] sm:$0x7f]  ;;  %v1255_v11 = vld [vmem:[%s10783_s0 + $0x26f8] sm:$0x7f]  ;;  %v1256_v18 = vld [vmem:[%s10783_s0 + $0x2700] sm:$0x7f] }
 0x2d6   :  { %3958 = vst [vmem:[%s10784_s1 + $0x4cc] sm:$0xf] %v3957_v8  ;;  %v3004_v12 = vpack.c.bf16 %v2668_v3, %v2668_v3  ;;  %v2669_v13 = vmul.f32 0.25, %v2333_v4  ;;  %v3962_v14 = vld [vmem:[%s10784_s1 + $0x4d4] sm:$0xf]  ;;  %v2334_v15 = vadd.f32 %v1973_v6, %v1972_v5  ;;  %v1974_v16 = vadd.f32 %v1254_v10, %v1252_v7 }
 0x2d7   :  { %v1975_v17 = vadd.f32 %v1255_v11, %v1253_v9  ;;  %v1257_v19 = vld [vmem:[%s10783_s0 + $0x2708] sm:$0x7f]  ;;  %v1258_v20 = vld [vmem:[%s10783_s0 + $0x2710] sm:$0x7f]  ;;  %v3965_v25 = vld [vmem:[%s10784_s1 + $0x4d8] sm:$0xf] }
 0x2d8   :  { %v3960_v21 = vsel %vm4104_vm2, %v3004_v12, %v3959_v0  ;;  %v3005_v22 = vpack.c.bf16 %v2669_v13, %v2669_v13  ;;  %v2670_v24 = vmul.f32 0.25, %v2334_v15  ;;  %v1259_v26 = vld [vmem:[%s10783_s0 + $0x2718] sm:$0x7f]  ;;  %v1976_v27 = vadd.f32 %v1258_v20, %v1256_v18  ;;  %v1260_v30 = vld [vmem:[%s10783_s0 + $0x2720] sm:$0x7f] }
 0x2d9   :  { %3961 = vst [vmem:[%s10784_s1 + $0x4d0] sm:$0xf] %v3960_v21  ;;  %v2335_v28 = vadd.f32 %v1975_v17, %v1974_v16  ;;  %v1977_v29 = vadd.f32 %v1259_v26, %v1257_v19  ;;  %v1261_v31 = vld [vmem:[%s10783_s0 + $0x2728] sm:$0x7f]  ;;  %v3968_v34 = vld [vmem:[%s10784_s1 + $0x4dc] sm:$0xf] }
 0x2da   :  { %v3963_v32 = vsel %vm4104_vm2, %v3005_v22, %v3962_v14  ;;  %v3006_v33 = vpack.c.bf16 %v2670_v24, %v2670_v24  ;;  %v1262_v35 = vld [vmem:[%s10783_s0 + $0x2730] sm:$0x7f]  ;;  %v1263_v36 = vld [vmem:[%s10783_s0 + $0x2738] sm:$0x7f]  ;;  %v1264_v41 = vld [vmem:[%s10783_s0 + $0x2740] sm:$0x7f] }
 0x2db   :  { %3964 = vst [vmem:[%s10784_s1 + $0x4d4] sm:$0xf] %v3963_v32  ;;  %v2671_v37 = vmul.f32 0.25, %v2335_v28  ;;  %v2336_v38 = vadd.f32 %v1977_v29, %v1976_v27  ;;  %v1978_v39 = vadd.f32 %v1262_v35, %v1260_v30  ;;  %v1979_v40 = vadd.f32 %v1263_v36, %v1261_v31  ;;  %v1265_v43 = vld [vmem:[%s10783_s0 + $0x2748] sm:$0x7f] }
 0x2dc   :  { %v3966_v42 = vsel %vm4104_vm2, %v3006_v33, %v3965_v25  ;;  %v1266_v44 = vld [vmem:[%s10783_s0 + $0x2750] sm:$0x7f]  ;;  %v1267_v45 = vld [vmem:[%s10783_s0 + $0x2758] sm:$0x7f]  ;;  %v3971_v48 = vld [vmem:[%s10784_s1 + $0x4e0] sm:$0xf] }
 0x2dd   :  { %3967 = vst [vmem:[%s10784_s1 + $0x4d8] sm:$0xf] %v3966_v42  ;;  %v3007_v46 = vpack.c.bf16 %v2671_v37, %v2671_v37  ;;  %v2672_v47 = vmul.f32 0.25, %v2336_v38  ;;  %v2337_v49 = vadd.f32 %v1979_v40, %v1978_v39  ;;  %v1980_v50 = vadd.f32 %v1266_v44, %v1264_v41  ;;  %v1268_v52 = vld [vmem:[%s10783_s0 + $0x2760] sm:$0x7f] }
 0x2de   :  { %v1981_v51 = vadd.f32 %v1267_v45, %v1265_v43  ;;  %v1269_v53 = vld [vmem:[%s10783_s0 + $0x2768] sm:$0x7f]  ;;  %v1270_v54 = vld [vmem:[%s10783_s0 + $0x2770] sm:$0x7f]  ;;  %v3974_v58 = vld [vmem:[%s10784_s1 + $0x4e4] sm:$0xf] }
 0x2df   :  { %v3969_v55 = vsel %vm4104_vm2, %v3007_v46, %v3968_v34  ;;  %v3008_v56 = vpack.c.bf16 %v2672_v47, %v2672_v47  ;;  %v2673_v57 = vmul.f32 0.25, %v2337_v49  ;;  %v1271_v59 = vld [vmem:[%s10783_s0 + $0x2778] sm:$0x7f]  ;;  %v1982_v60 = vadd.f32 %v1270_v54, %v1268_v52  ;;  %v1272_v63 = vld [vmem:[%s10783_s0 + $0x2780] sm:$0x7f] }
 0x2e0   :  { %3970 = vst [vmem:[%s10784_s1 + $0x4dc] sm:$0xf] %v3969_v55  ;;  %v2338_v61 = vadd.f32 %v1981_v51, %v1980_v50  ;;  %v1983_v62 = vadd.f32 %v1271_v59, %v1269_v53  ;;  %v1273_v0 = vld [vmem:[%s10783_s0 + $0x2788] sm:$0x7f]  ;;  %v1274_v4 = vld [vmem:[%s10783_s0 + $0x2790] sm:$0x7f] }
 0x2e1   :  { %v3972_v1 = vsel %vm4104_vm2, %v3008_v56, %v3971_v48  ;;  %v3009_v2 = vpack.c.bf16 %v2673_v57, %v2673_v57  ;;  %v3977_v3 = vld [vmem:[%s10784_s1 + $0x4e8] sm:$0xf]  ;;  %v1275_v5 = vld [vmem:[%s10783_s0 + $0x2798] sm:$0x7f]  ;;  %v1984_v8 = vadd.f32 %v1274_v4, %v1272_v63  ;;  %v1276_v10 = vld [vmem:[%s10783_s0 + $0x27a0] sm:$0x7f] }
 0x2e2   :  { %3973 = vst [vmem:[%s10784_s1 + $0x4e0] sm:$0xf] %v3972_v1  ;;  %v2674_v6 = vmul.f32 0.25, %v2338_v61  ;;  %v2339_v7 = vadd.f32 %v1983_v62, %v1982_v60  ;;  %v1985_v9 = vadd.f32 %v1275_v5, %v1273_v0  ;;  %v1277_v12 = vld [vmem:[%s10783_s0 + $0x27a8] sm:$0x7f] }
 0x2e3   :  { %v3975_v11 = vsel %vm4104_vm2, %v3009_v2, %v3974_v58  ;;  %v1278_v13 = vld [vmem:[%s10783_s0 + $0x27b0] sm:$0x7f]  ;;  %v1279_v14 = vld [vmem:[%s10783_s0 + $0x27b8] sm:$0x7f]  ;;  %v3980_v17 = vld [vmem:[%s10784_s1 + $0x4ec] sm:$0xf] }
 0x2e4   :  { %3976 = vst [vmem:[%s10784_s1 + $0x4e4] sm:$0xf] %v3975_v11  ;;  %v3010_v15 = vpack.c.bf16 %v2674_v6, %v2674_v6  ;;  %v2675_v16 = vmul.f32 0.25, %v2339_v7  ;;  %v2340_v18 = vadd.f32 %v1985_v9, %v1984_v8  ;;  %v1986_v19 = vadd.f32 %v1278_v13, %v1276_v10  ;;  %v1280_v21 = vld [vmem:[%s10783_s0 + $0x27c0] sm:$0x7f] }
 0x2e5   :  { %v1987_v20 = vadd.f32 %v1279_v14, %v1277_v12  ;;  %v1281_v22 = vld [vmem:[%s10783_s0 + $0x27c8] sm:$0x7f]  ;;  %v1282_v24 = vld [vmem:[%s10783_s0 + $0x27d0] sm:$0x7f]  ;;  %v1283_v29 = vld [vmem:[%s10783_s0 + $0x27d8] sm:$0x7f] }
 0x2e6   :  { %v3978_v25 = vsel %vm4104_vm2, %v3010_v15, %v3977_v3  ;;  %v3011_v26 = vpack.c.bf16 %v2675_v16, %v2675_v16  ;;  %v2676_v27 = vmul.f32 0.25, %v2340_v18  ;;  %v3983_v28 = vld [vmem:[%s10784_s1 + $0x4f0] sm:$0xf]  ;;  %v1988_v30 = vadd.f32 %v1282_v24, %v1280_v21  ;;  %v1284_v33 = vld [vmem:[%s10783_s0 + $0x27e0] sm:$0x7f] }
 0x2e7   :  { %3979 = vst [vmem:[%s10784_s1 + $0x4e8] sm:$0xf] %v3978_v25  ;;  %v2341_v31 = vadd.f32 %v1987_v20, %v1986_v19  ;;  %v1989_v32 = vadd.f32 %v1283_v29, %v1281_v22  ;;  %v1285_v34 = vld [vmem:[%s10783_s0 + $0x27e8] sm:$0x7f]  ;;  %v3986_v37 = vld [vmem:[%s10784_s1 + $0x4f4] sm:$0xf] }
 0x2e8   :  { %v3981_v35 = vsel %vm4104_vm2, %v3011_v26, %v3980_v17  ;;  %v3012_v36 = vpack.c.bf16 %v2676_v27, %v2676_v27  ;;  %v1286_v38 = vld [vmem:[%s10783_s0 + $0x27f0] sm:$0x7f]  ;;  %v1287_v39 = vld [vmem:[%s10783_s0 + $0x27f8] sm:$0x7f]  ;;  %v1288_v44 = vld [vmem:[%s10783_s0 + $0x2800] sm:$0x7f] }
 0x2e9   :  { %3982 = vst [vmem:[%s10784_s1 + $0x4ec] sm:$0xf] %v3981_v35  ;;  %v2677_v40 = vmul.f32 0.25, %v2341_v31  ;;  %v2342_v41 = vadd.f32 %v1989_v32, %v1988_v30  ;;  %v1990_v42 = vadd.f32 %v1286_v38, %v1284_v33  ;;  %v1991_v43 = vadd.f32 %v1287_v39, %v1285_v34  ;;  %v1289_v46 = vld [vmem:[%s10783_s0 + $0x2808] sm:$0x7f] }
 0x2ea   :  { %v3984_v45 = vsel %vm4104_vm2, %v3012_v36, %v3983_v28  ;;  %v1290_v47 = vld [vmem:[%s10783_s0 + $0x2810] sm:$0x7f]  ;;  %v1291_v48 = vld [vmem:[%s10783_s0 + $0x2818] sm:$0x7f]  ;;  %v1292_v55 = vld [vmem:[%s10783_s0 + $0x2820] sm:$0x7f] }
 0x2eb   :  { %3985 = vst [vmem:[%s10784_s1 + $0x4f0] sm:$0xf] %v3984_v45  ;;  %v3013_v49 = vpack.c.bf16 %v2677_v40, %v2677_v40  ;;  %v2678_v50 = vmul.f32 0.25, %v2342_v41  ;;  %v3989_v51 = vld [vmem:[%s10784_s1 + $0x4f8] sm:$0xf]  ;;  %v2343_v52 = vadd.f32 %v1991_v43, %v1990_v42  ;;  %v1992_v53 = vadd.f32 %v1290_v47, %v1288_v44 }
 0x2ec   :  { %v1993_v54 = vadd.f32 %v1291_v48, %v1289_v46  ;;  %v1293_v56 = vld [vmem:[%s10783_s0 + $0x2828] sm:$0x7f]  ;;  %v1294_v57 = vld [vmem:[%s10783_s0 + $0x2830] sm:$0x7f]  ;;  %v3992_v61 = vld [vmem:[%s10784_s1 + $0x4fc] sm:$0xf] }
 0x2ed   :  { %v3987_v58 = vsel %vm4104_vm2, %v3013_v49, %v3986_v37  ;;  %v3014_v59 = vpack.c.bf16 %v2678_v50, %v2678_v50  ;;  %v2679_v60 = vmul.f32 0.25, %v2343_v52  ;;  %v1295_v62 = vld [vmem:[%s10783_s0 + $0x2838] sm:$0x7f]  ;;  %v1994_v63 = vadd.f32 %v1294_v57, %v1292_v55  ;;  %v1296_v2 = vld [vmem:[%s10783_s0 + $0x2840] sm:$0x7f] }
 0x2ee   :  { %3988 = vst [vmem:[%s10784_s1 + $0x4f4] sm:$0xf] %v3987_v58  ;;  %v2344_v0 = vadd.f32 %v1993_v54, %v1992_v53  ;;  %v1995_v1 = vadd.f32 %v1295_v62, %v1293_v56  ;;  %v1297_v3 = vld [vmem:[%s10783_s0 + $0x2848] sm:$0x7f]  ;;  %v3995_v6 = vld [vmem:[%s10784_s1 + $0x500] sm:$0xf] }
 0x2ef   :  { %v3990_v4 = vsel %vm4104_vm2, %v3014_v59, %v3989_v51  ;;  %v3015_v5 = vpack.c.bf16 %v2679_v60, %v2679_v60  ;;  %v1298_v7 = vld [vmem:[%s10783_s0 + $0x2850] sm:$0x7f]  ;;  %v1299_v8 = vld [vmem:[%s10783_s0 + $0x2858] sm:$0x7f]  ;;  %v1300_v13 = vld [vmem:[%s10783_s0 + $0x2860] sm:$0x7f] }
 0x2f0   :  { %3991 = vst [vmem:[%s10784_s1 + $0x4f8] sm:$0xf] %v3990_v4  ;;  %v2680_v9 = vmul.f32 0.25, %v2344_v0  ;;  %v2345_v10 = vadd.f32 %v1995_v1, %v1994_v63  ;;  %v1996_v11 = vadd.f32 %v1298_v7, %v1296_v2  ;;  %v1997_v12 = vadd.f32 %v1299_v8, %v1297_v3  ;;  %v1301_v15 = vld [vmem:[%s10783_s0 + $0x2868] sm:$0x7f] }
 0x2f1   :  { %v3993_v14 = vsel %vm4104_vm2, %v3015_v5, %v3992_v61  ;;  %v1302_v16 = vld [vmem:[%s10783_s0 + $0x2870] sm:$0x7f]  ;;  %v1303_v17 = vld [vmem:[%s10783_s0 + $0x2878] sm:$0x7f]  ;;  %v3998_v20 = vld [vmem:[%s10784_s1 + $0x504] sm:$0xf] }
 0x2f2   :  { %3994 = vst [vmem:[%s10784_s1 + $0x4fc] sm:$0xf] %v3993_v14  ;;  %v3016_v18 = vpack.c.bf16 %v2680_v9, %v2680_v9  ;;  %v2681_v19 = vmul.f32 0.25, %v2345_v10  ;;  %v2346_v21 = vadd.f32 %v1997_v12, %v1996_v11  ;;  %v1998_v22 = vadd.f32 %v1302_v16, %v1300_v13  ;;  %v1304_v25 = vld [vmem:[%s10783_s0 + $0x2880] sm:$0x7f] }
 0x2f3   :  { %v1999_v24 = vadd.f32 %v1303_v17, %v1301_v15  ;;  %v1305_v26 = vld [vmem:[%s10783_s0 + $0x2888] sm:$0x7f]  ;;  %v1306_v27 = vld [vmem:[%s10783_s0 + $0x2890] sm:$0x7f]  ;;  %v1307_v32 = vld [vmem:[%s10783_s0 + $0x2898] sm:$0x7f] }
 0x2f4   :  { %v3996_v28 = vsel %vm4104_vm2, %v3016_v18, %v3995_v6  ;;  %v3017_v29 = vpack.c.bf16 %v2681_v19, %v2681_v19  ;;  %v2682_v30 = vmul.f32 0.25, %v2346_v21  ;;  %v4001_v31 = vld [vmem:[%s10784_s1 + $0x508] sm:$0xf]  ;;  %v2000_v33 = vadd.f32 %v1306_v27, %v1304_v25  ;;  %v1308_v36 = vld [vmem:[%s10783_s0 + $0x28a0] sm:$0x7f] }
 0x2f5   :  { %3997 = vst [vmem:[%s10784_s1 + $0x500] sm:$0xf] %v3996_v28  ;;  %v2347_v34 = vadd.f32 %v1999_v24, %v1998_v22  ;;  %v2001_v35 = vadd.f32 %v1307_v32, %v1305_v26  ;;  %v1309_v37 = vld [vmem:[%s10783_s0 + $0x28a8] sm:$0x7f]  ;;  %v1310_v41 = vld [vmem:[%s10783_s0 + $0x28b0] sm:$0x7f] }
 0x2f6   :  { %v3999_v38 = vsel %vm4104_vm2, %v3017_v29, %v3998_v20  ;;  %v3018_v39 = vpack.c.bf16 %v2682_v30, %v2682_v30  ;;  %v4004_v40 = vld [vmem:[%s10784_s1 + $0x50c] sm:$0xf]  ;;  %v1311_v42 = vld [vmem:[%s10783_s0 + $0x28b8] sm:$0x7f]  ;;  %v2002_v45 = vadd.f32 %v1310_v41, %v1308_v36  ;;  %v1312_v47 = vld [vmem:[%s10783_s0 + $0x28c0] sm:$0x7f] }
 0x2f7   :  { %4000 = vst [vmem:[%s10784_s1 + $0x504] sm:$0xf] %v3999_v38  ;;  %v2683_v43 = vmul.f32 0.25, %v2347_v34  ;;  %v2348_v44 = vadd.f32 %v2001_v35, %v2000_v33  ;;  %v2003_v46 = vadd.f32 %v1311_v42, %v1309_v37  ;;  %v1313_v49 = vld [vmem:[%s10783_s0 + $0x28c8] sm:$0x7f] }
 0x2f8   :  { %v4002_v48 = vsel %vm4104_vm2, %v3018_v39, %v4001_v31  ;;  %v1314_v50 = vld [vmem:[%s10783_s0 + $0x28d0] sm:$0x7f]  ;;  %v1315_v51 = vld [vmem:[%s10783_s0 + $0x28d8] sm:$0x7f]  ;;  %v1316_v58 = vld [vmem:[%s10783_s0 + $0x28e0] sm:$0x7f] }
 0x2f9   :  { %4003 = vst [vmem:[%s10784_s1 + $0x508] sm:$0xf] %v4002_v48  ;;  %v3019_v52 = vpack.c.bf16 %v2683_v43, %v2683_v43  ;;  %v2684_v53 = vmul.f32 0.25, %v2348_v44  ;;  %v4007_v54 = vld [vmem:[%s10784_s1 + $0x510] sm:$0xf]  ;;  %v2349_v55 = vadd.f32 %v2003_v46, %v2002_v45  ;;  %v2004_v56 = vadd.f32 %v1314_v50, %v1312_v47 }
 0x2fa   :  { %v2005_v57 = vadd.f32 %v1315_v51, %v1313_v49  ;;  %v1317_v59 = vld [vmem:[%s10783_s0 + $0x28e8] sm:$0x7f]  ;;  %v1318_v60 = vld [vmem:[%s10783_s0 + $0x28f0] sm:$0x7f]  ;;  %v1319_v1 = vld [vmem:[%s10783_s0 + $0x28f8] sm:$0x7f] }
 0x2fb   :  { %v4005_v61 = vsel %vm4104_vm2, %v3019_v52, %v4004_v40  ;;  %v3020_v62 = vpack.c.bf16 %v2684_v53, %v2684_v53  ;;  %v2685_v63 = vmul.f32 0.25, %v2349_v55  ;;  %v4010_v0 = vld [vmem:[%s10784_s1 + $0x514] sm:$0xf]  ;;  %v2006_v2 = vadd.f32 %v1318_v60, %v1316_v58  ;;  %v1320_v5 = vld [vmem:[%s10783_s0 + $0x2900] sm:$0x7f] }
 0x2fc   :  { %4006 = vst [vmem:[%s10784_s1 + $0x50c] sm:$0xf] %v4005_v61  ;;  %v2350_v3 = vadd.f32 %v2005_v57, %v2004_v56  ;;  %v2007_v4 = vadd.f32 %v1319_v1, %v1317_v59  ;;  %v1321_v6 = vld [vmem:[%s10783_s0 + $0x2908] sm:$0x7f]  ;;  %v4013_v9 = vld [vmem:[%s10784_s1 + $0x518] sm:$0xf] }
 0x2fd   :  { %v4008_v7 = vsel %vm4104_vm2, %v3020_v62, %v4007_v54  ;;  %v3021_v8 = vpack.c.bf16 %v2685_v63, %v2685_v63  ;;  %v1322_v10 = vld [vmem:[%s10783_s0 + $0x2910] sm:$0x7f]  ;;  %v1323_v11 = vld [vmem:[%s10783_s0 + $0x2918] sm:$0x7f]  ;;  %v1324_v16 = vld [vmem:[%s10783_s0 + $0x2920] sm:$0x7f] }
 0x2fe   :  { %4009 = vst [vmem:[%s10784_s1 + $0x510] sm:$0xf] %v4008_v7  ;;  %v2686_v12 = vmul.f32 0.25, %v2350_v3  ;;  %v2351_v13 = vadd.f32 %v2007_v4, %v2006_v2  ;;  %v2008_v14 = vadd.f32 %v1322_v10, %v1320_v5  ;;  %v2009_v15 = vadd.f32 %v1323_v11, %v1321_v6  ;;  %v1325_v18 = vld [vmem:[%s10783_s0 + $0x2928] sm:$0x7f] }
 0x2ff   :  { %v4011_v17 = vsel %vm4104_vm2, %v3021_v8, %v4010_v0  ;;  %v1326_v19 = vld [vmem:[%s10783_s0 + $0x2930] sm:$0x7f]  ;;  %v1327_v20 = vld [vmem:[%s10783_s0 + $0x2938] sm:$0x7f]  ;;  %v1328_v28 = vld [vmem:[%s10783_s0 + $0x2940] sm:$0x7f] }
 0x300   :  { %4012 = vst [vmem:[%s10784_s1 + $0x514] sm:$0xf] %v4011_v17  ;;  %v3022_v21 = vpack.c.bf16 %v2686_v12, %v2686_v12  ;;  %v2687_v22 = vmul.f32 0.25, %v2351_v13  ;;  %v4016_v24 = vld [vmem:[%s10784_s1 + $0x51c] sm:$0xf]  ;;  %v2352_v25 = vadd.f32 %v2009_v15, %v2008_v14  ;;  %v2010_v26 = vadd.f32 %v1326_v19, %v1324_v16 }
 0x301   :  { %v2011_v27 = vadd.f32 %v1327_v20, %v1325_v18  ;;  %v1329_v29 = vld [vmem:[%s10783_s0 + $0x2948] sm:$0x7f]  ;;  %v1330_v30 = vld [vmem:[%s10783_s0 + $0x2950] sm:$0x7f]  ;;  %v4019_v34 = vld [vmem:[%s10784_s1 + $0x520] sm:$0xf] }
 0x302   :  { %v4014_v31 = vsel %vm4104_vm2, %v3022_v21, %v4013_v9  ;;  %v3023_v32 = vpack.c.bf16 %v2687_v22, %v2687_v22  ;;  %v2688_v33 = vmul.f32 0.25, %v2352_v25  ;;  %v1331_v35 = vld [vmem:[%s10783_s0 + $0x2958] sm:$0x7f]  ;;  %v2012_v36 = vadd.f32 %v1330_v30, %v1328_v28  ;;  %v1332_v39 = vld [vmem:[%s10783_s0 + $0x2960] sm:$0x7f] }
 0x303   :  { %4015 = vst [vmem:[%s10784_s1 + $0x518] sm:$0xf] %v4014_v31  ;;  %v2353_v37 = vadd.f32 %v2011_v27, %v2010_v26  ;;  %v2013_v38 = vadd.f32 %v1331_v35, %v1329_v29  ;;  %v1333_v40 = vld [vmem:[%s10783_s0 + $0x2968] sm:$0x7f]  ;;  %v4022_v43 = vld [vmem:[%s10784_s1 + $0x524] sm:$0xf] }
 0x304   :  { %v4017_v41 = vsel %vm4104_vm2, %v3023_v32, %v4016_v24  ;;  %v3024_v42 = vpack.c.bf16 %v2688_v33, %v2688_v33  ;;  %v1334_v44 = vld [vmem:[%s10783_s0 + $0x2970] sm:$0x7f]  ;;  %v1335_v45 = vld [vmem:[%s10783_s0 + $0x2978] sm:$0x7f]  ;;  %v1336_v50 = vld [vmem:[%s10783_s0 + $0x2980] sm:$0x7f] }
 0x305   :  { %4018 = vst [vmem:[%s10784_s1 + $0x51c] sm:$0xf] %v4017_v41  ;;  %v2689_v46 = vmul.f32 0.25, %v2353_v37  ;;  %v2354_v47 = vadd.f32 %v2013_v38, %v2012_v36  ;;  %v2014_v48 = vadd.f32 %v1334_v44, %v1332_v39  ;;  %v2015_v49 = vadd.f32 %v1335_v45, %v1333_v40  ;;  %v1337_v52 = vld [vmem:[%s10783_s0 + $0x2988] sm:$0x7f] }
 0x306   :  { %v4020_v51 = vsel %vm4104_vm2, %v3024_v42, %v4019_v34  ;;  %v1338_v53 = vld [vmem:[%s10783_s0 + $0x2990] sm:$0x7f]  ;;  %v1339_v54 = vld [vmem:[%s10783_s0 + $0x2998] sm:$0x7f]  ;;  %v4025_v57 = vld [vmem:[%s10784_s1 + $0x528] sm:$0xf] }
 0x307   :  { %4021 = vst [vmem:[%s10784_s1 + $0x520] sm:$0xf] %v4020_v51  ;;  %v3025_v55 = vpack.c.bf16 %v2689_v46, %v2689_v46  ;;  %v2690_v56 = vmul.f32 0.25, %v2354_v47  ;;  %v2355_v58 = vadd.f32 %v2015_v49, %v2014_v48  ;;  %v2016_v59 = vadd.f32 %v1338_v53, %v1336_v50  ;;  %v1340_v61 = vld [vmem:[%s10783_s0 + $0x29a0] sm:$0x7f] }
 0x308   :  { %v2017_v60 = vadd.f32 %v1339_v54, %v1337_v52  ;;  %v1341_v62 = vld [vmem:[%s10783_s0 + $0x29a8] sm:$0x7f]  ;;  %v1342_v63 = vld [vmem:[%s10783_s0 + $0x29b0] sm:$0x7f]  ;;  %v1343_v4 = vld [vmem:[%s10783_s0 + $0x29b8] sm:$0x7f] }
 0x309   :  { %v4023_v0 = vsel %vm4104_vm2, %v3025_v55, %v4022_v43  ;;  %v3026_v1 = vpack.c.bf16 %v2690_v56, %v2690_v56  ;;  %v2691_v2 = vmul.f32 0.25, %v2355_v58  ;;  %v4028_v3 = vld [vmem:[%s10784_s1 + $0x52c] sm:$0xf]  ;;  %v2018_v5 = vadd.f32 %v1342_v63, %v1340_v61  ;;  %v1344_v8 = vld [vmem:[%s10783_s0 + $0x29c0] sm:$0x7f] }
 0x30a   :  { %4024 = vst [vmem:[%s10784_s1 + $0x524] sm:$0xf] %v4023_v0  ;;  %v2356_v6 = vadd.f32 %v2017_v60, %v2016_v59  ;;  %v2019_v7 = vadd.f32 %v1343_v4, %v1341_v62  ;;  %v1345_v9 = vld [vmem:[%s10783_s0 + $0x29c8] sm:$0x7f]  ;;  %v4031_v12 = vld [vmem:[%s10784_s1 + $0x530] sm:$0xf] }
 0x30b   :  { %v4026_v10 = vsel %vm4104_vm2, %v3026_v1, %v4025_v57  ;;  %v3027_v11 = vpack.c.bf16 %v2691_v2, %v2691_v2  ;;  %v1346_v13 = vld [vmem:[%s10783_s0 + $0x29d0] sm:$0x7f]  ;;  %v1347_v14 = vld [vmem:[%s10783_s0 + $0x29d8] sm:$0x7f]  ;;  %v1348_v19 = vld [vmem:[%s10783_s0 + $0x29e0] sm:$0x7f] }
 0x30c   :  { %4027 = vst [vmem:[%s10784_s1 + $0x528] sm:$0xf] %v4026_v10  ;;  %v2692_v15 = vmul.f32 0.25, %v2356_v6  ;;  %v2357_v16 = vadd.f32 %v2019_v7, %v2018_v5  ;;  %v2020_v17 = vadd.f32 %v1346_v13, %v1344_v8  ;;  %v2021_v18 = vadd.f32 %v1347_v14, %v1345_v9  ;;  %v1349_v21 = vld [vmem:[%s10783_s0 + $0x29e8] sm:$0x7f] }
 0x30d   :  { %v4029_v20 = vsel %vm4104_vm2, %v3027_v11, %v4028_v3  ;;  %v1350_v22 = vld [vmem:[%s10783_s0 + $0x29f0] sm:$0x7f]  ;;  %v1351_v24 = vld [vmem:[%s10783_s0 + $0x29f8] sm:$0x7f] }
 0x30e   :  { %4030 = vst [vmem:[%s10784_s1 + $0x52c] sm:$0xf] %v4029_v20  ;;  %v3028_v25 = vpack.c.bf16 %v2692_v15, %v2692_v15  ;;  %v2693_v26 = vmul.f32 0.25, %v2357_v16  ;;  %v2358_v27 = vadd.f32 %v2021_v18, %v2020_v17  ;;  %v2022_v28 = vadd.f32 %v1350_v22, %v1348_v19  ;;  %v4034_v29 = vld [vmem:[%s10784_s1 + $0x534] sm:$0xf] }
 0x30f   :  { %v2023_v30 = vadd.f32 %v1351_v24, %v1349_v21  ;;  %v4037_v34 = vld [vmem:[%s10784_s1 + $0x538] sm:$0xf]  ;;  %v4040_v40 = vld [vmem:[%s10784_s1 + $0x53c] sm:$0xf] }
 0x310   :  { %v4032_v31 = vsel %vm4104_vm2, %v3028_v25, %v4031_v12  ;;  %v3029_v32 = vpack.c.bf16 %v2693_v26, %v2693_v26  ;;  %v2694_v33 = vmul.f32 0.25, %v2358_v27 }
 0x311   :  { %4033 = vst [vmem:[%s10784_s1 + $0x530] sm:$0xf] %v4032_v31  ;;  %v2359_v35 = vadd.f32 %v2023_v30, %v2022_v28 }
 0x312   :  { %v4035_v36 = vsel %vm4104_vm2, %v3029_v32, %v4034_v29  ;;  %v3030_v37 = vpack.c.bf16 %v2694_v33, %v2694_v33 }
 0x313   :  { %4036 = vst [vmem:[%s10784_s1 + $0x534] sm:$0xf] %v4035_v36  ;;  %v2695_v38 = vmul.f32 0.25, %v2359_v35 }
 0x314   :  { %v4038_v39 = vsel %vm4104_vm2, %v3030_v37, %v4037_v34 }
 0x315   :  { %4039 = vst [vmem:[%s10784_s1 + $0x538] sm:$0xf] %v4038_v39  ;;  %v3031_v41 = vpack.c.bf16 %v2695_v38, %v2695_v38 }
 0x317   :  { %v4041_v42 = vsel %vm4104_vm2, %v3031_v41, %v4040_v40 }
 0x318   :  { %4042 = vst [vmem:[%s10784_s1 + $0x53c] sm:$0xf] %v4041_v42 }

</bundles_post_ra>
